<compile_context>
chip_gen: v7x
topology: tpu7x:2x2x1
jax: 0.10.0
libtpu: 0.0.40
codegen_flags: <defaults>
</compile_context>

<pallas_src>
import functools

import jax
import jax.numpy as jnp
from jax import lax
from jax.experimental import pallas as pl
from jax.experimental.pallas import tpu as pltpu

WINDOW = 16          # small stand-in for the real WINDOW=200
HIDDEN = 32          # lstm hidden_size
NUM_CLASSES = 2
BATCH = 2
KSIZE = 8
PAD = 4

_VMEM = functools.partial(pl.BlockSpec, memory_space=pltpu.MemorySpace.VMEM)


# ------------------------------ fused kernel --------------------------------

def _fused_forward_kernel(x_ref, w1_ref, b1_ref, w2_ref, b2_ref,
                          wx0f_ref, wx0b_ref, wh0_ref, bb0_ref,
                          wq1_ref, wr1_ref, wh1_ref, bb1_ref,
                          fc1w_ref, fc1b_ref, fc2w_ref, fc2b_ref,
                          o_ref,
                          x1p_ref, y1p_ref, pf0_ref, pb0_ref, q1_ref, r1_ref,
                          h0_ref, *, B, W, H, K, pad, unroll):
    """conv1 -> conv2 -> BiLSTM(2 layers, fused fwd+bwd) -> mean -> fc1 -> fc2.

    All activations are time-major: rows are ordered (t, b) so every per-step
    access in the recurrences is a plain dynamic leading-index load/store.
    """
    f32 = jnp.float32
    Cin = x_ref.shape[2]                 # 2
    C1 = w1_ref.shape[1]                 # 32
    C2 = w2_ref.shape[1]                 # 64
    L1 = W + 2 * pad - K + 1             # conv1 output length  (W + 1)
    T = L1 + 2 * pad - K + 1             # conv2 output length  (W + 2)
    H2 = 2 * H                           # fused fwd|bwd state width
    G = 8 * H                            # fused gate width  [i|f|g|o] x [f|b]

    # ---------------- conv1: im2col + single matmul + ReLU ----------------
    x1p_ref[:pad] = jnp.zeros((pad, B, Cin), f32)          # zero halos only
    x1p_ref[pad + W:] = jnp.zeros((pad, B, Cin), f32)
    x1p_ref[pad:pad + W] = x_ref[...]
    p1 = jnp.concatenate([x1p_ref[k:k + L1] for k in range(K)], axis=-1)
    y1 = jnp.maximum(
        jnp.dot(p1.reshape(L1 * B, K * Cin), w1_ref[...],
                preferred_element_type=f32) + b1_ref[...], 0.0)

    # ---------------- conv2: im2col + single matmul + ReLU ----------------
    y1p_ref[:pad] = jnp.zeros((pad, B, C1), f32)
    y1p_ref[pad + L1:] = jnp.zeros((pad, B, C1), f32)
    y1p_ref[pad:pad + L1] = y1.reshape(L1, B, C1)
    p2 = jnp.concatenate([y1p_ref[k:k + T] for k in range(K)], axis=-1)
    y2 = jnp.maximum(
        jnp.dot(p2.reshape(T * B, K * C1), w2_ref[...],
                preferred_element_type=f32) + b2_ref[...], 0.0)   # (T*B, C2)

    # ------- layer 0: hoisted input-gate projections (off the serial path) ----
    pf0_ref[...] = jnp.dot(y2, wx0f_ref[...],
                           preferred_element_type=f32).reshape(T, B, G)
    pb0_ref[...] = jnp.dot(y2, wx0b_ref[...],
                           preferred_element_type=f32).reshape(T, B, G)

    def cell(g, c):
        # i/f/o columns were pre-scaled by 0.5 in pack_params, so one tanh over
        # the whole gate block gives sigmoid(z)=0.5*tanh(z/2)+0.5 for i/f/o and
        # tanh(z) for g.  Only tanh(c_new) remains as a second EUP op.
        t = jnp.tanh(g)
        i_ = 0.5 * t[:, 0 * H2:1 * H2] + 0.5
        f_ = 0.5 * t[:, 1 * H2:2 * H2] + 0.5
        gg = t[:, 2 * H2:3 * H2]
        o_ = 0.5 * t[:, 3 * H2:4 * H2] + 0.5
        c_new = f_ * c + i_ * gg
        return o_ * jnp.tanh(c_new), c_new

    wh0 = wh0_ref[...]
    bg0 = bb0_ref[...]
    z2 = jnp.zeros((B, H2), f32)

    def step0(s, carry):
        h, c = carry
        g = (pf0_ref[s] + pb0_ref[T - 1 - s]
             + jnp.dot(h, wh0, preferred_element_type=f32) + bg0)
        h, c = cell(g, c)
        h0_ref[s] = h            # single full-width (B, 2H) store per step
        return h, c

    lax.fori_loop(0, T, step0, (z2, z2), unroll=unroll)

    # ------- layer 1: hoisted projections (reindexing folded into wq1/wr1) ----
    h0_all = h0_ref[...].reshape(T * B, H2)
    q1_ref[...] = jnp.dot(h0_all, wq1_ref[...],
                          preferred_element_type=f32).reshape(T, B, G)
    r1_ref[...] = jnp.dot(h0_all, wr1_ref[...],
                          preferred_element_type=f32).reshape(T, B, G)

    wh1 = wh1_ref[...]
    bg1 = bb1_ref[...]

    def step1(s, carry):
        h, c, acc = carry
        g = (q1_ref[s] + r1_ref[T - 1 - s]
             + jnp.dot(h, wh1, preferred_element_type=f32) + bg1)
        h, c = cell(g, c)
        return h, c, acc + h     # acc accumulates sum_t [h_f(t) | h_b(t)]

    _, _, acc = lax.fori_loop(0, T, step1, (z2, z2, z2), unroll=unroll)

    # ------------------- mean over time + fc1(ReLU) + fc2 -------------------
    pooled = acc * (1.0 / T)
    y = jnp.maximum(
        jnp.dot(pooled, fc1w_ref[...], preferred_element_type=f32)
        + fc1b_ref[...], 0.0)
    o_ref[...] = (jnp.dot(y, fc2w_ref[...], preferred_element_type=f32)
                  + fc2b_ref[...])


# ------------------------------ kernel wrapper -------------------------------

def fused_forward(x_tm, pp, *, hidden, num_classes):
    W, B, Cin = x_tm.shape
    K, pad = KSIZE, PAD
    L1 = W + 2 * pad - K + 1
    T = L1 + 2 * pad - K + 1
    C1 = pp['w1'].shape[1]
    G = 8 * hidden
    # partial unroll for long sequences (real WINDOW=200), full unroll if short
    unroll = T if T <= 32 else 8
    kernel = functools.partial(_fused_forward_kernel, B=B, W=W, H=hidden, K=K,
                               pad=pad, unroll=unroll)
    return pl.pallas_call(
        kernel,
        out_shape=jax.ShapeDtypeStruct((B, num_classes), jnp.float32),
        in_specs=[_VMEM()] * 17,
        out_specs=_VMEM(),
        scratch_shapes=[
            pltpu.VMEM((W + 2 * pad, B, Cin), jnp.float32),   # padded conv1 in
            pltpu.VMEM((L1 + 2 * pad, B, C1), jnp.float32),   # padded conv1 out
            pltpu.VMEM((T, B, G), jnp.float32),               # layer0 fwd proj
            pltpu.VMEM((T, B, G), jnp.float32),               # layer0 bwd proj
            pltpu.VMEM((T, B, G), jnp.float32),               # layer1 Q proj
            pltpu.VMEM((T, B, G), jnp.float32),               # layer1 R proj
            pltpu.VMEM((T, B, 2 * hidden), jnp.float32),      # layer0 hidden seq
        ],
    )(x_tm, pp['w1'], pp['b1'], pp['w2'], pp['b2'],
      pp['wx0f'], pp['wx0b'], pp['wh0'], pp['b0'],
      pp['wq1'], pp['wr1'], pp['wh1'], pp['b1l'],
      pp['fc1w'], pp['fc1b'], pp['fc2w'], pp['fc2b'])


def forward(x, pp, *, hidden=HIDDEN, num_classes=NUM_CLASSES):
    """x: (2, B, W) = stacked [forward_seq, reverse_seq]; pp: packed params."""
    # torch: h = cat([fwd, rev], 1).view(B, 2, W)  (channels-first); the kernel
    # consumes the time-major channels-last equivalent (W, B, 2) -- this single
    # transpose is the only XLA glue left.
    x_tm = jnp.transpose(x, (2, 1, 0)).astype(jnp.float32)
    return fused_forward(x_tm, pp, hidden=hidden, num_classes=num_classes)


# ------------------------------ weight packing -------------------------------

def pack_params(p, hidden):
    """One-time packing: im2col conv weights, fused fwd+bwd block-structured
    LSTM matrices (hoisted-projection layout), 0.5 pre-scale on i/f/o gate
    columns (sigmoid-via-tanh), and pre-transposed FC weights."""
    H = hidden
    H2 = 2 * H
    G = 8 * H

    # column scale implementing sigmoid(z) = 0.5*tanh(z/2)+0.5 for gates i,f,o
    gate_scale = jnp.concatenate([
        jnp.full((H2,), 0.5), jnp.full((H2,), 0.5),
        jnp.ones((H2,)), jnp.full((H2,), 0.5)]).astype(jnp.float32)

    def col(g, half):      # columns of gate block g (0..3), half 0=fwd 1=bwd
        s = g * H2 + half * H
        return slice(s, s + H)

    def pack_x(wih, half):           # (4H, In) torch -> (In, G) placed columns
        In = wih.shape[1]
        Wm = jnp.zeros((In, G), jnp.float32)
        for g in range(4):           # PyTorch gate order: i, f, g, o
            Wm = Wm.at[:, col(g, half)].set(wih[g * H:(g + 1) * H, :].T)
        return Wm

    def pack_h(whh_f, whh_b):
        Wm = jnp.zeros((H2, G), jnp.float32)
        for g in range(4):
            Wm = Wm.at[0:H, col(g, 0)].set(whh_f[g * H:(g + 1) * H, :].T)
            Wm = Wm.at[H:H2, col(g, 1)].set(whh_b[g * H:(g + 1) * H, :].T)
        return Wm

    def pack_b(bih_f, bhh_f, bih_b, bhh_b):
        b = jnp.zeros((1, G), jnp.float32)
        for g in range(4):
            rg = slice(g * H, (g + 1) * H)
            b = b.at[0, col(g, 0)].set(bih_f[rg] + bhh_f[rg])
            b = b.at[0, col(g, 1)].set(bih_b[rg] + bhh_b[rg])
        return b

    wih0f, whh0f, bih0f, bhh0f = p['l0f']
    wih0b, whh0b, bih0b, bhh0b = p['l0b']
    wih1f, whh1f, bih1f, bhh1f = p['l1f']
    wih1b, whh1b, bih1b, bhh1b = p['l1b']

    pp = {}
    # conv weights (O, C, K) -> im2col layout (K*C, O)
    K = p['w1'].shape[2]
    pp['w1'] = jnp.transpose(p['w1'], (2, 1, 0)).reshape(K * p['w1'].shape[1], -1)
    pp['b1'] = p['b1'].reshape(1, -1)
    pp['w2'] = jnp.transpose(p['w2'], (2, 1, 0)).reshape(K * p['w2'].shape[1], -1)
    pp['b2'] = p['b2'].reshape(1, -1)

    # layer 0
    pp['wx0f'] = pack_x(wih0f, 0) * gate_scale
    pp['wx0b'] = pack_x(wih0b, 1) * gate_scale
    pp['wh0'] = pack_h(whh0f, whh0b) * gate_scale
    pp['b0'] = pack_b(bih0f, bhh0f, bih0b, bhh0b) * gate_scale

    # layer 1: the layer-0 scratch stores h0[s] = [hf(s) | hb(T-1-s)], so fold
    # the fwd/bwd time re-indexing into the packed projections:
    #   Q(s) = h0[s] @ wq1   -> hf(s)    to fwd cols, hb(T-1-s) to bwd cols
    #   R(s) = h0[s] @ wr1   -> hf(s)    to bwd cols, hb(T-1-s) to fwd cols
    #   gate_in(step s) = Q(s) + R(T-1-s)
    wq1 = jnp.zeros((H2, G), jnp.float32)
    wr1 = jnp.zeros((H2, G), jnp.float32)
    for g in range(4):
        rg = slice(g * H, (g + 1) * H)
        wq1 = wq1.at[0:H, col(g, 0)].set(wih1f[rg, 0:H].T)
        wq1 = wq1.at[H:H2, col(g, 1)].set(wih1b[rg, H:H2].T)
        wr1 = wr1.at[0:H, col(g, 1)].set(wih1b[rg, 0:H].T)
        wr1 = wr1.at[H:H2, col(g, 0)].set(wih1f[rg, H:H2].T)
    pp['wq1'] = wq1 * gate_scale
    pp['wr1'] = wr1 * gate_scale
    pp['wh1'] = pack_h(whh1f, whh1b) * gate_scale
    pp['b1l'] = pack_b(bih1f, bhh1f, bih1b, bhh1b) * gate_scale

    pp['fc1w'] = p['fc1_w'].T
    pp['fc1b'] = p['fc1_b'].reshape(1, -1)
    pp['fc2w'] = p['fc2_w'].T
    pp['fc2b'] = p['fc2_b'].reshape(1, -1)
    return pp


# ----------------------------- pure-JAX reference ----------------------------

def ref_forward(x, p, hidden):
    fwd, rev = x[0], x[1]
    B = fwd.shape[0]
    h = jnp.concatenate([fwd, rev], axis=1).reshape(B, 2, -1)

    def conv(h, w, b):
        y = lax.conv_general_dilated(h, w, window_strides=(1,), padding=[(4, 4)],
                                     dimension_numbers=('NCH', 'OIH', 'NCH'),
                                     precision=lax.Precision.HIGHEST)
        return jax.nn.relu(y + b[None, :, None])

    h = conv(h, p['w1'], p['b1'])
    h = conv(h, p['w2'], p['b2'])
    h = h.transpose(0, 2, 1)

    def lstm_dir(xs, wih, whh, bih, bhh):
        def step(carry, xt):
            hp, cp = carry
            g = xt @ wih.T + bih + bhh + hp @ whh.T
            i = jax.nn.sigmoid(g[:, :hidden])
            f = jax.nn.sigmoid(g[:, hidden:2 * hidden])
            gg = jnp.tanh(g[:, 2 * hidden:3 * hidden])
            o = jax.nn.sigmoid(g[:, 3 * hidden:])
            c = f * cp + i * gg
            hh = o * jnp.tanh(c)
            return (hh, c), hh
        h0 = jnp.zeros((xs.shape[0], hidden), jnp.float32)
        _, hs = lax.scan(step, (h0, jnp.zeros_like(h0)), xs.transpose(1, 0, 2))
        return hs.transpose(1, 0, 2)

    def bilayer(xs, pf, pb):
        hf = lstm_dir(xs, *pf)
        hb = lstm_dir(xs[:, ::-1, :], *pb)[:, ::-1, :]
        return jnp.concatenate([hf, hb], axis=-1)

    h = bilayer(h, p['l0f'], p['l0b'])
    h = bilayer(h, p['l1f'], p['l1b'])
    pooled = h.mean(axis=1)
    out = jax.nn.relu(pooled @ p['fc1_w'].T + p['fc1_b'])
    return out @ p['fc2_w'].T + p['fc2_b']


# ---------------------------------- params -----------------------------------

def init_params(key, hidden, num_classes):
    keys = iter(jax.random.split(key, 32))

    def u(shape, fan_in):
        bound = 1.0 / (fan_in ** 0.5)
        return jax.random.uniform(next(keys), shape, jnp.float32, -bound, bound)

    p = {}
    p['w1'], p['b1'] = u((32, 2, 8), 2 * 8), u((32,), 2 * 8)
    p['w2'], p['b2'] = u((64, 32, 8), 32 * 8), u((64,), 32 * 8)

    def lstm_p(in_size):
        return (u((4 * hidden, in_size), hidden), u((4 * hidden, hidden), hidden),
                u((4 * hidden,), hidden), u((4 * hidden,), hidden))

    p['l0f'], p['l0b'] = lstm_p(64), lstm_p(64)
    p['l1f'], p['l1b'] = lstm_p(2 * hidden), lstm_p(2 * hidden)
    p['fc1_w'], p['fc1_b'] = u((128, 2 * hidden), 2 * hidden), u((128,), 2 * hidden)
    p['fc2_w'], p['fc2_b'] = u((num_classes, 128), 128), u((num_classes,), 128)
    return p


# ------------------------------------ main ------------------------------------

if __name__ == "__main__":
    key = jax.random.PRNGKey(0)
    kx, kp = jax.random.split(key)
    # x[0] = forward_seq (B, W), x[1] = reverse_seq (B, W)
    x = jax.random.normal(kx, (2, BATCH, WINDOW), dtype=jnp.float32)
    params = init_params(kp, HIDDEN, NUM_CLASSES)
    packed = pack_params(params, HIDDEN)

    out = jax.block_until_ready(jax.jit(forward)(x, packed))
    ref = jax.block_until_ready(
        jax.jit(functools.partial(ref_forward, hidden=HIDDEN))(x, params))

    assert out.shape == (BATCH, NUM_CLASSES)
    assert bool(jnp.all(jnp.isfinite(out)))
    assert bool(jnp.allclose(out, ref, atol=1e-2, rtol=1e-2))
    print("KERNEL_OK")
</pallas_src>

<mosaic_0001>
module attributes {stable_mosaic.version = 11 : i64} {
  func.func @_fused_forward_kernel(%arg0: memref<16x2x2xf32, #tpu.memory_space<vmem>>, %arg1: memref<16x32xf32, #tpu.memory_space<vmem>>, %arg2: memref<1x32xf32, #tpu.memory_space<vmem>>, %arg3: memref<256x64xf32, #tpu.memory_space<vmem>>, %arg4: memref<1x64xf32, #tpu.memory_space<vmem>>, %arg5: memref<64x256xf32, #tpu.memory_space<vmem>>, %arg6: memref<64x256xf32, #tpu.memory_space<vmem>>, %arg7: memref<64x256xf32, #tpu.memory_space<vmem>>, %arg8: memref<1x256xf32, #tpu.memory_space<vmem>>, %arg9: memref<64x256xf32, #tpu.memory_space<vmem>>, %arg10: memref<64x256xf32, #tpu.memory_space<vmem>>, %arg11: memref<64x256xf32, #tpu.memory_space<vmem>>, %arg12: memref<1x256xf32, #tpu.memory_space<vmem>>, %arg13: memref<64x128xf32, #tpu.memory_space<vmem>>, %arg14: memref<1x128xf32, #tpu.memory_space<vmem>>, %arg15: memref<128x2xf32, #tpu.memory_space<vmem>>, %arg16: memref<1x2xf32, #tpu.memory_space<vmem>>, %arg17: memref<2x2xf32, #tpu.memory_space<vmem>>, %arg18: memref<24x2x2xf32, #tpu.memory_space<vmem>>, %arg19: memref<25x2x32xf32, #tpu.memory_space<vmem>>, %arg20: memref<18x2x256xf32, #tpu.memory_space<vmem>>, %arg21: memref<18x2x256xf32, #tpu.memory_space<vmem>>, %arg22: memref<18x2x256xf32, #tpu.memory_space<vmem>>, %arg23: memref<18x2x256xf32, #tpu.memory_space<vmem>>, %arg24: memref<18x2x64xf32, #tpu.memory_space<vmem>>) attributes {dimension_semantics = [], scalar_prefetch = 0 : i64, scratch_operands = 7 : i64, tpu.core_type = #tpu.core_type<tc>} {
    %cst = arith.constant 0.000000e+00 : f32
    %0 = vector.broadcast %cst : f32 to vector<4x2x2xf32>
    %c0 = arith.constant 0 : index
    %c0_0 = arith.constant 0 : index
    %c0_1 = arith.constant 0 : index
    %1 = vector.load %arg18[%c0, %c0_0, %c0_1] : memref<24x2x2xf32, #tpu.memory_space<vmem>>, vector<4x2x2xf32>
    tpu.vector_store %arg18[%c0, %c0_0, %c0_1], %0 {strides = array<i32>} : memref<24x2x2xf32, #tpu.memory_space<vmem>>, vector<4x2x2xf32>,
    %cst_2 = arith.constant 0.000000e+00 : f32
    %2 = vector.broadcast %cst_2 : f32 to vector<4x2x2xf32>
    %c20 = arith.constant 20 : index
    %c0_3 = arith.constant 0 : index
    %c0_4 = arith.constant 0 : index
    %3 = vector.load %arg18[%c20, %c0_3, %c0_4] : memref<24x2x2xf32, #tpu.memory_space<vmem>>, vector<4x2x2xf32>
    tpu.vector_store %arg18[%c20, %c0_3, %c0_4], %2 {strides = array<i32>} : memref<24x2x2xf32, #tpu.memory_space<vmem>>, vector<4x2x2xf32>,
    %c0_5 = arith.constant 0 : index
    %c0_6 = arith.constant 0 : index
    %c0_7 = arith.constant 0 : index
    %4 = vector.load %arg0[%c0_5, %c0_6, %c0_7] : memref<16x2x2xf32, #tpu.memory_space<vmem>>, vector<16x2x2xf32>
    %c4 = arith.constant 4 : index
    %c0_8 = arith.constant 0 : index
    %c0_9 = arith.constant 0 : index
    %5 = vector.load %arg18[%c4, %c0_8, %c0_9] : memref<24x2x2xf32, #tpu.memory_space<vmem>>, vector<16x2x2xf32>
    tpu.vector_store %arg18[%c4, %c0_8, %c0_9], %4 {strides = array<i32>} : memref<24x2x2xf32, #tpu.memory_space<vmem>>, vector<16x2x2xf32>,
    %c0_10 = arith.constant 0 : index
    %c0_11 = arith.constant 0 : index
    %c0_12 = arith.constant 0 : index
    %6 = vector.load %arg18[%c0_10, %c0_11, %c0_12] : memref<24x2x2xf32, #tpu.memory_space<vmem>>, vector<17x2x2xf32>
    %c1 = arith.constant 1 : index
    %c0_13 = arith.constant 0 : index
    %c0_14 = arith.constant 0 : index
    %7 = vector.load %arg18[%c1, %c0_13, %c0_14] : memref<24x2x2xf32, #tpu.memory_space<vmem>>, vector<17x2x2xf32>
    %c2 = arith.constant 2 : index
    %c0_15 = arith.constant 0 : index
    %c0_16 = arith.constant 0 : index
    %8 = vector.load %arg18[%c2, %c0_15, %c0_16] : memref<24x2x2xf32, #tpu.memory_space<vmem>>, vector<17x2x2xf32>
    %c3 = arith.constant 3 : index
    %c0_17 = arith.constant 0 : index
    %c0_18 = arith.constant 0 : index
    %9 = vector.load %arg18[%c3, %c0_17, %c0_18] : memref<24x2x2xf32, #tpu.memory_space<vmem>>, vector<17x2x2xf32>
    %c4_19 = arith.constant 4 : index
    %c0_20 = arith.constant 0 : index
    %c0_21 = arith.constant 0 : index
    %10 = vector.load %arg18[%c4_19, %c0_20, %c0_21] : memref<24x2x2xf32, #tpu.memory_space<vmem>>, vector<17x2x2xf32>
    %c5 = arith.constant 5 : index
    %c0_22 = arith.constant 0 : index
    %c0_23 = arith.constant 0 : index
    %11 = vector.load %arg18[%c5, %c0_22, %c0_23] : memref<24x2x2xf32, #tpu.memory_space<vmem>>, vector<17x2x2xf32>
    %c6 = arith.constant 6 : index
    %c0_24 = arith.constant 0 : index
    %c0_25 = arith.constant 0 : index
    %12 = vector.load %arg18[%c6, %c0_24, %c0_25] : memref<24x2x2xf32, #tpu.memory_space<vmem>>, vector<17x2x2xf32>
    %c7 = arith.constant 7 : index
    %c0_26 = arith.constant 0 : index
    %c0_27 = arith.constant 0 : index
    %13 = vector.load %arg18[%c7, %c0_26, %c0_27] : memref<24x2x2xf32, #tpu.memory_space<vmem>>, vector<17x2x2xf32>
    %14 = tpu.concatenate %6, %7, %8, %9, %10, %11, %12, %13 in 2 : vector<17x2x2xf32>, vector<17x2x2xf32>, vector<17x2x2xf32>, vector<17x2x2xf32>, vector<17x2x2xf32>, vector<17x2x2xf32>, vector<17x2x2xf32>, vector<17x2x2xf32> -> vector<17x2x16xf32>
    %15 = vector.shape_cast %14 : vector<17x2x16xf32> to vector<34x16xf32>
    %c0_28 = arith.constant 0 : index
    %c0_29 = arith.constant 0 : index
    %16 = vector.load %arg1[%c0_28, %c0_29] : memref<16x32xf32, #tpu.memory_space<vmem>>, vector<16x32xf32>
    %cst_30 = arith.constant dense<0.000000e+00> : vector<34x32xf32>
    %17 = tpu.matmul %15, %16, %cst_30 {dimension_numbers = #tpu.dot_dimension_numbers<[1], [0], [0], [1], [0, 0, 1, 1], [], []>} : vector<34x16xf32>, vector<16x32xf32>, vector<34x32xf32> -> vector<34x32xf32>
    %c0_31 = arith.constant 0 : index
    %c0_32 = arith.constant 0 : index
    %18 = vector.load %arg2[%c0_31, %c0_32] : memref<1x32xf32, #tpu.memory_space<vmem>>, vector<1x32xf32>
    %19 = vector.broadcast %18 : vector<1x32xf32> to vector<34x32xf32>
    %20 = arith.addf %17, %19 : vector<34x32xf32>
    %cst_33 = arith.constant 0.000000e+00 : f32
    %21 = vector.broadcast %cst_33 : f32 to vector<34x32xf32>
    %22 = arith.maximumf %20, %21 : vector<34x32xf32>
    %cst_34 = arith.constant 0.000000e+00 : f32
    %23 = vector.broadcast %cst_34 : f32 to vector<4x2x32xf32>
    %c0_35 = arith.constant 0 : index
    %c0_36 = arith.constant 0 : index
    %c0_37 = arith.constant 0 : index
    %24 = vector.load %arg19[%c0_35, %c0_36, %c0_37] : memref<25x2x32xf32, #tpu.memory_space<vmem>>, vector<4x2x32xf32>
    tpu.vector_store %arg19[%c0_35, %c0_36, %c0_37], %23 {strides = array<i32>} : memref<25x2x32xf32, #tpu.memory_space<vmem>>, vector<4x2x32xf32>,
    %cst_38 = arith.constant 0.000000e+00 : f32
    %25 = vector.broadcast %cst_38 : f32 to vector<4x2x32xf32>
    %c21 = arith.constant 21 : index
    %c0_39 = arith.constant 0 : index
    %c0_40 = arith.constant 0 : index
    %26 = vector.load %arg19[%c21, %c0_39, %c0_40] : memref<25x2x32xf32, #tpu.memory_space<vmem>>, vector<4x2x32xf32>
    tpu.vector_store %arg19[%c21, %c0_39, %c0_40], %25 {strides = array<i32>} : memref<25x2x32xf32, #tpu.memory_space<vmem>>, vector<4x2x32xf32>,
    %27 = vector.shape_cast %22 : vector<34x32xf32> to vector<17x2x32xf32>
    %c4_41 = arith.constant 4 : index
    %c0_42 = arith.constant 0 : index
    %c0_43 = arith.constant 0 : index
    %28 = vector.load %arg19[%c4_41, %c0_42, %c0_43] : memref<25x2x32xf32, #tpu.memory_space<vmem>>, vector<17x2x32xf32>
    tpu.vector_store %arg19[%c4_41, %c0_42, %c0_43], %27 {strides = array<i32>} : memref<25x2x32xf32, #tpu.memory_space<vmem>>, vector<17x2x32xf32>,
    %c0_44 = arith.constant 0 : index
    %c0_45 = arith.constant 0 : index
    %c0_46 = arith.constant 0 : index
    %29 = vector.load %arg19[%c0_44, %c0_45, %c0_46] : memref<25x2x32xf32, #tpu.memory_space<vmem>>, vector<18x2x32xf32>
    %c1_47 = arith.constant 1 : index
    %c0_48 = arith.constant 0 : index
    %c0_49 = arith.constant 0 : index
    %30 = vector.load %arg19[%c1_47, %c0_48, %c0_49] : memref<25x2x32xf32, #tpu.memory_space<vmem>>, vector<18x2x32xf32>
    %c2_50 = arith.constant 2 : index
    %c0_51 = arith.constant 0 : index
    %c0_52 = arith.constant 0 : index
    %31 = vector.load %arg19[%c2_50, %c0_51, %c0_52] : memref<25x2x32xf32, #tpu.memory_space<vmem>>, vector<18x2x32xf32>
    %c3_53 = arith.constant 3 : index
    %c0_54 = arith.constant 0 : index
    %c0_55 = arith.constant 0 : index
    %32 = vector.load %arg19[%c3_53, %c0_54, %c0_55] : memref<25x2x32xf32, #tpu.memory_space<vmem>>, vector<18x2x32xf32>
    %c4_56 = arith.constant 4 : index
    %c0_57 = arith.constant 0 : index
    %c0_58 = arith.constant 0 : index
    %33 = vector.load %arg19[%c4_56, %c0_57, %c0_58] : memref<25x2x32xf32, #tpu.memory_space<vmem>>, vector<18x2x32xf32>
    %c5_59 = arith.constant 5 : index
    %c0_60 = arith.constant 0 : index
    %c0_61 = arith.constant 0 : index
    %34 = vector.load %arg19[%c5_59, %c0_60, %c0_61] : memref<25x2x32xf32, #tpu.memory_space<vmem>>, vector<18x2x32xf32>
    %c6_62 = arith.constant 6 : index
    %c0_63 = arith.constant 0 : index
    %c0_64 = arith.constant 0 : index
    %35 = vector.load %arg19[%c6_62, %c0_63, %c0_64] : memref<25x2x32xf32, #tpu.memory_space<vmem>>, vector<18x2x32xf32>
    %c7_65 = arith.constant 7 : index
    %c0_66 = arith.constant 0 : index
    %c0_67 = arith.constant 0 : index
    %36 = vector.load %arg19[%c7_65, %c0_66, %c0_67] : memref<25x2x32xf32, #tpu.memory_space<vmem>>, vector<18x2x32xf32>
    %37 = tpu.concatenate %29, %30, %31, %32, %33, %34, %35, %36 in 2 : vector<18x2x32xf32>, vector<18x2x32xf32>, vector<18x2x32xf32>, vector<18x2x32xf32>, vector<18x2x32xf32>, vector<18x2x32xf32>, vector<18x2x32xf32>, vector<18x2x32xf32> -> vector<18x2x256xf32>
    %38 = vector.shape_cast %37 : vector<18x2x256xf32> to vector<36x256xf32>
    %c0_68 = arith.constant 0 : index
    %c0_69 = arith.constant 0 : index
    %39 = vector.load %arg3[%c0_68, %c0_69] : memref<256x64xf32, #tpu.memory_space<vmem>>, vector<256x64xf32>
    %cst_70 = arith.constant dense<0.000000e+00> : vector<36x64xf32>
    %40 = tpu.matmul %38, %39, %cst_70 {dimension_numbers = #tpu.dot_dimension_numbers<[1], [0], [0], [1], [0, 0, 1, 1], [], []>} : vector<36x256xf32>, vector<256x64xf32>, vector<36x64xf32> -> vector<36x64xf32>
    %c0_71 = arith.constant 0 : index
    %c0_72 = arith.constant 0 : index
    %41 = vector.load %arg4[%c0_71, %c0_72] : memref<1x64xf32, #tpu.memory_space<vmem>>, vector<1x64xf32>
    %42 = vector.broadcast %41 : vector<1x64xf32> to vector<36x64xf32>
    %43 = arith.addf %40, %42 : vector<36x64xf32>
    %cst_73 = arith.constant 0.000000e+00 : f32
    %44 = vector.broadcast %cst_73 : f32 to vector<36x64xf32>
    %45 = arith.maximumf %43, %44 : vector<36x64xf32>
    %c0_74 = arith.constant 0 : index
    %c0_75 = arith.constant 0 : index
    %46 = vector.load %arg5[%c0_74, %c0_75] : memref<64x256xf32, #tpu.memory_space<vmem>>, vector<64x256xf32>
    %cst_76 = arith.constant dense<0.000000e+00> : vector<36x256xf32>
    %47 = tpu.matmul %45, %46, %cst_76 {dimension_numbers = #tpu.dot_dimension_numbers<[1], [0], [0], [1], [0, 0, 1, 1], [], []>} : vector<36x64xf32>, vector<64x256xf32>, vector<36x256xf32> -> vector<36x256xf32>
    %48 = vector.shape_cast %47 : vector<36x256xf32> to vector<18x2x256xf32>
    %c0_77 = arith.constant 0 : index
    %c0_78 = arith.constant 0 : index
    %c0_79 = arith.constant 0 : index
    %49 = vector.load %arg20[%c0_77, %c0_78, %c0_79] : memref<18x2x256xf32, #tpu.memory_space<vmem>>, vector<18x2x256xf32>
    tpu.vector_store %arg20[%c0_77, %c0_78, %c0_79], %48 {strides = array<i32>} : memref<18x2x256xf32, #tpu.memory_space<vmem>>, vector<18x2x256xf32>,
    %c0_80 = arith.constant 0 : index
    %c0_81 = arith.constant 0 : index
    %50 = vector.load %arg6[%c0_80, %c0_81] : memref<64x256xf32, #tpu.memory_space<vmem>>, vector<64x256xf32>
    %cst_82 = arith.constant dense<0.000000e+00> : vector<36x256xf32>
    %51 = tpu.matmul %45, %50, %cst_82 {dimension_numbers = #tpu.dot_dimension_numbers<[1], [0], [0], [1], [0, 0, 1, 1], [], []>} : vector<36x64xf32>, vector<64x256xf32>, vector<36x256xf32> -> vector<36x256xf32>
    %52 = vector.shape_cast %51 : vector<36x256xf32> to vector<18x2x256xf32>
    %c0_83 = arith.constant 0 : index
    %c0_84 = arith.constant 0 : index
    %c0_85 = arith.constant 0 : index
    %53 = vector.load %arg21[%c0_83, %c0_84, %c0_85] : memref<18x2x256xf32, #tpu.memory_space<vmem>>, vector<18x2x256xf32>
    tpu.vector_store %arg21[%c0_83, %c0_84, %c0_85], %52 {strides = array<i32>} : memref<18x2x256xf32, #tpu.memory_space<vmem>>, vector<18x2x256xf32>,
    %c0_86 = arith.constant 0 : index
    %c0_87 = arith.constant 0 : index
    %54 = vector.load %arg7[%c0_86, %c0_87] : memref<64x256xf32, #tpu.memory_space<vmem>>, vector<64x256xf32>
    %c0_88 = arith.constant 0 : index
    %c0_89 = arith.constant 0 : index
    %55 = vector.load %arg8[%c0_88, %c0_89] : memref<1x256xf32, #tpu.memory_space<vmem>>, vector<1x256xf32>
    %cst_90 = arith.constant 0.000000e+00 : f32
    %56 = vector.broadcast %cst_90 : f32 to vector<2x64xf32>
    %c0_i32 = arith.constant 0 : i32
    %57 = arith.index_cast %c0_i32 : i32 to index
    %c0_91 = arith.constant 0 : index
    %c0_92 = arith.constant 0 : index
    %58 = vector.load %arg20[%57, %c0_91, %c0_92] : memref<18x2x256xf32, #tpu.memory_space<vmem>>, vector<1x2x256xf32>
    %59 = vector.shape_cast %58 : vector<1x2x256xf32> to vector<2x256xf32>
    %c17_i32 = arith.constant 17 : i32
    %60 = arith.subi %c17_i32, %c0_i32 : i32
    %61 = arith.index_cast %60 : i32 to index
    %c0_93 = arith.constant 0 : index
    %c0_94 = arith.constant 0 : index
    %62 = vector.load %arg21[%61, %c0_93, %c0_94] : memref<18x2x256xf32, #tpu.memory_space<vmem>>, vector<1x2x256xf32>
    %63 = vector.shape_cast %62 : vector<1x2x256xf32> to vector<2x256xf32>
    %64 = arith.addf %59, %63 : vector<2x256xf32>
    %cst_95 = arith.constant dense<0.000000e+00> : vector<2x256xf32>
    %65 = tpu.matmul %56, %54, %cst_95 {dimension_numbers = #tpu.dot_dimension_numbers<[1], [0], [0], [1], [0, 0, 1, 1], [], []>} : vector<2x64xf32>, vector<64x256xf32>, vector<2x256xf32> -> vector<2x256xf32>
    %66 = arith.addf %64, %65 : vector<2x256xf32>
    %67 = vector.broadcast %55 : vector<1x256xf32> to vector<2x256xf32>
    %68 = arith.addf %66, %67 : vector<2x256xf32>
    %69 = math.tanh %68 : vector<2x256xf32>
    %70 = vector.extract_strided_slice %69 {offsets = [0, 0], sizes = [2, 64], strides = [1, 1]} : vector<2x256xf32> to vector<2x64xf32>
    %cst_96 = arith.constant 5.000000e-01 : f32
    %71 = vector.broadcast %cst_96 : f32 to vector<2x64xf32>
    %72 = arith.mulf %71, %70 : vector<2x64xf32>
    %cst_97 = arith.constant 5.000000e-01 : f32
    %73 = vector.broadcast %cst_97 : f32 to vector<2x64xf32>
    %74 = arith.addf %72, %73 : vector<2x64xf32>
    %75 = vector.extract_strided_slice %69 {offsets = [0, 64], sizes = [2, 64], strides = [1, 1]} : vector<2x256xf32> to vector<2x64xf32>
    %cst_98 = arith.constant 5.000000e-01 : f32
    %76 = vector.broadcast %cst_98 : f32 to vector<2x64xf32>
    %77 = arith.mulf %76, %75 : vector<2x64xf32>
    %cst_99 = arith.constant 5.000000e-01 : f32
    %78 = vector.broadcast %cst_99 : f32 to vector<2x64xf32>
    %79 = arith.addf %77, %78 : vector<2x64xf32>
    %80 = vector.extract_strided_slice %69 {offsets = [0, 128], sizes = [2, 64], strides = [1, 1]} : vector<2x256xf32> to vector<2x64xf32>
    %81 = vector.extract_strided_slice %69 {offsets = [0, 192], sizes = [2, 64], strides = [1, 1]} : vector<2x256xf32> to vector<2x64xf32>
    %cst_100 = arith.constant 5.000000e-01 : f32
    %82 = vector.broadcast %cst_100 : f32 to vector<2x64xf32>
    %83 = arith.mulf %82, %81 : vector<2x64xf32>
    %cst_101 = arith.constant 5.000000e-01 : f32
    %84 = vector.broadcast %cst_101 : f32 to vector<2x64xf32>
    %85 = arith.addf %83, %84 : vector<2x64xf32>
    %86 = arith.mulf %79, %56 : vector<2x64xf32>
    %87 = arith.mulf %74, %80 : vector<2x64xf32>
    %88 = arith.addf %86, %87 : vector<2x64xf32>
    %89 = math.tanh %88 : vector<2x64xf32>
    %90 = arith.mulf %85, %89 : vector<2x64xf32>
    %91 = arith.index_cast %c0_i32 : i32 to index
    %c0_102 = arith.constant 0 : index
    %c0_103 = arith.constant 0 : index
    %92 = vector.load %arg24[%91, %c0_102, %c0_103] : memref<18x2x64xf32, #tpu.memory_space<vmem>>, vector<1x2x64xf32>
    %93 = vector.shape_cast %92 : vector<1x2x64xf32> to vector<2x64xf32>
    %94 = vector.shape_cast %90 : vector<2x64xf32> to vector<1x2x64xf32>
    tpu.vector_store %arg24[%91, %c0_102, %c0_103], %94 {strides = array<i32>} : memref<18x2x64xf32, #tpu.memory_space<vmem>>, vector<1x2x64xf32>,
    %c1_i32 = arith.constant 1 : i32
    %95 = arith.index_cast %c1_i32 : i32 to index
    %c0_104 = arith.constant 0 : index
    %c0_105 = arith.constant 0 : index
    %96 = vector.load %arg20[%95, %c0_104, %c0_105] : memref<18x2x256xf32, #tpu.memory_space<vmem>>, vector<1x2x256xf32>
    %97 = vector.shape_cast %96 : vector<1x2x256xf32> to vector<2x256xf32>
    %c17_i32_106 = arith.constant 17 : i32
    %98 = arith.subi %c17_i32_106, %c1_i32 : i32
    %99 = arith.index_cast %98 : i32 to index
    %c0_107 = arith.constant 0 : index
    %c0_108 = arith.constant 0 : index
    %100 = vector.load %arg21[%99, %c0_107, %c0_108] : memref<18x2x256xf32, #tpu.memory_space<vmem>>, vector<1x2x256xf32>
    %101 = vector.shape_cast %100 : vector<1x2x256xf32> to vector<2x256xf32>
    %102 = arith.addf %97, %101 : vector<2x256xf32>
    %cst_109 = arith.constant dense<0.000000e+00> : vector<2x256xf32>
    %103 = tpu.matmul %90, %54, %cst_109 {dimension_numbers = #tpu.dot_dimension_numbers<[1], [0], [0], [1], [0, 0, 1, 1], [], []>} : vector<2x64xf32>, vector<64x256xf32>, vector<2x256xf32> -> vector<2x256xf32>
    %104 = arith.addf %102, %103 : vector<2x256xf32>
    %105 = vector.broadcast %55 : vector<1x256xf32> to vector<2x256xf32>
    %106 = arith.addf %104, %105 : vector<2x256xf32>
    %107 = math.tanh %106 : vector<2x256xf32>
    %108 = vector.extract_strided_slice %107 {offsets = [0, 0], sizes = [2, 64], strides = [1, 1]} : vector<2x256xf32> to vector<2x64xf32>
    %cst_110 = arith.constant 5.000000e-01 : f32
    %109 = vector.broadcast %cst_110 : f32 to vector<2x64xf32>
    %110 = arith.mulf %109, %108 : vector<2x64xf32>
    %cst_111 = arith.constant 5.000000e-01 : f32
    %111 = vector.broadcast %cst_111 : f32 to vector<2x64xf32>
    %112 = arith.addf %110, %111 : vector<2x64xf32>
    %113 = vector.extract_strided_slice %107 {offsets = [0, 64], sizes = [2, 64], strides = [1, 1]} : vector<2x256xf32> to vector<2x64xf32>
    %cst_112 = arith.constant 5.000000e-01 : f32
    %114 = vector.broadcast %cst_112 : f32 to vector<2x64xf32>
    %115 = arith.mulf %114, %113 : vector<2x64xf32>
    %cst_113 = arith.constant 5.000000e-01 : f32
    %116 = vector.broadcast %cst_113 : f32 to vector<2x64xf32>
    %117 = arith.addf %115, %116 : vector<2x64xf32>
    %118 = vector.extract_strided_slice %107 {offsets = [0, 128], sizes = [2, 64], strides = [1, 1]} : vector<2x256xf32> to vector<2x64xf32>
    %119 = vector.extract_strided_slice %107 {offsets = [0, 192], sizes = [2, 64], strides = [1, 1]} : vector<2x256xf32> to vector<2x64xf32>
    %cst_114 = arith.constant 5.000000e-01 : f32
    %120 = vector.broadcast %cst_114 : f32 to vector<2x64xf32>
    %121 = arith.mulf %120, %119 : vector<2x64xf32>
    %cst_115 = arith.constant 5.000000e-01 : f32
    %122 = vector.broadcast %cst_115 : f32 to vector<2x64xf32>
    %123 = arith.addf %121, %122 : vector<2x64xf32>
    %124 = arith.mulf %117, %88 : vector<2x64xf32>
    %125 = arith.mulf %112, %118 : vector<2x64xf32>
    %126 = arith.addf %124, %125 : vector<2x64xf32>
    %127 = math.tanh %126 : vector<2x64xf32>
    %128 = arith.mulf %123, %127 : vector<2x64xf32>
    %129 = arith.index_cast %c1_i32 : i32 to index
    %c0_116 = arith.constant 0 : index
    %c0_117 = arith.constant 0 : index
    %130 = vector.load %arg24[%129, %c0_116, %c0_117] : memref<18x2x64xf32, #tpu.memory_space<vmem>>, vector<1x2x64xf32>
    %131 = vector.shape_cast %130 : vector<1x2x64xf32> to vector<2x64xf32>
    %132 = vector.shape_cast %128 : vector<2x64xf32> to vector<1x2x64xf32>
    tpu.vector_store %arg24[%129, %c0_116, %c0_117], %132 {strides = array<i32>} : memref<18x2x64xf32, #tpu.memory_space<vmem>>, vector<1x2x64xf32>,
    %c2_i32 = arith.constant 2 : i32
    %133 = arith.index_cast %c2_i32 : i32 to index
    %c0_118 = arith.constant 0 : index
    %c0_119 = arith.constant 0 : index
    %134 = vector.load %arg20[%133, %c0_118, %c0_119] : memref<18x2x256xf32, #tpu.memory_space<vmem>>, vector<1x2x256xf32>
    %135 = vector.shape_cast %134 : vector<1x2x256xf32> to vector<2x256xf32>
    %c17_i32_120 = arith.constant 17 : i32
    %136 = arith.subi %c17_i32_120, %c2_i32 : i32
    %137 = arith.index_cast %136 : i32 to index
    %c0_121 = arith.constant 0 : index
    %c0_122 = arith.constant 0 : index
    %138 = vector.load %arg21[%137, %c0_121, %c0_122] : memref<18x2x256xf32, #tpu.memory_space<vmem>>, vector<1x2x256xf32>
    %139 = vector.shape_cast %138 : vector<1x2x256xf32> to vector<2x256xf32>
    %140 = arith.addf %135, %139 : vector<2x256xf32>
    %cst_123 = arith.constant dense<0.000000e+00> : vector<2x256xf32>
    %141 = tpu.matmul %128, %54, %cst_123 {dimension_numbers = #tpu.dot_dimension_numbers<[1], [0], [0], [1], [0, 0, 1, 1], [], []>} : vector<2x64xf32>, vector<64x256xf32>, vector<2x256xf32> -> vector<2x256xf32>
    %142 = arith.addf %140, %141 : vector<2x256xf32>
    %143 = vector.broadcast %55 : vector<1x256xf32> to vector<2x256xf32>
    %144 = arith.addf %142, %143 : vector<2x256xf32>
    %145 = math.tanh %144 : vector<2x256xf32>
    %146 = vector.extract_strided_slice %145 {offsets = [0, 0], sizes = [2, 64], strides = [1, 1]} : vector<2x256xf32> to vector<2x64xf32>
    %cst_124 = arith.constant 5.000000e-01 : f32
    %147 = vector.broadcast %cst_124 : f32 to vector<2x64xf32>
    %148 = arith.mulf %147, %146 : vector<2x64xf32>
    %cst_125 = arith.constant 5.000000e-01 : f32
    %149 = vector.broadcast %cst_125 : f32 to vector<2x64xf32>
    %150 = arith.addf %148, %149 : vector<2x64xf32>
    %151 = vector.extract_strided_slice %145 {offsets = [0, 64], sizes = [2, 64], strides = [1, 1]} : vector<2x256xf32> to vector<2x64xf32>
    %cst_126 = arith.constant 5.000000e-01 : f32
    %152 = vector.broadcast %cst_126 : f32 to vector<2x64xf32>
    %153 = arith.mulf %152, %151 : vector<2x64xf32>
    %cst_127 = arith.constant 5.000000e-01 : f32
    %154 = vector.broadcast %cst_127 : f32 to vector<2x64xf32>
    %155 = arith.addf %153, %154 : vector<2x64xf32>
    %156 = vector.extract_strided_slice %145 {offsets = [0, 128], sizes = [2, 64], strides = [1, 1]} : vector<2x256xf32> to vector<2x64xf32>
    %157 = vector.extract_strided_slice %145 {offsets = [0, 192], sizes = [2, 64], strides = [1, 1]} : vector<2x256xf32> to vector<2x64xf32>
    %cst_128 = arith.constant 5.000000e-01 : f32
    %158 = vector.broadcast %cst_128 : f32 to vector<2x64xf32>
    %159 = arith.mulf %158, %157 : vector<2x64xf32>
    %cst_129 = arith.constant 5.000000e-01 : f32
    %160 = vector.broadcast %cst_129 : f32 to vector<2x64xf32>
    %161 = arith.addf %159, %160 : vector<2x64xf32>
    %162 = arith.mulf %155, %126 : vector<2x64xf32>
    %163 = arith.mulf %150, %156 : vector<2x64xf32>
    %164 = arith.addf %162, %163 : vector<2x64xf32>
    %165 = math.tanh %164 : vector<2x64xf32>
    %166 = arith.mulf %161, %165 : vector<2x64xf32>
    %167 = arith.index_cast %c2_i32 : i32 to index
    %c0_130 = arith.constant 0 : index
    %c0_131 = arith.constant 0 : index
    %168 = vector.load %arg24[%167, %c0_130, %c0_131] : memref<18x2x64xf32, #tpu.memory_space<vmem>>, vector<1x2x64xf32>
    %169 = vector.shape_cast %168 : vector<1x2x64xf32> to vector<2x64xf32>
    %170 = vector.shape_cast %166 : vector<2x64xf32> to vector<1x2x64xf32>
    tpu.vector_store %arg24[%167, %c0_130, %c0_131], %170 {strides = array<i32>} : memref<18x2x64xf32, #tpu.memory_space<vmem>>, vector<1x2x64xf32>,
    %c3_i32 = arith.constant 3 : i32
    %171 = arith.index_cast %c3_i32 : i32 to index
    %c0_132 = arith.constant 0 : index
    %c0_133 = arith.constant 0 : index
    %172 = vector.load %arg20[%171, %c0_132, %c0_133] : memref<18x2x256xf32, #tpu.memory_space<vmem>>, vector<1x2x256xf32>
    %173 = vector.shape_cast %172 : vector<1x2x256xf32> to vector<2x256xf32>
    %c17_i32_134 = arith.constant 17 : i32
    %174 = arith.subi %c17_i32_134, %c3_i32 : i32
    %175 = arith.index_cast %174 : i32 to index
    %c0_135 = arith.constant 0 : index
    %c0_136 = arith.constant 0 : index
    %176 = vector.load %arg21[%175, %c0_135, %c0_136] : memref<18x2x256xf32, #tpu.memory_space<vmem>>, vector<1x2x256xf32>
    %177 = vector.shape_cast %176 : vector<1x2x256xf32> to vector<2x256xf32>
    %178 = arith.addf %173, %177 : vector<2x256xf32>
    %cst_137 = arith.constant dense<0.000000e+00> : vector<2x256xf32>
    %179 = tpu.matmul %166, %54, %cst_137 {dimension_numbers = #tpu.dot_dimension_numbers<[1], [0], [0], [1], [0, 0, 1, 1], [], []>} : vector<2x64xf32>, vector<64x256xf32>, vector<2x256xf32> -> vector<2x256xf32>
    %180 = arith.addf %178, %179 : vector<2x256xf32>
    %181 = vector.broadcast %55 : vector<1x256xf32> to vector<2x256xf32>
    %182 = arith.addf %180, %181 : vector<2x256xf32>
    %183 = math.tanh %182 : vector<2x256xf32>
    %184 = vector.extract_strided_slice %183 {offsets = [0, 0], sizes = [2, 64], strides = [1, 1]} : vector<2x256xf32> to vector<2x64xf32>
    %cst_138 = arith.constant 5.000000e-01 : f32
    %185 = vector.broadcast %cst_138 : f32 to vector<2x64xf32>
    %186 = arith.mulf %185, %184 : vector<2x64xf32>
    %cst_139 = arith.constant 5.000000e-01 : f32
    %187 = vector.broadcast %cst_139 : f32 to vector<2x64xf32>
    %188 = arith.addf %186, %187 : vector<2x64xf32>
    %189 = vector.extract_strided_slice %183 {offsets = [0, 64], sizes = [2, 64], strides = [1, 1]} : vector<2x256xf32> to vector<2x64xf32>
    %cst_140 = arith.constant 5.000000e-01 : f32
    %190 = vector.broadcast %cst_140 : f32 to vector<2x64xf32>
    %191 = arith.mulf %190, %189 : vector<2x64xf32>
    %cst_141 = arith.constant 5.000000e-01 : f32
    %192 = vector.broadcast %cst_141 : f32 to vector<2x64xf32>
    %193 = arith.addf %191, %192 : vector<2x64xf32>
    %194 = vector.extract_strided_slice %183 {offsets = [0, 128], sizes = [2, 64], strides = [1, 1]} : vector<2x256xf32> to vector<2x64xf32>
    %195 = vector.extract_strided_slice %183 {offsets = [0, 192], sizes = [2, 64], strides = [1, 1]} : vector<2x256xf32> to vector<2x64xf32>
    %cst_142 = arith.constant 5.000000e-01 : f32
    %196 = vector.broadcast %cst_142 : f32 to vector<2x64xf32>
    %197 = arith.mulf %196, %195 : vector<2x64xf32>
    %cst_143 = arith.constant 5.000000e-01 : f32
    %198 = vector.broadcast %cst_143 : f32 to vector<2x64xf32>
    %199 = arith.addf %197, %198 : vector<2x64xf32>
    %200 = arith.mulf %193, %164 : vector<2x64xf32>
    %201 = arith.mulf %188, %194 : vector<2x64xf32>
    %202 = arith.addf %200, %201 : vector<2x64xf32>
    %203 = math.tanh %202 : vector<2x64xf32>
    %204 = arith.mulf %199, %203 : vector<2x64xf32>
    %205 = arith.index_cast %c3_i32 : i32 to index
    %c0_144 = arith.constant 0 : index
    %c0_145 = arith.constant 0 : index
    %206 = vector.load %arg24[%205, %c0_144, %c0_145] : memref<18x2x64xf32, #tpu.memory_space<vmem>>, vector<1x2x64xf32>
    %207 = vector.shape_cast %206 : vector<1x2x64xf32> to vector<2x64xf32>
    %208 = vector.shape_cast %204 : vector<2x64xf32> to vector<1x2x64xf32>
    tpu.vector_store %arg24[%205, %c0_144, %c0_145], %208 {strides = array<i32>} : memref<18x2x64xf32, #tpu.memory_space<vmem>>, vector<1x2x64xf32>,
    %c4_i32 = arith.constant 4 : i32
    %209 = arith.index_cast %c4_i32 : i32 to index
    %c0_146 = arith.constant 0 : index
    %c0_147 = arith.constant 0 : index
    %210 = vector.load %arg20[%209, %c0_146, %c0_147] : memref<18x2x256xf32, #tpu.memory_space<vmem>>, vector<1x2x256xf32>
    %211 = vector.shape_cast %210 : vector<1x2x256xf32> to vector<2x256xf32>
    %c17_i32_148 = arith.constant 17 : i32
    %212 = arith.subi %c17_i32_148, %c4_i32 : i32
    %213 = arith.index_cast %212 : i32 to index
    %c0_149 = arith.constant 0 : index
    %c0_150 = arith.constant 0 : index
    %214 = vector.load %arg21[%213, %c0_149, %c0_150] : memref<18x2x256xf32, #tpu.memory_space<vmem>>, vector<1x2x256xf32>
    %215 = vector.shape_cast %214 : vector<1x2x256xf32> to vector<2x256xf32>
    %216 = arith.addf %211, %215 : vector<2x256xf32>
    %cst_151 = arith.constant dense<0.000000e+00> : vector<2x256xf32>
    %217 = tpu.matmul %204, %54, %cst_151 {dimension_numbers = #tpu.dot_dimension_numbers<[1], [0], [0], [1], [0, 0, 1, 1], [], []>} : vector<2x64xf32>, vector<64x256xf32>, vector<2x256xf32> -> vector<2x256xf32>
    %218 = arith.addf %216, %217 : vector<2x256xf32>
    %219 = vector.broadcast %55 : vector<1x256xf32> to vector<2x256xf32>
    %220 = arith.addf %218, %219 : vector<2x256xf32>
    %221 = math.tanh %220 : vector<2x256xf32>
    %222 = vector.extract_strided_slice %221 {offsets = [0, 0], sizes = [2, 64], strides = [1, 1]} : vector<2x256xf32> to vector<2x64xf32>
    %cst_152 = arith.constant 5.000000e-01 : f32
    %223 = vector.broadcast %cst_152 : f32 to vector<2x64xf32>
    %224 = arith.mulf %223, %222 : vector<2x64xf32>
    %cst_153 = arith.constant 5.000000e-01 : f32
    %225 = vector.broadcast %cst_153 : f32 to vector<2x64xf32>
    %226 = arith.addf %224, %225 : vector<2x64xf32>
    %227 = vector.extract_strided_slice %221 {offsets = [0, 64], sizes = [2, 64], strides = [1, 1]} : vector<2x256xf32> to vector<2x64xf32>
    %cst_154 = arith.constant 5.000000e-01 : f32
    %228 = vector.broadcast %cst_154 : f32 to vector<2x64xf32>
    %229 = arith.mulf %228, %227 : vector<2x64xf32>
    %cst_155 = arith.constant 5.000000e-01 : f32
    %230 = vector.broadcast %cst_155 : f32 to vector<2x64xf32>
    %231 = arith.addf %229, %230 : vector<2x64xf32>
    %232 = vector.extract_strided_slice %221 {offsets = [0, 128], sizes = [2, 64], strides = [1, 1]} : vector<2x256xf32> to vector<2x64xf32>
    %233 = vector.extract_strided_slice %221 {offsets = [0, 192], sizes = [2, 64], strides = [1, 1]} : vector<2x256xf32> to vector<2x64xf32>
    %cst_156 = arith.constant 5.000000e-01 : f32
    %234 = vector.broadcast %cst_156 : f32 to vector<2x64xf32>
    %235 = arith.mulf %234, %233 : vector<2x64xf32>
    %cst_157 = arith.constant 5.000000e-01 : f32
    %236 = vector.broadcast %cst_157 : f32 to vector<2x64xf32>
    %237 = arith.addf %235, %236 : vector<2x64xf32>
    %238 = arith.mulf %231, %202 : vector<2x64xf32>
    %239 = arith.mulf %226, %232 : vector<2x64xf32>
    %240 = arith.addf %238, %239 : vector<2x64xf32>
    %241 = math.tanh %240 : vector<2x64xf32>
    %242 = arith.mulf %237, %241 : vector<2x64xf32>
    %243 = arith.index_cast %c4_i32 : i32 to index
    %c0_158 = arith.constant 0 : index
    %c0_159 = arith.constant 0 : index
    %244 = vector.load %arg24[%243, %c0_158, %c0_159] : memref<18x2x64xf32, #tpu.memory_space<vmem>>, vector<1x2x64xf32>
    %245 = vector.shape_cast %244 : vector<1x2x64xf32> to vector<2x64xf32>
    %246 = vector.shape_cast %242 : vector<2x64xf32> to vector<1x2x64xf32>
    tpu.vector_store %arg24[%243, %c0_158, %c0_159], %246 {strides = array<i32>} : memref<18x2x64xf32, #tpu.memory_space<vmem>>, vector<1x2x64xf32>,
    %c5_i32 = arith.constant 5 : i32
    %247 = arith.index_cast %c5_i32 : i32 to index
    %c0_160 = arith.constant 0 : index
    %c0_161 = arith.constant 0 : index
    %248 = vector.load %arg20[%247, %c0_160, %c0_161] : memref<18x2x256xf32, #tpu.memory_space<vmem>>, vector<1x2x256xf32>
    %249 = vector.shape_cast %248 : vector<1x2x256xf32> to vector<2x256xf32>
    %c17_i32_162 = arith.constant 17 : i32
    %250 = arith.subi %c17_i32_162, %c5_i32 : i32
    %251 = arith.index_cast %250 : i32 to index
    %c0_163 = arith.constant 0 : index
    %c0_164 = arith.constant 0 : index
    %252 = vector.load %arg21[%251, %c0_163, %c0_164] : memref<18x2x256xf32, #tpu.memory_space<vmem>>, vector<1x2x256xf32>
    %253 = vector.shape_cast %252 : vector<1x2x256xf32> to vector<2x256xf32>
    %254 = arith.addf %249, %253 : vector<2x256xf32>
    %cst_165 = arith.constant dense<0.000000e+00> : vector<2x256xf32>
    %255 = tpu.matmul %242, %54, %cst_165 {dimension_numbers = #tpu.dot_dimension_numbers<[1], [0], [0], [1], [0, 0, 1, 1], [], []>} : vector<2x64xf32>, vector<64x256xf32>, vector<2x256xf32> -> vector<2x256xf32>
    %256 = arith.addf %254, %255 : vector<2x256xf32>
    %257 = vector.broadcast %55 : vector<1x256xf32> to vector<2x256xf32>
    %258 = arith.addf %256, %257 : vector<2x256xf32>
    %259 = math.tanh %258 : vector<2x256xf32>
    %260 = vector.extract_strided_slice %259 {offsets = [0, 0], sizes = [2, 64], strides = [1, 1]} : vector<2x256xf32> to vector<2x64xf32>
    %cst_166 = arith.constant 5.000000e-01 : f32
    %261 = vector.broadcast %cst_166 : f32 to vector<2x64xf32>
    %262 = arith.mulf %261, %260 : vector<2x64xf32>
    %cst_167 = arith.constant 5.000000e-01 : f32
    %263 = vector.broadcast %cst_167 : f32 to vector<2x64xf32>
    %264 = arith.addf %262, %263 : vector<2x64xf32>
    %265 = vector.extract_strided_slice %259 {offsets = [0, 64], sizes = [2, 64], strides = [1, 1]} : vector<2x256xf32> to vector<2x64xf32>
    %cst_168 = arith.constant 5.000000e-01 : f32
    %266 = vector.broadcast %cst_168 : f32 to vector<2x64xf32>
    %267 = arith.mulf %266, %265 : vector<2x64xf32>
    %cst_169 = arith.constant 5.000000e-01 : f32
    %268 = vector.broadcast %cst_169 : f32 to vector<2x64xf32>
    %269 = arith.addf %267, %268 : vector<2x64xf32>
    %270 = vector.extract_strided_slice %259 {offsets = [0, 128], sizes = [2, 64], strides = [1, 1]} : vector<2x256xf32> to vector<2x64xf32>
    %271 = vector.extract_strided_slice %259 {offsets = [0, 192], sizes = [2, 64], strides = [1, 1]} : vector<2x256xf32> to vector<2x64xf32>
    %cst_170 = arith.constant 5.000000e-01 : f32
    %272 = vector.broadcast %cst_170 : f32 to vector<2x64xf32>
    %273 = arith.mulf %272, %271 : vector<2x64xf32>
    %cst_171 = arith.constant 5.000000e-01 : f32
    %274 = vector.broadcast %cst_171 : f32 to vector<2x64xf32>
    %275 = arith.addf %273, %274 : vector<2x64xf32>
    %276 = arith.mulf %269, %240 : vector<2x64xf32>
    %277 = arith.mulf %264, %270 : vector<2x64xf32>
    %278 = arith.addf %276, %277 : vector<2x64xf32>
    %279 = math.tanh %278 : vector<2x64xf32>
    %280 = arith.mulf %275, %279 : vector<2x64xf32>
    %281 = arith.index_cast %c5_i32 : i32 to index
    %c0_172 = arith.constant 0 : index
    %c0_173 = arith.constant 0 : index
    %282 = vector.load %arg24[%281, %c0_172, %c0_173] : memref<18x2x64xf32, #tpu.memory_space<vmem>>, vector<1x2x64xf32>
    %283 = vector.shape_cast %282 : vector<1x2x64xf32> to vector<2x64xf32>
    %284 = vector.shape_cast %280 : vector<2x64xf32> to vector<1x2x64xf32>
    tpu.vector_store %arg24[%281, %c0_172, %c0_173], %284 {strides = array<i32>} : memref<18x2x64xf32, #tpu.memory_space<vmem>>, vector<1x2x64xf32>,
    %c6_i32 = arith.constant 6 : i32
    %285 = arith.index_cast %c6_i32 : i32 to index
    %c0_174 = arith.constant 0 : index
    %c0_175 = arith.constant 0 : index
    %286 = vector.load %arg20[%285, %c0_174, %c0_175] : memref<18x2x256xf32, #tpu.memory_space<vmem>>, vector<1x2x256xf32>
    %287 = vector.shape_cast %286 : vector<1x2x256xf32> to vector<2x256xf32>
    %c17_i32_176 = arith.constant 17 : i32
    %288 = arith.subi %c17_i32_176, %c6_i32 : i32
    %289 = arith.index_cast %288 : i32 to index
    %c0_177 = arith.constant 0 : index
    %c0_178 = arith.constant 0 : index
    %290 = vector.load %arg21[%289, %c0_177, %c0_178] : memref<18x2x256xf32, #tpu.memory_space<vmem>>, vector<1x2x256xf32>
    %291 = vector.shape_cast %290 : vector<1x2x256xf32> to vector<2x256xf32>
    %292 = arith.addf %287, %291 : vector<2x256xf32>
    %cst_179 = arith.constant dense<0.000000e+00> : vector<2x256xf32>
    %293 = tpu.matmul %280, %54, %cst_179 {dimension_numbers = #tpu.dot_dimension_numbers<[1], [0], [0], [1], [0, 0, 1, 1], [], []>} : vector<2x64xf32>, vector<64x256xf32>, vector<2x256xf32> -> vector<2x256xf32>
    %294 = arith.addf %292, %293 : vector<2x256xf32>
    %295 = vector.broadcast %55 : vector<1x256xf32> to vector<2x256xf32>
    %296 = arith.addf %294, %295 : vector<2x256xf32>
    %297 = math.tanh %296 : vector<2x256xf32>
    %298 = vector.extract_strided_slice %297 {offsets = [0, 0], sizes = [2, 64], strides = [1, 1]} : vector<2x256xf32> to vector<2x64xf32>
    %cst_180 = arith.constant 5.000000e-01 : f32
    %299 = vector.broadcast %cst_180 : f32 to vector<2x64xf32>
    %300 = arith.mulf %299, %298 : vector<2x64xf32>
    %cst_181 = arith.constant 5.000000e-01 : f32
    %301 = vector.broadcast %cst_181 : f32 to vector<2x64xf32>
    %302 = arith.addf %300, %301 : vector<2x64xf32>
    %303 = vector.extract_strided_slice %297 {offsets = [0, 64], sizes = [2, 64], strides = [1, 1]} : vector<2x256xf32> to vector<2x64xf32>
    %cst_182 = arith.constant 5.000000e-01 : f32
    %304 = vector.broadcast %cst_182 : f32 to vector<2x64xf32>
    %305 = arith.mulf %304, %303 : vector<2x64xf32>
    %cst_183 = arith.constant 5.000000e-01 : f32
    %306 = vector.broadcast %cst_183 : f32 to vector<2x64xf32>
    %307 = arith.addf %305, %306 : vector<2x64xf32>
    %308 = vector.extract_strided_slice %297 {offsets = [0, 128], sizes = [2, 64], strides = [1, 1]} : vector<2x256xf32> to vector<2x64xf32>
    %309 = vector.extract_strided_slice %297 {offsets = [0, 192], sizes = [2, 64], strides = [1, 1]} : vector<2x256xf32> to vector<2x64xf32>
    %cst_184 = arith.constant 5.000000e-01 : f32
    %310 = vector.broadcast %cst_184 : f32 to vector<2x64xf32>
    %311 = arith.mulf %310, %309 : vector<2x64xf32>
    %cst_185 = arith.constant 5.000000e-01 : f32
    %312 = vector.broadcast %cst_185 : f32 to vector<2x64xf32>
    %313 = arith.addf %311, %312 : vector<2x64xf32>
    %314 = arith.mulf %307, %278 : vector<2x64xf32>
    %315 = arith.mulf %302, %308 : vector<2x64xf32>
    %316 = arith.addf %314, %315 : vector<2x64xf32>
    %317 = math.tanh %316 : vector<2x64xf32>
    %318 = arith.mulf %313, %317 : vector<2x64xf32>
    %319 = arith.index_cast %c6_i32 : i32 to index
    %c0_186 = arith.constant 0 : index
    %c0_187 = arith.constant 0 : index
    %320 = vector.load %arg24[%319, %c0_186, %c0_187] : memref<18x2x64xf32, #tpu.memory_space<vmem>>, vector<1x2x64xf32>
    %321 = vector.shape_cast %320 : vector<1x2x64xf32> to vector<2x64xf32>
    %322 = vector.shape_cast %318 : vector<2x64xf32> to vector<1x2x64xf32>
    tpu.vector_store %arg24[%319, %c0_186, %c0_187], %322 {strides = array<i32>} : memref<18x2x64xf32, #tpu.memory_space<vmem>>, vector<1x2x64xf32>,
    %c7_i32 = arith.constant 7 : i32
    %323 = arith.index_cast %c7_i32 : i32 to index
    %c0_188 = arith.constant 0 : index
    %c0_189 = arith.constant 0 : index
    %324 = vector.load %arg20[%323, %c0_188, %c0_189] : memref<18x2x256xf32, #tpu.memory_space<vmem>>, vector<1x2x256xf32>
    %325 = vector.shape_cast %324 : vector<1x2x256xf32> to vector<2x256xf32>
    %c17_i32_190 = arith.constant 17 : i32
    %326 = arith.subi %c17_i32_190, %c7_i32 : i32
    %327 = arith.index_cast %326 : i32 to index
    %c0_191 = arith.constant 0 : index
    %c0_192 = arith.constant 0 : index
    %328 = vector.load %arg21[%327, %c0_191, %c0_192] : memref<18x2x256xf32, #tpu.memory_space<vmem>>, vector<1x2x256xf32>
    %329 = vector.shape_cast %328 : vector<1x2x256xf32> to vector<2x256xf32>
    %330 = arith.addf %325, %329 : vector<2x256xf32>
    %cst_193 = arith.constant dense<0.000000e+00> : vector<2x256xf32>
    %331 = tpu.matmul %318, %54, %cst_193 {dimension_numbers = #tpu.dot_dimension_numbers<[1], [0], [0], [1], [0, 0, 1, 1], [], []>} : vector<2x64xf32>, vector<64x256xf32>, vector<2x256xf32> -> vector<2x256xf32>
    %332 = arith.addf %330, %331 : vector<2x256xf32>
    %333 = vector.broadcast %55 : vector<1x256xf32> to vector<2x256xf32>
    %334 = arith.addf %332, %333 : vector<2x256xf32>
    %335 = math.tanh %334 : vector<2x256xf32>
    %336 = vector.extract_strided_slice %335 {offsets = [0, 0], sizes = [2, 64], strides = [1, 1]} : vector<2x256xf32> to vector<2x64xf32>
    %cst_194 = arith.constant 5.000000e-01 : f32
    %337 = vector.broadcast %cst_194 : f32 to vector<2x64xf32>
    %338 = arith.mulf %337, %336 : vector<2x64xf32>
    %cst_195 = arith.constant 5.000000e-01 : f32
    %339 = vector.broadcast %cst_195 : f32 to vector<2x64xf32>
    %340 = arith.addf %338, %339 : vector<2x64xf32>
    %341 = vector.extract_strided_slice %335 {offsets = [0, 64], sizes = [2, 64], strides = [1, 1]} : vector<2x256xf32> to vector<2x64xf32>
    %cst_196 = arith.constant 5.000000e-01 : f32
    %342 = vector.broadcast %cst_196 : f32 to vector<2x64xf32>
    %343 = arith.mulf %342, %341 : vector<2x64xf32>
    %cst_197 = arith.constant 5.000000e-01 : f32
    %344 = vector.broadcast %cst_197 : f32 to vector<2x64xf32>
    %345 = arith.addf %343, %344 : vector<2x64xf32>
    %346 = vector.extract_strided_slice %335 {offsets = [0, 128], sizes = [2, 64], strides = [1, 1]} : vector<2x256xf32> to vector<2x64xf32>
    %347 = vector.extract_strided_slice %335 {offsets = [0, 192], sizes = [2, 64], strides = [1, 1]} : vector<2x256xf32> to vector<2x64xf32>
    %cst_198 = arith.constant 5.000000e-01 : f32
    %348 = vector.broadcast %cst_198 : f32 to vector<2x64xf32>
    %349 = arith.mulf %348, %347 : vector<2x64xf32>
    %cst_199 = arith.constant 5.000000e-01 : f32
    %350 = vector.broadcast %cst_199 : f32 to vector<2x64xf32>
    %351 = arith.addf %349, %350 : vector<2x64xf32>
    %352 = arith.mulf %345, %316 : vector<2x64xf32>
    %353 = arith.mulf %340, %346 : vector<2x64xf32>
    %354 = arith.addf %352, %353 : vector<2x64xf32>
    %355 = math.tanh %354 : vector<2x64xf32>
    %356 = arith.mulf %351, %355 : vector<2x64xf32>
    %357 = arith.index_cast %c7_i32 : i32 to index
    %c0_200 = arith.constant 0 : index
    %c0_201 = arith.constant 0 : index
    %358 = vector.load %arg24[%357, %c0_200, %c0_201] : memref<18x2x64xf32, #tpu.memory_space<vmem>>, vector<1x2x64xf32>
    %359 = vector.shape_cast %358 : vector<1x2x64xf32> to vector<2x64xf32>
    %360 = vector.shape_cast %356 : vector<2x64xf32> to vector<1x2x64xf32>
    tpu.vector_store %arg24[%357, %c0_200, %c0_201], %360 {strides = array<i32>} : memref<18x2x64xf32, #tpu.memory_space<vmem>>, vector<1x2x64xf32>,
    %c8_i32 = arith.constant 8 : i32
    %361 = arith.index_cast %c8_i32 : i32 to index
    %c0_202 = arith.constant 0 : index
    %c0_203 = arith.constant 0 : index
    %362 = vector.load %arg20[%361, %c0_202, %c0_203] : memref<18x2x256xf32, #tpu.memory_space<vmem>>, vector<1x2x256xf32>
    %363 = vector.shape_cast %362 : vector<1x2x256xf32> to vector<2x256xf32>
    %c17_i32_204 = arith.constant 17 : i32
    %364 = arith.subi %c17_i32_204, %c8_i32 : i32
    %365 = arith.index_cast %364 : i32 to index
    %c0_205 = arith.constant 0 : index
    %c0_206 = arith.constant 0 : index
    %366 = vector.load %arg21[%365, %c0_205, %c0_206] : memref<18x2x256xf32, #tpu.memory_space<vmem>>, vector<1x2x256xf32>
    %367 = vector.shape_cast %366 : vector<1x2x256xf32> to vector<2x256xf32>
    %368 = arith.addf %363, %367 : vector<2x256xf32>
    %cst_207 = arith.constant dense<0.000000e+00> : vector<2x256xf32>
    %369 = tpu.matmul %356, %54, %cst_207 {dimension_numbers = #tpu.dot_dimension_numbers<[1], [0], [0], [1], [0, 0, 1, 1], [], []>} : vector<2x64xf32>, vector<64x256xf32>, vector<2x256xf32> -> vector<2x256xf32>
    %370 = arith.addf %368, %369 : vector<2x256xf32>
    %371 = vector.broadcast %55 : vector<1x256xf32> to vector<2x256xf32>
    %372 = arith.addf %370, %371 : vector<2x256xf32>
    %373 = math.tanh %372 : vector<2x256xf32>
    %374 = vector.extract_strided_slice %373 {offsets = [0, 0], sizes = [2, 64], strides = [1, 1]} : vector<2x256xf32> to vector<2x64xf32>
    %cst_208 = arith.constant 5.000000e-01 : f32
    %375 = vector.broadcast %cst_208 : f32 to vector<2x64xf32>
    %376 = arith.mulf %375, %374 : vector<2x64xf32>
    %cst_209 = arith.constant 5.000000e-01 : f32
    %377 = vector.broadcast %cst_209 : f32 to vector<2x64xf32>
    %378 = arith.addf %376, %377 : vector<2x64xf32>
    %379 = vector.extract_strided_slice %373 {offsets = [0, 64], sizes = [2, 64], strides = [1, 1]} : vector<2x256xf32> to vector<2x64xf32>
    %cst_210 = arith.constant 5.000000e-01 : f32
    %380 = vector.broadcast %cst_210 : f32 to vector<2x64xf32>
    %381 = arith.mulf %380, %379 : vector<2x64xf32>
    %cst_211 = arith.constant 5.000000e-01 : f32
    %382 = vector.broadcast %cst_211 : f32 to vector<2x64xf32>
    %383 = arith.addf %381, %382 : vector<2x64xf32>
    %384 = vector.extract_strided_slice %373 {offsets = [0, 128], sizes = [2, 64], strides = [1, 1]} : vector<2x256xf32> to vector<2x64xf32>
    %385 = vector.extract_strided_slice %373 {offsets = [0, 192], sizes = [2, 64], strides = [1, 1]} : vector<2x256xf32> to vector<2x64xf32>
    %cst_212 = arith.constant 5.000000e-01 : f32
    %386 = vector.broadcast %cst_212 : f32 to vector<2x64xf32>
    %387 = arith.mulf %386, %385 : vector<2x64xf32>
    %cst_213 = arith.constant 5.000000e-01 : f32
    %388 = vector.broadcast %cst_213 : f32 to vector<2x64xf32>
    %389 = arith.addf %387, %388 : vector<2x64xf32>
    %390 = arith.mulf %383, %354 : vector<2x64xf32>
    %391 = arith.mulf %378, %384 : vector<2x64xf32>
    %392 = arith.addf %390, %391 : vector<2x64xf32>
    %393 = math.tanh %392 : vector<2x64xf32>
    %394 = arith.mulf %389, %393 : vector<2x64xf32>
    %395 = arith.index_cast %c8_i32 : i32 to index
    %c0_214 = arith.constant 0 : index
    %c0_215 = arith.constant 0 : index
    %396 = vector.load %arg24[%395, %c0_214, %c0_215] : memref<18x2x64xf32, #tpu.memory_space<vmem>>, vector<1x2x64xf32>
    %397 = vector.shape_cast %396 : vector<1x2x64xf32> to vector<2x64xf32>
    %398 = vector.shape_cast %394 : vector<2x64xf32> to vector<1x2x64xf32>
    tpu.vector_store %arg24[%395, %c0_214, %c0_215], %398 {strides = array<i32>} : memref<18x2x64xf32, #tpu.memory_space<vmem>>, vector<1x2x64xf32>,
    %c9_i32 = arith.constant 9 : i32
    %399 = arith.index_cast %c9_i32 : i32 to index
    %c0_216 = arith.constant 0 : index
    %c0_217 = arith.constant 0 : index
    %400 = vector.load %arg20[%399, %c0_216, %c0_217] : memref<18x2x256xf32, #tpu.memory_space<vmem>>, vector<1x2x256xf32>
    %401 = vector.shape_cast %400 : vector<1x2x256xf32> to vector<2x256xf32>
    %c17_i32_218 = arith.constant 17 : i32
    %402 = arith.subi %c17_i32_218, %c9_i32 : i32
    %403 = arith.index_cast %402 : i32 to index
    %c0_219 = arith.constant 0 : index
    %c0_220 = arith.constant 0 : index
    %404 = vector.load %arg21[%403, %c0_219, %c0_220] : memref<18x2x256xf32, #tpu.memory_space<vmem>>, vector<1x2x256xf32>
    %405 = vector.shape_cast %404 : vector<1x2x256xf32> to vector<2x256xf32>
    %406 = arith.addf %401, %405 : vector<2x256xf32>
    %cst_221 = arith.constant dense<0.000000e+00> : vector<2x256xf32>
    %407 = tpu.matmul %394, %54, %cst_221 {dimension_numbers = #tpu.dot_dimension_numbers<[1], [0], [0], [1], [0, 0, 1, 1], [], []>} : vector<2x64xf32>, vector<64x256xf32>, vector<2x256xf32> -> vector<2x256xf32>
    %408 = arith.addf %406, %407 : vector<2x256xf32>
    %409 = vector.broadcast %55 : vector<1x256xf32> to vector<2x256xf32>
    %410 = arith.addf %408, %409 : vector<2x256xf32>
    %411 = math.tanh %410 : vector<2x256xf32>
    %412 = vector.extract_strided_slice %411 {offsets = [0, 0], sizes = [2, 64], strides = [1, 1]} : vector<2x256xf32> to vector<2x64xf32>
    %cst_222 = arith.constant 5.000000e-01 : f32
    %413 = vector.broadcast %cst_222 : f32 to vector<2x64xf32>
    %414 = arith.mulf %413, %412 : vector<2x64xf32>
    %cst_223 = arith.constant 5.000000e-01 : f32
    %415 = vector.broadcast %cst_223 : f32 to vector<2x64xf32>
    %416 = arith.addf %414, %415 : vector<2x64xf32>
    %417 = vector.extract_strided_slice %411 {offsets = [0, 64], sizes = [2, 64], strides = [1, 1]} : vector<2x256xf32> to vector<2x64xf32>
    %cst_224 = arith.constant 5.000000e-01 : f32
    %418 = vector.broadcast %cst_224 : f32 to vector<2x64xf32>
    %419 = arith.mulf %418, %417 : vector<2x64xf32>
    %cst_225 = arith.constant 5.000000e-01 : f32
    %420 = vector.broadcast %cst_225 : f32 to vector<2x64xf32>
    %421 = arith.addf %419, %420 : vector<2x64xf32>
    %422 = vector.extract_strided_slice %411 {offsets = [0, 128], sizes = [2, 64], strides = [1, 1]} : vector<2x256xf32> to vector<2x64xf32>
    %423 = vector.extract_strided_slice %411 {offsets = [0, 192], sizes = [2, 64], strides = [1, 1]} : vector<2x256xf32> to vector<2x64xf32>
    %cst_226 = arith.constant 5.000000e-01 : f32
    %424 = vector.broadcast %cst_226 : f32 to vector<2x64xf32>
    %425 = arith.mulf %424, %423 : vector<2x64xf32>
    %cst_227 = arith.constant 5.000000e-01 : f32
    %426 = vector.broadcast %cst_227 : f32 to vector<2x64xf32>
    %427 = arith.addf %425, %426 : vector<2x64xf32>
    %428 = arith.mulf %421, %392 : vector<2x64xf32>
    %429 = arith.mulf %416, %422 : vector<2x64xf32>
    %430 = arith.addf %428, %429 : vector<2x64xf32>
    %431 = math.tanh %430 : vector<2x64xf32>
    %432 = arith.mulf %427, %431 : vector<2x64xf32>
    %433 = arith.index_cast %c9_i32 : i32 to index
    %c0_228 = arith.constant 0 : index
    %c0_229 = arith.constant 0 : index
    %434 = vector.load %arg24[%433, %c0_228, %c0_229] : memref<18x2x64xf32, #tpu.memory_space<vmem>>, vector<1x2x64xf32>
    %435 = vector.shape_cast %434 : vector<1x2x64xf32> to vector<2x64xf32>
    %436 = vector.shape_cast %432 : vector<2x64xf32> to vector<1x2x64xf32>
    tpu.vector_store %arg24[%433, %c0_228, %c0_229], %436 {strides = array<i32>} : memref<18x2x64xf32, #tpu.memory_space<vmem>>, vector<1x2x64xf32>,
    %c10_i32 = arith.constant 10 : i32
    %437 = arith.index_cast %c10_i32 : i32 to index
    %c0_230 = arith.constant 0 : index
    %c0_231 = arith.constant 0 : index
    %438 = vector.load %arg20[%437, %c0_230, %c0_231] : memref<18x2x256xf32, #tpu.memory_space<vmem>>, vector<1x2x256xf32>
    %439 = vector.shape_cast %438 : vector<1x2x256xf32> to vector<2x256xf32>
    %c17_i32_232 = arith.constant 17 : i32
    %440 = arith.subi %c17_i32_232, %c10_i32 : i32
    %441 = arith.index_cast %440 : i32 to index
    %c0_233 = arith.constant 0 : index
    %c0_234 = arith.constant 0 : index
    %442 = vector.load %arg21[%441, %c0_233, %c0_234] : memref<18x2x256xf32, #tpu.memory_space<vmem>>, vector<1x2x256xf32>
    %443 = vector.shape_cast %442 : vector<1x2x256xf32> to vector<2x256xf32>
    %444 = arith.addf %439, %443 : vector<2x256xf32>
    %cst_235 = arith.constant dense<0.000000e+00> : vector<2x256xf32>
    %445 = tpu.matmul %432, %54, %cst_235 {dimension_numbers = #tpu.dot_dimension_numbers<[1], [0], [0], [1], [0, 0, 1, 1], [], []>} : vector<2x64xf32>, vector<64x256xf32>, vector<2x256xf32> -> vector<2x256xf32>
    %446 = arith.addf %444, %445 : vector<2x256xf32>
    %447 = vector.broadcast %55 : vector<1x256xf32> to vector<2x256xf32>
    %448 = arith.addf %446, %447 : vector<2x256xf32>
    %449 = math.tanh %448 : vector<2x256xf32>
    %450 = vector.extract_strided_slice %449 {offsets = [0, 0], sizes = [2, 64], strides = [1, 1]} : vector<2x256xf32> to vector<2x64xf32>
    %cst_236 = arith.constant 5.000000e-01 : f32
    %451 = vector.broadcast %cst_236 : f32 to vector<2x64xf32>
    %452 = arith.mulf %451, %450 : vector<2x64xf32>
    %cst_237 = arith.constant 5.000000e-01 : f32
    %453 = vector.broadcast %cst_237 : f32 to vector<2x64xf32>
    %454 = arith.addf %452, %453 : vector<2x64xf32>
    %455 = vector.extract_strided_slice %449 {offsets = [0, 64], sizes = [2, 64], strides = [1, 1]} : vector<2x256xf32> to vector<2x64xf32>
    %cst_238 = arith.constant 5.000000e-01 : f32
    %456 = vector.broadcast %cst_238 : f32 to vector<2x64xf32>
    %457 = arith.mulf %456, %455 : vector<2x64xf32>
    %cst_239 = arith.constant 5.000000e-01 : f32
    %458 = vector.broadcast %cst_239 : f32 to vector<2x64xf32>
    %459 = arith.addf %457, %458 : vector<2x64xf32>
    %460 = vector.extract_strided_slice %449 {offsets = [0, 128], sizes = [2, 64], strides = [1, 1]} : vector<2x256xf32> to vector<2x64xf32>
    %461 = vector.extract_strided_slice %449 {offsets = [0, 192], sizes = [2, 64], strides = [1, 1]} : vector<2x256xf32> to vector<2x64xf32>
    %cst_240 = arith.constant 5.000000e-01 : f32
    %462 = vector.broadcast %cst_240 : f32 to vector<2x64xf32>
    %463 = arith.mulf %462, %461 : vector<2x64xf32>
    %cst_241 = arith.constant 5.000000e-01 : f32
    %464 = vector.broadcast %cst_241 : f32 to vector<2x64xf32>
    %465 = arith.addf %463, %464 : vector<2x64xf32>
    %466 = arith.mulf %459, %430 : vector<2x64xf32>
    %467 = arith.mulf %454, %460 : vector<2x64xf32>
    %468 = arith.addf %466, %467 : vector<2x64xf32>
    %469 = math.tanh %468 : vector<2x64xf32>
    %470 = arith.mulf %465, %469 : vector<2x64xf32>
    %471 = arith.index_cast %c10_i32 : i32 to index
    %c0_242 = arith.constant 0 : index
    %c0_243 = arith.constant 0 : index
    %472 = vector.load %arg24[%471, %c0_242, %c0_243] : memref<18x2x64xf32, #tpu.memory_space<vmem>>, vector<1x2x64xf32>
    %473 = vector.shape_cast %472 : vector<1x2x64xf32> to vector<2x64xf32>
    %474 = vector.shape_cast %470 : vector<2x64xf32> to vector<1x2x64xf32>
    tpu.vector_store %arg24[%471, %c0_242, %c0_243], %474 {strides = array<i32>} : memref<18x2x64xf32, #tpu.memory_space<vmem>>, vector<1x2x64xf32>,
    %c11_i32 = arith.constant 11 : i32
    %475 = arith.index_cast %c11_i32 : i32 to index
    %c0_244 = arith.constant 0 : index
    %c0_245 = arith.constant 0 : index
    %476 = vector.load %arg20[%475, %c0_244, %c0_245] : memref<18x2x256xf32, #tpu.memory_space<vmem>>, vector<1x2x256xf32>
    %477 = vector.shape_cast %476 : vector<1x2x256xf32> to vector<2x256xf32>
    %c17_i32_246 = arith.constant 17 : i32
    %478 = arith.subi %c17_i32_246, %c11_i32 : i32
    %479 = arith.index_cast %478 : i32 to index
    %c0_247 = arith.constant 0 : index
    %c0_248 = arith.constant 0 : index
    %480 = vector.load %arg21[%479, %c0_247, %c0_248] : memref<18x2x256xf32, #tpu.memory_space<vmem>>, vector<1x2x256xf32>
    %481 = vector.shape_cast %480 : vector<1x2x256xf32> to vector<2x256xf32>
    %482 = arith.addf %477, %481 : vector<2x256xf32>
    %cst_249 = arith.constant dense<0.000000e+00> : vector<2x256xf32>
    %483 = tpu.matmul %470, %54, %cst_249 {dimension_numbers = #tpu.dot_dimension_numbers<[1], [0], [0], [1], [0, 0, 1, 1], [], []>} : vector<2x64xf32>, vector<64x256xf32>, vector<2x256xf32> -> vector<2x256xf32>
    %484 = arith.addf %482, %483 : vector<2x256xf32>
    %485 = vector.broadcast %55 : vector<1x256xf32> to vector<2x256xf32>
    %486 = arith.addf %484, %485 : vector<2x256xf32>
    %487 = math.tanh %486 : vector<2x256xf32>
    %488 = vector.extract_strided_slice %487 {offsets = [0, 0], sizes = [2, 64], strides = [1, 1]} : vector<2x256xf32> to vector<2x64xf32>
    %cst_250 = arith.constant 5.000000e-01 : f32
    %489 = vector.broadcast %cst_250 : f32 to vector<2x64xf32>
    %490 = arith.mulf %489, %488 : vector<2x64xf32>
    %cst_251 = arith.constant 5.000000e-01 : f32
    %491 = vector.broadcast %cst_251 : f32 to vector<2x64xf32>
    %492 = arith.addf %490, %491 : vector<2x64xf32>
    %493 = vector.extract_strided_slice %487 {offsets = [0, 64], sizes = [2, 64], strides = [1, 1]} : vector<2x256xf32> to vector<2x64xf32>
    %cst_252 = arith.constant 5.000000e-01 : f32
    %494 = vector.broadcast %cst_252 : f32 to vector<2x64xf32>
    %495 = arith.mulf %494, %493 : vector<2x64xf32>
    %cst_253 = arith.constant 5.000000e-01 : f32
    %496 = vector.broadcast %cst_253 : f32 to vector<2x64xf32>
    %497 = arith.addf %495, %496 : vector<2x64xf32>
    %498 = vector.extract_strided_slice %487 {offsets = [0, 128], sizes = [2, 64], strides = [1, 1]} : vector<2x256xf32> to vector<2x64xf32>
    %499 = vector.extract_strided_slice %487 {offsets = [0, 192], sizes = [2, 64], strides = [1, 1]} : vector<2x256xf32> to vector<2x64xf32>
    %cst_254 = arith.constant 5.000000e-01 : f32
    %500 = vector.broadcast %cst_254 : f32 to vector<2x64xf32>
    %501 = arith.mulf %500, %499 : vector<2x64xf32>
    %cst_255 = arith.constant 5.000000e-01 : f32
    %502 = vector.broadcast %cst_255 : f32 to vector<2x64xf32>
    %503 = arith.addf %501, %502 : vector<2x64xf32>
    %504 = arith.mulf %497, %468 : vector<2x64xf32>
    %505 = arith.mulf %492, %498 : vector<2x64xf32>
    %506 = arith.addf %504, %505 : vector<2x64xf32>
    %507 = math.tanh %506 : vector<2x64xf32>
    %508 = arith.mulf %503, %507 : vector<2x64xf32>
    %509 = arith.index_cast %c11_i32 : i32 to index
    %c0_256 = arith.constant 0 : index
    %c0_257 = arith.constant 0 : index
    %510 = vector.load %arg24[%509, %c0_256, %c0_257] : memref<18x2x64xf32, #tpu.memory_space<vmem>>, vector<1x2x64xf32>
    %511 = vector.shape_cast %510 : vector<1x2x64xf32> to vector<2x64xf32>
    %512 = vector.shape_cast %508 : vector<2x64xf32> to vector<1x2x64xf32>
    tpu.vector_store %arg24[%509, %c0_256, %c0_257], %512 {strides = array<i32>} : memref<18x2x64xf32, #tpu.memory_space<vmem>>, vector<1x2x64xf32>,
    %c12_i32 = arith.constant 12 : i32
    %513 = arith.index_cast %c12_i32 : i32 to index
    %c0_258 = arith.constant 0 : index
    %c0_259 = arith.constant 0 : index
    %514 = vector.load %arg20[%513, %c0_258, %c0_259] : memref<18x2x256xf32, #tpu.memory_space<vmem>>, vector<1x2x256xf32>
    %515 = vector.shape_cast %514 : vector<1x2x256xf32> to vector<2x256xf32>
    %c17_i32_260 = arith.constant 17 : i32
    %516 = arith.subi %c17_i32_260, %c12_i32 : i32
    %517 = arith.index_cast %516 : i32 to index
    %c0_261 = arith.constant 0 : index
    %c0_262 = arith.constant 0 : index
    %518 = vector.load %arg21[%517, %c0_261, %c0_262] : memref<18x2x256xf32, #tpu.memory_space<vmem>>, vector<1x2x256xf32>
    %519 = vector.shape_cast %518 : vector<1x2x256xf32> to vector<2x256xf32>
    %520 = arith.addf %515, %519 : vector<2x256xf32>
    %cst_263 = arith.constant dense<0.000000e+00> : vector<2x256xf32>
    %521 = tpu.matmul %508, %54, %cst_263 {dimension_numbers = #tpu.dot_dimension_numbers<[1], [0], [0], [1], [0, 0, 1, 1], [], []>} : vector<2x64xf32>, vector<64x256xf32>, vector<2x256xf32> -> vector<2x256xf32>
    %522 = arith.addf %520, %521 : vector<2x256xf32>
    %523 = vector.broadcast %55 : vector<1x256xf32> to vector<2x256xf32>
    %524 = arith.addf %522, %523 : vector<2x256xf32>
    %525 = math.tanh %524 : vector<2x256xf32>
    %526 = vector.extract_strided_slice %525 {offsets = [0, 0], sizes = [2, 64], strides = [1, 1]} : vector<2x256xf32> to vector<2x64xf32>
    %cst_264 = arith.constant 5.000000e-01 : f32
    %527 = vector.broadcast %cst_264 : f32 to vector<2x64xf32>
    %528 = arith.mulf %527, %526 : vector<2x64xf32>
    %cst_265 = arith.constant 5.000000e-01 : f32
    %529 = vector.broadcast %cst_265 : f32 to vector<2x64xf32>
    %530 = arith.addf %528, %529 : vector<2x64xf32>
    %531 = vector.extract_strided_slice %525 {offsets = [0, 64], sizes = [2, 64], strides = [1, 1]} : vector<2x256xf32> to vector<2x64xf32>
    %cst_266 = arith.constant 5.000000e-01 : f32
    %532 = vector.broadcast %cst_266 : f32 to vector<2x64xf32>
    %533 = arith.mulf %532, %531 : vector<2x64xf32>
    %cst_267 = arith.constant 5.000000e-01 : f32
    %534 = vector.broadcast %cst_267 : f32 to vector<2x64xf32>
    %535 = arith.addf %533, %534 : vector<2x64xf32>
    %536 = vector.extract_strided_slice %525 {offsets = [0, 128], sizes = [2, 64], strides = [1, 1]} : vector<2x256xf32> to vector<2x64xf32>
    %537 = vector.extract_strided_slice %525 {offsets = [0, 192], sizes = [2, 64], strides = [1, 1]} : vector<2x256xf32> to vector<2x64xf32>
    %cst_268 = arith.constant 5.000000e-01 : f32
    %538 = vector.broadcast %cst_268 : f32 to vector<2x64xf32>
    %539 = arith.mulf %538, %537 : vector<2x64xf32>
    %cst_269 = arith.constant 5.000000e-01 : f32
    %540 = vector.broadcast %cst_269 : f32 to vector<2x64xf32>
    %541 = arith.addf %539, %540 : vector<2x64xf32>
    %542 = arith.mulf %535, %506 : vector<2x64xf32>
    %543 = arith.mulf %530, %536 : vector<2x64xf32>
    %544 = arith.addf %542, %543 : vector<2x64xf32>
    %545 = math.tanh %544 : vector<2x64xf32>
    %546 = arith.mulf %541, %545 : vector<2x64xf32>
    %547 = arith.index_cast %c12_i32 : i32 to index
    %c0_270 = arith.constant 0 : index
    %c0_271 = arith.constant 0 : index
    %548 = vector.load %arg24[%547, %c0_270, %c0_271] : memref<18x2x64xf32, #tpu.memory_space<vmem>>, vector<1x2x64xf32>
    %549 = vector.shape_cast %548 : vector<1x2x64xf32> to vector<2x64xf32>
    %550 = vector.shape_cast %546 : vector<2x64xf32> to vector<1x2x64xf32>
    tpu.vector_store %arg24[%547, %c0_270, %c0_271], %550 {strides = array<i32>} : memref<18x2x64xf32, #tpu.memory_space<vmem>>, vector<1x2x64xf32>,
    %c13_i32 = arith.constant 13 : i32
    %551 = arith.index_cast %c13_i32 : i32 to index
    %c0_272 = arith.constant 0 : index
    %c0_273 = arith.constant 0 : index
    %552 = vector.load %arg20[%551, %c0_272, %c0_273] : memref<18x2x256xf32, #tpu.memory_space<vmem>>, vector<1x2x256xf32>
    %553 = vector.shape_cast %552 : vector<1x2x256xf32> to vector<2x256xf32>
    %c17_i32_274 = arith.constant 17 : i32
    %554 = arith.subi %c17_i32_274, %c13_i32 : i32
    %555 = arith.index_cast %554 : i32 to index
    %c0_275 = arith.constant 0 : index
    %c0_276 = arith.constant 0 : index
    %556 = vector.load %arg21[%555, %c0_275, %c0_276] : memref<18x2x256xf32, #tpu.memory_space<vmem>>, vector<1x2x256xf32>
    %557 = vector.shape_cast %556 : vector<1x2x256xf32> to vector<2x256xf32>
    %558 = arith.addf %553, %557 : vector<2x256xf32>
    %cst_277 = arith.constant dense<0.000000e+00> : vector<2x256xf32>
    %559 = tpu.matmul %546, %54, %cst_277 {dimension_numbers = #tpu.dot_dimension_numbers<[1], [0], [0], [1], [0, 0, 1, 1], [], []>} : vector<2x64xf32>, vector<64x256xf32>, vector<2x256xf32> -> vector<2x256xf32>
    %560 = arith.addf %558, %559 : vector<2x256xf32>
    %561 = vector.broadcast %55 : vector<1x256xf32> to vector<2x256xf32>
    %562 = arith.addf %560, %561 : vector<2x256xf32>
    %563 = math.tanh %562 : vector<2x256xf32>
    %564 = vector.extract_strided_slice %563 {offsets = [0, 0], sizes = [2, 64], strides = [1, 1]} : vector<2x256xf32> to vector<2x64xf32>
    %cst_278 = arith.constant 5.000000e-01 : f32
    %565 = vector.broadcast %cst_278 : f32 to vector<2x64xf32>
    %566 = arith.mulf %565, %564 : vector<2x64xf32>
    %cst_279 = arith.constant 5.000000e-01 : f32
    %567 = vector.broadcast %cst_279 : f32 to vector<2x64xf32>
    %568 = arith.addf %566, %567 : vector<2x64xf32>
    %569 = vector.extract_strided_slice %563 {offsets = [0, 64], sizes = [2, 64], strides = [1, 1]} : vector<2x256xf32> to vector<2x64xf32>
    %cst_280 = arith.constant 5.000000e-01 : f32
    %570 = vector.broadcast %cst_280 : f32 to vector<2x64xf32>
    %571 = arith.mulf %570, %569 : vector<2x64xf32>
    %cst_281 = arith.constant 5.000000e-01 : f32
    %572 = vector.broadcast %cst_281 : f32 to vector<2x64xf32>
    %573 = arith.addf %571, %572 : vector<2x64xf32>
    %574 = vector.extract_strided_slice %563 {offsets = [0, 128], sizes = [2, 64], strides = [1, 1]} : vector<2x256xf32> to vector<2x64xf32>
    %575 = vector.extract_strided_slice %563 {offsets = [0, 192], sizes = [2, 64], strides = [1, 1]} : vector<2x256xf32> to vector<2x64xf32>
    %cst_282 = arith.constant 5.000000e-01 : f32
    %576 = vector.broadcast %cst_282 : f32 to vector<2x64xf32>
    %577 = arith.mulf %576, %575 : vector<2x64xf32>
    %cst_283 = arith.constant 5.000000e-01 : f32
    %578 = vector.broadcast %cst_283 : f32 to vector<2x64xf32>
    %579 = arith.addf %577, %578 : vector<2x64xf32>
    %580 = arith.mulf %573, %544 : vector<2x64xf32>
    %581 = arith.mulf %568, %574 : vector<2x64xf32>
    %582 = arith.addf %580, %581 : vector<2x64xf32>
    %583 = math.tanh %582 : vector<2x64xf32>
    %584 = arith.mulf %579, %583 : vector<2x64xf32>
    %585 = arith.index_cast %c13_i32 : i32 to index
    %c0_284 = arith.constant 0 : index
    %c0_285 = arith.constant 0 : index
    %586 = vector.load %arg24[%585, %c0_284, %c0_285] : memref<18x2x64xf32, #tpu.memory_space<vmem>>, vector<1x2x64xf32>
    %587 = vector.shape_cast %586 : vector<1x2x64xf32> to vector<2x64xf32>
    %588 = vector.shape_cast %584 : vector<2x64xf32> to vector<1x2x64xf32>
    tpu.vector_store %arg24[%585, %c0_284, %c0_285], %588 {strides = array<i32>} : memref<18x2x64xf32, #tpu.memory_space<vmem>>, vector<1x2x64xf32>,
    %c14_i32 = arith.constant 14 : i32
    %589 = arith.index_cast %c14_i32 : i32 to index
    %c0_286 = arith.constant 0 : index
    %c0_287 = arith.constant 0 : index
    %590 = vector.load %arg20[%589, %c0_286, %c0_287] : memref<18x2x256xf32, #tpu.memory_space<vmem>>, vector<1x2x256xf32>
    %591 = vector.shape_cast %590 : vector<1x2x256xf32> to vector<2x256xf32>
    %c17_i32_288 = arith.constant 17 : i32
    %592 = arith.subi %c17_i32_288, %c14_i32 : i32
    %593 = arith.index_cast %592 : i32 to index
    %c0_289 = arith.constant 0 : index
    %c0_290 = arith.constant 0 : index
    %594 = vector.load %arg21[%593, %c0_289, %c0_290] : memref<18x2x256xf32, #tpu.memory_space<vmem>>, vector<1x2x256xf32>
    %595 = vector.shape_cast %594 : vector<1x2x256xf32> to vector<2x256xf32>
    %596 = arith.addf %591, %595 : vector<2x256xf32>
    %cst_291 = arith.constant dense<0.000000e+00> : vector<2x256xf32>
    %597 = tpu.matmul %584, %54, %cst_291 {dimension_numbers = #tpu.dot_dimension_numbers<[1], [0], [0], [1], [0, 0, 1, 1], [], []>} : vector<2x64xf32>, vector<64x256xf32>, vector<2x256xf32> -> vector<2x256xf32>
    %598 = arith.addf %596, %597 : vector<2x256xf32>
    %599 = vector.broadcast %55 : vector<1x256xf32> to vector<2x256xf32>
    %600 = arith.addf %598, %599 : vector<2x256xf32>
    %601 = math.tanh %600 : vector<2x256xf32>
    %602 = vector.extract_strided_slice %601 {offsets = [0, 0], sizes = [2, 64], strides = [1, 1]} : vector<2x256xf32> to vector<2x64xf32>
    %cst_292 = arith.constant 5.000000e-01 : f32
    %603 = vector.broadcast %cst_292 : f32 to vector<2x64xf32>
    %604 = arith.mulf %603, %602 : vector<2x64xf32>
    %cst_293 = arith.constant 5.000000e-01 : f32
    %605 = vector.broadcast %cst_293 : f32 to vector<2x64xf32>
    %606 = arith.addf %604, %605 : vector<2x64xf32>
    %607 = vector.extract_strided_slice %601 {offsets = [0, 64], sizes = [2, 64], strides = [1, 1]} : vector<2x256xf32> to vector<2x64xf32>
    %cst_294 = arith.constant 5.000000e-01 : f32
    %608 = vector.broadcast %cst_294 : f32 to vector<2x64xf32>
    %609 = arith.mulf %608, %607 : vector<2x64xf32>
    %cst_295 = arith.constant 5.000000e-01 : f32
    %610 = vector.broadcast %cst_295 : f32 to vector<2x64xf32>
    %611 = arith.addf %609, %610 : vector<2x64xf32>
    %612 = vector.extract_strided_slice %601 {offsets = [0, 128], sizes = [2, 64], strides = [1, 1]} : vector<2x256xf32> to vector<2x64xf32>
    %613 = vector.extract_strided_slice %601 {offsets = [0, 192], sizes = [2, 64], strides = [1, 1]} : vector<2x256xf32> to vector<2x64xf32>
    %cst_296 = arith.constant 5.000000e-01 : f32
    %614 = vector.broadcast %cst_296 : f32 to vector<2x64xf32>
    %615 = arith.mulf %614, %613 : vector<2x64xf32>
    %cst_297 = arith.constant 5.000000e-01 : f32
    %616 = vector.broadcast %cst_297 : f32 to vector<2x64xf32>
    %617 = arith.addf %615, %616 : vector<2x64xf32>
    %618 = arith.mulf %611, %582 : vector<2x64xf32>
    %619 = arith.mulf %606, %612 : vector<2x64xf32>
    %620 = arith.addf %618, %619 : vector<2x64xf32>
    %621 = math.tanh %620 : vector<2x64xf32>
    %622 = arith.mulf %617, %621 : vector<2x64xf32>
    %623 = arith.index_cast %c14_i32 : i32 to index
    %c0_298 = arith.constant 0 : index
    %c0_299 = arith.constant 0 : index
    %624 = vector.load %arg24[%623, %c0_298, %c0_299] : memref<18x2x64xf32, #tpu.memory_space<vmem>>, vector<1x2x64xf32>
    %625 = vector.shape_cast %624 : vector<1x2x64xf32> to vector<2x64xf32>
    %626 = vector.shape_cast %622 : vector<2x64xf32> to vector<1x2x64xf32>
    tpu.vector_store %arg24[%623, %c0_298, %c0_299], %626 {strides = array<i32>} : memref<18x2x64xf32, #tpu.memory_space<vmem>>, vector<1x2x64xf32>,
    %c15_i32 = arith.constant 15 : i32
    %627 = arith.index_cast %c15_i32 : i32 to index
    %c0_300 = arith.constant 0 : index
    %c0_301 = arith.constant 0 : index
    %628 = vector.load %arg20[%627, %c0_300, %c0_301] : memref<18x2x256xf32, #tpu.memory_space<vmem>>, vector<1x2x256xf32>
    %629 = vector.shape_cast %628 : vector<1x2x256xf32> to vector<2x256xf32>
    %c17_i32_302 = arith.constant 17 : i32
    %630 = arith.subi %c17_i32_302, %c15_i32 : i32
    %631 = arith.index_cast %630 : i32 to index
    %c0_303 = arith.constant 0 : index
    %c0_304 = arith.constant 0 : index
    %632 = vector.load %arg21[%631, %c0_303, %c0_304] : memref<18x2x256xf32, #tpu.memory_space<vmem>>, vector<1x2x256xf32>
    %633 = vector.shape_cast %632 : vector<1x2x256xf32> to vector<2x256xf32>
    %634 = arith.addf %629, %633 : vector<2x256xf32>
    %cst_305 = arith.constant dense<0.000000e+00> : vector<2x256xf32>
    %635 = tpu.matmul %622, %54, %cst_305 {dimension_numbers = #tpu.dot_dimension_numbers<[1], [0], [0], [1], [0, 0, 1, 1], [], []>} : vector<2x64xf32>, vector<64x256xf32>, vector<2x256xf32> -> vector<2x256xf32>
    %636 = arith.addf %634, %635 : vector<2x256xf32>
    %637 = vector.broadcast %55 : vector<1x256xf32> to vector<2x256xf32>
    %638 = arith.addf %636, %637 : vector<2x256xf32>
    %639 = math.tanh %638 : vector<2x256xf32>
    %640 = vector.extract_strided_slice %639 {offsets = [0, 0], sizes = [2, 64], strides = [1, 1]} : vector<2x256xf32> to vector<2x64xf32>
    %cst_306 = arith.constant 5.000000e-01 : f32
    %641 = vector.broadcast %cst_306 : f32 to vector<2x64xf32>
    %642 = arith.mulf %641, %640 : vector<2x64xf32>
    %cst_307 = arith.constant 5.000000e-01 : f32
    %643 = vector.broadcast %cst_307 : f32 to vector<2x64xf32>
    %644 = arith.addf %642, %643 : vector<2x64xf32>
    %645 = vector.extract_strided_slice %639 {offsets = [0, 64], sizes = [2, 64], strides = [1, 1]} : vector<2x256xf32> to vector<2x64xf32>
    %cst_308 = arith.constant 5.000000e-01 : f32
    %646 = vector.broadcast %cst_308 : f32 to vector<2x64xf32>
    %647 = arith.mulf %646, %645 : vector<2x64xf32>
    %cst_309 = arith.constant 5.000000e-01 : f32
    %648 = vector.broadcast %cst_309 : f32 to vector<2x64xf32>
    %649 = arith.addf %647, %648 : vector<2x64xf32>
    %650 = vector.extract_strided_slice %639 {offsets = [0, 128], sizes = [2, 64], strides = [1, 1]} : vector<2x256xf32> to vector<2x64xf32>
    %651 = vector.extract_strided_slice %639 {offsets = [0, 192], sizes = [2, 64], strides = [1, 1]} : vector<2x256xf32> to vector<2x64xf32>
    %cst_310 = arith.constant 5.000000e-01 : f32
    %652 = vector.broadcast %cst_310 : f32 to vector<2x64xf32>
    %653 = arith.mulf %652, %651 : vector<2x64xf32>
    %cst_311 = arith.constant 5.000000e-01 : f32
    %654 = vector.broadcast %cst_311 : f32 to vector<2x64xf32>
    %655 = arith.addf %653, %654 : vector<2x64xf32>
    %656 = arith.mulf %649, %620 : vector<2x64xf32>
    %657 = arith.mulf %644, %650 : vector<2x64xf32>
    %658 = arith.addf %656, %657 : vector<2x64xf32>
    %659 = math.tanh %658 : vector<2x64xf32>
    %660 = arith.mulf %655, %659 : vector<2x64xf32>
    %661 = arith.index_cast %c15_i32 : i32 to index
    %c0_312 = arith.constant 0 : index
    %c0_313 = arith.constant 0 : index
    %662 = vector.load %arg24[%661, %c0_312, %c0_313] : memref<18x2x64xf32, #tpu.memory_space<vmem>>, vector<1x2x64xf32>
    %663 = vector.shape_cast %662 : vector<1x2x64xf32> to vector<2x64xf32>
    %664 = vector.shape_cast %660 : vector<2x64xf32> to vector<1x2x64xf32>
    tpu.vector_store %arg24[%661, %c0_312, %c0_313], %664 {strides = array<i32>} : memref<18x2x64xf32, #tpu.memory_space<vmem>>, vector<1x2x64xf32>,
    %c16_i32 = arith.constant 16 : i32
    %665 = arith.index_cast %c16_i32 : i32 to index
    %c0_314 = arith.constant 0 : index
    %c0_315 = arith.constant 0 : index
    %666 = vector.load %arg20[%665, %c0_314, %c0_315] : memref<18x2x256xf32, #tpu.memory_space<vmem>>, vector<1x2x256xf32>
    %667 = vector.shape_cast %666 : vector<1x2x256xf32> to vector<2x256xf32>
    %c17_i32_316 = arith.constant 17 : i32
    %668 = arith.subi %c17_i32_316, %c16_i32 : i32
    %669 = arith.index_cast %668 : i32 to index
    %c0_317 = arith.constant 0 : index
    %c0_318 = arith.constant 0 : index
    %670 = vector.load %arg21[%669, %c0_317, %c0_318] : memref<18x2x256xf32, #tpu.memory_space<vmem>>, vector<1x2x256xf32>
    %671 = vector.shape_cast %670 : vector<1x2x256xf32> to vector<2x256xf32>
    %672 = arith.addf %667, %671 : vector<2x256xf32>
    %cst_319 = arith.constant dense<0.000000e+00> : vector<2x256xf32>
    %673 = tpu.matmul %660, %54, %cst_319 {dimension_numbers = #tpu.dot_dimension_numbers<[1], [0], [0], [1], [0, 0, 1, 1], [], []>} : vector<2x64xf32>, vector<64x256xf32>, vector<2x256xf32> -> vector<2x256xf32>
    %674 = arith.addf %672, %673 : vector<2x256xf32>
    %675 = vector.broadcast %55 : vector<1x256xf32> to vector<2x256xf32>
    %676 = arith.addf %674, %675 : vector<2x256xf32>
    %677 = math.tanh %676 : vector<2x256xf32>
    %678 = vector.extract_strided_slice %677 {offsets = [0, 0], sizes = [2, 64], strides = [1, 1]} : vector<2x256xf32> to vector<2x64xf32>
    %cst_320 = arith.constant 5.000000e-01 : f32
    %679 = vector.broadcast %cst_320 : f32 to vector<2x64xf32>
    %680 = arith.mulf %679, %678 : vector<2x64xf32>
    %cst_321 = arith.constant 5.000000e-01 : f32
    %681 = vector.broadcast %cst_321 : f32 to vector<2x64xf32>
    %682 = arith.addf %680, %681 : vector<2x64xf32>
    %683 = vector.extract_strided_slice %677 {offsets = [0, 64], sizes = [2, 64], strides = [1, 1]} : vector<2x256xf32> to vector<2x64xf32>
    %cst_322 = arith.constant 5.000000e-01 : f32
    %684 = vector.broadcast %cst_322 : f32 to vector<2x64xf32>
    %685 = arith.mulf %684, %683 : vector<2x64xf32>
    %cst_323 = arith.constant 5.000000e-01 : f32
    %686 = vector.broadcast %cst_323 : f32 to vector<2x64xf32>
    %687 = arith.addf %685, %686 : vector<2x64xf32>
    %688 = vector.extract_strided_slice %677 {offsets = [0, 128], sizes = [2, 64], strides = [1, 1]} : vector<2x256xf32> to vector<2x64xf32>
    %689 = vector.extract_strided_slice %677 {offsets = [0, 192], sizes = [2, 64], strides = [1, 1]} : vector<2x256xf32> to vector<2x64xf32>
    %cst_324 = arith.constant 5.000000e-01 : f32
    %690 = vector.broadcast %cst_324 : f32 to vector<2x64xf32>
    %691 = arith.mulf %690, %689 : vector<2x64xf32>
    %cst_325 = arith.constant 5.000000e-01 : f32
    %692 = vector.broadcast %cst_325 : f32 to vector<2x64xf32>
    %693 = arith.addf %691, %692 : vector<2x64xf32>
    %694 = arith.mulf %687, %658 : vector<2x64xf32>
    %695 = arith.mulf %682, %688 : vector<2x64xf32>
    %696 = arith.addf %694, %695 : vector<2x64xf32>
    %697 = math.tanh %696 : vector<2x64xf32>
    %698 = arith.mulf %693, %697 : vector<2x64xf32>
    %699 = arith.index_cast %c16_i32 : i32 to index
    %c0_326 = arith.constant 0 : index
    %c0_327 = arith.constant 0 : index
    %700 = vector.load %arg24[%699, %c0_326, %c0_327] : memref<18x2x64xf32, #tpu.memory_space<vmem>>, vector<1x2x64xf32>
    %701 = vector.shape_cast %700 : vector<1x2x64xf32> to vector<2x64xf32>
    %702 = vector.shape_cast %698 : vector<2x64xf32> to vector<1x2x64xf32>
    tpu.vector_store %arg24[%699, %c0_326, %c0_327], %702 {strides = array<i32>} : memref<18x2x64xf32, #tpu.memory_space<vmem>>, vector<1x2x64xf32>,
    %c17_i32_328 = arith.constant 17 : i32
    %703 = arith.index_cast %c17_i32_328 : i32 to index
    %c0_329 = arith.constant 0 : index
    %c0_330 = arith.constant 0 : index
    %704 = vector.load %arg20[%703, %c0_329, %c0_330] : memref<18x2x256xf32, #tpu.memory_space<vmem>>, vector<1x2x256xf32>
    %705 = vector.shape_cast %704 : vector<1x2x256xf32> to vector<2x256xf32>
    %c17_i32_331 = arith.constant 17 : i32
    %706 = arith.subi %c17_i32_331, %c17_i32_328 : i32
    %707 = arith.index_cast %706 : i32 to index
    %c0_332 = arith.constant 0 : index
    %c0_333 = arith.constant 0 : index
    %708 = vector.load %arg21[%707, %c0_332, %c0_333] : memref<18x2x256xf32, #tpu.memory_space<vmem>>, vector<1x2x256xf32>
    %709 = vector.shape_cast %708 : vector<1x2x256xf32> to vector<2x256xf32>
    %710 = arith.addf %705, %709 : vector<2x256xf32>
    %cst_334 = arith.constant dense<0.000000e+00> : vector<2x256xf32>
    %711 = tpu.matmul %698, %54, %cst_334 {dimension_numbers = #tpu.dot_dimension_numbers<[1], [0], [0], [1], [0, 0, 1, 1], [], []>} : vector<2x64xf32>, vector<64x256xf32>, vector<2x256xf32> -> vector<2x256xf32>
    %712 = arith.addf %710, %711 : vector<2x256xf32>
    %713 = vector.broadcast %55 : vector<1x256xf32> to vector<2x256xf32>
    %714 = arith.addf %712, %713 : vector<2x256xf32>
    %715 = math.tanh %714 : vector<2x256xf32>
    %716 = vector.extract_strided_slice %715 {offsets = [0, 0], sizes = [2, 64], strides = [1, 1]} : vector<2x256xf32> to vector<2x64xf32>
    %cst_335 = arith.constant 5.000000e-01 : f32
    %717 = vector.broadcast %cst_335 : f32 to vector<2x64xf32>
    %718 = arith.mulf %717, %716 : vector<2x64xf32>
    %cst_336 = arith.constant 5.000000e-01 : f32
    %719 = vector.broadcast %cst_336 : f32 to vector<2x64xf32>
    %720 = arith.addf %718, %719 : vector<2x64xf32>
    %721 = vector.extract_strided_slice %715 {offsets = [0, 64], sizes = [2, 64], strides = [1, 1]} : vector<2x256xf32> to vector<2x64xf32>
    %cst_337 = arith.constant 5.000000e-01 : f32
    %722 = vector.broadcast %cst_337 : f32 to vector<2x64xf32>
    %723 = arith.mulf %722, %721 : vector<2x64xf32>
    %cst_338 = arith.constant 5.000000e-01 : f32
    %724 = vector.broadcast %cst_338 : f32 to vector<2x64xf32>
    %725 = arith.addf %723, %724 : vector<2x64xf32>
    %726 = vector.extract_strided_slice %715 {offsets = [0, 128], sizes = [2, 64], strides = [1, 1]} : vector<2x256xf32> to vector<2x64xf32>
    %727 = vector.extract_strided_slice %715 {offsets = [0, 192], sizes = [2, 64], strides = [1, 1]} : vector<2x256xf32> to vector<2x64xf32>
    %cst_339 = arith.constant 5.000000e-01 : f32
    %728 = vector.broadcast %cst_339 : f32 to vector<2x64xf32>
    %729 = arith.mulf %728, %727 : vector<2x64xf32>
    %cst_340 = arith.constant 5.000000e-01 : f32
    %730 = vector.broadcast %cst_340 : f32 to vector<2x64xf32>
    %731 = arith.addf %729, %730 : vector<2x64xf32>
    %732 = arith.mulf %725, %696 : vector<2x64xf32>
    %733 = arith.mulf %720, %726 : vector<2x64xf32>
    %734 = arith.addf %732, %733 : vector<2x64xf32>
    %735 = math.tanh %734 : vector<2x64xf32>
    %736 = arith.mulf %731, %735 : vector<2x64xf32>
    %737 = arith.index_cast %c17_i32_328 : i32 to index
    %c0_341 = arith.constant 0 : index
    %c0_342 = arith.constant 0 : index
    %738 = vector.load %arg24[%737, %c0_341, %c0_342] : memref<18x2x64xf32, #tpu.memory_space<vmem>>, vector<1x2x64xf32>
    %739 = vector.shape_cast %738 : vector<1x2x64xf32> to vector<2x64xf32>
    %740 = vector.shape_cast %736 : vector<2x64xf32> to vector<1x2x64xf32>
    tpu.vector_store %arg24[%737, %c0_341, %c0_342], %740 {strides = array<i32>} : memref<18x2x64xf32, #tpu.memory_space<vmem>>, vector<1x2x64xf32>,
    %c18_i32 = arith.constant 18 : i32
    %c0_343 = arith.constant 0 : index
    %c0_344 = arith.constant 0 : index
    %c0_345 = arith.constant 0 : index
    %741 = vector.load %arg24[%c0_343, %c0_344, %c0_345] : memref<18x2x64xf32, #tpu.memory_space<vmem>>, vector<18x2x64xf32>
    %742 = vector.shape_cast %741 : vector<18x2x64xf32> to vector<36x64xf32>
    %c0_346 = arith.constant 0 : index
    %c0_347 = arith.constant 0 : index
    %743 = vector.load %arg9[%c0_346, %c0_347] : memref<64x256xf32, #tpu.memory_space<vmem>>, vector<64x256xf32>
    %cst_348 = arith.constant dense<0.000000e+00> : vector<36x256xf32>
    %744 = tpu.matmul %742, %743, %cst_348 {dimension_numbers = #tpu.dot_dimension_numbers<[1], [0], [0], [1], [0, 0, 1, 1], [], []>} : vector<36x64xf32>, vector<64x256xf32>, vector<36x256xf32> -> vector<36x256xf32>
    %745 = vector.shape_cast %744 : vector<36x256xf32> to vector<18x2x256xf32>
    %c0_349 = arith.constant 0 : index
    %c0_350 = arith.constant 0 : index
    %c0_351 = arith.constant 0 : index
    %746 = vector.load %arg22[%c0_349, %c0_350, %c0_351] : memref<18x2x256xf32, #tpu.memory_space<vmem>>, vector<18x2x256xf32>
    tpu.vector_store %arg22[%c0_349, %c0_350, %c0_351], %745 {strides = array<i32>} : memref<18x2x256xf32, #tpu.memory_space<vmem>>, vector<18x2x256xf32>,
    %c0_352 = arith.constant 0 : index
    %c0_353 = arith.constant 0 : index
    %747 = vector.load %arg10[%c0_352, %c0_353] : memref<64x256xf32, #tpu.memory_space<vmem>>, vector<64x256xf32>
    %cst_354 = arith.constant dense<0.000000e+00> : vector<36x256xf32>
    %748 = tpu.matmul %742, %747, %cst_354 {dimension_numbers = #tpu.dot_dimension_numbers<[1], [0], [0], [1], [0, 0, 1, 1], [], []>} : vector<36x64xf32>, vector<64x256xf32>, vector<36x256xf32> -> vector<36x256xf32>
    %749 = vector.shape_cast %748 : vector<36x256xf32> to vector<18x2x256xf32>
    %c0_355 = arith.constant 0 : index
    %c0_356 = arith.constant 0 : index
    %c0_357 = arith.constant 0 : index
    %750 = vector.load %arg23[%c0_355, %c0_356, %c0_357] : memref<18x2x256xf32, #tpu.memory_space<vmem>>, vector<18x2x256xf32>
    tpu.vector_store %arg23[%c0_355, %c0_356, %c0_357], %749 {strides = array<i32>} : memref<18x2x256xf32, #tpu.memory_space<vmem>>, vector<18x2x256xf32>,
    %c0_358 = arith.constant 0 : index
    %c0_359 = arith.constant 0 : index
    %751 = vector.load %arg11[%c0_358, %c0_359] : memref<64x256xf32, #tpu.memory_space<vmem>>, vector<64x256xf32>
    %c0_360 = arith.constant 0 : index
    %c0_361 = arith.constant 0 : index
    %752 = vector.load %arg12[%c0_360, %c0_361] : memref<1x256xf32, #tpu.memory_space<vmem>>, vector<1x256xf32>
    %c0_i32_362 = arith.constant 0 : i32
    %753 = arith.index_cast %c0_i32_362 : i32 to index
    %c0_363 = arith.constant 0 : index
    %c0_364 = arith.constant 0 : index
    %754 = vector.load %arg22[%753, %c0_363, %c0_364] : memref<18x2x256xf32, #tpu.memory_space<vmem>>, vector<1x2x256xf32>
    %755 = vector.shape_cast %754 : vector<1x2x256xf32> to vector<2x256xf32>
    %c17_i32_365 = arith.constant 17 : i32
    %756 = arith.subi %c17_i32_365, %c0_i32_362 : i32
    %757 = arith.index_cast %756 : i32 to index
    %c0_366 = arith.constant 0 : index
    %c0_367 = arith.constant 0 : index
    %758 = vector.load %arg23[%757, %c0_366, %c0_367] : memref<18x2x256xf32, #tpu.memory_space<vmem>>, vector<1x2x256xf32>
    %759 = vector.shape_cast %758 : vector<1x2x256xf32> to vector<2x256xf32>
    %760 = arith.addf %755, %759 : vector<2x256xf32>
    %cst_368 = arith.constant dense<0.000000e+00> : vector<2x256xf32>
    %761 = tpu.matmul %56, %751, %cst_368 {dimension_numbers = #tpu.dot_dimension_numbers<[1], [0], [0], [1], [0, 0, 1, 1], [], []>} : vector<2x64xf32>, vector<64x256xf32>, vector<2x256xf32> -> vector<2x256xf32>
    %762 = arith.addf %760, %761 : vector<2x256xf32>
    %763 = vector.broadcast %752 : vector<1x256xf32> to vector<2x256xf32>
    %764 = arith.addf %762, %763 : vector<2x256xf32>
    %765 = math.tanh %764 : vector<2x256xf32>
    %766 = vector.extract_strided_slice %765 {offsets = [0, 0], sizes = [2, 64], strides = [1, 1]} : vector<2x256xf32> to vector<2x64xf32>
    %cst_369 = arith.constant 5.000000e-01 : f32
    %767 = vector.broadcast %cst_369 : f32 to vector<2x64xf32>
    %768 = arith.mulf %767, %766 : vector<2x64xf32>
    %cst_370 = arith.constant 5.000000e-01 : f32
    %769 = vector.broadcast %cst_370 : f32 to vector<2x64xf32>
    %770 = arith.addf %768, %769 : vector<2x64xf32>
    %771 = vector.extract_strided_slice %765 {offsets = [0, 64], sizes = [2, 64], strides = [1, 1]} : vector<2x256xf32> to vector<2x64xf32>
    %cst_371 = arith.constant 5.000000e-01 : f32
    %772 = vector.broadcast %cst_371 : f32 to vector<2x64xf32>
    %773 = arith.mulf %772, %771 : vector<2x64xf32>
    %cst_372 = arith.constant 5.000000e-01 : f32
    %774 = vector.broadcast %cst_372 : f32 to vector<2x64xf32>
    %775 = arith.addf %773, %774 : vector<2x64xf32>
    %776 = vector.extract_strided_slice %765 {offsets = [0, 128], sizes = [2, 64], strides = [1, 1]} : vector<2x256xf32> to vector<2x64xf32>
    %777 = vector.extract_strided_slice %765 {offsets = [0, 192], sizes = [2, 64], strides = [1, 1]} : vector<2x256xf32> to vector<2x64xf32>
    %cst_373 = arith.constant 5.000000e-01 : f32
    %778 = vector.broadcast %cst_373 : f32 to vector<2x64xf32>
    %779 = arith.mulf %778, %777 : vector<2x64xf32>
    %cst_374 = arith.constant 5.000000e-01 : f32
    %780 = vector.broadcast %cst_374 : f32 to vector<2x64xf32>
    %781 = arith.addf %779, %780 : vector<2x64xf32>
    %782 = arith.mulf %775, %56 : vector<2x64xf32>
    %783 = arith.mulf %770, %776 : vector<2x64xf32>
    %784 = arith.addf %782, %783 : vector<2x64xf32>
    %785 = math.tanh %784 : vector<2x64xf32>
    %786 = arith.mulf %781, %785 : vector<2x64xf32>
    %787 = arith.addf %56, %786 : vector<2x64xf32>
    %c1_i32_375 = arith.constant 1 : i32
    %788 = arith.index_cast %c1_i32_375 : i32 to index
    %c0_376 = arith.constant 0 : index
    %c0_377 = arith.constant 0 : index
    %789 = vector.load %arg22[%788, %c0_376, %c0_377] : memref<18x2x256xf32, #tpu.memory_space<vmem>>, vector<1x2x256xf32>
    %790 = vector.shape_cast %789 : vector<1x2x256xf32> to vector<2x256xf32>
    %c17_i32_378 = arith.constant 17 : i32
    %791 = arith.subi %c17_i32_378, %c1_i32_375 : i32
    %792 = arith.index_cast %791 : i32 to index
    %c0_379 = arith.constant 0 : index
    %c0_380 = arith.constant 0 : index
    %793 = vector.load %arg23[%792, %c0_379, %c0_380] : memref<18x2x256xf32, #tpu.memory_space<vmem>>, vector<1x2x256xf32>
    %794 = vector.shape_cast %793 : vector<1x2x256xf32> to vector<2x256xf32>
    %795 = arith.addf %790, %794 : vector<2x256xf32>
    %cst_381 = arith.constant dense<0.000000e+00> : vector<2x256xf32>
    %796 = tpu.matmul %786, %751, %cst_381 {dimension_numbers = #tpu.dot_dimension_numbers<[1], [0], [0], [1], [0, 0, 1, 1], [], []>} : vector<2x64xf32>, vector<64x256xf32>, vector<2x256xf32> -> vector<2x256xf32>
    %797 = arith.addf %795, %796 : vector<2x256xf32>
    %798 = vector.broadcast %752 : vector<1x256xf32> to vector<2x256xf32>
    %799 = arith.addf %797, %798 : vector<2x256xf32>
    %800 = math.tanh %799 : vector<2x256xf32>
    %801 = vector.extract_strided_slice %800 {offsets = [0, 0], sizes = [2, 64], strides = [1, 1]} : vector<2x256xf32> to vector<2x64xf32>
    %cst_382 = arith.constant 5.000000e-01 : f32
    %802 = vector.broadcast %cst_382 : f32 to vector<2x64xf32>
    %803 = arith.mulf %802, %801 : vector<2x64xf32>
    %cst_383 = arith.constant 5.000000e-01 : f32
    %804 = vector.broadcast %cst_383 : f32 to vector<2x64xf32>
    %805 = arith.addf %803, %804 : vector<2x64xf32>
    %806 = vector.extract_strided_slice %800 {offsets = [0, 64], sizes = [2, 64], strides = [1, 1]} : vector<2x256xf32> to vector<2x64xf32>
    %cst_384 = arith.constant 5.000000e-01 : f32
    %807 = vector.broadcast %cst_384 : f32 to vector<2x64xf32>
    %808 = arith.mulf %807, %806 : vector<2x64xf32>
    %cst_385 = arith.constant 5.000000e-01 : f32
    %809 = vector.broadcast %cst_385 : f32 to vector<2x64xf32>
    %810 = arith.addf %808, %809 : vector<2x64xf32>
    %811 = vector.extract_strided_slice %800 {offsets = [0, 128], sizes = [2, 64], strides = [1, 1]} : vector<2x256xf32> to vector<2x64xf32>
    %812 = vector.extract_strided_slice %800 {offsets = [0, 192], sizes = [2, 64], strides = [1, 1]} : vector<2x256xf32> to vector<2x64xf32>
    %cst_386 = arith.constant 5.000000e-01 : f32
    %813 = vector.broadcast %cst_386 : f32 to vector<2x64xf32>
    %814 = arith.mulf %813, %812 : vector<2x64xf32>
    %cst_387 = arith.constant 5.000000e-01 : f32
    %815 = vector.broadcast %cst_387 : f32 to vector<2x64xf32>
    %816 = arith.addf %814, %815 : vector<2x64xf32>
    %817 = arith.mulf %810, %784 : vector<2x64xf32>
    %818 = arith.mulf %805, %811 : vector<2x64xf32>
    %819 = arith.addf %817, %818 : vector<2x64xf32>
    %820 = math.tanh %819 : vector<2x64xf32>
    %821 = arith.mulf %816, %820 : vector<2x64xf32>
    %822 = arith.addf %787, %821 : vector<2x64xf32>
    %c2_i32_388 = arith.constant 2 : i32
    %823 = arith.index_cast %c2_i32_388 : i32 to index
    %c0_389 = arith.constant 0 : index
    %c0_390 = arith.constant 0 : index
    %824 = vector.load %arg22[%823, %c0_389, %c0_390] : memref<18x2x256xf32, #tpu.memory_space<vmem>>, vector<1x2x256xf32>
    %825 = vector.shape_cast %824 : vector<1x2x256xf32> to vector<2x256xf32>
    %c17_i32_391 = arith.constant 17 : i32
    %826 = arith.subi %c17_i32_391, %c2_i32_388 : i32
    %827 = arith.index_cast %826 : i32 to index
    %c0_392 = arith.constant 0 : index
    %c0_393 = arith.constant 0 : index
    %828 = vector.load %arg23[%827, %c0_392, %c0_393] : memref<18x2x256xf32, #tpu.memory_space<vmem>>, vector<1x2x256xf32>
    %829 = vector.shape_cast %828 : vector<1x2x256xf32> to vector<2x256xf32>
    %830 = arith.addf %825, %829 : vector<2x256xf32>
    %cst_394 = arith.constant dense<0.000000e+00> : vector<2x256xf32>
    %831 = tpu.matmul %821, %751, %cst_394 {dimension_numbers = #tpu.dot_dimension_numbers<[1], [0], [0], [1], [0, 0, 1, 1], [], []>} : vector<2x64xf32>, vector<64x256xf32>, vector<2x256xf32> -> vector<2x256xf32>
    %832 = arith.addf %830, %831 : vector<2x256xf32>
    %833 = vector.broadcast %752 : vector<1x256xf32> to vector<2x256xf32>
    %834 = arith.addf %832, %833 : vector<2x256xf32>
    %835 = math.tanh %834 : vector<2x256xf32>
    %836 = vector.extract_strided_slice %835 {offsets = [0, 0], sizes = [2, 64], strides = [1, 1]} : vector<2x256xf32> to vector<2x64xf32>
    %cst_395 = arith.constant 5.000000e-01 : f32
    %837 = vector.broadcast %cst_395 : f32 to vector<2x64xf32>
    %838 = arith.mulf %837, %836 : vector<2x64xf32>
    %cst_396 = arith.constant 5.000000e-01 : f32
    %839 = vector.broadcast %cst_396 : f32 to vector<2x64xf32>
    %840 = arith.addf %838, %839 : vector<2x64xf32>
    %841 = vector.extract_strided_slice %835 {offsets = [0, 64], sizes = [2, 64], strides = [1, 1]} : vector<2x256xf32> to vector<2x64xf32>
    %cst_397 = arith.constant 5.000000e-01 : f32
    %842 = vector.broadcast %cst_397 : f32 to vector<2x64xf32>
    %843 = arith.mulf %842, %841 : vector<2x64xf32>
    %cst_398 = arith.constant 5.000000e-01 : f32
    %844 = vector.broadcast %cst_398 : f32 to vector<2x64xf32>
    %845 = arith.addf %843, %844 : vector<2x64xf32>
    %846 = vector.extract_strided_slice %835 {offsets = [0, 128], sizes = [2, 64], strides = [1, 1]} : vector<2x256xf32> to vector<2x64xf32>
    %847 = vector.extract_strided_slice %835 {offsets = [0, 192], sizes = [2, 64], strides = [1, 1]} : vector<2x256xf32> to vector<2x64xf32>
    %cst_399 = arith.constant 5.000000e-01 : f32
    %848 = vector.broadcast %cst_399 : f32 to vector<2x64xf32>
    %849 = arith.mulf %848, %847 : vector<2x64xf32>
    %cst_400 = arith.constant 5.000000e-01 : f32
    %850 = vector.broadcast %cst_400 : f32 to vector<2x64xf32>
    %851 = arith.addf %849, %850 : vector<2x64xf32>
    %852 = arith.mulf %845, %819 : vector<2x64xf32>
    %853 = arith.mulf %840, %846 : vector<2x64xf32>
    %854 = arith.addf %852, %853 : vector<2x64xf32>
    %855 = math.tanh %854 : vector<2x64xf32>
    %856 = arith.mulf %851, %855 : vector<2x64xf32>
    %857 = arith.addf %822, %856 : vector<2x64xf32>
    %c3_i32_401 = arith.constant 3 : i32
    %858 = arith.index_cast %c3_i32_401 : i32 to index
    %c0_402 = arith.constant 0 : index
    %c0_403 = arith.constant 0 : index
    %859 = vector.load %arg22[%858, %c0_402, %c0_403] : memref<18x2x256xf32, #tpu.memory_space<vmem>>, vector<1x2x256xf32>
    %860 = vector.shape_cast %859 : vector<1x2x256xf32> to vector<2x256xf32>
    %c17_i32_404 = arith.constant 17 : i32
    %861 = arith.subi %c17_i32_404, %c3_i32_401 : i32
    %862 = arith.index_cast %861 : i32 to index
    %c0_405 = arith.constant 0 : index
    %c0_406 = arith.constant 0 : index
    %863 = vector.load %arg23[%862, %c0_405, %c0_406] : memref<18x2x256xf32, #tpu.memory_space<vmem>>, vector<1x2x256xf32>
    %864 = vector.shape_cast %863 : vector<1x2x256xf32> to vector<2x256xf32>
    %865 = arith.addf %860, %864 : vector<2x256xf32>
    %cst_407 = arith.constant dense<0.000000e+00> : vector<2x256xf32>
    %866 = tpu.matmul %856, %751, %cst_407 {dimension_numbers = #tpu.dot_dimension_numbers<[1], [0], [0], [1], [0, 0, 1, 1], [], []>} : vector<2x64xf32>, vector<64x256xf32>, vector<2x256xf32> -> vector<2x256xf32>
    %867 = arith.addf %865, %866 : vector<2x256xf32>
    %868 = vector.broadcast %752 : vector<1x256xf32> to vector<2x256xf32>
    %869 = arith.addf %867, %868 : vector<2x256xf32>
    %870 = math.tanh %869 : vector<2x256xf32>
    %871 = vector.extract_strided_slice %870 {offsets = [0, 0], sizes = [2, 64], strides = [1, 1]} : vector<2x256xf32> to vector<2x64xf32>
    %cst_408 = arith.constant 5.000000e-01 : f32
    %872 = vector.broadcast %cst_408 : f32 to vector<2x64xf32>
    %873 = arith.mulf %872, %871 : vector<2x64xf32>
    %cst_409 = arith.constant 5.000000e-01 : f32
    %874 = vector.broadcast %cst_409 : f32 to vector<2x64xf32>
    %875 = arith.addf %873, %874 : vector<2x64xf32>
    %876 = vector.extract_strided_slice %870 {offsets = [0, 64], sizes = [2, 64], strides = [1, 1]} : vector<2x256xf32> to vector<2x64xf32>
    %cst_410 = arith.constant 5.000000e-01 : f32
    %877 = vector.broadcast %cst_410 : f32 to vector<2x64xf32>
    %878 = arith.mulf %877, %876 : vector<2x64xf32>
    %cst_411 = arith.constant 5.000000e-01 : f32
    %879 = vector.broadcast %cst_411 : f32 to vector<2x64xf32>
    %880 = arith.addf %878, %879 : vector<2x64xf32>
    %881 = vector.extract_strided_slice %870 {offsets = [0, 128], sizes = [2, 64], strides = [1, 1]} : vector<2x256xf32> to vector<2x64xf32>
    %882 = vector.extract_strided_slice %870 {offsets = [0, 192], sizes = [2, 64], strides = [1, 1]} : vector<2x256xf32> to vector<2x64xf32>
    %cst_412 = arith.constant 5.000000e-01 : f32
    %883 = vector.broadcast %cst_412 : f32 to vector<2x64xf32>
    %884 = arith.mulf %883, %882 : vector<2x64xf32>
    %cst_413 = arith.constant 5.000000e-01 : f32
    %885 = vector.broadcast %cst_413 : f32 to vector<2x64xf32>
    %886 = arith.addf %884, %885 : vector<2x64xf32>
    %887 = arith.mulf %880, %854 : vector<2x64xf32>
    %888 = arith.mulf %875, %881 : vector<2x64xf32>
    %889 = arith.addf %887, %888 : vector<2x64xf32>
    %890 = math.tanh %889 : vector<2x64xf32>
    %891 = arith.mulf %886, %890 : vector<2x64xf32>
    %892 = arith.addf %857, %891 : vector<2x64xf32>
    %c4_i32_414 = arith.constant 4 : i32
    %893 = arith.index_cast %c4_i32_414 : i32 to index
    %c0_415 = arith.constant 0 : index
    %c0_416 = arith.constant 0 : index
    %894 = vector.load %arg22[%893, %c0_415, %c0_416] : memref<18x2x256xf32, #tpu.memory_space<vmem>>, vector<1x2x256xf32>
    %895 = vector.shape_cast %894 : vector<1x2x256xf32> to vector<2x256xf32>
    %c17_i32_417 = arith.constant 17 : i32
    %896 = arith.subi %c17_i32_417, %c4_i32_414 : i32
    %897 = arith.index_cast %896 : i32 to index
    %c0_418 = arith.constant 0 : index
    %c0_419 = arith.constant 0 : index
    %898 = vector.load %arg23[%897, %c0_418, %c0_419] : memref<18x2x256xf32, #tpu.memory_space<vmem>>, vector<1x2x256xf32>
    %899 = vector.shape_cast %898 : vector<1x2x256xf32> to vector<2x256xf32>
    %900 = arith.addf %895, %899 : vector<2x256xf32>
    %cst_420 = arith.constant dense<0.000000e+00> : vector<2x256xf32>
    %901 = tpu.matmul %891, %751, %cst_420 {dimension_numbers = #tpu.dot_dimension_numbers<[1], [0], [0], [1], [0, 0, 1, 1], [], []>} : vector<2x64xf32>, vector<64x256xf32>, vector<2x256xf32> -> vector<2x256xf32>
    %902 = arith.addf %900, %901 : vector<2x256xf32>
    %903 = vector.broadcast %752 : vector<1x256xf32> to vector<2x256xf32>
    %904 = arith.addf %902, %903 : vector<2x256xf32>
    %905 = math.tanh %904 : vector<2x256xf32>
    %906 = vector.extract_strided_slice %905 {offsets = [0, 0], sizes = [2, 64], strides = [1, 1]} : vector<2x256xf32> to vector<2x64xf32>
    %cst_421 = arith.constant 5.000000e-01 : f32
    %907 = vector.broadcast %cst_421 : f32 to vector<2x64xf32>
    %908 = arith.mulf %907, %906 : vector<2x64xf32>
    %cst_422 = arith.constant 5.000000e-01 : f32
    %909 = vector.broadcast %cst_422 : f32 to vector<2x64xf32>
    %910 = arith.addf %908, %909 : vector<2x64xf32>
    %911 = vector.extract_strided_slice %905 {offsets = [0, 64], sizes = [2, 64], strides = [1, 1]} : vector<2x256xf32> to vector<2x64xf32>
    %cst_423 = arith.constant 5.000000e-01 : f32
    %912 = vector.broadcast %cst_423 : f32 to vector<2x64xf32>
    %913 = arith.mulf %912, %911 : vector<2x64xf32>
    %cst_424 = arith.constant 5.000000e-01 : f32
    %914 = vector.broadcast %cst_424 : f32 to vector<2x64xf32>
    %915 = arith.addf %913, %914 : vector<2x64xf32>
    %916 = vector.extract_strided_slice %905 {offsets = [0, 128], sizes = [2, 64], strides = [1, 1]} : vector<2x256xf32> to vector<2x64xf32>
    %917 = vector.extract_strided_slice %905 {offsets = [0, 192], sizes = [2, 64], strides = [1, 1]} : vector<2x256xf32> to vector<2x64xf32>
    %cst_425 = arith.constant 5.000000e-01 : f32
    %918 = vector.broadcast %cst_425 : f32 to vector<2x64xf32>
    %919 = arith.mulf %918, %917 : vector<2x64xf32>
    %cst_426 = arith.constant 5.000000e-01 : f32
    %920 = vector.broadcast %cst_426 : f32 to vector<2x64xf32>
    %921 = arith.addf %919, %920 : vector<2x64xf32>
    %922 = arith.mulf %915, %889 : vector<2x64xf32>
    %923 = arith.mulf %910, %916 : vector<2x64xf32>
    %924 = arith.addf %922, %923 : vector<2x64xf32>
    %925 = math.tanh %924 : vector<2x64xf32>
    %926 = arith.mulf %921, %925 : vector<2x64xf32>
    %927 = arith.addf %892, %926 : vector<2x64xf32>
    %c5_i32_427 = arith.constant 5 : i32
    %928 = arith.index_cast %c5_i32_427 : i32 to index
    %c0_428 = arith.constant 0 : index
    %c0_429 = arith.constant 0 : index
    %929 = vector.load %arg22[%928, %c0_428, %c0_429] : memref<18x2x256xf32, #tpu.memory_space<vmem>>, vector<1x2x256xf32>
    %930 = vector.shape_cast %929 : vector<1x2x256xf32> to vector<2x256xf32>
    %c17_i32_430 = arith.constant 17 : i32
    %931 = arith.subi %c17_i32_430, %c5_i32_427 : i32
    %932 = arith.index_cast %931 : i32 to index
    %c0_431 = arith.constant 0 : index
    %c0_432 = arith.constant 0 : index
    %933 = vector.load %arg23[%932, %c0_431, %c0_432] : memref<18x2x256xf32, #tpu.memory_space<vmem>>, vector<1x2x256xf32>
    %934 = vector.shape_cast %933 : vector<1x2x256xf32> to vector<2x256xf32>
    %935 = arith.addf %930, %934 : vector<2x256xf32>
    %cst_433 = arith.constant dense<0.000000e+00> : vector<2x256xf32>
    %936 = tpu.matmul %926, %751, %cst_433 {dimension_numbers = #tpu.dot_dimension_numbers<[1], [0], [0], [1], [0, 0, 1, 1], [], []>} : vector<2x64xf32>, vector<64x256xf32>, vector<2x256xf32> -> vector<2x256xf32>
    %937 = arith.addf %935, %936 : vector<2x256xf32>
    %938 = vector.broadcast %752 : vector<1x256xf32> to vector<2x256xf32>
    %939 = arith.addf %937, %938 : vector<2x256xf32>
    %940 = math.tanh %939 : vector<2x256xf32>
    %941 = vector.extract_strided_slice %940 {offsets = [0, 0], sizes = [2, 64], strides = [1, 1]} : vector<2x256xf32> to vector<2x64xf32>
    %cst_434 = arith.constant 5.000000e-01 : f32
    %942 = vector.broadcast %cst_434 : f32 to vector<2x64xf32>
    %943 = arith.mulf %942, %941 : vector<2x64xf32>
    %cst_435 = arith.constant 5.000000e-01 : f32
    %944 = vector.broadcast %cst_435 : f32 to vector<2x64xf32>
    %945 = arith.addf %943, %944 : vector<2x64xf32>
    %946 = vector.extract_strided_slice %940 {offsets = [0, 64], sizes = [2, 64], strides = [1, 1]} : vector<2x256xf32> to vector<2x64xf32>
    %cst_436 = arith.constant 5.000000e-01 : f32
    %947 = vector.broadcast %cst_436 : f32 to vector<2x64xf32>
    %948 = arith.mulf %947, %946 : vector<2x64xf32>
    %cst_437 = arith.constant 5.000000e-01 : f32
    %949 = vector.broadcast %cst_437 : f32 to vector<2x64xf32>
    %950 = arith.addf %948, %949 : vector<2x64xf32>
    %951 = vector.extract_strided_slice %940 {offsets = [0, 128], sizes = [2, 64], strides = [1, 1]} : vector<2x256xf32> to vector<2x64xf32>
    %952 = vector.extract_strided_slice %940 {offsets = [0, 192], sizes = [2, 64], strides = [1, 1]} : vector<2x256xf32> to vector<2x64xf32>
    %cst_438 = arith.constant 5.000000e-01 : f32
    %953 = vector.broadcast %cst_438 : f32 to vector<2x64xf32>
    %954 = arith.mulf %953, %952 : vector<2x64xf32>
    %cst_439 = arith.constant 5.000000e-01 : f32
    %955 = vector.broadcast %cst_439 : f32 to vector<2x64xf32>
    %956 = arith.addf %954, %955 : vector<2x64xf32>
    %957 = arith.mulf %950, %924 : vector<2x64xf32>
    %958 = arith.mulf %945, %951 : vector<2x64xf32>
    %959 = arith.addf %957, %958 : vector<2x64xf32>
    %960 = math.tanh %959 : vector<2x64xf32>
    %961 = arith.mulf %956, %960 : vector<2x64xf32>
    %962 = arith.addf %927, %961 : vector<2x64xf32>
    %c6_i32_440 = arith.constant 6 : i32
    %963 = arith.index_cast %c6_i32_440 : i32 to index
    %c0_441 = arith.constant 0 : index
    %c0_442 = arith.constant 0 : index
    %964 = vector.load %arg22[%963, %c0_441, %c0_442] : memref<18x2x256xf32, #tpu.memory_space<vmem>>, vector<1x2x256xf32>
    %965 = vector.shape_cast %964 : vector<1x2x256xf32> to vector<2x256xf32>
    %c17_i32_443 = arith.constant 17 : i32
    %966 = arith.subi %c17_i32_443, %c6_i32_440 : i32
    %967 = arith.index_cast %966 : i32 to index
    %c0_444 = arith.constant 0 : index
    %c0_445 = arith.constant 0 : index
    %968 = vector.load %arg23[%967, %c0_444, %c0_445] : memref<18x2x256xf32, #tpu.memory_space<vmem>>, vector<1x2x256xf32>
    %969 = vector.shape_cast %968 : vector<1x2x256xf32> to vector<2x256xf32>
    %970 = arith.addf %965, %969 : vector<2x256xf32>
    %cst_446 = arith.constant dense<0.000000e+00> : vector<2x256xf32>
    %971 = tpu.matmul %961, %751, %cst_446 {dimension_numbers = #tpu.dot_dimension_numbers<[1], [0], [0], [1], [0, 0, 1, 1], [], []>} : vector<2x64xf32>, vector<64x256xf32>, vector<2x256xf32> -> vector<2x256xf32>
    %972 = arith.addf %970, %971 : vector<2x256xf32>
    %973 = vector.broadcast %752 : vector<1x256xf32> to vector<2x256xf32>
    %974 = arith.addf %972, %973 : vector<2x256xf32>
    %975 = math.tanh %974 : vector<2x256xf32>
    %976 = vector.extract_strided_slice %975 {offsets = [0, 0], sizes = [2, 64], strides = [1, 1]} : vector<2x256xf32> to vector<2x64xf32>
    %cst_447 = arith.constant 5.000000e-01 : f32
    %977 = vector.broadcast %cst_447 : f32 to vector<2x64xf32>
    %978 = arith.mulf %977, %976 : vector<2x64xf32>
    %cst_448 = arith.constant 5.000000e-01 : f32
    %979 = vector.broadcast %cst_448 : f32 to vector<2x64xf32>
    %980 = arith.addf %978, %979 : vector<2x64xf32>
    %981 = vector.extract_strided_slice %975 {offsets = [0, 64], sizes = [2, 64], strides = [1, 1]} : vector<2x256xf32> to vector<2x64xf32>
    %cst_449 = arith.constant 5.000000e-01 : f32
    %982 = vector.broadcast %cst_449 : f32 to vector<2x64xf32>
    %983 = arith.mulf %982, %981 : vector<2x64xf32>
    %cst_450 = arith.constant 5.000000e-01 : f32
    %984 = vector.broadcast %cst_450 : f32 to vector<2x64xf32>
    %985 = arith.addf %983, %984 : vector<2x64xf32>
    %986 = vector.extract_strided_slice %975 {offsets = [0, 128], sizes = [2, 64], strides = [1, 1]} : vector<2x256xf32> to vector<2x64xf32>
    %987 = vector.extract_strided_slice %975 {offsets = [0, 192], sizes = [2, 64], strides = [1, 1]} : vector<2x256xf32> to vector<2x64xf32>
    %cst_451 = arith.constant 5.000000e-01 : f32
    %988 = vector.broadcast %cst_451 : f32 to vector<2x64xf32>
    %989 = arith.mulf %988, %987 : vector<2x64xf32>
    %cst_452 = arith.constant 5.000000e-01 : f32
    %990 = vector.broadcast %cst_452 : f32 to vector<2x64xf32>
    %991 = arith.addf %989, %990 : vector<2x64xf32>
    %992 = arith.mulf %985, %959 : vector<2x64xf32>
    %993 = arith.mulf %980, %986 : vector<2x64xf32>
    %994 = arith.addf %992, %993 : vector<2x64xf32>
    %995 = math.tanh %994 : vector<2x64xf32>
    %996 = arith.mulf %991, %995 : vector<2x64xf32>
    %997 = arith.addf %962, %996 : vector<2x64xf32>
    %c7_i32_453 = arith.constant 7 : i32
    %998 = arith.index_cast %c7_i32_453 : i32 to index
    %c0_454 = arith.constant 0 : index
    %c0_455 = arith.constant 0 : index
    %999 = vector.load %arg22[%998, %c0_454, %c0_455] : memref<18x2x256xf32, #tpu.memory_space<vmem>>, vector<1x2x256xf32>
    %1000 = vector.shape_cast %999 : vector<1x2x256xf32> to vector<2x256xf32>
    %c17_i32_456 = arith.constant 17 : i32
    %1001 = arith.subi %c17_i32_456, %c7_i32_453 : i32
    %1002 = arith.index_cast %1001 : i32 to index
    %c0_457 = arith.constant 0 : index
    %c0_458 = arith.constant 0 : index
    %1003 = vector.load %arg23[%1002, %c0_457, %c0_458] : memref<18x2x256xf32, #tpu.memory_space<vmem>>, vector<1x2x256xf32>
    %1004 = vector.shape_cast %1003 : vector<1x2x256xf32> to vector<2x256xf32>
    %1005 = arith.addf %1000, %1004 : vector<2x256xf32>
    %cst_459 = arith.constant dense<0.000000e+00> : vector<2x256xf32>
    %1006 = tpu.matmul %996, %751, %cst_459 {dimension_numbers = #tpu.dot_dimension_numbers<[1], [0], [0], [1], [0, 0, 1, 1], [], []>} : vector<2x64xf32>, vector<64x256xf32>, vector<2x256xf32> -> vector<2x256xf32>
    %1007 = arith.addf %1005, %1006 : vector<2x256xf32>
    %1008 = vector.broadcast %752 : vector<1x256xf32> to vector<2x256xf32>
    %1009 = arith.addf %1007, %1008 : vector<2x256xf32>
    %1010 = math.tanh %1009 : vector<2x256xf32>
    %1011 = vector.extract_strided_slice %1010 {offsets = [0, 0], sizes = [2, 64], strides = [1, 1]} : vector<2x256xf32> to vector<2x64xf32>
    %cst_460 = arith.constant 5.000000e-01 : f32
    %1012 = vector.broadcast %cst_460 : f32 to vector<2x64xf32>
    %1013 = arith.mulf %1012, %1011 : vector<2x64xf32>
    %cst_461 = arith.constant 5.000000e-01 : f32
    %1014 = vector.broadcast %cst_461 : f32 to vector<2x64xf32>
    %1015 = arith.addf %1013, %1014 : vector<2x64xf32>
    %1016 = vector.extract_strided_slice %1010 {offsets = [0, 64], sizes = [2, 64], strides = [1, 1]} : vector<2x256xf32> to vector<2x64xf32>
    %cst_462 = arith.constant 5.000000e-01 : f32
    %1017 = vector.broadcast %cst_462 : f32 to vector<2x64xf32>
    %1018 = arith.mulf %1017, %1016 : vector<2x64xf32>
    %cst_463 = arith.constant 5.000000e-01 : f32
    %1019 = vector.broadcast %cst_463 : f32 to vector<2x64xf32>
    %1020 = arith.addf %1018, %1019 : vector<2x64xf32>
    %1021 = vector.extract_strided_slice %1010 {offsets = [0, 128], sizes = [2, 64], strides = [1, 1]} : vector<2x256xf32> to vector<2x64xf32>
    %1022 = vector.extract_strided_slice %1010 {offsets = [0, 192], sizes = [2, 64], strides = [1, 1]} : vector<2x256xf32> to vector<2x64xf32>
    %cst_464 = arith.constant 5.000000e-01 : f32
    %1023 = vector.broadcast %cst_464 : f32 to vector<2x64xf32>
    %1024 = arith.mulf %1023, %1022 : vector<2x64xf32>
    %cst_465 = arith.constant 5.000000e-01 : f32
    %1025 = vector.broadcast %cst_465 : f32 to vector<2x64xf32>
    %1026 = arith.addf %1024, %1025 : vector<2x64xf32>
    %1027 = arith.mulf %1020, %994 : vector<2x64xf32>
    %1028 = arith.mulf %1015, %1021 : vector<2x64xf32>
    %1029 = arith.addf %1027, %1028 : vector<2x64xf32>
    %1030 = math.tanh %1029 : vector<2x64xf32>
    %1031 = arith.mulf %1026, %1030 : vector<2x64xf32>
    %1032 = arith.addf %997, %1031 : vector<2x64xf32>
    %c8_i32_466 = arith.constant 8 : i32
    %1033 = arith.index_cast %c8_i32_466 : i32 to index
    %c0_467 = arith.constant 0 : index
    %c0_468 = arith.constant 0 : index
    %1034 = vector.load %arg22[%1033, %c0_467, %c0_468] : memref<18x2x256xf32, #tpu.memory_space<vmem>>, vector<1x2x256xf32>
    %1035 = vector.shape_cast %1034 : vector<1x2x256xf32> to vector<2x256xf32>
    %c17_i32_469 = arith.constant 17 : i32
    %1036 = arith.subi %c17_i32_469, %c8_i32_466 : i32
    %1037 = arith.index_cast %1036 : i32 to index
    %c0_470 = arith.constant 0 : index
    %c0_471 = arith.constant 0 : index
    %1038 = vector.load %arg23[%1037, %c0_470, %c0_471] : memref<18x2x256xf32, #tpu.memory_space<vmem>>, vector<1x2x256xf32>
    %1039 = vector.shape_cast %1038 : vector<1x2x256xf32> to vector<2x256xf32>
    %1040 = arith.addf %1035, %1039 : vector<2x256xf32>
    %cst_472 = arith.constant dense<0.000000e+00> : vector<2x256xf32>
    %1041 = tpu.matmul %1031, %751, %cst_472 {dimension_numbers = #tpu.dot_dimension_numbers<[1], [0], [0], [1], [0, 0, 1, 1], [], []>} : vector<2x64xf32>, vector<64x256xf32>, vector<2x256xf32> -> vector<2x256xf32>
    %1042 = arith.addf %1040, %1041 : vector<2x256xf32>
    %1043 = vector.broadcast %752 : vector<1x256xf32> to vector<2x256xf32>
    %1044 = arith.addf %1042, %1043 : vector<2x256xf32>
    %1045 = math.tanh %1044 : vector<2x256xf32>
    %1046 = vector.extract_strided_slice %1045 {offsets = [0, 0], sizes = [2, 64], strides = [1, 1]} : vector<2x256xf32> to vector<2x64xf32>
    %cst_473 = arith.constant 5.000000e-01 : f32
    %1047 = vector.broadcast %cst_473 : f32 to vector<2x64xf32>
    %1048 = arith.mulf %1047, %1046 : vector<2x64xf32>
    %cst_474 = arith.constant 5.000000e-01 : f32
    %1049 = vector.broadcast %cst_474 : f32 to vector<2x64xf32>
    %1050 = arith.addf %1048, %1049 : vector<2x64xf32>
    %1051 = vector.extract_strided_slice %1045 {offsets = [0, 64], sizes = [2, 64], strides = [1, 1]} : vector<2x256xf32> to vector<2x64xf32>
    %cst_475 = arith.constant 5.000000e-01 : f32
    %1052 = vector.broadcast %cst_475 : f32 to vector<2x64xf32>
    %1053 = arith.mulf %1052, %1051 : vector<2x64xf32>
    %cst_476 = arith.constant 5.000000e-01 : f32
    %1054 = vector.broadcast %cst_476 : f32 to vector<2x64xf32>
    %1055 = arith.addf %1053, %1054 : vector<2x64xf32>
    %1056 = vector.extract_strided_slice %1045 {offsets = [0, 128], sizes = [2, 64], strides = [1, 1]} : vector<2x256xf32> to vector<2x64xf32>
    %1057 = vector.extract_strided_slice %1045 {offsets = [0, 192], sizes = [2, 64], strides = [1, 1]} : vector<2x256xf32> to vector<2x64xf32>
    %cst_477 = arith.constant 5.000000e-01 : f32
    %1058 = vector.broadcast %cst_477 : f32 to vector<2x64xf32>
    %1059 = arith.mulf %1058, %1057 : vector<2x64xf32>
    %cst_478 = arith.constant 5.000000e-01 : f32
    %1060 = vector.broadcast %cst_478 : f32 to vector<2x64xf32>
    %1061 = arith.addf %1059, %1060 : vector<2x64xf32>
    %1062 = arith.mulf %1055, %1029 : vector<2x64xf32>
    %1063 = arith.mulf %1050, %1056 : vector<2x64xf32>
    %1064 = arith.addf %1062, %1063 : vector<2x64xf32>
    %1065 = math.tanh %1064 : vector<2x64xf32>
    %1066 = arith.mulf %1061, %1065 : vector<2x64xf32>
    %1067 = arith.addf %1032, %1066 : vector<2x64xf32>
    %c9_i32_479 = arith.constant 9 : i32
    %1068 = arith.index_cast %c9_i32_479 : i32 to index
    %c0_480 = arith.constant 0 : index
    %c0_481 = arith.constant 0 : index
    %1069 = vector.load %arg22[%1068, %c0_480, %c0_481] : memref<18x2x256xf32, #tpu.memory_space<vmem>>, vector<1x2x256xf32>
    %1070 = vector.shape_cast %1069 : vector<1x2x256xf32> to vector<2x256xf32>
    %c17_i32_482 = arith.constant 17 : i32
    %1071 = arith.subi %c17_i32_482, %c9_i32_479 : i32
    %1072 = arith.index_cast %1071 : i32 to index
    %c0_483 = arith.constant 0 : index
    %c0_484 = arith.constant 0 : index
    %1073 = vector.load %arg23[%1072, %c0_483, %c0_484] : memref<18x2x256xf32, #tpu.memory_space<vmem>>, vector<1x2x256xf32>
    %1074 = vector.shape_cast %1073 : vector<1x2x256xf32> to vector<2x256xf32>
    %1075 = arith.addf %1070, %1074 : vector<2x256xf32>
    %cst_485 = arith.constant dense<0.000000e+00> : vector<2x256xf32>
    %1076 = tpu.matmul %1066, %751, %cst_485 {dimension_numbers = #tpu.dot_dimension_numbers<[1], [0], [0], [1], [0, 0, 1, 1], [], []>} : vector<2x64xf32>, vector<64x256xf32>, vector<2x256xf32> -> vector<2x256xf32>
    %1077 = arith.addf %1075, %1076 : vector<2x256xf32>
    %1078 = vector.broadcast %752 : vector<1x256xf32> to vector<2x256xf32>
    %1079 = arith.addf %1077, %1078 : vector<2x256xf32>
    %1080 = math.tanh %1079 : vector<2x256xf32>
    %1081 = vector.extract_strided_slice %1080 {offsets = [0, 0], sizes = [2, 64], strides = [1, 1]} : vector<2x256xf32> to vector<2x64xf32>
    %cst_486 = arith.constant 5.000000e-01 : f32
    %1082 = vector.broadcast %cst_486 : f32 to vector<2x64xf32>
    %1083 = arith.mulf %1082, %1081 : vector<2x64xf32>
    %cst_487 = arith.constant 5.000000e-01 : f32
    %1084 = vector.broadcast %cst_487 : f32 to vector<2x64xf32>
    %1085 = arith.addf %1083, %1084 : vector<2x64xf32>
    %1086 = vector.extract_strided_slice %1080 {offsets = [0, 64], sizes = [2, 64], strides = [1, 1]} : vector<2x256xf32> to vector<2x64xf32>
    %cst_488 = arith.constant 5.000000e-01 : f32
    %1087 = vector.broadcast %cst_488 : f32 to vector<2x64xf32>
    %1088 = arith.mulf %1087, %1086 : vector<2x64xf32>
    %cst_489 = arith.constant 5.000000e-01 : f32
    %1089 = vector.broadcast %cst_489 : f32 to vector<2x64xf32>
    %1090 = arith.addf %1088, %1089 : vector<2x64xf32>
    %1091 = vector.extract_strided_slice %1080 {offsets = [0, 128], sizes = [2, 64], strides = [1, 1]} : vector<2x256xf32> to vector<2x64xf32>
    %1092 = vector.extract_strided_slice %1080 {offsets = [0, 192], sizes = [2, 64], strides = [1, 1]} : vector<2x256xf32> to vector<2x64xf32>
    %cst_490 = arith.constant 5.000000e-01 : f32
    %1093 = vector.broadcast %cst_490 : f32 to vector<2x64xf32>
    %1094 = arith.mulf %1093, %1092 : vector<2x64xf32>
    %cst_491 = arith.constant 5.000000e-01 : f32
    %1095 = vector.broadcast %cst_491 : f32 to vector<2x64xf32>
    %1096 = arith.addf %1094, %1095 : vector<2x64xf32>
    %1097 = arith.mulf %1090, %1064 : vector<2x64xf32>
    %1098 = arith.mulf %1085, %1091 : vector<2x64xf32>
    %1099 = arith.addf %1097, %1098 : vector<2x64xf32>
    %1100 = math.tanh %1099 : vector<2x64xf32>
    %1101 = arith.mulf %1096, %1100 : vector<2x64xf32>
    %1102 = arith.addf %1067, %1101 : vector<2x64xf32>
    %c10_i32_492 = arith.constant 10 : i32
    %1103 = arith.index_cast %c10_i32_492 : i32 to index
    %c0_493 = arith.constant 0 : index
    %c0_494 = arith.constant 0 : index
    %1104 = vector.load %arg22[%1103, %c0_493, %c0_494] : memref<18x2x256xf32, #tpu.memory_space<vmem>>, vector<1x2x256xf32>
    %1105 = vector.shape_cast %1104 : vector<1x2x256xf32> to vector<2x256xf32>
    %c17_i32_495 = arith.constant 17 : i32
    %1106 = arith.subi %c17_i32_495, %c10_i32_492 : i32
    %1107 = arith.index_cast %1106 : i32 to index
    %c0_496 = arith.constant 0 : index
    %c0_497 = arith.constant 0 : index
    %1108 = vector.load %arg23[%1107, %c0_496, %c0_497] : memref<18x2x256xf32, #tpu.memory_space<vmem>>, vector<1x2x256xf32>
    %1109 = vector.shape_cast %1108 : vector<1x2x256xf32> to vector<2x256xf32>
    %1110 = arith.addf %1105, %1109 : vector<2x256xf32>
    %cst_498 = arith.constant dense<0.000000e+00> : vector<2x256xf32>
    %1111 = tpu.matmul %1101, %751, %cst_498 {dimension_numbers = #tpu.dot_dimension_numbers<[1], [0], [0], [1], [0, 0, 1, 1], [], []>} : vector<2x64xf32>, vector<64x256xf32>, vector<2x256xf32> -> vector<2x256xf32>
    %1112 = arith.addf %1110, %1111 : vector<2x256xf32>
    %1113 = vector.broadcast %752 : vector<1x256xf32> to vector<2x256xf32>
    %1114 = arith.addf %1112, %1113 : vector<2x256xf32>
    %1115 = math.tanh %1114 : vector<2x256xf32>
    %1116 = vector.extract_strided_slice %1115 {offsets = [0, 0], sizes = [2, 64], strides = [1, 1]} : vector<2x256xf32> to vector<2x64xf32>
    %cst_499 = arith.constant 5.000000e-01 : f32
    %1117 = vector.broadcast %cst_499 : f32 to vector<2x64xf32>
    %1118 = arith.mulf %1117, %1116 : vector<2x64xf32>
    %cst_500 = arith.constant 5.000000e-01 : f32
    %1119 = vector.broadcast %cst_500 : f32 to vector<2x64xf32>
    %1120 = arith.addf %1118, %1119 : vector<2x64xf32>
    %1121 = vector.extract_strided_slice %1115 {offsets = [0, 64], sizes = [2, 64], strides = [1, 1]} : vector<2x256xf32> to vector<2x64xf32>
    %cst_501 = arith.constant 5.000000e-01 : f32
    %1122 = vector.broadcast %cst_501 : f32 to vector<2x64xf32>
    %1123 = arith.mulf %1122, %1121 : vector<2x64xf32>
    %cst_502 = arith.constant 5.000000e-01 : f32
    %1124 = vector.broadcast %cst_502 : f32 to vector<2x64xf32>
    %1125 = arith.addf %1123, %1124 : vector<2x64xf32>
    %1126 = vector.extract_strided_slice %1115 {offsets = [0, 128], sizes = [2, 64], strides = [1, 1]} : vector<2x256xf32> to vector<2x64xf32>
    %1127 = vector.extract_strided_slice %1115 {offsets = [0, 192], sizes = [2, 64], strides = [1, 1]} : vector<2x256xf32> to vector<2x64xf32>
    %cst_503 = arith.constant 5.000000e-01 : f32
    %1128 = vector.broadcast %cst_503 : f32 to vector<2x64xf32>
    %1129 = arith.mulf %1128, %1127 : vector<2x64xf32>
    %cst_504 = arith.constant 5.000000e-01 : f32
    %1130 = vector.broadcast %cst_504 : f32 to vector<2x64xf32>
    %1131 = arith.addf %1129, %1130 : vector<2x64xf32>
    %1132 = arith.mulf %1125, %1099 : vector<2x64xf32>
    %1133 = arith.mulf %1120, %1126 : vector<2x64xf32>
    %1134 = arith.addf %1132, %1133 : vector<2x64xf32>
    %1135 = math.tanh %1134 : vector<2x64xf32>
    %1136 = arith.mulf %1131, %1135 : vector<2x64xf32>
    %1137 = arith.addf %1102, %1136 : vector<2x64xf32>
    %c11_i32_505 = arith.constant 11 : i32
    %1138 = arith.index_cast %c11_i32_505 : i32 to index
    %c0_506 = arith.constant 0 : index
    %c0_507 = arith.constant 0 : index
    %1139 = vector.load %arg22[%1138, %c0_506, %c0_507] : memref<18x2x256xf32, #tpu.memory_space<vmem>>, vector<1x2x256xf32>
    %1140 = vector.shape_cast %1139 : vector<1x2x256xf32> to vector<2x256xf32>
    %c17_i32_508 = arith.constant 17 : i32
    %1141 = arith.subi %c17_i32_508, %c11_i32_505 : i32
    %1142 = arith.index_cast %1141 : i32 to index
    %c0_509 = arith.constant 0 : index
    %c0_510 = arith.constant 0 : index
    %1143 = vector.load %arg23[%1142, %c0_509, %c0_510] : memref<18x2x256xf32, #tpu.memory_space<vmem>>, vector<1x2x256xf32>
    %1144 = vector.shape_cast %1143 : vector<1x2x256xf32> to vector<2x256xf32>
    %1145 = arith.addf %1140, %1144 : vector<2x256xf32>
    %cst_511 = arith.constant dense<0.000000e+00> : vector<2x256xf32>
    %1146 = tpu.matmul %1136, %751, %cst_511 {dimension_numbers = #tpu.dot_dimension_numbers<[1], [0], [0], [1], [0, 0, 1, 1], [], []>} : vector<2x64xf32>, vector<64x256xf32>, vector<2x256xf32> -> vector<2x256xf32>
    %1147 = arith.addf %1145, %1146 : vector<2x256xf32>
    %1148 = vector.broadcast %752 : vector<1x256xf32> to vector<2x256xf32>
    %1149 = arith.addf %1147, %1148 : vector<2x256xf32>
    %1150 = math.tanh %1149 : vector<2x256xf32>
    %1151 = vector.extract_strided_slice %1150 {offsets = [0, 0], sizes = [2, 64], strides = [1, 1]} : vector<2x256xf32> to vector<2x64xf32>
    %cst_512 = arith.constant 5.000000e-01 : f32
    %1152 = vector.broadcast %cst_512 : f32 to vector<2x64xf32>
    %1153 = arith.mulf %1152, %1151 : vector<2x64xf32>
    %cst_513 = arith.constant 5.000000e-01 : f32
    %1154 = vector.broadcast %cst_513 : f32 to vector<2x64xf32>
    %1155 = arith.addf %1153, %1154 : vector<2x64xf32>
    %1156 = vector.extract_strided_slice %1150 {offsets = [0, 64], sizes = [2, 64], strides = [1, 1]} : vector<2x256xf32> to vector<2x64xf32>
    %cst_514 = arith.constant 5.000000e-01 : f32
    %1157 = vector.broadcast %cst_514 : f32 to vector<2x64xf32>
    %1158 = arith.mulf %1157, %1156 : vector<2x64xf32>
    %cst_515 = arith.constant 5.000000e-01 : f32
    %1159 = vector.broadcast %cst_515 : f32 to vector<2x64xf32>
    %1160 = arith.addf %1158, %1159 : vector<2x64xf32>
    %1161 = vector.extract_strided_slice %1150 {offsets = [0, 128], sizes = [2, 64], strides = [1, 1]} : vector<2x256xf32> to vector<2x64xf32>
    %1162 = vector.extract_strided_slice %1150 {offsets = [0, 192], sizes = [2, 64], strides = [1, 1]} : vector<2x256xf32> to vector<2x64xf32>
    %cst_516 = arith.constant 5.000000e-01 : f32
    %1163 = vector.broadcast %cst_516 : f32 to vector<2x64xf32>
    %1164 = arith.mulf %1163, %1162 : vector<2x64xf32>
    %cst_517 = arith.constant 5.000000e-01 : f32
    %1165 = vector.broadcast %cst_517 : f32 to vector<2x64xf32>
    %1166 = arith.addf %1164, %1165 : vector<2x64xf32>
    %1167 = arith.mulf %1160, %1134 : vector<2x64xf32>
    %1168 = arith.mulf %1155, %1161 : vector<2x64xf32>
    %1169 = arith.addf %1167, %1168 : vector<2x64xf32>
    %1170 = math.tanh %1169 : vector<2x64xf32>
    %1171 = arith.mulf %1166, %1170 : vector<2x64xf32>
    %1172 = arith.addf %1137, %1171 : vector<2x64xf32>
    %c12_i32_518 = arith.constant 12 : i32
    %1173 = arith.index_cast %c12_i32_518 : i32 to index
    %c0_519 = arith.constant 0 : index
    %c0_520 = arith.constant 0 : index
    %1174 = vector.load %arg22[%1173, %c0_519, %c0_520] : memref<18x2x256xf32, #tpu.memory_space<vmem>>, vector<1x2x256xf32>
    %1175 = vector.shape_cast %1174 : vector<1x2x256xf32> to vector<2x256xf32>
    %c17_i32_521 = arith.constant 17 : i32
    %1176 = arith.subi %c17_i32_521, %c12_i32_518 : i32
    %1177 = arith.index_cast %1176 : i32 to index
    %c0_522 = arith.constant 0 : index
    %c0_523 = arith.constant 0 : index
    %1178 = vector.load %arg23[%1177, %c0_522, %c0_523] : memref<18x2x256xf32, #tpu.memory_space<vmem>>, vector<1x2x256xf32>
    %1179 = vector.shape_cast %1178 : vector<1x2x256xf32> to vector<2x256xf32>
    %1180 = arith.addf %1175, %1179 : vector<2x256xf32>
    %cst_524 = arith.constant dense<0.000000e+00> : vector<2x256xf32>
    %1181 = tpu.matmul %1171, %751, %cst_524 {dimension_numbers = #tpu.dot_dimension_numbers<[1], [0], [0], [1], [0, 0, 1, 1], [], []>} : vector<2x64xf32>, vector<64x256xf32>, vector<2x256xf32> -> vector<2x256xf32>
    %1182 = arith.addf %1180, %1181 : vector<2x256xf32>
    %1183 = vector.broadcast %752 : vector<1x256xf32> to vector<2x256xf32>
    %1184 = arith.addf %1182, %1183 : vector<2x256xf32>
    %1185 = math.tanh %1184 : vector<2x256xf32>
    %1186 = vector.extract_strided_slice %1185 {offsets = [0, 0], sizes = [2, 64], strides = [1, 1]} : vector<2x256xf32> to vector<2x64xf32>
    %cst_525 = arith.constant 5.000000e-01 : f32
    %1187 = vector.broadcast %cst_525 : f32 to vector<2x64xf32>
    %1188 = arith.mulf %1187, %1186 : vector<2x64xf32>
    %cst_526 = arith.constant 5.000000e-01 : f32
    %1189 = vector.broadcast %cst_526 : f32 to vector<2x64xf32>
    %1190 = arith.addf %1188, %1189 : vector<2x64xf32>
    %1191 = vector.extract_strided_slice %1185 {offsets = [0, 64], sizes = [2, 64], strides = [1, 1]} : vector<2x256xf32> to vector<2x64xf32>
    %cst_527 = arith.constant 5.000000e-01 : f32
    %1192 = vector.broadcast %cst_527 : f32 to vector<2x64xf32>
    %1193 = arith.mulf %1192, %1191 : vector<2x64xf32>
    %cst_528 = arith.constant 5.000000e-01 : f32
    %1194 = vector.broadcast %cst_528 : f32 to vector<2x64xf32>
    %1195 = arith.addf %1193, %1194 : vector<2x64xf32>
    %1196 = vector.extract_strided_slice %1185 {offsets = [0, 128], sizes = [2, 64], strides = [1, 1]} : vector<2x256xf32> to vector<2x64xf32>
    %1197 = vector.extract_strided_slice %1185 {offsets = [0, 192], sizes = [2, 64], strides = [1, 1]} : vector<2x256xf32> to vector<2x64xf32>
    %cst_529 = arith.constant 5.000000e-01 : f32
    %1198 = vector.broadcast %cst_529 : f32 to vector<2x64xf32>
    %1199 = arith.mulf %1198, %1197 : vector<2x64xf32>
    %cst_530 = arith.constant 5.000000e-01 : f32
    %1200 = vector.broadcast %cst_530 : f32 to vector<2x64xf32>
    %1201 = arith.addf %1199, %1200 : vector<2x64xf32>
    %1202 = arith.mulf %1195, %1169 : vector<2x64xf32>
    %1203 = arith.mulf %1190, %1196 : vector<2x64xf32>
    %1204 = arith.addf %1202, %1203 : vector<2x64xf32>
    %1205 = math.tanh %1204 : vector<2x64xf32>
    %1206 = arith.mulf %1201, %1205 : vector<2x64xf32>
    %1207 = arith.addf %1172, %1206 : vector<2x64xf32>
    %c13_i32_531 = arith.constant 13 : i32
    %1208 = arith.index_cast %c13_i32_531 : i32 to index
    %c0_532 = arith.constant 0 : index
    %c0_533 = arith.constant 0 : index
    %1209 = vector.load %arg22[%1208, %c0_532, %c0_533] : memref<18x2x256xf32, #tpu.memory_space<vmem>>, vector<1x2x256xf32>
    %1210 = vector.shape_cast %1209 : vector<1x2x256xf32> to vector<2x256xf32>
    %c17_i32_534 = arith.constant 17 : i32
    %1211 = arith.subi %c17_i32_534, %c13_i32_531 : i32
    %1212 = arith.index_cast %1211 : i32 to index
    %c0_535 = arith.constant 0 : index
    %c0_536 = arith.constant 0 : index
    %1213 = vector.load %arg23[%1212, %c0_535, %c0_536] : memref<18x2x256xf32, #tpu.memory_space<vmem>>, vector<1x2x256xf32>
    %1214 = vector.shape_cast %1213 : vector<1x2x256xf32> to vector<2x256xf32>
    %1215 = arith.addf %1210, %1214 : vector<2x256xf32>
    %cst_537 = arith.constant dense<0.000000e+00> : vector<2x256xf32>
    %1216 = tpu.matmul %1206, %751, %cst_537 {dimension_numbers = #tpu.dot_dimension_numbers<[1], [0], [0], [1], [0, 0, 1, 1], [], []>} : vector<2x64xf32>, vector<64x256xf32>, vector<2x256xf32> -> vector<2x256xf32>
    %1217 = arith.addf %1215, %1216 : vector<2x256xf32>
    %1218 = vector.broadcast %752 : vector<1x256xf32> to vector<2x256xf32>
    %1219 = arith.addf %1217, %1218 : vector<2x256xf32>
    %1220 = math.tanh %1219 : vector<2x256xf32>
    %1221 = vector.extract_strided_slice %1220 {offsets = [0, 0], sizes = [2, 64], strides = [1, 1]} : vector<2x256xf32> to vector<2x64xf32>
    %cst_538 = arith.constant 5.000000e-01 : f32
    %1222 = vector.broadcast %cst_538 : f32 to vector<2x64xf32>
    %1223 = arith.mulf %1222, %1221 : vector<2x64xf32>
    %cst_539 = arith.constant 5.000000e-01 : f32
    %1224 = vector.broadcast %cst_539 : f32 to vector<2x64xf32>
    %1225 = arith.addf %1223, %1224 : vector<2x64xf32>
    %1226 = vector.extract_strided_slice %1220 {offsets = [0, 64], sizes = [2, 64], strides = [1, 1]} : vector<2x256xf32> to vector<2x64xf32>
    %cst_540 = arith.constant 5.000000e-01 : f32
    %1227 = vector.broadcast %cst_540 : f32 to vector<2x64xf32>
    %1228 = arith.mulf %1227, %1226 : vector<2x64xf32>
    %cst_541 = arith.constant 5.000000e-01 : f32
    %1229 = vector.broadcast %cst_541 : f32 to vector<2x64xf32>
    %1230 = arith.addf %1228, %1229 : vector<2x64xf32>
    %1231 = vector.extract_strided_slice %1220 {offsets = [0, 128], sizes = [2, 64], strides = [1, 1]} : vector<2x256xf32> to vector<2x64xf32>
    %1232 = vector.extract_strided_slice %1220 {offsets = [0, 192], sizes = [2, 64], strides = [1, 1]} : vector<2x256xf32> to vector<2x64xf32>
    %cst_542 = arith.constant 5.000000e-01 : f32
    %1233 = vector.broadcast %cst_542 : f32 to vector<2x64xf32>
    %1234 = arith.mulf %1233, %1232 : vector<2x64xf32>
    %cst_543 = arith.constant 5.000000e-01 : f32
    %1235 = vector.broadcast %cst_543 : f32 to vector<2x64xf32>
    %1236 = arith.addf %1234, %1235 : vector<2x64xf32>
    %1237 = arith.mulf %1230, %1204 : vector<2x64xf32>
    %1238 = arith.mulf %1225, %1231 : vector<2x64xf32>
    %1239 = arith.addf %1237, %1238 : vector<2x64xf32>
    %1240 = math.tanh %1239 : vector<2x64xf32>
    %1241 = arith.mulf %1236, %1240 : vector<2x64xf32>
    %1242 = arith.addf %1207, %1241 : vector<2x64xf32>
    %c14_i32_544 = arith.constant 14 : i32
    %1243 = arith.index_cast %c14_i32_544 : i32 to index
    %c0_545 = arith.constant 0 : index
    %c0_546 = arith.constant 0 : index
    %1244 = vector.load %arg22[%1243, %c0_545, %c0_546] : memref<18x2x256xf32, #tpu.memory_space<vmem>>, vector<1x2x256xf32>
    %1245 = vector.shape_cast %1244 : vector<1x2x256xf32> to vector<2x256xf32>
    %c17_i32_547 = arith.constant 17 : i32
    %1246 = arith.subi %c17_i32_547, %c14_i32_544 : i32
    %1247 = arith.index_cast %1246 : i32 to index
    %c0_548 = arith.constant 0 : index
    %c0_549 = arith.constant 0 : index
    %1248 = vector.load %arg23[%1247, %c0_548, %c0_549] : memref<18x2x256xf32, #tpu.memory_space<vmem>>, vector<1x2x256xf32>
    %1249 = vector.shape_cast %1248 : vector<1x2x256xf32> to vector<2x256xf32>
    %1250 = arith.addf %1245, %1249 : vector<2x256xf32>
    %cst_550 = arith.constant dense<0.000000e+00> : vector<2x256xf32>
    %1251 = tpu.matmul %1241, %751, %cst_550 {dimension_numbers = #tpu.dot_dimension_numbers<[1], [0], [0], [1], [0, 0, 1, 1], [], []>} : vector<2x64xf32>, vector<64x256xf32>, vector<2x256xf32> -> vector<2x256xf32>
    %1252 = arith.addf %1250, %1251 : vector<2x256xf32>
    %1253 = vector.broadcast %752 : vector<1x256xf32> to vector<2x256xf32>
    %1254 = arith.addf %1252, %1253 : vector<2x256xf32>
    %1255 = math.tanh %1254 : vector<2x256xf32>
    %1256 = vector.extract_strided_slice %1255 {offsets = [0, 0], sizes = [2, 64], strides = [1, 1]} : vector<2x256xf32> to vector<2x64xf32>
    %cst_551 = arith.constant 5.000000e-01 : f32
    %1257 = vector.broadcast %cst_551 : f32 to vector<2x64xf32>
    %1258 = arith.mulf %1257, %1256 : vector<2x64xf32>
    %cst_552 = arith.constant 5.000000e-01 : f32
    %1259 = vector.broadcast %cst_552 : f32 to vector<2x64xf32>
    %1260 = arith.addf %1258, %1259 : vector<2x64xf32>
    %1261 = vector.extract_strided_slice %1255 {offsets = [0, 64], sizes = [2, 64], strides = [1, 1]} : vector<2x256xf32> to vector<2x64xf32>
    %cst_553 = arith.constant 5.000000e-01 : f32
    %1262 = vector.broadcast %cst_553 : f32 to vector<2x64xf32>
    %1263 = arith.mulf %1262, %1261 : vector<2x64xf32>
    %cst_554 = arith.constant 5.000000e-01 : f32
    %1264 = vector.broadcast %cst_554 : f32 to vector<2x64xf32>
    %1265 = arith.addf %1263, %1264 : vector<2x64xf32>
    %1266 = vector.extract_strided_slice %1255 {offsets = [0, 128], sizes = [2, 64], strides = [1, 1]} : vector<2x256xf32> to vector<2x64xf32>
    %1267 = vector.extract_strided_slice %1255 {offsets = [0, 192], sizes = [2, 64], strides = [1, 1]} : vector<2x256xf32> to vector<2x64xf32>
    %cst_555 = arith.constant 5.000000e-01 : f32
    %1268 = vector.broadcast %cst_555 : f32 to vector<2x64xf32>
    %1269 = arith.mulf %1268, %1267 : vector<2x64xf32>
    %cst_556 = arith.constant 5.000000e-01 : f32
    %1270 = vector.broadcast %cst_556 : f32 to vector<2x64xf32>
    %1271 = arith.addf %1269, %1270 : vector<2x64xf32>
    %1272 = arith.mulf %1265, %1239 : vector<2x64xf32>
    %1273 = arith.mulf %1260, %1266 : vector<2x64xf32>
    %1274 = arith.addf %1272, %1273 : vector<2x64xf32>
    %1275 = math.tanh %1274 : vector<2x64xf32>
    %1276 = arith.mulf %1271, %1275 : vector<2x64xf32>
    %1277 = arith.addf %1242, %1276 : vector<2x64xf32>
    %c15_i32_557 = arith.constant 15 : i32
    %1278 = arith.index_cast %c15_i32_557 : i32 to index
    %c0_558 = arith.constant 0 : index
    %c0_559 = arith.constant 0 : index
    %1279 = vector.load %arg22[%1278, %c0_558, %c0_559] : memref<18x2x256xf32, #tpu.memory_space<vmem>>, vector<1x2x256xf32>
    %1280 = vector.shape_cast %1279 : vector<1x2x256xf32> to vector<2x256xf32>
    %c17_i32_560 = arith.constant 17 : i32
    %1281 = arith.subi %c17_i32_560, %c15_i32_557 : i32
    %1282 = arith.index_cast %1281 : i32 to index
    %c0_561 = arith.constant 0 : index
    %c0_562 = arith.constant 0 : index
    %1283 = vector.load %arg23[%1282, %c0_561, %c0_562] : memref<18x2x256xf32, #tpu.memory_space<vmem>>, vector<1x2x256xf32>
    %1284 = vector.shape_cast %1283 : vector<1x2x256xf32> to vector<2x256xf32>
    %1285 = arith.addf %1280, %1284 : vector<2x256xf32>
    %cst_563 = arith.constant dense<0.000000e+00> : vector<2x256xf32>
    %1286 = tpu.matmul %1276, %751, %cst_563 {dimension_numbers = #tpu.dot_dimension_numbers<[1], [0], [0], [1], [0, 0, 1, 1], [], []>} : vector<2x64xf32>, vector<64x256xf32>, vector<2x256xf32> -> vector<2x256xf32>
    %1287 = arith.addf %1285, %1286 : vector<2x256xf32>
    %1288 = vector.broadcast %752 : vector<1x256xf32> to vector<2x256xf32>
    %1289 = arith.addf %1287, %1288 : vector<2x256xf32>
    %1290 = math.tanh %1289 : vector<2x256xf32>
    %1291 = vector.extract_strided_slice %1290 {offsets = [0, 0], sizes = [2, 64], strides = [1, 1]} : vector<2x256xf32> to vector<2x64xf32>
    %cst_564 = arith.constant 5.000000e-01 : f32
    %1292 = vector.broadcast %cst_564 : f32 to vector<2x64xf32>
    %1293 = arith.mulf %1292, %1291 : vector<2x64xf32>
    %cst_565 = arith.constant 5.000000e-01 : f32
    %1294 = vector.broadcast %cst_565 : f32 to vector<2x64xf32>
    %1295 = arith.addf %1293, %1294 : vector<2x64xf32>
    %1296 = vector.extract_strided_slice %1290 {offsets = [0, 64], sizes = [2, 64], strides = [1, 1]} : vector<2x256xf32> to vector<2x64xf32>
    %cst_566 = arith.constant 5.000000e-01 : f32
    %1297 = vector.broadcast %cst_566 : f32 to vector<2x64xf32>
    %1298 = arith.mulf %1297, %1296 : vector<2x64xf32>
    %cst_567 = arith.constant 5.000000e-01 : f32
    %1299 = vector.broadcast %cst_567 : f32 to vector<2x64xf32>
    %1300 = arith.addf %1298, %1299 : vector<2x64xf32>
    %1301 = vector.extract_strided_slice %1290 {offsets = [0, 128], sizes = [2, 64], strides = [1, 1]} : vector<2x256xf32> to vector<2x64xf32>
    %1302 = vector.extract_strided_slice %1290 {offsets = [0, 192], sizes = [2, 64], strides = [1, 1]} : vector<2x256xf32> to vector<2x64xf32>
    %cst_568 = arith.constant 5.000000e-01 : f32
    %1303 = vector.broadcast %cst_568 : f32 to vector<2x64xf32>
    %1304 = arith.mulf %1303, %1302 : vector<2x64xf32>
    %cst_569 = arith.constant 5.000000e-01 : f32
    %1305 = vector.broadcast %cst_569 : f32 to vector<2x64xf32>
    %1306 = arith.addf %1304, %1305 : vector<2x64xf32>
    %1307 = arith.mulf %1300, %1274 : vector<2x64xf32>
    %1308 = arith.mulf %1295, %1301 : vector<2x64xf32>
    %1309 = arith.addf %1307, %1308 : vector<2x64xf32>
    %1310 = math.tanh %1309 : vector<2x64xf32>
    %1311 = arith.mulf %1306, %1310 : vector<2x64xf32>
    %1312 = arith.addf %1277, %1311 : vector<2x64xf32>
    %c16_i32_570 = arith.constant 16 : i32
    %1313 = arith.index_cast %c16_i32_570 : i32 to index
    %c0_571 = arith.constant 0 : index
    %c0_572 = arith.constant 0 : index
    %1314 = vector.load %arg22[%1313, %c0_571, %c0_572] : memref<18x2x256xf32, #tpu.memory_space<vmem>>, vector<1x2x256xf32>
    %1315 = vector.shape_cast %1314 : vector<1x2x256xf32> to vector<2x256xf32>
    %c17_i32_573 = arith.constant 17 : i32
    %1316 = arith.subi %c17_i32_573, %c16_i32_570 : i32
    %1317 = arith.index_cast %1316 : i32 to index
    %c0_574 = arith.constant 0 : index
    %c0_575 = arith.constant 0 : index
    %1318 = vector.load %arg23[%1317, %c0_574, %c0_575] : memref<18x2x256xf32, #tpu.memory_space<vmem>>, vector<1x2x256xf32>
    %1319 = vector.shape_cast %1318 : vector<1x2x256xf32> to vector<2x256xf32>
    %1320 = arith.addf %1315, %1319 : vector<2x256xf32>
    %cst_576 = arith.constant dense<0.000000e+00> : vector<2x256xf32>
    %1321 = tpu.matmul %1311, %751, %cst_576 {dimension_numbers = #tpu.dot_dimension_numbers<[1], [0], [0], [1], [0, 0, 1, 1], [], []>} : vector<2x64xf32>, vector<64x256xf32>, vector<2x256xf32> -> vector<2x256xf32>
    %1322 = arith.addf %1320, %1321 : vector<2x256xf32>
    %1323 = vector.broadcast %752 : vector<1x256xf32> to vector<2x256xf32>
    %1324 = arith.addf %1322, %1323 : vector<2x256xf32>
    %1325 = math.tanh %1324 : vector<2x256xf32>
    %1326 = vector.extract_strided_slice %1325 {offsets = [0, 0], sizes = [2, 64], strides = [1, 1]} : vector<2x256xf32> to vector<2x64xf32>
    %cst_577 = arith.constant 5.000000e-01 : f32
    %1327 = vector.broadcast %cst_577 : f32 to vector<2x64xf32>
    %1328 = arith.mulf %1327, %1326 : vector<2x64xf32>
    %cst_578 = arith.constant 5.000000e-01 : f32
    %1329 = vector.broadcast %cst_578 : f32 to vector<2x64xf32>
    %1330 = arith.addf %1328, %1329 : vector<2x64xf32>
    %1331 = vector.extract_strided_slice %1325 {offsets = [0, 64], sizes = [2, 64], strides = [1, 1]} : vector<2x256xf32> to vector<2x64xf32>
    %cst_579 = arith.constant 5.000000e-01 : f32
    %1332 = vector.broadcast %cst_579 : f32 to vector<2x64xf32>
    %1333 = arith.mulf %1332, %1331 : vector<2x64xf32>
    %cst_580 = arith.constant 5.000000e-01 : f32
    %1334 = vector.broadcast %cst_580 : f32 to vector<2x64xf32>
    %1335 = arith.addf %1333, %1334 : vector<2x64xf32>
    %1336 = vector.extract_strided_slice %1325 {offsets = [0, 128], sizes = [2, 64], strides = [1, 1]} : vector<2x256xf32> to vector<2x64xf32>
    %1337 = vector.extract_strided_slice %1325 {offsets = [0, 192], sizes = [2, 64], strides = [1, 1]} : vector<2x256xf32> to vector<2x64xf32>
    %cst_581 = arith.constant 5.000000e-01 : f32
    %1338 = vector.broadcast %cst_581 : f32 to vector<2x64xf32>
    %1339 = arith.mulf %1338, %1337 : vector<2x64xf32>
    %cst_582 = arith.constant 5.000000e-01 : f32
    %1340 = vector.broadcast %cst_582 : f32 to vector<2x64xf32>
    %1341 = arith.addf %1339, %1340 : vector<2x64xf32>
    %1342 = arith.mulf %1335, %1309 : vector<2x64xf32>
    %1343 = arith.mulf %1330, %1336 : vector<2x64xf32>
    %1344 = arith.addf %1342, %1343 : vector<2x64xf32>
    %1345 = math.tanh %1344 : vector<2x64xf32>
    %1346 = arith.mulf %1341, %1345 : vector<2x64xf32>
    %1347 = arith.addf %1312, %1346 : vector<2x64xf32>
    %c17_i32_583 = arith.constant 17 : i32
    %1348 = arith.index_cast %c17_i32_583 : i32 to index
    %c0_584 = arith.constant 0 : index
    %c0_585 = arith.constant 0 : index
    %1349 = vector.load %arg22[%1348, %c0_584, %c0_585] : memref<18x2x256xf32, #tpu.memory_space<vmem>>, vector<1x2x256xf32>
    %1350 = vector.shape_cast %1349 : vector<1x2x256xf32> to vector<2x256xf32>
    %c17_i32_586 = arith.constant 17 : i32
    %1351 = arith.subi %c17_i32_586, %c17_i32_583 : i32
    %1352 = arith.index_cast %1351 : i32 to index
    %c0_587 = arith.constant 0 : index
    %c0_588 = arith.constant 0 : index
    %1353 = vector.load %arg23[%1352, %c0_587, %c0_588] : memref<18x2x256xf32, #tpu.memory_space<vmem>>, vector<1x2x256xf32>
    %1354 = vector.shape_cast %1353 : vector<1x2x256xf32> to vector<2x256xf32>
    %1355 = arith.addf %1350, %1354 : vector<2x256xf32>
    %cst_589 = arith.constant dense<0.000000e+00> : vector<2x256xf32>
    %1356 = tpu.matmul %1346, %751, %cst_589 {dimension_numbers = #tpu.dot_dimension_numbers<[1], [0], [0], [1], [0, 0, 1, 1], [], []>} : vector<2x64xf32>, vector<64x256xf32>, vector<2x256xf32> -> vector<2x256xf32>
    %1357 = arith.addf %1355, %1356 : vector<2x256xf32>
    %1358 = vector.broadcast %752 : vector<1x256xf32> to vector<2x256xf32>
    %1359 = arith.addf %1357, %1358 : vector<2x256xf32>
    %1360 = math.tanh %1359 : vector<2x256xf32>
    %1361 = vector.extract_strided_slice %1360 {offsets = [0, 0], sizes = [2, 64], strides = [1, 1]} : vector<2x256xf32> to vector<2x64xf32>
    %cst_590 = arith.constant 5.000000e-01 : f32
    %1362 = vector.broadcast %cst_590 : f32 to vector<2x64xf32>
    %1363 = arith.mulf %1362, %1361 : vector<2x64xf32>
    %cst_591 = arith.constant 5.000000e-01 : f32
    %1364 = vector.broadcast %cst_591 : f32 to vector<2x64xf32>
    %1365 = arith.addf %1363, %1364 : vector<2x64xf32>
    %1366 = vector.extract_strided_slice %1360 {offsets = [0, 64], sizes = [2, 64], strides = [1, 1]} : vector<2x256xf32> to vector<2x64xf32>
    %cst_592 = arith.constant 5.000000e-01 : f32
    %1367 = vector.broadcast %cst_592 : f32 to vector<2x64xf32>
    %1368 = arith.mulf %1367, %1366 : vector<2x64xf32>
    %cst_593 = arith.constant 5.000000e-01 : f32
    %1369 = vector.broadcast %cst_593 : f32 to vector<2x64xf32>
    %1370 = arith.addf %1368, %1369 : vector<2x64xf32>
    %1371 = vector.extract_strided_slice %1360 {offsets = [0, 128], sizes = [2, 64], strides = [1, 1]} : vector<2x256xf32> to vector<2x64xf32>
    %1372 = vector.extract_strided_slice %1360 {offsets = [0, 192], sizes = [2, 64], strides = [1, 1]} : vector<2x256xf32> to vector<2x64xf32>
    %cst_594 = arith.constant 5.000000e-01 : f32
    %1373 = vector.broadcast %cst_594 : f32 to vector<2x64xf32>
    %1374 = arith.mulf %1373, %1372 : vector<2x64xf32>
    %cst_595 = arith.constant 5.000000e-01 : f32
    %1375 = vector.broadcast %cst_595 : f32 to vector<2x64xf32>
    %1376 = arith.addf %1374, %1375 : vector<2x64xf32>
    %1377 = arith.mulf %1370, %1344 : vector<2x64xf32>
    %1378 = arith.mulf %1365, %1371 : vector<2x64xf32>
    %1379 = arith.addf %1377, %1378 : vector<2x64xf32>
    %1380 = math.tanh %1379 : vector<2x64xf32>
    %1381 = arith.mulf %1376, %1380 : vector<2x64xf32>
    %1382 = arith.addf %1347, %1381 : vector<2x64xf32>
    %c18_i32_596 = arith.constant 18 : i32
    %cst_597 = arith.constant 0.055555556 : f32
    %1383 = vector.broadcast %cst_597 : f32 to vector<2x64xf32>
    %1384 = arith.mulf %1382, %1383 : vector<2x64xf32>
    %c0_598 = arith.constant 0 : index
    %c0_599 = arith.constant 0 : index
    %1385 = vector.load %arg13[%c0_598, %c0_599] : memref<64x128xf32, #tpu.memory_space<vmem>>, vector<64x128xf32>
    %cst_600 = arith.constant dense<0.000000e+00> : vector<2x128xf32>
    %1386 = tpu.matmul %1384, %1385, %cst_600 {dimension_numbers = #tpu.dot_dimension_numbers<[1], [0], [0], [1], [0, 0, 1, 1], [], []>} : vector<2x64xf32>, vector<64x128xf32>, vector<2x128xf32> -> vector<2x128xf32>
    %c0_601 = arith.constant 0 : index
    %c0_602 = arith.constant 0 : index
    %1387 = vector.load %arg14[%c0_601, %c0_602] : memref<1x128xf32, #tpu.memory_space<vmem>>, vector<1x128xf32>
    %1388 = vector.broadcast %1387 : vector<1x128xf32> to vector<2x128xf32>
    %1389 = arith.addf %1386, %1388 : vector<2x128xf32>
    %cst_603 = arith.constant 0.000000e+00 : f32
    %1390 = vector.broadcast %cst_603 : f32 to vector<2x128xf32>
    %1391 = arith.maximumf %1389, %1390 : vector<2x128xf32>
    %c0_604 = arith.constant 0 : index
    %c0_605 = arith.constant 0 : index
    %1392 = vector.load %arg15[%c0_604, %c0_605] : memref<128x2xf32, #tpu.memory_space<vmem>>, vector<128x2xf32>
    %cst_606 = arith.constant dense<0.000000e+00> : vector<2x2xf32>
    %1393 = tpu.matmul %1391, %1392, %cst_606 {dimension_numbers = #tpu.dot_dimension_numbers<[1], [0], [0], [1], [0, 0, 1, 1], [], []>} : vector<2x128xf32>, vector<128x2xf32>, vector<2x2xf32> -> vector<2x2xf32>
    %c0_607 = arith.constant 0 : index
    %c0_608 = arith.constant 0 : index
    %1394 = vector.load %arg16[%c0_607, %c0_608] : memref<1x2xf32, #tpu.memory_space<vmem>>, vector<1x2xf32>
    %1395 = vector.broadcast %1394 : vector<1x2xf32> to vector<2x2xf32>
    %1396 = arith.addf %1393, %1395 : vector<2x2xf32>
    %c0_609 = arith.constant 0 : index
    %c0_610 = arith.constant 0 : index
    %1397 = vector.load %arg17[%c0_609, %c0_610] : memref<2x2xf32, #tpu.memory_space<vmem>>, vector<2x2xf32>
    tpu.vector_store %arg17[%c0_609, %c0_610], %1396 {strides = array<i32>} : memref<2x2xf32, #tpu.memory_space<vmem>>, vector<2x2xf32>,
    return
  }
}

</mosaic_0001>

<bundles_post_ra>
// kernel: forward.1
= control target key start
LH: loop header
LB: loop body
LE: loop exit
PB: predicated region body
PF: predicated region fallthrough
CT: control target
= control target key end

     0   :  { %s11463_s0 = inlined_call_operand.vmem [shape: f32[16,2,2], index: 0, kind: input, shape index: {}]   ;;  %s11464_s1 = inlined_call_operand.hbm [shape: f32[16,32], index: 1, kind: input, shape index: {}]   ;;  %s11465_s2 = inlined_call_operand.vmem [shape: f32[1,32], index: 2, kind: input, shape index: {}]   ;;  %s11466_s3 = inlined_call_operand.vmem [shape: f32[256,64], index: 3, kind: input, shape index: {}]   ;;  %s11467_s4 = inlined_call_operand.vmem [shape: f32[1,64], index: 4, kind: input, shape index: {}]   ;;  %s11468_s5 = inlined_call_operand.vmem [shape: f32[64,256], index: 5, kind: input, shape index: {}]   ;;  %s11469_s6 = inlined_call_operand.vmem [shape: f32[64,256], index: 6, kind: input, shape index: {}]   ;;  %s11470_s7 = inlined_call_operand.vmem [shape: f32[64,256], index: 7, kind: input, shape index: {}]   ;;  %s11471_s8 = inlined_call_operand.vmem [shape: f32[1,256], index: 8, kind: input, shape index: {}]   ;;  %s11472_s9 = inlined_call_operand.hbm [shape: f32[64,256], index: 9, kind: input, shape index: {}]   ;;  %s11473_s10 = inlined_call_operand.hbm [shape: f32[64,256], index: 10, kind: input, shape index: {}]   ;;  %s11474_s11 = inlined_call_operand.hbm [shape: f32[64,256], index: 11, kind: input, shape index: {}]   ;;  %s11475_s12 = inlined_call_operand.vmem [shape: f32[1,256], index: 12, kind: input, shape index: {}]   ;;  %s11476_s13 = inlined_call_operand.vmem [shape: f32[64,128], index: 13, kind: input, shape index: {}]   ;;  %s11477_s14 = inlined_call_operand.vmem [shape: f32[1,128], index: 14, kind: input, shape index: {}]   ;;  %s11478_s15 = inlined_call_operand.vmem [shape: f32[128,2], index: 15, kind: input, shape index: {}]   ;;  %s11479_s16 = inlined_call_operand.vmem [shape: f32[1,2], index: 16, kind: input, shape index: {}]   ;;  %s11480_s17 = inlined_call_operand.hbm [shape: f32[2,2], index: 17, kind: output, shape index: {}]  }
   0x1   :  { %11488 = sst [smem:[#allocation22_spill]] %s11463_s0 }
   0x2   :  { %11489 = sst [smem:[#allocation23_spill]] %s11464_s1 }
   0x3   :  { %11490 = sst [smem:[#allocation24_spill]] %s11480_s17 }
   0x4   :  { %22 = vsyncpa [#allocation10], 0 }
   0x5   :  { %23 = vsyncpa [#allocation13], 0 }
   0x6   :  { %24 = vsyncpa [#allocation16], 0 }
   0x7   :  { %25 = vsyncpa [#allocation11], 0  ;;  %s9196_s24 = smov [#allocation12]   ;;  %s9078_s28 = scalar_lea.hbm %s11472_s9, 2048 }
   0x8   :  { %s59_s25 = sshll.u32 %s9196_s24, 4  ;;  %p9079_p0 = scmp.ne.s32.totalorder %s11472_s9, %s9078_s28  ;;  %s60_s25 = int_to_ptr.vmem [resolvable:$true] %s59_s25 }
   0x9   :  { %p9082_p1 = scmp.lt.u32.totalorder %s9078_s28, %s11472_s9 }
   0xb   :  { %p9084_p2 = pnand %p9082_p1, %p9079_p0 }
   0xd   :  { %9087 = shalt.err (!%p9084_p2)
}
   0xe   :  { %s9088_s19 = scalar_lea.vmem %s60_s25, 2048  ;;  %p9093_p4 = scmp.lt.s32.totalorder %s60_s25, %s60_s25 }
   0xf   :  { %p9089_p3 = scmp.ne.s32.totalorder %s60_s25, %s9088_s19  ;;  %p9094_p5 = scmp.lt.s32.totalorder %s9088_s19, %s9088_s19 }
  0x11   :  { %p9095_p6 = por %p9094_p5, %p9093_p4 }
  0x13   :  { %p9096_p7 = pnand %p9095_p6, %p9089_p3 }
  0x15   :  { %9099 = shalt.err (!%p9096_p7)
}
  0x16   :  { %s11484_s1 = smov 256   ;;  %s11486_s20 = smov 16  }
  0x17   :  { %65 = dma.hbm_to_vmem [thread:$0]  %s11472_s9, 2048, %s60_s25, [#allocation13], %s11484_s1, %s11484_s1, %s11486_s20  }
  0x18   :  { %s9199_s23 = smov [#allocation9]   ;;  %s11491_s28 = sld [smem:[#allocation23_spill]] }
  0x19   :  { %s33_s24 = sshll.u32 %s9199_s23, 4  ;;  %s34_s24 = int_to_ptr.vmem [resolvable:$true] %s33_s24 }
  0x1e   :  { %s9100_s29 = scalar_lea.hbm %s11491_s28, 256 }
  0x1f   :  { %p9101_p8 = scmp.ne.s32.totalorder %s11491_s28, %s9100_s29  ;;  %p9104_p9 = scmp.lt.u32.totalorder %s9100_s29, %s11491_s28 }
  0x21   :  { %p9106_p10 = pnand %p9104_p9, %p9101_p8 }
  0x23   :  { %9109 = shalt.err (!%p9106_p10)
}
  0x24   :  { %s9110_s17 = scalar_lea.vmem %s34_s24, 256  ;;  %p9115_p12 = scmp.lt.s32.totalorder %s34_s24, %s34_s24 }
  0x25   :  { %p9111_p11 = scmp.ne.s32.totalorder %s34_s24, %s9110_s17  ;;  %p9116_p13 = scmp.lt.s32.totalorder %s9110_s17, %s9110_s17 }
  0x27   :  { %p9117_p0 = por %p9116_p13, %p9115_p12 }
  0x29   :  { %p9118_p1 = pnand %p9117_p0, %p9111_p11 }
  0x2b   :  { %9121 = shalt.err (!%p9118_p1)
}
  0x2c   :  { %s9200_s9 = smov 128   ;;  %s9201_s25 = smov 8  }
  0x2d   :  { %39 = dma.hbm_to_vmem [thread:$0]  %s11491_s28, 256, %s34_s24, [#allocation10], %s9200_s9, %s9200_s9, %s9201_s25  }
  0x2e   :  { %s9202_s23 = smov [#allocation14]   ;;  %s9203_s27 = smov [#allocation15]  }
  0x2f   :  { %s71_s26 = sshll.u32 %s9202_s23, 4  ;;  %s83_s29 = sshll.u32 %s9203_s27, 4  ;;  %s72_s26 = int_to_ptr.vmem [resolvable:$true] %s71_s26  ;;  %s9336_s29 = int_to_ptr.vmem [resolvable:$true] %s83_s29 }
  0x30   :  { %s9122_s17 = scalar_lea.hbm %s11473_s10, 2048 }
  0x31   :  { %p9123_p2 = scmp.ne.s32.totalorder %s11473_s10, %s9122_s17  ;;  %p9126_p3 = scmp.lt.u32.totalorder %s9122_s17, %s11473_s10 }
  0x33   :  { %p9128_p4 = pnand %p9126_p3, %p9123_p2 }
  0x35   :  { %9131 = shalt.err (!%p9128_p4)
}
  0x36   :  { %s9132_s24 = scalar_lea.vmem %s72_s26, 2048  ;;  %p9137_p6 = scmp.lt.s32.totalorder %s72_s26, %s72_s26 }
  0x37   :  { %p9133_p5 = scmp.ne.s32.totalorder %s72_s26, %s9132_s24  ;;  %p9138_p7 = scmp.lt.s32.totalorder %s9132_s24, %s9132_s24 }
  0x39   :  { %p9139_p8 = por %p9138_p7, %p9137_p6 }
  0x3b   :  { %p9140_p9 = pnand %p9139_p8, %p9133_p5 }
  0x3d   :  { %9143 = shalt.err (!%p9140_p9)
}
  0x3e   :  { %s11492_s28 = smov 16   ;;  %s11493_s9 = smov 256  }
  0x3f   :  { %77 = dma.hbm_to_vmem [thread:$0]  %s11473_s10, 2048, %s72_s26, [#allocation13], %s11493_s9, %s11493_s9, %s11492_s28  }
  0x40   :  { %s9144_s1 = scalar_lea.hbm %s11474_s11, 2048 }
  0x41   :  { %p9145_p10 = scmp.ne.s32.totalorder %s11474_s11, %s9144_s1  ;;  %p9148_p11 = scmp.lt.u32.totalorder %s9144_s1, %s11474_s11 }
  0x43   :  { %p9150_p12 = pnand %p9148_p11, %p9145_p10 }
  0x45   :  { %9153 = shalt.err (!%p9150_p12)
}
  0x46   :  { %s9154_s18 = scalar_lea.vmem %s9336_s29, 2048  ;;  %p9159_p0 = scmp.lt.s32.totalorder %s9336_s29, %s9336_s29 }
  0x47   :  { %p9155_p13 = scmp.ne.s32.totalorder %s9336_s29, %s9154_s18  ;;  %p9160_p1 = scmp.lt.s32.totalorder %s9154_s18, %s9154_s18 }
  0x49   :  { %p9161_p2 = por %p9160_p1, %p9159_p0 }
  0x4b   :  { %p9162_p3 = pnand %p9161_p2, %p9155_p13 }
  0x4d   :  { %9165 = shalt.err (!%p9162_p3)
}
  0x4e   :  { %89 = dma.hbm_to_vmem [thread:$0]  %s11474_s11, 2048, %s9336_s29, [#allocation16], %s11493_s9, %s11493_s9, %s11492_s28  }
  0x4f   :  { %9188 = dma.done.wait [#allocation10], 256  }
  0x50   :  { %9189 = vsyncadd [#allocation10], 4294967040 }
  0x51   :  { %9190 = dma.done.wait [#allocation13], 4096  }
  0x52   :  { %9191 = vsyncadd [#allocation13], 4294963200 }
  0x53   :  { %9192 = dma.done.wait [#allocation16], 2048  }
  0x54   :  { %9193 = vsyncadd [#allocation16], 4294965248  ;;  %vm112_vm0 = vcmask 9216   ;;  %v9204_v0 = vmov 0.0   ;;  %s11494_s19 = sld [smem:[#allocation22_spill]]  ;;  %s9205_s22 = smov 2  }
  0x55   :  { %116 = vst.msk [vmem:[#allocation2 + $0x6] sm:$0x3] %vm112_vm0, %v9204_v0  ;;  %113 = vst.msk [vmem:[#allocation2] sm:$0x3] %vm112_vm0, %v9204_v0  ;;  %s9206_s9 = smov 4   ;;  %s9207_s20 = smov 6  }
  0x56   :  { %114 = vst.msk [vmem:[#allocation2 + $0x2] sm:$0x3] %vm112_vm0, %v9204_v0  ;;  %115 = vst.msk [vmem:[#allocation2 + $0x4] sm:$0x3] %vm112_vm0, %v9204_v0  ;;  %s9208_s10 = smov 10   ;;  %s9209_s29 = smov 12  }
  0x57   :  { %118 = vst.msk [vmem:[#allocation2 + $0x28] sm:$0x3] %vm112_vm0, %v9204_v0  ;;  %119 = vst.msk [vmem:[#allocation2 + $0x2a] sm:$0x3] %vm112_vm0, %v9204_v0  ;;  %v899_v51 = vld [vmem:[#allocation9] sm:$0xff]  ;;  %v900_v52 = vld [vmem:[#allocation9 + $0x8] sm:$0xff] }
  0x58   :  { %120 = vst.msk [vmem:[#allocation2 + $0x2c] sm:$0x3] %vm112_vm0, %v9204_v0  ;;  %121 = vst.msk [vmem:[#allocation2 + $0x2e] sm:$0x3] %vm112_vm0, %v9204_v0  ;;  %v8202_v55 = vpack.c.bf16 %v900_v52, %v899_v51  ;;  %v9210_v56 = vmov 0.0|0.0   ;;  %vm9211_vm1 = vmmov 0  }
  0x59   :  { %8201 = vmatprep.subr.bf16.mxu0 %v9210_v56  ;;  %8132 = vmatprep.mubr.msk.f32.mxu0 %vm9211_vm1, %v9204_v0  ;;  %vm773_vm2 = vcmask 15360   ;;  %vm791_vm3 = vcmask 31744   ;;  %vm809_vm4 = vcmask 48128   ;;  %vm827_vm5 = vcmask 64512  }
  0x5a   :  { %v122_v1 = vld [vmem:[%s11494_s19] sm:$0x3]  ;;  %v123_v2 = vld [vmem:[%s11494_s19 + $0x2] sm:$0x3]  ;;  %v124_v3 = vld [vmem:[%s11494_s19 + $0x4] sm:$0x3]  ;;  %8203 = vmatpush3.bf16.msra.mxu0 %v8202_v55 }
  0x5b   :  { %139 = vst.msk [vmem:[#allocation2 + $0x8] sm:$0x3] %vm112_vm0, %v122_v1  ;;  %140 = vst.msk [vmem:[#allocation2 + $0xa] sm:$0x3] %vm112_vm0, %v123_v2  ;;  %v125_v8 = vld [vmem:[%s11494_s19 + $0x6] sm:$0x3] }
  0x5c   :  { %v175_v4 = vld [vmem:[#allocation2 + $0x6] sm:$0x3]  ;;  %141 = vst.msk [vmem:[#allocation2 + $0xc] sm:$0x3] %vm112_vm0, %v124_v3  ;;  %v126_v9 = vld [vmem:[%s11494_s19 + $0x8] sm:$0x3] }
  0x5d   :  { %v173_v5 = vld [vmem:[#allocation2 + $0x2] sm:$0x3]  ;;  %318 = vrot.lane.b32.xlu1 %v175_v4, %s9205_s22  ;;  %v192_v6 = vld [vmem:[#allocation2 + $0x6] sm:$0x3]  ;;  %v174_v7 = vld [vmem:[#allocation2 + $0x4] sm:$0x3] }
  0x5e   :  { %314 = vrot.lane.b32.xlu0 %v173_v5, %s9205_s22  ;;  %v127_v10 = vld [vmem:[%s11494_s19 + $0xa] sm:$0x3]  ;;  %142 = vst.msk [vmem:[#allocation2 + $0xe] sm:$0x3] %vm112_vm0, %v125_v8  ;;  %143 = vst.msk [vmem:[#allocation2 + $0x10] sm:$0x3] %vm112_vm0, %v126_v9 }
  0x5f   :  { %144 = vst.msk [vmem:[#allocation2 + $0x12] sm:$0x3] %vm112_vm0, %v127_v10  ;;  %v128_v11 = vld [vmem:[%s11494_s19 + $0xc] sm:$0x3]  ;;  %v129_v12 = vld [vmem:[%s11494_s19 + $0xe] sm:$0x3] }
  0x60   :  { %v130_v13 = vld [vmem:[%s11494_s19 + $0x10] sm:$0x3]  ;;  %145 = vst.msk [vmem:[#allocation2 + $0x14] sm:$0x3] %vm112_vm0, %v128_v11  ;;  %146 = vst.msk [vmem:[#allocation2 + $0x16] sm:$0x3] %vm112_vm0, %v129_v12 }
  0x61   :  { %147 = vst.msk [vmem:[#allocation2 + $0x18] sm:$0x3] %vm112_vm0, %v130_v13  ;;  %v131_v14 = vld [vmem:[%s11494_s19 + $0x12] sm:$0x3]  ;;  %384 = vrot.lane.b32.xlu1 %v192_v6, %s9206_s9  ;;  %v132_v15 = vld [vmem:[%s11494_s19 + $0x14] sm:$0x3] }
  0x62   :  { %316 = vrot.lane.b32.xlu0 %v174_v7, %s9205_s22  ;;  %148 = vst.msk [vmem:[#allocation2 + $0x1a] sm:$0x3] %vm112_vm0, %v131_v14  ;;  %v191_v16 = vld [vmem:[#allocation2 + $0x4] sm:$0x3]  ;;  %149 = vst.msk [vmem:[#allocation2 + $0x1c] sm:$0x3] %vm112_vm0, %v132_v15 }
  0x63   :  { %v133_v17 = vld [vmem:[%s11494_s19 + $0x16] sm:$0x3]  ;;  %v176_v18 = vld [vmem:[#allocation2 + $0x8] sm:$0x3]  ;;  %v194_v19 = vld [vmem:[#allocation2 + $0xa] sm:$0x3] }
  0x64   :  { %150 = vst.msk [vmem:[#allocation2 + $0x1e] sm:$0x3] %vm112_vm0, %v133_v17  ;;  %v209_v20 = vld [vmem:[#allocation2 + $0x6] sm:$0x3]  ;;  %v210_v21 = vld [vmem:[#allocation2 + $0x8] sm:$0x3] }
  0x65   :  { %320 = vrot.lane.b32.xlu1 %v176_v18, %s9205_s22  ;;  %v193_v22 = vld [vmem:[#allocation2 + $0x8] sm:$0x3]  ;;  %v212_v23 = vld [vmem:[#allocation2 + $0xc] sm:$0x3]  ;;  %v211_v24 = vld [vmem:[#allocation2 + $0xa] sm:$0x3] }
  0x66   :  { %382 = vrot.lane.b32.xlu0 %v191_v16, %s9206_s9  ;;  %v227_v25 = vld [vmem:[#allocation2 + $0xa] sm:$0x3]  ;;  %v226_v26 = vld [vmem:[#allocation2 + $0x8] sm:$0x3]  ;;  %v229_v27 = vld [vmem:[#allocation2 + $0xe] sm:$0x3] }
  0x67   :  { %v228_v28 = vld [vmem:[#allocation2 + $0xc] sm:$0x3]  ;;  %v177_v30 = vld [vmem:[#allocation2 + $0xa] sm:$0x3]  ;;  %v134_v31 = vld [vmem:[%s11494_s19 + $0x18] sm:$0x3] }
  0x68   :  { %v178_v29 = vld [vmem:[#allocation2 + $0xc] sm:$0x3]  ;;  %151 = vst.msk [vmem:[#allocation2 + $0x20] sm:$0x3] %vm112_vm0, %v134_v31  ;;  %v135_v32 = vld [vmem:[%s11494_s19 + $0x1a] sm:$0x3] }
  0x69   :  { %388 = vrot.lane.b32.xlu1 %v194_v19, %s9206_s9  ;;  %v180_v33 = vld [vmem:[#allocation2 + $0x10] sm:$0x3]  ;;  %v179_v34 = vld [vmem:[#allocation2 + $0xe] sm:$0x3]  ;;  %152 = vst.msk [vmem:[#allocation2 + $0x22] sm:$0x3] %vm112_vm0, %v135_v32 }
  0x6a   :  { %450 = vrot.lane.b32.xlu0 %v209_v20, %s9207_s20  ;;  %v245_v35 = vld [vmem:[#allocation2 + $0xc] sm:$0x3]  ;;  %v244_v36 = vld [vmem:[#allocation2 + $0xa] sm:$0x3]  ;;  %v247_v37 = vld [vmem:[#allocation2 + $0x10] sm:$0x3] }
  0x6b   :  { %v246_v38 = vld [vmem:[#allocation2 + $0xe] sm:$0x3]  ;;  %v136_v39 = vld [vmem:[%s11494_s19 + $0x1c] sm:$0x3]  ;;  %v195_v41 = vld [vmem:[#allocation2 + $0xc] sm:$0x3] }
  0x6c   :  { %153 = vst.msk [vmem:[#allocation2 + $0x24] sm:$0x3] %vm112_vm0, %v136_v39  ;;  %v196_v40 = vld [vmem:[#allocation2 + $0xe] sm:$0x3]  ;;  %v198_v42 = vld [vmem:[#allocation2 + $0x12] sm:$0x3] }
  0x6d   :  { %452 = vrot.lane.b32.xlu1 %v210_v21, %s9207_s20  ;;  %v197_v43 = vld [vmem:[#allocation2 + $0x10] sm:$0x3]  ;;  %v263_v44 = vld [vmem:[#allocation2 + $0xe] sm:$0x3]  ;;  %v262_v45 = vld [vmem:[#allocation2 + $0xc] sm:$0x3] }
  0x6e   :  { %386 = vrot.lane.b32.xlu0 %v193_v22, %s9206_s9  ;;  %v265_v46 = vld [vmem:[#allocation2 + $0x12] sm:$0x3]  ;;  %v264_v47 = vld [vmem:[#allocation2 + $0x10] sm:$0x3]  ;;  %v137_v48 = vld [vmem:[%s11494_s19 + $0x1e] sm:$0x3] }
  0x6f   :  { %154 = vst.msk [vmem:[#allocation2 + $0x26] sm:$0x3] %vm112_vm0, %v137_v48  ;;  %v214_v49 = vld [vmem:[#allocation2 + $0x10] sm:$0x3]  ;;  %v213_v50 = vld [vmem:[#allocation2 + $0xe] sm:$0x3] }
  0x70   :  { %v216_v53 = vld [vmem:[#allocation2 + $0x14] sm:$0x3]  ;;  %v215_v54 = vld [vmem:[#allocation2 + $0x12] sm:$0x3]  ;;  %v281_v57 = vld [vmem:[#allocation2 + $0x10] sm:$0x3] }
  0x71   :  { %456 = vrot.lane.b32.xlu1 %v212_v23, %s9207_s20  ;;  %v280_v58 = vld [vmem:[#allocation2 + $0xe] sm:$0x3]  ;;  %s9212_s19 = smov 14   ;;  %v283_v59 = vld [vmem:[#allocation2 + $0x14] sm:$0x3]  ;;  %vm845_vm6 = vcmask 80896  }
  0x72   :  { %454 = vrot.lane.b32.xlu0 %v211_v24, %s9207_s20  ;;  %v282_v60 = vld [vmem:[#allocation2 + $0x12] sm:$0x3]  ;;  %v230_v62 = vld [vmem:[#allocation2 + $0x10] sm:$0x3]  ;;  %v233_v63 = vld [vmem:[#allocation2 + $0x16] sm:$0x3] }
  0x73   :  { %v231_v61 = vld [vmem:[#allocation2 + $0x12] sm:$0x3]  ;;  %v232_v1 = vld [vmem:[#allocation2 + $0x14] sm:$0x3]  ;;  %v184_v4 = vld [vmem:[#allocation2 + $0x18] sm:$0x3] }
  0x74   :  { %v182_v2 = vld [vmem:[#allocation2 + $0x14] sm:$0x3]  ;;  %v181_v3 = vld [vmem:[#allocation2 + $0x12] sm:$0x3]  ;;  %v183_v5 = vld [vmem:[#allocation2 + $0x16] sm:$0x3] }
  0x75   :  { %520 = vrot.lane.b32.xlu1 %v227_v25, %s9201_s25  ;;  %v249_v6 = vld [vmem:[#allocation2 + $0x14] sm:$0x3]  ;;  %v248_v7 = vld [vmem:[#allocation2 + $0x12] sm:$0x3]  ;;  %v251_v8 = vld [vmem:[#allocation2 + $0x18] sm:$0x3] }
  0x76   :  { %518 = vrot.lane.b32.xlu0 %v226_v26, %s9201_s25  ;;  %v250_v9 = vld [vmem:[#allocation2 + $0x16] sm:$0x3]  ;;  %v199_v11 = vld [vmem:[#allocation2 + $0x14] sm:$0x3]  ;;  %v202_v12 = vld [vmem:[#allocation2 + $0x1a] sm:$0x3] }
  0x77   :  { %v200_v10 = vld [vmem:[#allocation2 + $0x16] sm:$0x3]  ;;  %v201_v13 = vld [vmem:[#allocation2 + $0x18] sm:$0x3]  ;;  %v266_v15 = vld [vmem:[#allocation2 + $0x14] sm:$0x3] }
  0x78   :  { %v267_v14 = vld [vmem:[#allocation2 + $0x16] sm:$0x3]  ;;  %v269_v16 = vld [vmem:[#allocation2 + $0x1a] sm:$0x3]  ;;  %v268_v17 = vld [vmem:[#allocation2 + $0x18] sm:$0x3] }
  0x79   :  { %524 = vrot.lane.b32.xlu1 %v229_v27, %s9201_s25  ;;  %v218_v20 = vld [vmem:[#allocation2 + $0x18] sm:$0x3]  ;;  %v217_v21 = vld [vmem:[#allocation2 + $0x16] sm:$0x3]  ;;  %v220_v24 = vld [vmem:[#allocation2 + $0x1c] sm:$0x3] }
  0x7a   :  { %522 = vrot.lane.b32.xlu0 %v228_v28, %s9201_s25  ;;  %v219_v25 = vld [vmem:[#allocation2 + $0x1a] sm:$0x3]  ;;  %v285_v28 = vld [vmem:[#allocation2 + $0x18] sm:$0x3]  ;;  %v287_v32 = vld [vmem:[#allocation2 + $0x1c] sm:$0x3] }
  0x7b   :  { %v188_v48 = vld [vmem:[#allocation2 + $0x20] sm:$0x3]  ;;  %v253_v52 = vld [vmem:[#allocation2 + $0x1c] sm:$0x3]  ;;  %vm863_vm7 = vcmask 97280   ;;  %vm881_vm8 = vcmask 113664  }
  0x7c   :  { %vm1000_vm9 = vcmask 130048   ;;  %vm1106_vm10 = vcmask 254976   ;;  %vm1813_vm11 = vcmask 261120   ;;  %vm1832_vm12 = vcmask 523264  }
  0x7d   :  { %324 = vrot.lane.b32.xlu1 %v178_v29, %s9205_s22  ;;  %v284_v29 = vld [vmem:[#allocation2 + $0x16] sm:$0x3]  ;;  %1108 = vst.msk [vmem:[#allocation3 + $0x2] sm:$0x3] %vm1106_vm10, %v9204_v0  ;;  %1107 = vst.msk [vmem:[#allocation3] sm:$0x3] %vm1106_vm10, %v9204_v0 }
  0x7e   :  { %322 = vrot.lane.b32.xlu0 %v177_v30, %s9205_s22  ;;  %1109 = vst.msk [vmem:[#allocation3 + $0x4] sm:$0x3] %vm1106_vm10, %v9204_v0  ;;  %1110 = vst.msk [vmem:[#allocation3 + $0x6] sm:$0x3] %vm1106_vm10, %v9204_v0  ;;  %vm1851_vm13 = vcmask 785408   ;;  %vm2971_vm14 = vcmask 517120  }
  0x7f   :  { %1112 = vst.msk [vmem:[#allocation3 + $0x2a] sm:$0x3] %vm1106_vm10, %v9204_v0  ;;  %1113 = vst.msk [vmem:[#allocation3 + $0x2c] sm:$0x3] %vm1106_vm10, %v9204_v0 }
  0x80   :  { %1114 = vst.msk [vmem:[#allocation3 + $0x2e] sm:$0x3] %vm1106_vm10, %v9204_v0  ;;  %1115 = vst.msk [vmem:[#allocation3 + $0x30] sm:$0x3] %vm1106_vm10, %v9204_v0 }
  0x81   :  { %328 = vrot.lane.b32.xlu1 %v180_v33, %s9205_s22  ;;  %v286_v33 = vld [vmem:[#allocation2 + $0x1a] sm:$0x3] }
  0x82   :  { %326 = vrot.lane.b32.xlu0 %v179_v34, %s9205_s22 }
  0x85   :  { %588 = vrot.lane.b32.xlu1 %v245_v35, %s9208_s10 }
  0x86   :  { %586 = vrot.lane.b32.xlu0 %v244_v36, %s9208_s10  ;;  %v235_v36 = vld [vmem:[#allocation2 + $0x1a] sm:$0x3] }
  0x89   :  { %592 = vrot.lane.b32.xlu1 %v247_v37, %s9208_s10  ;;  %v234_v37 = vld [vmem:[#allocation2 + $0x18] sm:$0x3] }
  0x8a   :  { %590 = vrot.lane.b32.xlu0 %v246_v38, %s9208_s10 }
  0x8d   :  { %392 = vrot.lane.b32.xlu1 %v196_v40, %s9206_s9  ;;  %v237_v40 = vld [vmem:[#allocation2 + $0x1e] sm:$0x3] }
  0x8e   :  { %390 = vrot.lane.b32.xlu0 %v195_v41, %s9206_s9  ;;  %v236_v41 = vld [vmem:[#allocation2 + $0x1c] sm:$0x3] }
  0x91   :  { %396 = vrot.lane.b32.xlu1 %v198_v42, %s9206_s9 }
  0x92   :  { %394 = vrot.lane.b32.xlu0 %v197_v43, %s9206_s9 }
  0x95   :  { %656 = vrot.lane.b32.xlu1 %v263_v44, %s9209_s29  ;;  %v186_v44 = vld [vmem:[#allocation2 + $0x1c] sm:$0x3] }
  0x96   :  { %654 = vrot.lane.b32.xlu0 %v262_v45, %s9209_s29  ;;  %v185_v45 = vld [vmem:[#allocation2 + $0x1a] sm:$0x3] }
  0x99   :  { %660 = vrot.lane.b32.xlu1 %v265_v46, %s9209_s29 }
  0x9a   :  { %658 = vrot.lane.b32.xlu0 %v264_v47, %s9209_s29 }
  0x9d   :  { %460 = vrot.lane.b32.xlu1 %v214_v49, %s9207_s20  ;;  %v187_v49 = vld [vmem:[#allocation2 + $0x1e] sm:$0x3] }
  0x9e   :  { %458 = vrot.lane.b32.xlu0 %v213_v50, %s9207_s20 }
  0xa1   :  { %464 = vrot.lane.b32.xlu1 %v216_v53, %s9207_s20  ;;  %v252_v53 = vld [vmem:[#allocation2 + $0x1a] sm:$0x3] }
  0xa2   :  { %462 = vrot.lane.b32.xlu0 %v215_v54, %s9207_s20 }
  0xa5   :  { %724 = vrot.lane.b32.xlu1 %v281_v57, %s9212_s19  ;;  %v255_v57 = vld [vmem:[#allocation2 + $0x20] sm:$0x3] }
  0xa6   :  { %722 = vrot.lane.b32.xlu0 %v280_v58, %s9212_s19  ;;  %v254_v58 = vld [vmem:[#allocation2 + $0x1e] sm:$0x3] }
  0xa9   :  { %728 = vrot.lane.b32.xlu1 %v283_v59, %s9212_s19 }
  0xaa   :  { %726 = vrot.lane.b32.xlu0 %v282_v60, %s9212_s19 }
  0xad   :  { %528 = vrot.lane.b32.xlu1 %v231_v61, %s9201_s25  ;;  %v204_v61 = vld [vmem:[#allocation2 + $0x1e] sm:$0x3] }
  0xae   :  { %526 = vrot.lane.b32.xlu0 %v230_v62, %s9201_s25  ;;  %v203_v62 = vld [vmem:[#allocation2 + $0x1c] sm:$0x3] }
  0xb1   :  { %532 = vrot.lane.b32.xlu1 %v233_v63, %s9201_s25 }
  0xb2   :  { %530 = vrot.lane.b32.xlu0 %v232_v1, %s9201_s25 }
  0xb5   :  { %332 = vrot.lane.b32.xlu1 %v182_v2, %s9205_s22  ;;  %v206_v2 = vld [vmem:[#allocation2 + $0x22] sm:$0x3] }
  0xb6   :  { %330 = vrot.lane.b32.xlu0 %v181_v3, %s9205_s22  ;;  %v205_v3 = vld [vmem:[#allocation2 + $0x20] sm:$0x3] }
  0xb9   :  { %336 = vrot.lane.b32.xlu1 %v184_v4, %s9205_s22 }
  0xba   :  { %334 = vrot.lane.b32.xlu0 %v183_v5, %s9205_s22 }
  0xbd   :  { %596 = vrot.lane.b32.xlu1 %v249_v6, %s9208_s10  ;;  %v271_v6 = vld [vmem:[#allocation2 + $0x1e] sm:$0x3] }
  0xbe   :  { %594 = vrot.lane.b32.xlu0 %v248_v7, %s9208_s10  ;;  %v270_v7 = vld [vmem:[#allocation2 + $0x1c] sm:$0x3] }
  0xc1   :  { %600 = vrot.lane.b32.xlu1 %v251_v8, %s9208_s10 }
  0xc2   :  { %598 = vrot.lane.b32.xlu0 %v250_v9, %s9208_s10 }
  0xc5   :  { %400 = vrot.lane.b32.xlu1 %v200_v10, %s9206_s9  ;;  %v273_v10 = vld [vmem:[#allocation2 + $0x22] sm:$0x3] }
  0xc6   :  { %398 = vrot.lane.b32.xlu0 %v199_v11, %s9206_s9  ;;  %v272_v11 = vld [vmem:[#allocation2 + $0x20] sm:$0x3] }
  0xc9   :  { %404 = vrot.lane.b32.xlu1 %v202_v12, %s9206_s9 }
  0xca   :  { %402 = vrot.lane.b32.xlu0 %v201_v13, %s9206_s9 }
  0xcd   :  { %664 = vrot.lane.b32.xlu1 %v267_v14, %s9209_s29  ;;  %v222_v14 = vld [vmem:[#allocation2 + $0x20] sm:$0x3] }
  0xce   :  { %662 = vrot.lane.b32.xlu0 %v266_v15, %s9209_s29  ;;  %v221_v15 = vld [vmem:[#allocation2 + $0x1e] sm:$0x3] }
  0xcf   :  { %v9514_v18 = vpop.permute.xlu1 %318 }
  0xd0   :  { %v9516_v19 = vpop.permute.xlu0 %314 }
  0xd1   :  { %668 = vrot.lane.b32.xlu1 %v269_v16, %s9209_s29 }
  0xd2   :  { %666 = vrot.lane.b32.xlu0 %v268_v17, %s9209_s29 }
  0xd3   :  { %v9520_v22 = vpop.permute.xlu1 %384 }
  0xd4   :  { %v9522_v23 = vpop.permute.xlu0 %316 }
  0xd5   :  { %468 = vrot.lane.b32.xlu1 %v218_v20, %s9207_s20  ;;  %v156_v20 = vld [vmem:[#allocation2 + $0x2] sm:$0x3] }
  0xd6   :  { %466 = vrot.lane.b32.xlu0 %v217_v21, %s9207_s20  ;;  %v224_v21 = vld [vmem:[#allocation2 + $0x24] sm:$0x3] }
  0xd7   :  { %v9526_v26 = vpop.permute.xlu1 %320 }
  0xd8   :  { %v9528_v27 = vpop.permute.xlu0 %382 }
  0xd9   :  { %472 = vrot.lane.b32.xlu1 %v220_v24, %s9207_s20  ;;  %v223_v24 = vld [vmem:[#allocation2 + $0x22] sm:$0x3] }
  0xda   :  { %470 = vrot.lane.b32.xlu0 %v219_v25, %s9207_s20  ;;  %v155_v25 = vld [vmem:[#allocation2] sm:$0x3] }
  0xdb   :  { %v9532_v30 = vpop.permute.xlu1 %388 }
  0xdc   :  { %v9534_v31 = vpop.permute.xlu0 %450 }
  0xdd   :  { %732 = vrot.lane.b32.xlu1 %v285_v28, %s9212_s19 }
  0xde   :  { %730 = vrot.lane.b32.xlu0 %v284_v29, %s9212_s19 }
  0xdf   :  { %v9538_v34 = vpop.permute.xlu1 %452 }
  0xe0   :  { %v9540_v35 = vpop.permute.xlu0 %386 }
  0xe1   :  { %736 = vrot.lane.b32.xlu1 %v287_v32, %s9212_s19  ;;  %v775_v32 = vsel %vm773_vm2, %v156_v20, %v9522_v23 }
  0xe2   :  { %734 = vrot.lane.b32.xlu0 %v286_v33, %s9212_s19  ;;  %v9213_v33 = vmov 1983009808  }
  0xe3   :  { %v9544_v38 = vpop.permute.xlu1 %456 }
  0xe4   :  { %v9546_v39 = vpop.permute.xlu0 %454 }
  0xe5   :  { %536 = vrot.lane.b32.xlu1 %v235_v36, %s9201_s25  ;;  %v928_v36 = vunpack.c.l.s4 %v9213_v33 }
  0xe6   :  { %534 = vrot.lane.b32.xlu0 %v234_v37, %s9201_s25  ;;  %v930_v37 = vlaneseq }
  0xe7   :  { %v9550_v42 = vpop.permute.xlu1 %520 }
  0xe8   :  { %v9552_v43 = vpop.permute.xlu0 %518 }
  0xe9   :  { %540 = vrot.lane.b32.xlu1 %v237_v40, %s9201_s25  ;;  %v774_v40 = vsel %vm773_vm2, %v155_v25, %v9516_v19 }
  0xea   :  { %538 = vrot.lane.b32.xlu0 %v236_v41, %s9201_s25  ;;  %v289_v41 = vld [vmem:[#allocation2 + $0x20] sm:$0x3]  ;;  %v792_v23 = vsel %vm791_vm3, %v774_v40, %v9528_v27 }
  0xeb   :  { %v9556_v46 = vpop.permute.xlu1 %524 }
  0xec   :  { %v9558_v47 = vpop.permute.xlu0 %522 }
  0xed   :  { %340 = vrot.lane.b32.xlu1 %v186_v44, %s9205_s22  ;;  %v288_v44 = vld [vmem:[#allocation2 + $0x1e] sm:$0x3] }
  0xee   :  { %338 = vrot.lane.b32.xlu0 %v185_v45, %s9205_s22  ;;  %v157_v45 = vld [vmem:[#allocation2 + $0x4] sm:$0x3] }
  0xef   :  { %v9562_v50 = vpop.permute.xlu1 %324 }
  0xf0   :  { %v9564_v51 = vpop.permute.xlu0 %322 }
  0xf1   :  { %344 = vrot.lane.b32.xlu1 %v188_v48, %s9205_s22  ;;  %v158_v48 = vld [vmem:[#allocation2 + $0x6] sm:$0x3] }
  0xf2   :  { %342 = vrot.lane.b32.xlu0 %v187_v49, %s9205_s22  ;;  %v793_v49 = vsel %vm791_vm3, %v775_v32, %v9520_v22  ;;  %v929_v22 = vunpack.c.0.s8 %v928_v36 }
  0xf3   :  { %v9568_v54 = vpop.permute.xlu1 %328  ;;  %v811_v19 = vsel %vm809_vm4, %v793_v49, %v9538_v34  ;;  %v777_v34 = vsel %vm773_vm2, %v158_v48, %v9526_v26  ;;  %v258_v49 = vld [vmem:[#allocation2 + $0x26] sm:$0x3] }
  0xf4   :  { %v9570_v55 = vpop.permute.xlu0 %326 }
  0xf5   :  { %604 = vrot.lane.b32.xlu1 %v253_v52, %s9208_s10 }
  0xf6   :  { %602 = vrot.lane.b32.xlu0 %v252_v53, %s9208_s10 }
  0xf7   :  { %v9574_v59 = vpop.permute.xlu1 %588 }
  0xf8   :  { %v9576_v60 = vpop.permute.xlu0 %586 }
  0xf9   :  { %608 = vrot.lane.b32.xlu1 %v255_v57, %s9208_s10  ;;  %v810_v57 = vsel %vm809_vm4, %v792_v23, %v9534_v31  ;;  %v776_v31 = vsel %vm773_vm2, %v157_v45, %v9514_v18  ;;  %v259_v23 = vld [vmem:[#allocation2 + $0x28] sm:$0x3] }
  0xfa   :  { %606 = vrot.lane.b32.xlu0 %v254_v58, %s9208_s10  ;;  %v829_v58 = vsel %vm827_vm5, %v811_v19, %v9550_v42  ;;  %v828_v27 = vsel %vm827_vm5, %v810_v57, %v9552_v43  ;;  %v291_v43 = vld [vmem:[#allocation2 + $0x24] sm:$0x3] }
  0xfb   :  { %v9580_v63 = vpop.permute.xlu1 %592  ;;  %v846_v42 = vsel %vm845_vm6, %v828_v27, %v9576_v60  ;;  %v274_v27 = vld [vmem:[#allocation2 + $0x24] sm:$0x3] }
  0xfc   :  { %v9582_v1 = vpop.permute.xlu0 %590 }
  0xfd   :  { %408 = vrot.lane.b32.xlu1 %v204_v61, %s9206_s9  ;;  %v9634_v61 = vshrl.u32 %v930_v37, 7 }
  0xfe   :  { %406 = vrot.lane.b32.xlu0 %v203_v62, %s9206_s9  ;;  %v847_v62 = vsel %vm845_vm6, %v829_v58, %v9574_v59  ;;  %v275_v58 = vld [vmem:[#allocation2 + $0x26] sm:$0x3] }
  0xff   :  { %v9586_v4 = vpop.permute.xlu1 %392 }
 0x100   :  { %v9588_v5 = vpop.permute.xlu0 %390 }
 0x101   :  { %412 = vrot.lane.b32.xlu1 %v206_v2, %s9206_s9  ;;  %v290_v2 = vld [vmem:[#allocation2 + $0x22] sm:$0x3] }
 0x102   :  { %410 = vrot.lane.b32.xlu0 %v205_v3, %s9206_s9  ;;  %v795_v3 = vsel %vm791_vm3, %v777_v34, %v9532_v30  ;;  %v277_v34 = vld [vmem:[#allocation2 + $0x2a] sm:$0x3] }
 0x103   :  { %v9592_v8 = vpop.permute.xlu1 %396  ;;  %v813_v59 = vsel %vm809_vm4, %v795_v3, %v9544_v38  ;;  %v292_v3 = vld [vmem:[#allocation2 + $0x26] sm:$0x3] }
 0x104   :  { %v9594_v9 = vpop.permute.xlu0 %394  ;;  %v831_v30 = vsel %vm827_vm5, %v813_v59, %v9556_v46 }
 0x105   :  { %672 = vrot.lane.b32.xlu1 %v271_v6, %s9209_s29  ;;  %v794_v6 = vsel %vm791_vm3, %v776_v31, %v9540_v35  ;;  %v849_v38 = vsel %vm845_vm6, %v831_v30, %v9580_v63 }
 0x106   :  { %670 = vrot.lane.b32.xlu0 %v270_v7, %s9209_s29  ;;  %v812_v60 = vsel %vm809_vm4, %v794_v6, %v9546_v39 }
 0x107   :  { %v657_v12 = vpop.permute.xlu1 %656  ;;  %v830_v35 = vsel %vm827_vm5, %v812_v60, %v9558_v47  ;;  %v9671_v47 = vsub.s32 %v929_v22, %v9634_v61  ;;  %v189_v60 = vld [vmem:[#allocation2 + $0x22] sm:$0x3] }
 0x108   :  { %v655_v13 = vpop.permute.xlu0 %654  ;;  %v865_v7 = vsel %vm863_vm7, %v847_v62, %v657_v12  ;;  %v848_v39 = vsel %vm845_vm6, %v830_v35, %v9582_v1  ;;  %v239_v12 = vld [vmem:[#allocation2 + $0x22] sm:$0x3]  ;;  %v241_v1 = vld [vmem:[#allocation2 + $0x26] sm:$0x3]  ;;  %v276_v62 = vld [vmem:[#allocation2 + $0x28] sm:$0x3] }
 0x109   :  { %676 = vrot.lane.b32.xlu1 %v273_v10, %s9209_s29  ;;  %v864_v18 = vsel %vm863_vm7, %v846_v42, %v655_v13  ;;  %v238_v13 = vld [vmem:[#allocation2 + $0x20] sm:$0x3]  ;;  %v225_v35 = vld [vmem:[#allocation2 + $0x26] sm:$0x3] }
 0x10a   :  { %674 = vrot.lane.b32.xlu0 %v272_v11, %s9209_s29 }
 0x10b   :  { %v9600_v16 = vpop.permute.xlu1 %660 }
 0x10c   :  { %v9602_v17 = vpop.permute.xlu0 %658 }
 0x10d   :  { %476 = vrot.lane.b32.xlu1 %v222_v14, %s9207_s20  ;;  %v866_v46 = vsel %vm863_vm7, %v848_v39, %v9602_v17 }
 0x10e   :  { %474 = vrot.lane.b32.xlu0 %v221_v15, %s9207_s20  ;;  %v867_v15 = vsel %vm863_vm7, %v849_v38, %v9600_v16  ;;  %v240_v16 = vld [vmem:[#allocation2 + $0x24] sm:$0x3]  ;;  %v242_v38 = vld [vmem:[#allocation2 + $0x28] sm:$0x3] }
 0x10f   :  { %v9606_v28 = vpop.permute.xlu1 %460 }
 0x110   :  { %v9608_v29 = vpop.permute.xlu0 %458 }
 0x111   :  { %480 = vrot.lane.b32.xlu1 %v224_v21, %s9207_s20 }
 0x112   :  { %478 = vrot.lane.b32.xlu0 %v223_v24, %s9207_s20 }
 0x113   :  { %v9620_v52 = vpop.permute.xlu1 %464 }
 0x114   :  { %v9622_v53 = vpop.permute.xlu0 %462 }
 0x115   :  { %740 = vrot.lane.b32.xlu1 %v289_v41, %s9212_s19  ;;  %v257_v41 = vld [vmem:[#allocation2 + $0x24] sm:$0x3] }
 0x116   :  { %738 = vrot.lane.b32.xlu0 %v288_v44, %s9212_s19  ;;  %v256_v44 = vld [vmem:[#allocation2 + $0x22] sm:$0x3] }
 0x117   :  { %v725_v10 = vpop.permute.xlu1 %724 }
 0x118   :  { %v723_v26 = vpop.permute.xlu0 %722  ;;  %v883_v11 = vsel %vm881_vm8, %v865_v7, %v725_v10  ;;  %v294_v10 = vld [vmem:[#allocation2 + $0x2a] sm:$0x3] }
 0x119   :  { %v882_v14 = vsel %vm881_vm8, %v864_v18, %v723_v26  ;;  %744 = vrot.lane.b32.xlu1 %v291_v43, %s9212_s19  ;;  %v295_v18 = vld [vmem:[#allocation2 + $0x2c] sm:$0x3] }
 0x11a   :  { %742 = vrot.lane.b32.xlu0 %v290_v2, %s9212_s19  ;;  %v925_v20 = vcombine.low %v882_v14, %v883_v11  ;;  %v293_v2 = vld [vmem:[#allocation2 + $0x28] sm:$0x3]  ;;  %v207_v11 = vld [vmem:[#allocation2 + $0x24] sm:$0x3] }
 0x11b   :  { %v729_v21 = vpop.permute.xlu1 %728 }
 0x11c   :  { %v727_v24 = vpop.permute.xlu0 %726  ;;  %v885_v25 = vsel %vm881_vm8, %v867_v15, %v729_v21  ;;  %v933_v33 = vrot.slane %v925_v20, %v9671_v47  ;;  %v278_v15 = vld [vmem:[#allocation2 + $0x2c] sm:$0x3]  ;;  %v296_v21 = vld [vmem:[#allocation2 + $0x2e] sm:$0x3] }
 0x11d   :  { %v884_v63 = vsel %vm881_vm8, %v866_v46, %v727_v24  ;;  %544 = vrot.lane.b32.xlu1 %v239_v12, %s9201_s25  ;;  %v160_v24 = vld [vmem:[#allocation2 + $0xa] sm:$0x3] }
 0x11e   :  { %v926_v32 = vcombine.low %v884_v63, %v885_v25  ;;  %542 = vrot.lane.b32.xlu0 %v238_v13, %s9201_s25  ;;  %v260_v13 = vld [vmem:[#allocation2 + $0x2a] sm:$0x3]  ;;  %v159_v25 = vld [vmem:[#allocation2 + $0x8] sm:$0x3] }
 0x11f   :  { %v9679_v36 = vpop.permute.xlu1 %528 }
 0x120   :  { %v940_v17 = vrot.slane %v926_v32, %v9671_v47  ;;  %v9681_v37 = vpop.permute.xlu0 %526 }
 0x121   :  { %548 = vrot.lane.b32.xlu1 %v241_v1, %s9201_s25  ;;  %v1250_v1 = vld [vmem:[#allocation3 + $0x2] sm:$0x3] }
 0x122   :  { %v941_v40 = vcombine.low %v933_v33, %v940_v17  ;;  %546 = vrot.lane.b32.xlu0 %v240_v16, %s9201_s25  ;;  %v779_v16 = vsel %vm773_vm2, %v160_v24, %v9562_v50  ;;  %v778_v33 = vsel %vm773_vm2, %v159_v25, %v9564_v51  ;;  %v162_v17 = vld [vmem:[#allocation2 + $0xe] sm:$0x3] }
 0x123   :  { %v9685_v45 = vpop.permute.xlu1 %532 }
 0x124   :  { %v9687_v48 = vpop.permute.xlu0 %530  ;;  %8133 = vmatmul.mubr.msk.f32.vlgmr.msra.gmra.mrb[0].mxu0 %vm1000_vm9, %v941_v40  ;;  %v161_v40 = vld [vmem:[#allocation2 + $0xc] sm:$0x3] }
 0x125   :  { %8135 = vmatprep.mubr.msk.f32.mxu0 %vm9211_vm1, %v9204_v0  ;;  %612 = vrot.lane.b32.xlu1 %v257_v41, %s9208_s10  ;;  %v797_v41 = vsel %vm791_vm3, %v779_v16, %v9586_v4  ;;  %v781_v4 = vsel %vm773_vm2, %v162_v17, %v9568_v54 }
 0x126   :  { %610 = vrot.lane.b32.xlu0 %v256_v44, %s9208_s10  ;;  %v796_v44 = vsel %vm791_vm3, %v778_v33, %v9588_v5  ;;  %v780_v5 = vsel %vm773_vm2, %v161_v40, %v9570_v55 }
 0x127   :  { %v9694_v57 = vpop.permute.xlu1 %332  ;;  %v814_v50 = vsel %vm809_vm4, %v796_v44, %v9608_v29  ;;  %v799_v29 = vsel %vm791_vm3, %v781_v4, %v9592_v8 }
 0x128   :  { %v9696_v19 = vpop.permute.xlu0 %330  ;;  %v817_v55 = vsel %vm809_vm4, %v799_v29, %v9620_v52  ;;  %v164_v29 = vld [vmem:[#allocation2 + $0x12] sm:$0x3] }
 0x129   :  { %616 = vrot.lane.b32.xlu1 %v259_v23, %s9208_s10  ;;  %v835_v8 = vsel %vm827_vm5, %v817_v55, %v9685_v45  ;;  %v783_v55 = vsel %vm773_vm2, %v164_v29, %v9694_v57 }
 0x12a   :  { %614 = vrot.lane.b32.xlu0 %v258_v49, %s9208_s10 }
 0x12b   :  { %v9700_v22 = vpop.permute.xlu1 %336 }
 0x12c   :  { %v9702_v31 = vpop.permute.xlu0 %334 }
 0x12d   :  { %680 = vrot.lane.b32.xlu1 %v275_v58, %s9209_s29  ;;  %v815_v58 = vsel %vm809_vm4, %v797_v41, %v9606_v28 }
 0x12e   :  { %678 = vrot.lane.b32.xlu0 %v274_v27, %s9209_s29  ;;  %v833_v51 = vsel %vm827_vm5, %v815_v58, %v9679_v36  ;;  %v832_v27 = vsel %vm827_vm5, %v814_v50, %v9681_v37  ;;  %v798_v36 = vsel %vm791_vm3, %v780_v5, %v9594_v9 }
 0x12f   :  { %v9706_v42 = vpop.permute.xlu1 %596 }
 0x130   :  { %v9708_v43 = vpop.permute.xlu0 %594 }
 0x131   :  { %684 = vrot.lane.b32.xlu1 %v277_v34, %s9209_s29  ;;  %v851_v34 = vsel %vm845_vm6, %v833_v51, %v9706_v42  ;;  %v850_v28 = vsel %vm845_vm6, %v832_v27, %v9708_v43  ;;  %v816_v42 = vsel %vm809_vm4, %v798_v36, %v9622_v53  ;;  %v1252_v27 = vld [vmem:[#allocation3 + $0x6] sm:$0x3]  ;;  %v163_v36 = vld [vmem:[#allocation2 + $0x10] sm:$0x3] }
 0x132   :  { %682 = vrot.lane.b32.xlu0 %v276_v62, %s9209_s29  ;;  %v834_v9 = vsel %vm827_vm5, %v816_v42, %v9687_v48  ;;  %v782_v42 = vsel %vm773_vm2, %v163_v36, %v9696_v19 }
 0x133   :  { %v9712_v6 = vpop.permute.xlu1 %600 }
 0x134   :  { %v9714_v7 = vpop.permute.xlu0 %598 }
 0x135   :  { %748 = vrot.lane.b32.xlu1 %v293_v2, %s9212_s19 }
 0x136   :  { %746 = vrot.lane.b32.xlu0 %v292_v3, %s9212_s19 }
 0x137   :  { %v9718_v26 = vpop.permute.xlu1 %400 }
 0x138   :  { %v9720_v59 = vpop.permute.xlu0 %398 }
 0x139   :  { %752 = vrot.lane.b32.xlu1 %v295_v18, %s9212_s19  ;;  %v853_v18 = vsel %vm845_vm6, %v835_v8, %v9712_v6  ;;  %v801_v8 = vsel %vm791_vm3, %v783_v55, %v9718_v26  ;;  %v167_v55 = vld [vmem:[#allocation2 + $0x18] sm:$0x3] }
 0x13a   :  { %750 = vrot.lane.b32.xlu0 %v294_v10, %s9212_s19  ;;  %v852_v10 = vsel %vm845_vm6, %v834_v9, %v9714_v7  ;;  %v800_v9 = vsel %vm791_vm3, %v782_v42, %v9720_v59 }
 0x13b   :  { %v9724_v14 = vpop.permute.xlu1 %404 }
 0x13c   :  { %v9726_v30 = vpop.permute.xlu0 %402 }
 0x13d   :  { %414 = vrot.lane.b32.xlu1 %v207_v11, %s9206_s9  ;;  %s9216_s9 = smov 96  }
 0x13e   :  { %346 = vrot.lane.b32.xlu0 %v189_v60, %s9205_s22  ;;  %s9214_s22 = smov 32  }
 0x13f   :  { %v665_v39 = vpop.permute.xlu1 %664 }
 0x140   :  { %v663_v12 = vpop.permute.xlu0 %662  ;;  %v869_v37 = vsel %vm863_vm7, %v851_v34, %v665_v39  ;;  %v1269_v34 = vld [vmem:[#allocation3 + $0x4] sm:$0x3] }
 0x141   :  { %550 = vrot.lane.b32.xlu1 %v242_v38, %s9201_s25  ;;  %v868_v62 = vsel %vm863_vm7, %v850_v28, %v663_v12  ;;  %v1251_v28 = vld [vmem:[#allocation3 + $0x4] sm:$0x3]  ;;  %s9215_s25 = smov 64  }
 0x142   :  { %482 = vrot.lane.b32.xlu0 %v225_v35, %s9207_s20 }
 0x143   :  { %v669_v46 = vpop.permute.xlu1 %668 }
 0x144   :  { %v667_v20 = vpop.permute.xlu0 %666  ;;  %v871_v52 = vsel %vm863_vm7, %v853_v18, %v669_v46 }
 0x145   :  { %686 = vrot.lane.b32.xlu1 %v278_v15, %s9209_s29  ;;  %v870_v53 = vsel %vm863_vm7, %v852_v10, %v667_v20 }
 0x146   :  { %618 = vrot.lane.b32.xlu0 %v260_v13, %s9208_s10 }
 0x147   :  { %v9750_v63 = vpop.permute.xlu1 %468 }
 0x148   :  { %v9752_v32 = vpop.permute.xlu0 %466 }
 0x149   :  { %1399 = vrot.lane.b32.xlu1 %v1250_v1, %s9214_s22  ;;  %v818_v57 = vsel %vm809_vm4, %v800_v9, %v9752_v32  ;;  %v170_v9 = vld [vmem:[#allocation2 + $0x1e] sm:$0x3] }
 0x14a   :  { %754 = vrot.lane.b32.xlu0 %v296_v21, %s9212_s19 }
 0x14b   :  { %v9764_v23 = vpop.permute.xlu1 %472 }
 0x14c   :  { %v9766_v49 = vpop.permute.xlu0 %470 }
 0x14d   :  { %1403 = vrot.lane.b32.xlu1 %v1252_v27, %s9214_s22 }
 0x14e   :  { %1401 = vrot.lane.b32.xlu0 %v1251_v28, %s9214_s22 }
 0x14f   :  { %v733_v54 = vpop.permute.xlu1 %732 }
 0x150   :  { %v731_v2 = vpop.permute.xlu0 %730  ;;  %v887_v43 = vsel %vm881_vm8, %v869_v37, %v733_v54  ;;  %v1288_v54 = vld [vmem:[#allocation3 + $0x6] sm:$0x3] }
 0x151   :  { %v886_v3 = vsel %vm881_vm8, %v868_v62, %v731_v2  ;;  %1471 = vrot.lane.b32.xlu1 %v1269_v34, %s9215_s25  ;;  %v1270_v2 = vld [vmem:[#allocation3 + $0x6] sm:$0x3] }
 0x152   :  { %v942_v60 = vcombine.low %v886_v3, %v887_v43  ;;  %1473 = vrot.lane.b32.xlu0 %v1270_v2, %s9215_s25  ;;  %v166_v43 = vld [vmem:[#allocation2 + $0x16] sm:$0x3]  ;;  %v165_v3 = vld [vmem:[#allocation2 + $0x14] sm:$0x3]  ;;  %v168_v2 = vld [vmem:[#allocation2 + $0x1a] sm:$0x3] }
 0x153   :  { %v737_v11 = vpop.permute.xlu1 %736  ;;  %v785_v26 = vsel %vm773_vm2, %v166_v43, %v9700_v22  ;;  %v784_v59 = vsel %vm773_vm2, %v165_v3, %v9702_v31 }
 0x154   :  { %v735_v35 = vpop.permute.xlu0 %734  ;;  %v889_v38 = vsel %vm881_vm8, %v871_v52, %v737_v11  ;;  %v950_v48 = vrot.slane %v942_v60, %v9671_v47  ;;  %v819_v52 = vsel %vm809_vm4, %v801_v8, %v9750_v63  ;;  %v803_v63 = vsel %vm791_vm3, %v785_v26, %v9724_v14 }
 0x155   :  { %v888_v45 = vsel %vm881_vm8, %v870_v53, %v735_v35  ;;  %1543 = vrot.lane.b32.xlu1 %v1288_v54, %s9216_s9  ;;  %v802_v32 = vsel %vm791_vm3, %v784_v59, %v9726_v30  ;;  %v821_v22 = vsel %vm809_vm4, %v803_v63, %v9764_v23 }
 0x156   :  { %v943_v39 = vcombine.low %v888_v45, %v889_v38  ;;  %v820_v31 = vsel %vm809_vm4, %v802_v32, %v9766_v49 }
 0x157   :  { %v537_v6 = vpop.permute.xlu1 %536 }
 0x158   :  { %v957_v12 = vrot.slane %v943_v39, %v9671_v47  ;;  %v535_v13 = vpop.permute.xlu0 %534  ;;  %v837_v19 = vsel %vm827_vm5, %v819_v52, %v537_v6  ;;  %v169_v52 = vld [vmem:[#allocation2 + $0x1c] sm:$0x3] }
 0x159   :  { %v836_v53 = vsel %vm827_vm5, %v818_v57, %v535_v13 }
 0x15a   :  { %v958_v15 = vcombine.low %v950_v48, %v957_v12 }
 0x15b   :  { %v9810_v7 = vpop.permute.xlu1 %540 }
 0x15c   :  { %v9812_v46 = vpop.permute.xlu0 %538  ;;  %8136 = vmatmul.mubr.msk.f32.gmra.mrb[2].mxu0 %vm1000_vm9, %v958_v15  ;;  %v839_v14 = vsel %vm827_vm5, %v821_v22, %v9810_v7 }
 0x15d   :  { %8138 = vmatprep.mubr.msk.f32.mxu0 %vm9211_vm1, %v9204_v0  ;;  %v838_v30 = vsel %vm827_vm5, %v820_v31, %v9812_v46 }
 0x15f   :  { %v9817_v20 = vpop.permute.xlu1 %340 }
 0x160   :  { %v9819_v21 = vpop.permute.xlu0 %338  ;;  %v787_v3 = vsel %vm773_vm2, %v168_v2, %v9817_v20 }
 0x161   :  { %v786_v8 = vsel %vm773_vm2, %v167_v55, %v9819_v21  ;;  %v9951_v55 = vld [vmem:[%s11465_s2] ss:$0 sm:$0xff] }
 0x163   :  { %v9821_v24 = vpop.permute.xlu1 %344 }
 0x164   :  { %v9823_v25 = vpop.permute.xlu0 %342 }
 0x167   :  { %v605_v1 = vpop.permute.xlu1 %604 }
 0x168   :  { %v603_v16 = vpop.permute.xlu0 %602  ;;  %v855_v60 = vsel %vm845_vm6, %v837_v19, %v605_v1 }
 0x169   :  { %v854_v11 = vsel %vm845_vm6, %v836_v53, %v603_v16 }
 0x16b   :  { %v609_v33 = vpop.permute.xlu1 %608 }
 0x16c   :  { %v607_v17 = vpop.permute.xlu0 %606  ;;  %v857_v6 = vsel %vm845_vm6, %v839_v14, %v609_v33 }
 0x16d   :  { %v856_v13 = vsel %vm845_vm6, %v838_v30, %v607_v17 }
 0x16f   :  { %v9825_v40 = vpop.permute.xlu1 %408 }
 0x170   :  { %v9827_v41 = vpop.permute.xlu0 %406  ;;  %v805_v57 = vsel %vm791_vm3, %v787_v3, %v9825_v40  ;;  %v788_v40 = vsel %vm773_vm2, %v169_v52, %v9823_v25 }
 0x171   :  { %v804_v19 = vsel %vm791_vm3, %v786_v8, %v9827_v41 }
 0x173   :  { %v9829_v44 = vpop.permute.xlu1 %412 }
 0x174   :  { %v9831_v58 = vpop.permute.xlu0 %410 }
 0x177   :  { %v673_v50 = vpop.permute.xlu1 %672 }
 0x178   :  { %v671_v51 = vpop.permute.xlu0 %670  ;;  %v873_v35 = vsel %vm863_vm7, %v855_v60, %v673_v50 }
 0x179   :  { %v872_v38 = vsel %vm863_vm7, %v854_v11, %v671_v51  ;;  %v789_v11 = vsel %vm773_vm2, %v170_v9, %v9821_v24 }
 0x17b   :  { %v677_v4 = vpop.permute.xlu1 %676 }
 0x17c   :  { %v675_v5 = vpop.permute.xlu0 %674  ;;  %v875_v15 = vsel %vm863_vm7, %v857_v6, %v677_v4 }
 0x17d   :  { %v874_v23 = vsel %vm863_vm7, %v856_v13, %v675_v5 }
 0x17f   :  { %v9836_v37 = vpop.permute.xlu1 %476 }
 0x180   :  { %v9838_v62 = vpop.permute.xlu0 %474  ;;  %v823_v59 = vsel %vm809_vm4, %v805_v57, %v9836_v37  ;;  %v807_v37 = vsel %vm791_vm3, %v789_v11, %v9829_v44 }
 0x181   :  { %v822_v60 = vsel %vm809_vm4, %v804_v19, %v9838_v62  ;;  %v806_v62 = vsel %vm791_vm3, %v788_v40, %v9831_v58 }
 0x183   :  { %v9850_v18 = vpop.permute.xlu1 %480 }
 0x184   :  { %v9852_v10 = vpop.permute.xlu0 %478  ;;  %v825_v24 = vsel %vm809_vm4, %v807_v37, %v9850_v18 }
 0x185   :  { %v824_v25 = vsel %vm809_vm4, %v806_v62, %v9852_v10 }
 0x187   :  { %v741_v45 = vpop.permute.xlu1 %740 }
 0x188   :  { %v739_v39 = vpop.permute.xlu0 %738  ;;  %v891_v48 = vsel %vm881_vm8, %v873_v35, %v741_v45 }
 0x189   :  { %v890_v12 = vsel %vm881_vm8, %v872_v38, %v739_v39 }
 0x18a   :  { %v959_v1 = vcombine.low %v890_v12, %v891_v48 }
 0x18b   :  { %v745_v49 = vpop.permute.xlu1 %744 }
 0x18c   :  { %v743_v16 = vpop.permute.xlu0 %742  ;;  %v893_v50 = vsel %vm881_vm8, %v875_v15, %v745_v49  ;;  %v967_v7 = vrot.slane %v959_v1, %v9671_v47 }
 0x18d   :  { %v892_v51 = vsel %vm881_vm8, %v874_v23, %v743_v16  ;;  %v171_v23 = vld [vmem:[#allocation2 + $0x20] sm:$0x3] }
 0x18e   :  { %v960_v27 = vcombine.low %v892_v51, %v893_v50 }
 0x18f   :  { %v545_v34 = vpop.permute.xlu1 %544 }
 0x190   :  { %v974_v46 = vrot.slane %v960_v27, %v9671_v47  ;;  %v543_v33 = vpop.permute.xlu0 %542  ;;  %v841_v20 = vsel %vm827_vm5, %v823_v59, %v545_v34 }
 0x191   :  { %v840_v21 = vsel %vm827_vm5, %v822_v60, %v543_v33 }
 0x192   :  { %v975_v28 = vcombine.low %v967_v7, %v974_v46 }
 0x193   :  { %v549_v17 = vpop.permute.xlu1 %548 }
 0x194   :  { %v547_v29 = vpop.permute.xlu0 %546  ;;  %8139 = vmatmul.mubr.msk.f32.gmra.mrb[4].mxu0 %vm1000_vm9, %v975_v28  ;;  %v843_v44 = vsel %vm827_vm5, %v825_v24, %v549_v17 }
 0x195   :  { %8141 = vmatprep.mubr.msk.f32.mxu0 %vm9211_vm1, %v9204_v0  ;;  %v842_v58 = vsel %vm827_vm5, %v824_v25, %v547_v29 }
 0x197   :  { %v613_v4 = vpop.permute.xlu1 %612 }
 0x198   :  { %v611_v5 = vpop.permute.xlu0 %610  ;;  %v859_v41 = vsel %vm845_vm6, %v841_v20, %v613_v4 }
 0x199   :  { %v858_v63 = vsel %vm845_vm6, %v840_v21, %v611_v5 }
 0x19b   :  { %v617_v36 = vpop.permute.xlu1 %616 }
 0x19c   :  { %v615_v54 = vpop.permute.xlu0 %614  ;;  %v861_v31 = vsel %vm845_vm6, %v843_v44, %v617_v36 }
 0x19d   :  { %v860_v48 = vsel %vm845_vm6, %v842_v58, %v615_v54 }
 0x19f   :  { %v681_v42 = vpop.permute.xlu1 %680 }
 0x1a0   :  { %v679_v43 = vpop.permute.xlu0 %678  ;;  %v877_v32 = vsel %vm863_vm7, %v859_v41, %v681_v42 }
 0x1a1   :  { %v876_v35 = vsel %vm863_vm7, %v858_v63, %v679_v43 }
 0x1a3   :  { %v685_v53 = vpop.permute.xlu1 %684 }
 0x1a4   :  { %v683_v26 = vpop.permute.xlu0 %682  ;;  %v879_v12 = vsel %vm863_vm7, %v861_v31, %v685_v53 }
 0x1a5   :  { %v878_v14 = vsel %vm863_vm7, %v860_v48, %v683_v26  ;;  %v2120_v48 = vld [vmem:[%s11466_s3 + $0x80] sm:$0xff] }
 0x1a7   :  { %v749_v38 = vpop.permute.xlu1 %748 }
 0x1a8   :  { %v747_v45 = vpop.permute.xlu0 %746  ;;  %v895_v39 = vsel %vm881_vm8, %v877_v32, %v749_v38 }
 0x1a9   :  { %v894_v22 = vsel %vm881_vm8, %v876_v35, %v747_v45 }
 0x1aa   :  { %v976_v18 = vcombine.low %v894_v22, %v895_v39 }
 0x1ab   :  { %v753_v30 = vpop.permute.xlu1 %752 }
 0x1ac   :  { %v751_v6 = vpop.permute.xlu0 %750  ;;  %v897_v10 = vsel %vm881_vm8, %v879_v12, %v753_v30  ;;  %v984_v1 = vrot.slane %v976_v18, %v9671_v47  ;;  %v2121_v12 = vld [vmem:[%s11466_s3 + $0x88] sm:$0xff] }
 0x1ad   :  { %v896_v13 = vsel %vm881_vm8, %v878_v14, %v751_v6  ;;  %v8204_v30 = vpack.c.bf16 %v2121_v12, %v2120_v48 }
 0x1ae   :  { %v977_v15 = vcombine.low %v896_v13, %v897_v10  ;;  %v2104_v13 = vld [vmem:[%s11466_s3] sm:$0xff] }
 0x1af   :  { %v415_v50 = vpop.permute.xlu1 %414  ;;  %8205 = vmatprep.subr.bf16.mxu1 %v8204_v30  ;;  %v2118_v30 = vld [vmem:[%s11466_s3 + $0x70] sm:$0xff] }
 0x1b0   :  { %v991_v49 = vrot.slane %v977_v15, %v9671_v47  ;;  %v347_v16 = vpop.permute.xlu0 %346 }
 0x1b1   :  { %v790_v51 = vsel %vm773_vm2, %v171_v23, %v347_v16  ;;  %v2123_v16 = vld [vmem:[%s11466_s3 + $0x98] sm:$0xff] }
 0x1b2   :  { %v992_v27 = vcombine.low %v984_v1, %v991_v49  ;;  %v808_v7 = vsel %vm791_vm3, %v790_v51, %v415_v50  ;;  %v2105_v1 = vld [vmem:[%s11466_s3 + $0x8] sm:$0xff]  ;;  %v2122_v49 = vld [vmem:[%s11466_s3 + $0x90] sm:$0xff] }
 0x1b3   :  { %v551_v34 = vpop.permute.xlu1 %550  ;;  %v8206_v50 = vpack.c.bf16 %v2105_v1, %v2104_v13  ;;  %v8208_v51 = vpack.c.bf16 %v2123_v16, %v2122_v49 }
 0x1b4   :  { %8142 = vmatmul.mubr.msk.f32.gmra.mrb[6].mxu0 %vm1000_vm9, %v992_v27  ;;  %v483_v46 = vpop.permute.xlu0 %482  ;;  %v2106_v27 = vld [vmem:[%s11466_s3 + $0x10] sm:$0xff] }
 0x1b5   :  { %v826_v33 = vsel %vm809_vm4, %v808_v7, %v483_v46  ;;  %8144 = vmatprep.mubr.msk.f32.mxu0 %vm9211_vm1, %v9204_v0  ;;  %v2107_v7 = vld [vmem:[%s11466_s3 + $0x18] sm:$0xff]  ;;  %v2124_v46 = vld [vmem:[%s11466_s3 + $0xa0] sm:$0xff]  ;;  %8207 = vmatpush3.bf16.msra.mxu1 %v8206_v50 }
 0x1b6   :  { %v844_v28 = vsel %vm827_vm5, %v826_v33, %v551_v34  ;;  %v2125_v34 = vld [vmem:[%s11466_s3 + $0xa8] sm:$0xff]  ;;  %8209 = vmatprep.subr.bf16.mxu1 %v8208_v51 }
 0x1b7   :  { %v687_v29 = vpop.permute.xlu1 %686 }
 0x1b8   :  { %v619_v17 = vpop.permute.xlu0 %618 }
 0x1b9   :  { %v862_v4 = vsel %vm845_vm6, %v844_v28, %v619_v17  ;;  %v8210_v28 = vpack.c.bf16 %v2107_v7, %v2106_v27 }
 0x1ba   :  { %v880_v5 = vsel %vm863_vm7, %v862_v4, %v687_v29  ;;  %v8212_v29 = vpack.c.bf16 %v2125_v34, %v2124_v46  ;;  %v2108_v4 = vld [vmem:[%s11466_s3 + $0x20] sm:$0xff] }
 0x1bb   :  { %8211 = vmatpush3.bf16.msra.mxu1 %v8210_v28 }
 0x1bc   :  { %v755_v36 = vpop.permute.xlu0 %754  ;;  %8213 = vmatprep.subr.bf16.mxu1 %v8212_v29  ;;  %v10106_v29 = vpop.permute.xlu1 %1399 }
 0x1bd   :  { %v898_v54 = vsel %vm881_vm8, %v880_v5, %v755_v36  ;;  %v2109_v5 = vld [vmem:[%s11466_s3 + $0x28] sm:$0xff]  ;;  %v2126_v36 = vld [vmem:[%s11466_s3 + $0xb0] sm:$0xff] }
 0x1be   :  { %v999_v2 = vrot.slane %v898_v54, %v9671_v47  ;;  %v2127_v54 = vld [vmem:[%s11466_s3 + $0xb8] sm:$0xff] }
 0x1c0   :  { %8145 = vmatmul.mubr.msk.f32.gmra.mrb[8].mxu0 %vm1000_vm9, %v999_v2 }
 0x1c1   :  { %2424 = vmatprep.mubr.f32.mxu0 %v9204_v0 }
 0x1f7   :  { %v1077_v42 = vpop.f32.mrb[0].mxu0 }
 0x1f8   :  { %v1078_v43 = vadd.f32 %v9951_v55, %v1077_v42  ;;  %v8134_v3 = vpop.f32.mrb[1].mxu0  ;;  %v8214_v42 = vpack.c.bf16 %v2109_v5, %v2108_v4 }
 0x1f9   :  { %v8216_v3 = vpack.c.bf16 %v2127_v54, %v2126_v36  ;;  %v10109_v36 = vpop.permute.xlu1 %1403 }
 0x1fa   :  { %v1101_v8 = vmax.f32 %v1078_v43, 0.0  ;;  %8215 = vmatpush3.bf16.msra.mxu1 %v8214_v42 }
 0x1fb   :  { %8217 = vmatprep.subr.bf16.mxu1 %v8216_v3 }
 0x1fc   :  { %v1121_v9 = vcombine.high %v1101_v8, %v1101_v8  ;;  %v1128_v52 = vrot.slane %v1101_v8, %v9671_v47  ;;  %v2110_v8 = vld [vmem:[%s11466_s3 + $0x30] sm:$0xff] }
 0x1fd   :  { %v10115_v42 = vpop.permute.xlu1 %1471 }
 0x1fe   :  { %v1135_v57 = vrot.slane %v1121_v9, %v9671_v47  ;;  %v1136_v19 = vcombine.high %v1128_v52, %v1128_v52  ;;  %1214 = vst.msk [vmem:[#allocation3 + $0x8] sm:$0x3] %vm1106_vm10, %v1128_v52  ;;  %v2111_v9 = vld [vmem:[%s11466_s3 + $0x38] sm:$0xff]  ;;  %v2128_v52 = vld [vmem:[%s11466_s3 + $0xc0] sm:$0xff] }
 0x200   :  { %v1137_v53 = vcombine.high %v1135_v57, %v1135_v57  ;;  %1215 = vst.msk [vmem:[#allocation3 + $0xa] sm:$0x3] %vm1106_vm10, %v1136_v19  ;;  %1216 = vst.msk [vmem:[#allocation3 + $0xc] sm:$0x3] %vm1106_vm10, %v1135_v57  ;;  %v2129_v57 = vld [vmem:[%s11466_s3 + $0xc8] sm:$0xff] }
 0x202   :  { %1217 = vst.msk [vmem:[#allocation3 + $0xe] sm:$0x3] %vm1106_vm10, %v1137_v53  ;;  %v8218_v53 = vpack.c.bf16 %v2111_v9, %v2110_v8  ;;  %v10119_v8 = vpop.permute.xlu0 %1401 }
 0x204   :  { %8219 = vmatpush3.bf16.msra.mxu1 %v8218_v53 }
 0x205   :  { %v1271_v26 = vld [vmem:[#allocation3 + $0x8] sm:$0x3] }
 0x206   :  { %v1253_v59 = vld [vmem:[#allocation3 + $0x8] sm:$0x3]  ;;  %1475 = vrot.lane.b32.xlu1 %v1271_v26, %s9215_s25 }
 0x207   :  { %1405 = vrot.lane.b32.xlu0 %v1253_v59, %s9214_s22  ;;  %v1289_v60 = vld [vmem:[#allocation3 + $0x8] sm:$0x3]  ;;  %v1325_v20 = vld [vmem:[#allocation3 + $0xa] sm:$0x3]  ;;  %v1344_v21 = vld [vmem:[#allocation3 + $0xc] sm:$0x3]  ;;  %v8220_v59 = vpack.c.bf16 %v2129_v57, %v2128_v52  ;;  %v10121_v57 = vpop.permute.xlu1 %1543 }
 0x208   :  { %v1326_v11 = vld [vmem:[#allocation3 + $0xc] sm:$0x3]  ;;  %v1290_v40 = vld [vmem:[#allocation3 + $0xa] sm:$0x3] }
 0x209   :  { %v1272_v41 = vld [vmem:[#allocation3 + $0xa] sm:$0x3]  ;;  %v1291_v37 = vld [vmem:[#allocation3 + $0xc] sm:$0x3]  ;;  %v1327_v35 = vld [vmem:[#allocation3 + $0xe] sm:$0x3]  ;;  %8221 = vmatprep.subr.bf16.mxu1 %v8220_v59 }
 0x20a   :  { %1615 = vrot.lane.b32.xlu1 %v1325_v20, %s9214_s22  ;;  %v1254_v63 = vld [vmem:[#allocation3 + $0xa] sm:$0x3]  ;;  %v1273_v62 = vld [vmem:[#allocation3 + $0xc] sm:$0x3]  ;;  %v1363_v6 = vld [vmem:[#allocation3 + $0xe] sm:$0x3] }
 0x20b   :  { %1545 = vrot.lane.b32.xlu0 %v1289_v60, %s9216_s9  ;;  %v1255_v32 = vld [vmem:[#allocation3 + $0xc] sm:$0x3]  ;;  %v1345_v10 = vld [vmem:[#allocation3 + $0xe] sm:$0x3]  ;;  %v2112_v60 = vld [vmem:[%s11466_s3 + $0x40] sm:$0xff] }
 0x20c   :  { %v1256_v15 = vld [vmem:[#allocation3 + $0xe] sm:$0x3]  ;;  %v2113_v20 = vld [vmem:[%s11466_s3 + $0x48] sm:$0xff] }
 0x20d   :  { %v1292_v2 = vld [vmem:[#allocation3 + $0xe] sm:$0x3] }
 0x20e   :  { %1687 = vrot.lane.b32.xlu1 %v1344_v21, %s9215_s25  ;;  %v1274_v43 = vld [vmem:[#allocation3 + $0xe] sm:$0x3]  ;;  %v2130_v21 = vld [vmem:[%s11466_s3 + $0xd0] sm:$0xff] }
 0x20f   :  { %1617 = vrot.lane.b32.xlu0 %v1326_v11, %s9214_s22  ;;  %v2131_v11 = vld [vmem:[%s11466_s3 + $0xd8] sm:$0xff] }
 0x212   :  { %1547 = vrot.lane.b32.xlu1 %v1290_v40, %s9216_s9 }
 0x213   :  { %1477 = vrot.lane.b32.xlu0 %v1272_v41, %s9215_s25  ;;  %v8222_v41 = vpack.c.bf16 %v2113_v20, %v2112_v60 }
 0x215   :  { %8223 = vmatpush3.bf16.msra.mxu1 %v8222_v41 }
 0x216   :  { %1407 = vrot.lane.b32.xlu1 %v1254_v63, %s9214_s22 }
 0x217   :  { %1549 = vrot.lane.b32.xlu0 %v1291_v37, %s9216_s9  ;;  %v8224_v37 = vpack.c.bf16 %v2131_v11, %v2130_v21 }
 0x219   :  { %8225 = vmatprep.subr.bf16.mxu1 %v8224_v37 }
 0x21a   :  { %1479 = vrot.lane.b32.xlu1 %v1273_v62, %s9215_s25  ;;  %v2114_v62 = vld [vmem:[%s11466_s3 + $0x50] sm:$0xff] }
 0x21b   :  { %1409 = vrot.lane.b32.xlu0 %v1255_v32, %s9214_s22  ;;  %v2115_v32 = vld [vmem:[%s11466_s3 + $0x58] sm:$0xff] }
 0x21e   :  { %1619 = vrot.lane.b32.xlu1 %v1327_v35, %s9214_s22  ;;  %v2132_v35 = vld [vmem:[%s11466_s3 + $0xe0] sm:$0xff] }
 0x22f   :  { %v1082_v38 = vpop.f32.mrb[2].mxu0 }
 0x230   :  { %v1083_v45 = vadd.f32 %v9951_v55, %v1082_v38  ;;  %v8137_v24 = vpop.f32.mrb[3].mxu0  ;;  %v2133_v38 = vld [vmem:[%s11466_s3 + $0xe8] sm:$0xff] }
 0x231   :  { %v8226_v24 = vpack.c.bf16 %v2115_v32, %v2114_v62 }
 0x232   :  { %v1102_v25 = vmax.f32 %v1083_v45, 0.0 }
 0x233   :  { %8227 = vmatpush3.bf16.msra.mxu1 %v8226_v24 }
 0x234   :  { %v1138_v39 = vcombine.high %v1102_v25, %v1102_v25  ;;  %v1145_v22 = vrot.slane %v1102_v25, %v9671_v47 }
 0x236   :  { %v1152_v44 = vrot.slane %v1138_v39, %v9671_v47  ;;  %v1153_v58 = vcombine.high %v1145_v22, %v1145_v22  ;;  %1218 = vst.msk [vmem:[#allocation3 + $0x10] sm:$0x3] %vm1106_vm10, %v1145_v22  ;;  %v8228_v39 = vpack.c.bf16 %v2133_v38, %v2132_v35  ;;  %v2116_v22 = vld [vmem:[%s11466_s3 + $0x60] sm:$0xff] }
 0x238   :  { %v1154_v31 = vcombine.high %v1152_v44, %v1152_v44  ;;  %1219 = vst.msk [vmem:[#allocation3 + $0x12] sm:$0x3] %vm1106_vm10, %v1153_v58  ;;  %1220 = vst.msk [vmem:[#allocation3 + $0x14] sm:$0x3] %vm1106_vm10, %v1152_v44  ;;  %v2117_v44 = vld [vmem:[%s11466_s3 + $0x68] sm:$0xff]  ;;  %v2134_v58 = vld [vmem:[%s11466_s3 + $0xf0] sm:$0xff]  ;;  %8229 = vmatprep.subr.bf16.mxu1 %v8228_v39 }
 0x239   :  { %v8230_v12 = vpack.c.bf16 %v2117_v44, %v2116_v22 }
 0x23a   :  { %1221 = vst.msk [vmem:[#allocation3 + $0x16] sm:$0x3] %vm1106_vm10, %v1154_v31  ;;  %v2135_v31 = vld [vmem:[%s11466_s3 + $0xf8] sm:$0xff] }
 0x23b   :  { %8231 = vmatpush3.bf16.msra.mxu1 %v8230_v12 }
 0x23d   :  { %v1346_v14 = vld [vmem:[#allocation3 + $0x10] sm:$0x3] }
 0x23e   :  { %v1328_v18 = vld [vmem:[#allocation3 + $0x10] sm:$0x3]  ;;  %1691 = vrot.lane.b32.xlu1 %v1346_v14, %s9215_s25 }
 0x23f   :  { %1621 = vrot.lane.b32.xlu0 %v1328_v18, %s9214_s22  ;;  %v1364_v23 = vld [vmem:[#allocation3 + $0x10] sm:$0x3]  ;;  %v1365_v26 = vld [vmem:[#allocation3 + $0x12] sm:$0x3]  ;;  %v1366_v45 = vld [vmem:[#allocation3 + $0x14] sm:$0x3]  ;;  %v8232_v18 = vpack.c.bf16 %v2135_v31, %v2134_v58 }
 0x240   :  { %v1275_v33 = vld [vmem:[#allocation3 + $0x10] sm:$0x3]  ;;  %v1347_v40 = vld [vmem:[#allocation3 + $0x12] sm:$0x3]  ;;  %v1348_v25 = vld [vmem:[#allocation3 + $0x14] sm:$0x3] }
 0x241   :  { %v1257_v17 = vld [vmem:[#allocation3 + $0x10] sm:$0x3]  ;;  %v1329_v63 = vld [vmem:[#allocation3 + $0x12] sm:$0x3]  ;;  %v1330_v14 = vld [vmem:[#allocation3 + $0x14] sm:$0x3]  ;;  %8233 = vmatprep.subr.bf16.mxu1 %v8232_v18 }
 0x242   :  { %1759 = vrot.lane.b32.xlu1 %v1363_v6, %s9216_s9  ;;  %v1293_v19 = vld [vmem:[#allocation3 + $0x10] sm:$0x3]  ;;  %v1294_v48 = vld [vmem:[#allocation3 + $0x12] sm:$0x3]  ;;  %v2119_v6 = vld [vmem:[%s11466_s3 + $0x78] sm:$0xff] }
 0x243   :  { %1689 = vrot.lane.b32.xlu0 %v1345_v10, %s9215_s25  ;;  %v8234_v10 = vpack.c.bf16 %v2119_v6, %v2118_v30  ;;  %v1258_v13 = vld [vmem:[#allocation3 + $0x12] sm:$0x3]  ;;  %v1277_v1 = vld [vmem:[#allocation3 + $0x14] sm:$0x3]  ;;  %v1331_v27 = vld [vmem:[#allocation3 + $0x16] sm:$0x3] }
 0x244   :  { %v1259_v51 = vld [vmem:[#allocation3 + $0x14] sm:$0x3]  ;;  %v1367_v54 = vld [vmem:[#allocation3 + $0x16] sm:$0x3] }
 0x245   :  { %8235 = vmatpush3.bf16.msra.mxu1 %v8234_v10  ;;  %v1278_v53 = vld [vmem:[#allocation3 + $0x16] sm:$0x3] }
 0x246   :  { %1411 = vrot.lane.b32.xlu1 %v1256_v15, %s9214_s22  ;;  %v1276_v15 = vld [vmem:[#allocation3 + $0x12] sm:$0x3] }
 0x247   :  { %1761 = vrot.lane.b32.xlu0 %v1364_v23, %s9216_s9  ;;  %v1295_v23 = vld [vmem:[#allocation3 + $0x14] sm:$0x3] }
 0x24a   :  { %1483 = vrot.lane.b32.xlu1 %v1275_v33, %s9215_s25 }
 0x24b   :  { %1413 = vrot.lane.b32.xlu0 %v1257_v17, %s9214_s22 }
 0x24e   :  { %1551 = vrot.lane.b32.xlu1 %v1292_v2, %s9216_s9  ;;  %v1349_v2 = vld [vmem:[#allocation3 + $0x16] sm:$0x3] }
 0x24f   :  { %1481 = vrot.lane.b32.xlu0 %v1274_v43, %s9215_s25  ;;  %v1260_v43 = vld [vmem:[#allocation3 + $0x16] sm:$0x3] }
 0x252   :  { %1763 = vrot.lane.b32.xlu1 %v1365_v26, %s9216_s9  ;;  %v10127_v26 = vpop.permute.xlu0 %1473 }
 0x253   :  { %1553 = vrot.lane.b32.xlu0 %v1293_v19, %s9216_s9  ;;  %v1296_v19 = vld [vmem:[#allocation3 + $0x16] sm:$0x3] }
 0x256   :  { %1623 = vrot.lane.b32.xlu1 %v1329_v63, %s9214_s22 }
 0x257   :  { %1693 = vrot.lane.b32.xlu0 %v1347_v40, %s9215_s25 }
 0x25a   :  { %1695 = vrot.lane.b32.xlu1 %v1348_v25, %s9215_s25 }
 0x25b   :  { %1765 = vrot.lane.b32.xlu0 %v1366_v45, %s9216_s9 }
 0x25e   :  { %1555 = vrot.lane.b32.xlu1 %v1294_v48, %s9216_s9 }
 0x25f   :  { %1625 = vrot.lane.b32.xlu0 %v1330_v14, %s9214_s22 }
 0x262   :  { %1415 = vrot.lane.b32.xlu1 %v1258_v13, %s9214_s22 }
 0x263   :  { %1485 = vrot.lane.b32.xlu0 %v1276_v15, %s9215_s25 }
 0x266   :  { %1487 = vrot.lane.b32.xlu1 %v1277_v1, %s9215_s25 }
 0x267   :  { %1557 = vrot.lane.b32.xlu0 %v1295_v23, %s9216_s9  ;;  %v1087_v49 = vpop.f32.mrb[4].mxu0 }
 0x268   :  { %v1088_v16 = vadd.f32 %v9951_v55, %v1087_v49  ;;  %v8140_v50 = vpop.f32.mrb[5].mxu0 }
 0x26a   :  { %v1103_v7 = vmax.f32 %v1088_v16, 0.0  ;;  %1627 = vrot.lane.b32.xlu1 %v1331_v27, %s9214_s22 }
 0x26b   :  { %1417 = vrot.lane.b32.xlu0 %v1259_v51, %s9214_s22 }
 0x26c   :  { %v1155_v46 = vcombine.high %v1103_v7, %v1103_v7  ;;  %v1162_v34 = vrot.slane %v1103_v7, %v9671_v47 }
 0x26e   :  { %v1169_v33 = vrot.slane %v1155_v46, %v9671_v47  ;;  %v1170_v28 = vcombine.high %v1162_v34, %v1162_v34  ;;  %1222 = vst.msk [vmem:[#allocation3 + $0x18] sm:$0x3] %vm1106_vm10, %v1162_v34 }
 0x270   :  { %v1171_v17 = vcombine.high %v1169_v33, %v1169_v33  ;;  %1223 = vst.msk [vmem:[#allocation3 + $0x1a] sm:$0x3] %vm1106_vm10, %v1170_v28  ;;  %1224 = vst.msk [vmem:[#allocation3 + $0x1c] sm:$0x3] %vm1106_vm10, %v1169_v33 }
 0x272   :  { %1225 = vst.msk [vmem:[#allocation3 + $0x1e] sm:$0x3] %vm1106_vm10, %v1171_v17 }
 0x275   :  { %v1350_v4 = vld [vmem:[#allocation3 + $0x18] sm:$0x3] }
 0x276   :  { %v1332_v5 = vld [vmem:[#allocation3 + $0x18] sm:$0x3]  ;;  %1699 = vrot.lane.b32.xlu1 %v1350_v4, %s9215_s25 }
 0x277   :  { %1629 = vrot.lane.b32.xlu0 %v1332_v5, %s9214_s22  ;;  %v1368_v3 = vld [vmem:[#allocation3 + $0x18] sm:$0x3]  ;;  %v1369_v40 = vld [vmem:[#allocation3 + $0x1a] sm:$0x3]  ;;  %v1370_v39 = vld [vmem:[#allocation3 + $0x1c] sm:$0x3] }
 0x278   :  { %v1279_v9 = vld [vmem:[#allocation3 + $0x18] sm:$0x3]  ;;  %v10129_v60 = vpop.permute.xlu1 %1475  ;;  %v1351_v32 = vld [vmem:[#allocation3 + $0x1a] sm:$0x3]  ;;  %v1352_v22 = vld [vmem:[#allocation3 + $0x1c] sm:$0x3] }
 0x279   :  { %v1261_v52 = vld [vmem:[#allocation3 + $0x18] sm:$0x3]  ;;  %v10135_v62 = vpop.permute.xlu0 %1405  ;;  %v1333_v35 = vld [vmem:[#allocation3 + $0x1a] sm:$0x3]  ;;  %v1334_v18 = vld [vmem:[#allocation3 + $0x1c] sm:$0x3] }
 0x27a   :  { %1767 = vrot.lane.b32.xlu1 %v1367_v54, %s9216_s9  ;;  %v1297_v11 = vld [vmem:[#allocation3 + $0x18] sm:$0x3]  ;;  %v1298_v14 = vld [vmem:[#allocation3 + $0x1a] sm:$0x3]  ;;  %v1335_v1 = vld [vmem:[#allocation3 + $0x1e] sm:$0x3] }
 0x27b   :  { %1697 = vrot.lane.b32.xlu0 %v1349_v2, %s9215_s25  ;;  %v1262_v10 = vld [vmem:[#allocation3 + $0x1a] sm:$0x3]  ;;  %v1263_v50 = vld [vmem:[#allocation3 + $0x1c] sm:$0x3]  ;;  %v1371_v27 = vld [vmem:[#allocation3 + $0x1e] sm:$0x3] }
 0x27c   :  { %v10137_v38 = vpop.permute.xlu1 %1615  ;;  %v1280_v13 = vld [vmem:[#allocation3 + $0x1a] sm:$0x3]  ;;  %v1264_v33 = vld [vmem:[#allocation3 + $0x1e] sm:$0x3] }
 0x27d   :  { %v10148_v44 = vpop.permute.xlu0 %1545  ;;  %v1353_v28 = vld [vmem:[#allocation3 + $0x1e] sm:$0x3] }
 0x27e   :  { %1419 = vrot.lane.b32.xlu1 %v1260_v43, %s9214_s22 }
 0x27f   :  { %1769 = vrot.lane.b32.xlu0 %v1368_v3, %s9216_s9 }
 0x280   :  { %v10150_v31 = vpop.permute.xlu1 %1687 }
 0x281   :  { %v10156_v15 = vpop.permute.xlu0 %1617 }
 0x282   :  { %1491 = vrot.lane.b32.xlu1 %v1279_v9, %s9215_s25 }
 0x283   :  { %1421 = vrot.lane.b32.xlu0 %v1261_v52, %s9214_s22 }
 0x284   :  { %v10158_v23 = vpop.permute.xlu1 %1547 }
 0x285   :  { %v10165_v49 = vpop.permute.xlu0 %1477 }
 0x286   :  { %1559 = vrot.lane.b32.xlu1 %v1296_v19, %s9216_s9 }
 0x287   :  { %1489 = vrot.lane.b32.xlu0 %v1278_v53, %s9215_s25  ;;  %v1092_v59 = vpop.f32.mrb[6].mxu0 }
 0x288   :  { %v1093_v20 = vadd.f32 %v9951_v55, %v1092_v59  ;;  %v8143_v21 = vpop.f32.mrb[7].mxu0  ;;  %v10167_v16 = vpop.permute.xlu1 %1407 }
 0x289   :  { %v10171_v46 = vpop.permute.xlu0 %1549 }
 0x28a   :  { %v1104_v41 = vmax.f32 %v1093_v20, 0.0  ;;  %1771 = vrot.lane.b32.xlu1 %v1369_v40, %s9216_s9  ;;  %v1281_v40 = vld [vmem:[#allocation3 + $0x1c] sm:$0x3] }
 0x28b   :  { %1561 = vrot.lane.b32.xlu0 %v1297_v11, %s9216_s9 }
 0x28c   :  { %v1172_v63 = vcombine.high %v1104_v41, %v1104_v41  ;;  %v1179_v37 = vrot.slane %v1104_v41, %v9671_v47  ;;  %v10173_v34 = vpop.permute.xlu1 %1479 }
 0x28d   :  { %v10179_v17 = vpop.permute.xlu0 %1409 }
 0x28e   :  { %v1186_v45 = vrot.slane %v1172_v63, %v9671_v47  ;;  %v1187_v24 = vcombine.high %v1179_v37, %v1179_v37  ;;  %1226 = vst.msk [vmem:[#allocation3 + $0x20] sm:$0x3] %vm1106_vm10, %v1179_v37  ;;  %1631 = vrot.lane.b32.xlu1 %v1333_v35, %s9214_s22  ;;  %v1232_v35 = vld [vmem:[#allocation3 + $0x2] sm:$0x3] }
 0x28f   :  { %1701 = vrot.lane.b32.xlu0 %v1351_v32, %s9215_s25 }
 0x290   :  { %v1188_v25 = vcombine.high %v1186_v45, %v1186_v45  ;;  %1227 = vst.msk [vmem:[#allocation3 + $0x22] sm:$0x3] %vm1106_vm10, %v1187_v24  ;;  %1228 = vst.msk [vmem:[#allocation3 + $0x24] sm:$0x3] %vm1106_vm10, %v1186_v45  ;;  %v1620_v4 = vpop.permute.xlu1 %1619  ;;  %v1231_v45 = vld [vmem:[#allocation3] sm:$0x3] }
 0x292   :  { %1229 = vst.msk [vmem:[#allocation3 + $0x26] sm:$0x3] %vm1106_vm10, %v1188_v25  ;;  %1703 = vrot.lane.b32.xlu1 %v1352_v22, %s9215_s25 }
 0x293   :  { %1773 = vrot.lane.b32.xlu0 %v1370_v39, %s9216_s9  ;;  %v1097_v58 = vpop.f32.mrb[8].mxu0  ;;  %v1815_v39 = vsel %vm1813_vm11, %v1232_v35, %v10119_v8  ;;  %v1306_v8 = vld [vmem:[#allocation3 + $0x8] sm:$0x3] }
 0x294   :  { %v1098_v48 = vadd.f32 %v9951_v55, %v1097_v58  ;;  %v8146_v12 = vpop.f32.mrb[9].mxu0  ;;  %v1299_v55 = vld [vmem:[#allocation3 + $0x1c] sm:$0x3] }
 0x295   :  { %v1354_v51 = vld [vmem:[#allocation3 + $0x20] sm:$0x3]  ;;  %v1814_v12 = vsel %vm1813_vm11, %v1231_v45, %v10106_v29 }
 0x296   :  { %1563 = vrot.lane.b32.xlu1 %v1298_v14, %s9216_s9  ;;  %v1105_v30 = vmax.f32 %v1098_v48, 0.0  ;;  %v1336_v7 = vld [vmem:[#allocation3 + $0x20] sm:$0x3]  ;;  %v1307_v48 = vld [vmem:[#allocation3 + $0xa] sm:$0x3] }
 0x297   :  { %1633 = vrot.lane.b32.xlu0 %v1334_v18, %s9214_s22  ;;  %v1372_v5 = vld [vmem:[#allocation3 + $0x20] sm:$0x3]  ;;  %v1373_v54 = vld [vmem:[#allocation3 + $0x22] sm:$0x3]  ;;  %v1374_v53 = vld [vmem:[#allocation3 + $0x24] sm:$0x3]  ;;  %v1871_v14 = vsel %vm1813_vm11, %v1307_v48, %v10156_v15  ;;  %v1833_v15 = vsel %vm1832_vm12, %v1814_v12, %v10115_v42 }
 0x298   :  { %v1195_v6 = vrot.slane %v1105_v30, %v9671_v47  ;;  %v1355_v3 = vld [vmem:[#allocation3 + $0x22] sm:$0x3]  ;;  %v1265_v11 = vld [vmem:[#allocation3 + $0x20] sm:$0x3]  ;;  %v1338_v37 = vld [vmem:[#allocation3 + $0x24] sm:$0x3]  ;;  %v1834_v30 = vsel %vm1832_vm12, %v1815_v39, %v10127_v26 }
 0x299   :  { %v1337_v9 = vld [vmem:[#allocation3 + $0x22] sm:$0x3]  ;;  %v1339_v59 = vld [vmem:[#allocation3 + $0x26] sm:$0x3]  ;;  %v1283_v32 = vld [vmem:[#allocation3 + $0x20] sm:$0x3] }
 0x29a   :  { %1423 = vrot.lane.b32.xlu1 %v1262_v10, %s9214_s22  ;;  %1230 = vst.msk [vmem:[#allocation3 + $0x28] sm:$0x3] %vm1106_vm10, %v1195_v6  ;;  %v1356_v22 = vld [vmem:[#allocation3 + $0x24] sm:$0x3]  ;;  %v1308_v26 = vld [vmem:[#allocation3 + $0xc] sm:$0x3] }
 0x29b   :  { %1493 = vrot.lane.b32.xlu0 %v1280_v13, %s9215_s25  ;;  %v1233_v18 = vld [vmem:[#allocation3 + $0x4] sm:$0x3]  ;;  %v1357_v35 = vld [vmem:[#allocation3 + $0x26] sm:$0x3] }
 0x29c   :  { %v1375_v48 = vld [vmem:[#allocation3 + $0x26] sm:$0x3] }
 0x29e   :  { %1635 = vrot.lane.b32.xlu1 %v1335_v1, %s9214_s22 }
 0x29f   :  { %1565 = vrot.lane.b32.xlu0 %v1299_v55, %s9216_s9  ;;  %v1870_v55 = vsel %vm1813_vm11, %v1306_v8, %v10137_v38  ;;  %v1853_v38 = vsel %vm1851_vm13, %v1834_v30, %v10148_v44 }
 0x2a1   :  { %v1340_v58 = vld [vmem:[#allocation3 + $0x28] sm:$0x3] }
 0x2a2   :  { %1707 = vrot.lane.b32.xlu1 %v1354_v51, %s9215_s25  ;;  %v1358_v1 = vld [vmem:[#allocation3 + $0x28] sm:$0x3]  ;;  %v1888_v51 = vsel %vm1832_vm12, %v1870_v55, %v10150_v31 }
 0x2a3   :  { %1425 = vrot.lane.b32.xlu0 %v1263_v50, %s9214_s22  ;;  %v1282_v50 = vld [vmem:[#allocation3 + $0x1e] sm:$0x3] }
 0x2a6   :  { %1775 = vrot.lane.b32.xlu1 %v1371_v27, %s9216_s9  ;;  %v1816_v27 = vsel %vm1813_vm11, %v1233_v18, %v10109_v36  ;;  %v1300_v36 = vld [vmem:[#allocation3 + $0x1e] sm:$0x3]  ;;  %v1377_v18 = vld [vmem:[#allocation3 + $0x2a] sm:$0x3] }
 0x2a7   :  { %1637 = vrot.lane.b32.xlu0 %v1336_v7, %s9214_s22  ;;  %v1872_v7 = vsel %vm1813_vm11, %v1308_v26, %v1620_v4  ;;  %v1835_v44 = vsel %vm1832_vm12, %v1816_v27, %v10129_v60  ;;  %v1309_v4 = vld [vmem:[#allocation3 + $0xe] sm:$0x3]  ;;  %v1376_v26 = vld [vmem:[#allocation3 + $0x28] sm:$0x3] }
 0x2aa   :  { %1427 = vrot.lane.b32.xlu1 %v1264_v33, %s9214_s22 }
 0x2ab   :  { %1705 = vrot.lane.b32.xlu0 %v1353_v28, %s9215_s25  ;;  %v1234_v28 = vld [vmem:[#allocation3 + $0x6] sm:$0x3] }
 0x2ae   :  { %1779 = vrot.lane.b32.xlu1 %v1373_v54, %s9216_s9 }
 0x2af   :  { %1777 = vrot.lane.b32.xlu0 %v1372_v5, %s9216_s9 }
 0x2b0   :  { %v1692_v2 = vpop.permute.xlu1 %1691 }
 0x2b1   :  { %v10183_v43 = vpop.permute.xlu0 %1621  ;;  %v1890_v42 = vsel %vm1832_vm12, %v1872_v7, %v1692_v2  ;;  %v1817_v2 = vsel %vm1813_vm11, %v1234_v28, %v10135_v62  ;;  %v1378_v7 = vld [vmem:[#allocation3 + $0x2c] sm:$0x3] }
 0x2b2   :  { %1639 = vrot.lane.b32.xlu1 %v1337_v9, %s9214_s22  ;;  %v1360_v28 = vld [vmem:[#allocation3 + $0x2c] sm:$0x3] }
 0x2b3   :  { %1709 = vrot.lane.b32.xlu0 %v1355_v3, %s9215_s25  ;;  %v1852_v3 = vsel %vm1851_vm13, %v1833_v15, %v10121_v57  ;;  %v1873_v57 = vsel %vm1813_vm11, %v1309_v4, %v10183_v43  ;;  %v1303_v15 = vld [vmem:[#allocation3 + $0x24] sm:$0x3] }
 0x2b4   :  { %v1760_v52 = vpop.permute.xlu1 %1759 }
 0x2b5   :  { %v1690_v19 = vpop.permute.xlu0 %1689  ;;  %v1906_v33 = vsel %vm1851_vm13, %v1888_v51, %v1760_v52  ;;  %v1854_v52 = vsel %vm1851_vm13, %v1835_v44, %v10158_v23  ;;  %v1302_v23 = vld [vmem:[#allocation3 + $0x22] sm:$0x3]  ;;  %v1341_v51 = vld [vmem:[#allocation3 + $0x2a] sm:$0x3]  ;;  %v1379_v44 = vld [vmem:[#allocation3 + $0x2e] sm:$0x3] }
 0x2b6   :  { %1643 = vrot.lane.b32.xlu1 %v1339_v59, %s9214_s22  ;;  %v1889_v6 = vsel %vm1832_vm12, %v1871_v14, %v1690_v19  ;;  %v1284_v19 = vld [vmem:[#allocation3 + $0x22] sm:$0x3]  ;;  %v1836_v59 = vsel %vm1832_vm12, %v1817_v2, %v10165_v49  ;;  %v1359_v49 = vld [vmem:[#allocation3 + $0x2a] sm:$0x3]  ;;  %v1286_v2 = vld [vmem:[#allocation3 + $0x26] sm:$0x3] }
 0x2b7   :  { %1781 = vrot.lane.b32.xlu0 %v1374_v53, %s9216_s9  ;;  %v1960_v53 = vcombine.low %v1852_v3, %v1906_v33  ;;  %v1855_v62 = vsel %vm1851_vm13, %v1836_v59, %v10171_v46  ;;  %v1285_v33 = vld [vmem:[#allocation3 + $0x24] sm:$0x3]  ;;  %v1342_v3 = vld [vmem:[#allocation3 + $0x2c] sm:$0x3] }
 0x2b8   :  { %v10189_v20 = vpop.permute.xlu1 %1411 }
 0x2b9   :  { %v1762_v21 = vpop.permute.xlu0 %1761  ;;  %v1967_v43 = vrot.slane %v1960_v53, %v9671_v47 }
 0x2ba   :  { %1495 = vrot.lane.b32.xlu1 %v1281_v40, %s9215_s25  ;;  %v1907_v29 = vsel %vm1851_vm13, %v1889_v6, %v1762_v21  ;;  %v1301_v6 = vld [vmem:[#allocation3 + $0x20] sm:$0x3] }
 0x2bb   :  { %1429 = vrot.lane.b32.xlu0 %v1265_v11, %s9214_s22  ;;  %v1968_v5 = vcombine.low %v1853_v38, %v1907_v29 }
 0x2bc   :  { %v10193_v41 = vpop.permute.xlu1 %1483 }
 0x2bd   :  { %v10195_v63 = vpop.permute.xlu0 %1413  ;;  %v1975_v60 = vrot.slane %v1968_v5, %v9671_v47 }
 0x2be   :  { %1499 = vrot.lane.b32.xlu1 %v1283_v32, %s9215_s25 }
 0x2bf   :  { %1641 = vrot.lane.b32.xlu0 %v1338_v37, %s9214_s22 }
 0x2c0   :  { %v10199_v24 = vpop.permute.xlu1 %1551 }
 0x2c1   :  { %v10201_v25 = vpop.permute.xlu0 %1481 }
 0x2c2   :  { %1711 = vrot.lane.b32.xlu1 %v1356_v22, %s9215_s25 }
 0x2c3   :  { %1645 = vrot.lane.b32.xlu0 %v1340_v58, %s9214_s22  ;;  %v2143_v58 = vcombine.low %v1967_v43, %v1975_v60  ;;  %v2332_v43 = vld [vmem:[%s11468_s5 + $0x18] sm:$0xff] }
 0x2c4   :  { %v1764_v13 = vpop.permute.xlu1 %1763 }
 0x2c5   :  { %v10214_v10 = vpop.permute.xlu0 %1553  ;;  %v1908_v9 = vsel %vm1851_vm13, %v1890_v42, %v1764_v13  ;;  %v2151_v30 = vrot.slane %v2143_v58, %v9671_v47  ;;  %v2336_v58 = vld [vmem:[%s11468_s5 + $0x38] sm:$0xff] }
 0x2c6   :  { %1715 = vrot.lane.b32.xlu1 %v1358_v1, %s9215_s25  ;;  %v1976_v21 = vcombine.low %v1854_v52, %v1908_v9  ;;  %v1361_v52 = vld [vmem:[#allocation3 + $0x2e] sm:$0x3] }
 0x2c7   :  { %1497 = vrot.lane.b32.xlu0 %v1282_v50, %s9215_s25  ;;  %v1266_v50 = vld [vmem:[#allocation3 + $0x22] sm:$0x3] }
 0x2c8   :  { %v10232_v54 = vpop.permute.xlu1 %1623  ;;  %v1983_v39 = vrot.slane %v1976_v21, %v9671_v47 }
 0x2c9   :  { %v1694_v31 = vpop.permute.xlu0 %1693 }
 0x2ca   :  { %1567 = vrot.lane.b32.xlu1 %v1300_v36, %s9216_s9  ;;  %v1891_v11 = vsel %vm1832_vm12, %v1873_v57, %v1694_v31  ;;  %v1267_v31 = vld [vmem:[#allocation3 + $0x24] sm:$0x3] }
 0x2cb   :  { %1501 = vrot.lane.b32.xlu0 %v1284_v19, %s9215_s25  ;;  %v1304_v19 = vld [vmem:[#allocation3 + $0x26] sm:$0x3] }
 0x2cc   :  { %v10251_v37 = vpop.permute.xlu1 %1695 }
 0x2cd   :  { %v1766_v40 = vpop.permute.xlu0 %1765 }
 0x2ce   :  { %v1909_v32 = vsel %vm1851_vm13, %v1891_v11, %v1766_v40  ;;  %1571 = vrot.lane.b32.xlu1 %v1302_v23, %s9216_s9  ;;  %v1305_v11 = vld [vmem:[#allocation3 + $0x28] sm:$0x3]  ;;  %v1380_v40 = vld [vmem:[#allocation3 + $0x30] sm:$0x3] }
 0x2cf   :  { %v1984_v45 = vcombine.low %v1855_v62, %v1909_v32  ;;  %1713 = vrot.lane.b32.xlu0 %v1357_v35, %s9215_s25  ;;  %v1311_v62 = vld [vmem:[#allocation3 + $0x12] sm:$0x3]  ;;  %v2330_v35 = vld [vmem:[%s11468_s5 + $0x8] sm:$0xff] }
 0x2d0   :  { %v10261_v12 = vpop.permute.xlu1 %1555 }
 0x2d1   :  { %v1991_v22 = vrot.slane %v1984_v45, %v9671_v47  ;;  %v10263_v46 = vpop.permute.xlu0 %1625  ;;  %v2329_v45 = vld [vmem:[%s11468_s5] sm:$0xff] }
 0x2d2   :  { %1783 = vrot.lane.b32.xlu1 %v1375_v48, %s9216_s9  ;;  %v1875_v48 = vsel %vm1813_vm11, %v1311_v62, %v10263_v46 }
 0x2d3   :  { %1717 = vrot.lane.b32.xlu0 %v1359_v49, %s9215_s25  ;;  %v2144_v14 = vcombine.low %v1983_v39, %v1991_v22  ;;  %v8236_v49 = vpack.c.bf16 %v2332_v43, %v2330_v35  ;;  %v2331_v39 = vld [vmem:[%s11468_s5 + $0x10] sm:$0xff]  ;;  %v2334_v22 = vld [vmem:[%s11468_s5 + $0x28] sm:$0xff] }
 0x2d4   :  { %v10271_v29 = vpop.permute.xlu1 %1415 }
 0x2d5   :  { %v2158_v8 = vrot.slane %v2144_v14, %v9671_v47  ;;  %v10273_v1 = vpop.permute.xlu0 %1485  ;;  %v8238_v14 = vpack.c.bf16 %v2331_v39, %v2329_v45  ;;  %8237 = vmatprep.subr.bf16.mxu0 %v8236_v49 }
 0x2d6   :  { %1787 = vrot.lane.b32.xlu1 %v1377_v18, %s9216_s9  ;;  %v8240_v18 = vpack.c.bf16 %v2336_v58, %v2334_v22 }
 0x2d7   :  { %1569 = vrot.lane.b32.xlu0 %v1301_v6, %s9216_s9  ;;  %v2160_v13 = vcombine.high %v2151_v30, %v2158_v8  ;;  %v2159_v55 = vcombine.low %v2151_v30, %v2158_v8  ;;  %v2333_v30 = vld [vmem:[%s11468_s5 + $0x20] sm:$0xff]  ;;  %v2335_v8 = vld [vmem:[%s11468_s5 + $0x30] sm:$0xff]  ;;  %v1236_v6 = vld [vmem:[#allocation3 + $0xa] sm:$0x3]  ;;  %8239 = vmatpush1.bf16.msra.mxu0 %v8238_v14 }
 0x2d8   :  { %v10279_v38 = vpop.permute.xlu1 %1487  ;;  %v1819_v46 = vsel %vm1813_vm11, %v1236_v6, %v10179_v17  ;;  %8241 = vmatprep.subr.bf16.mxu0 %v8240_v18 }
 0x2d9   :  { %2298 = vmatprep.mubr.f32.mxu1 %v2160_v13  ;;  %v10277_v27 = vpop.permute.xlu0 %1557  ;;  %v1310_v13 = vld [vmem:[#allocation3 + $0x10] sm:$0x3] }
 0x2da   :  { %2299 = vmatmul.mubr.f32.vlgmr.msra.gmra.mrb[0].mxu1 %v2159_v55  ;;  %1431 = vrot.lane.b32.xlu1 %v1266_v50, %s9214_s22 }
 0x2db   :  { %1573 = vrot.lane.b32.xlu0 %v1303_v15, %s9216_s9 }
 0x2dc   :  { %v1628_v5 = vpop.permute.xlu1 %1627 }
 0x2dd   :  { %v10285_v42 = vpop.permute.xlu0 %1417 }
 0x2de   :  { %1647 = vrot.lane.b32.xlu1 %v1341_v51, %s9214_s22  ;;  %v1874_v51 = vsel %vm1813_vm11, %v1310_v13, %v10232_v54 }
 0x2df   :  { %1785 = vrot.lane.b32.xlu0 %v1376_v26, %s9216_s9 }
 0x2e2   :  { %1503 = vrot.lane.b32.xlu1 %v1285_v33, %s9215_s25  ;;  %v1235_v33 = vld [vmem:[#allocation3 + $0x8] sm:$0x3] }
 0x2e3   :  { %1789 = vrot.lane.b32.xlu0 %v1378_v7, %s9216_s9  ;;  %v8242_v7 = vpack.c.bf16 %v2335_v8, %v2333_v30 }
 0x2e5   :  { %8243 = vmatpush1.bf16.msra.mxu0 %v8242_v7 }
 0x2e6   :  { %1719 = vrot.lane.b32.xlu1 %v1360_v28, %s9215_s25  ;;  %v1838_v28 = vsel %vm1832_vm12, %v1819_v46, %v10201_v25 }
 0x2e7   :  { %1433 = vrot.lane.b32.xlu0 %v1267_v31, %s9214_s22  ;;  %v1892_v31 = vsel %vm1832_vm12, %v1874_v51, %v10251_v37  ;;  %v1857_v17 = vsel %vm1851_vm13, %v1838_v28, %v10214_v10 }
 0x2e8   :  { %v1700_v9 = vpop.permute.xlu1 %1699 }
 0x2e9   :  { %v10289_v36 = vpop.permute.xlu0 %1629 }
 0x2ea   :  { %1575 = vrot.lane.b32.xlu1 %v1304_v19, %s9216_s9  ;;  %v1818_v19 = vsel %vm1813_vm11, %v1235_v33, %v10167_v16 }
 0x2eb   :  { %1649 = vrot.lane.b32.xlu0 %v1342_v3, %s9214_s22  ;;  %v1312_v3 = vld [vmem:[#allocation3 + $0x14] sm:$0x3] }
 0x2ec   :  { %v1768_v4 = vpop.permute.xlu1 %1767  ;;  %v1876_v54 = vsel %vm1813_vm11, %v1312_v3, %v1628_v5  ;;  %v1315_v3 = vld [vmem:[#allocation3 + $0x1a] sm:$0x3] }
 0x2ed   :  { %v1698_v53 = vpop.permute.xlu0 %1697  ;;  %v1894_v25 = vsel %vm1832_vm12, %v1876_v54, %v1700_v9  ;;  %v1314_v54 = vld [vmem:[#allocation3 + $0x18] sm:$0x3] }
 0x2ee   :  { %1791 = vrot.lane.b32.xlu1 %v1379_v44, %s9216_s9  ;;  %v1893_v55 = vsel %vm1832_vm12, %v1875_v48, %v1698_v53  ;;  %v1910_v44 = vsel %vm1851_vm13, %v1892_v31, %v1768_v4  ;;  %v1837_v53 = vsel %vm1832_vm12, %v1818_v19, %v10173_v34  ;;  %v1238_v4 = vld [vmem:[#allocation3 + $0xe] sm:$0x3]  ;;  %v1313_v34 = vld [vmem:[#allocation3 + $0x16] sm:$0x3] }
 0x2ef   :  { %1505 = vrot.lane.b32.xlu0 %v1286_v2, %s9215_s25  ;;  %v1237_v2 = vld [vmem:[#allocation3 + $0xc] sm:$0x3]  ;;  %v1856_v16 = vsel %vm1851_vm13, %v1837_v53, %v10199_v24  ;;  %v1821_v9 = vsel %vm1813_vm11, %v1238_v4, %v10195_v63 }
 0x2f0   :  { %v10295_v57 = vpop.permute.xlu1 %1419  ;;  %v1840_v24 = vsel %vm1832_vm12, %v1821_v9, %v10273_v1  ;;  %v1241_v9 = vld [vmem:[#allocation3 + $0x14] sm:$0x3] }
 0x2f1   :  { %v1770_v59 = vpop.permute.xlu0 %1769  ;;  %v1859_v39 = vsel %vm1851_vm13, %v1840_v24, %v10277_v27 }
 0x2f2   :  { %v1911_v26 = vsel %vm1851_vm13, %v1893_v55, %v1770_v59 }
 0x2f3   :  { %1721 = vrot.lane.b32.xlu0 %v1361_v52, %s9215_s25  ;;  %v2000_v52 = vcombine.low %v1857_v17, %v1911_v26  ;;  %v1240_v17 = vld [vmem:[#allocation3 + $0x12] sm:$0x3] }
 0x2f4   :  { %v10298_v60 = vpop.permute.xlu1 %1491 }
 0x2f5   :  { %v10300_v21 = vpop.permute.xlu0 %1421  ;;  %v2007_v35 = vrot.slane %v2000_v52, %v9671_v47 }
 0x2f7   :  { %1577 = vrot.lane.b32.xlu0 %v1305_v11, %s9216_s9  ;;  %v1820_v11 = vsel %vm1813_vm11, %v1237_v2, %v10189_v20  ;;  %v1877_v20 = vsel %vm1813_vm11, %v1313_v34, %v10289_v36 }
 0x2f8   :  { %v10303_v32 = vpop.permute.xlu1 %1559  ;;  %v1839_v5 = vsel %vm1832_vm12, %v1820_v11, %v10193_v41  ;;  %v1239_v11 = vld [vmem:[#allocation3 + $0x10] sm:$0x3] }
 0x2f9   :  { %v10305_v23 = vpop.permute.xlu0 %1489  ;;  %v1858_v62 = vsel %vm1851_vm13, %v1839_v5, %v10261_v12  ;;  %v1316_v5 = vld [vmem:[#allocation3 + $0x1c] sm:$0x3]  ;;  %v1822_v4 = vsel %vm1813_vm11, %v1239_v11, %v10271_v29  ;;  %v1824_v29 = vsel %vm1813_vm11, %v1241_v9, %v10295_v57 }
 0x2fb   :  { %1793 = vrot.lane.b32.xlu0 %v1380_v40, %s9216_s9  ;;  %v1992_v40 = vcombine.low %v1856_v16, %v1910_v44 }
 0x2fc   :  { %v1772_v15 = vpop.permute.xlu1 %1771 }
 0x2fd   :  { %v10335_v50 = vpop.permute.xlu0 %1561  ;;  %v1912_v10 = vsel %vm1851_vm13, %v1894_v25, %v1772_v15  ;;  %v1999_v12 = vrot.slane %v1992_v40, %v9671_v47  ;;  %v1823_v25 = vsel %vm1813_vm11, %v1240_v17, %v10285_v42  ;;  %v2337_v17 = vld [vmem:[%s11468_s5 + $0x40] sm:$0xff] }
 0x2fe   :  { %v2008_v43 = vcombine.low %v1858_v62, %v1912_v10  ;;  %v1842_v16 = vsel %vm1832_vm12, %v1823_v25, %v10305_v23  ;;  %v2341_v25 = vld [vmem:[%s11468_s5 + $0x60] sm:$0xff] }
 0x2ff   :  { %v2161_v58 = vcombine.low %v1999_v12, %v2007_v35  ;;  %v1861_v34 = vsel %vm1851_vm13, %v1842_v16, %v10335_v50 }
 0x300   :  { %v1632_v59 = vpop.permute.xlu1 %1631  ;;  %v2015_v36 = vrot.slane %v2008_v43, %v9671_v47  ;;  %v1843_v43 = vsel %vm1832_vm12, %v1824_v29, %v10298_v60  ;;  %v1318_v29 = vld [vmem:[#allocation3 + $0x20] sm:$0x3] }
 0x301   :  { %v1702_v37 = vpop.permute.xlu0 %1701  ;;  %v2169_v6 = vrot.slane %v2161_v58, %v9671_v47  ;;  %v1878_v52 = vsel %vm1813_vm11, %v1314_v54, %v1632_v59  ;;  %v1841_v59 = vsel %vm1832_vm12, %v1822_v4, %v10279_v38  ;;  %v2339_v54 = vld [vmem:[%s11468_s5 + $0x50] sm:$0xff] }
 0x302   :  { %v1895_v41 = vsel %vm1832_vm12, %v1877_v20, %v1702_v37  ;;  %v1860_v50 = vsel %vm1851_vm13, %v1841_v59, %v10303_v32 }
 0x304   :  { %v1704_v49 = vpop.permute.xlu1 %1703 }
 0x305   :  { %v1774_v45 = vpop.permute.xlu0 %1773  ;;  %v1896_v10 = vsel %vm1832_vm12, %v1878_v52, %v1704_v49  ;;  %v2343_v52 = vld [vmem:[%s11468_s5 + $0x70] sm:$0xff] }
 0x306   :  { %v1913_v63 = vsel %vm1851_vm13, %v1895_v41, %v1774_v45  ;;  %v1242_v41 = vld [vmem:[#allocation3 + $0x16] sm:$0x3]  ;;  %v1317_v45 = vld [vmem:[#allocation3 + $0x1e] sm:$0x3] }
 0x307   :  { %v2016_v22 = vcombine.low %v1859_v39, %v1913_v63  ;;  %v1825_v49 = vsel %vm1813_vm11, %v1242_v41, %v10300_v21  ;;  %v1244_v41 = vld [vmem:[#allocation3 + $0x1a] sm:$0x3] }
 0x308   :  { %v1564_v48 = vpop.permute.xlu1 %1563 }
 0x309   :  { %v2023_v1 = vrot.slane %v2016_v22, %v9671_v47  ;;  %v1634_v14 = vpop.permute.xlu0 %1633  ;;  %v1862_v39 = vsel %vm1851_vm13, %v1843_v43, %v1564_v48  ;;  %v1243_v43 = vld [vmem:[#allocation3 + $0x18] sm:$0x3] }
 0x30a   :  { %v1879_v19 = vsel %vm1813_vm11, %v1315_v3, %v1634_v14 }
 0x30b   :  { %v2162_v18 = vcombine.low %v2015_v36, %v2023_v1 }
 0x30c   :  { %v10378_v30 = vpop.permute.xlu1 %1423 }
 0x30d   :  { %v1494_v8 = vpop.permute.xlu0 %1493  ;;  %v2176_v27 = vrot.slane %v2162_v18, %v9671_v47 }
 0x30e   :  { %v1844_v57 = vsel %vm1832_vm12, %v1825_v49, %v1494_v8 }
 0x30f   :  { %v2178_v13 = vcombine.high %v2169_v6, %v2176_v27  ;;  %v2177_v55 = vcombine.low %v2169_v6, %v2176_v27 }
 0x310   :  { %v1636_v46 = vpop.permute.xlu1 %1635 }
 0x311   :  { %2303 = vmatprep.mubr.f32.mxu1 %v2178_v13  ;;  %v1566_v15 = vpop.permute.xlu0 %1565  ;;  %v1880_v40 = vsel %vm1813_vm11, %v1316_v5, %v1636_v46  ;;  %v2338_v13 = vld [vmem:[%s11468_s5 + $0x48] sm:$0xff] }
 0x312   :  { %2304 = vmatmul.mubr.f32.gmra.mrb[2].mxu1 %v2177_v55  ;;  %v1863_v60 = vsel %vm1851_vm13, %v1844_v57, %v1566_v15  ;;  %v2340_v55 = vld [vmem:[%s11468_s5 + $0x58] sm:$0xff]  ;;  %v1319_v57 = vld [vmem:[#allocation3 + $0x22] sm:$0x3] }
 0x313   :  { %v8244_v15 = vpack.c.bf16 %v2340_v55, %v2338_v13 }
 0x314   :  { %v1708_v26 = vpop.permute.xlu1 %1707 }
 0x315   :  { %v10382_v51 = vpop.permute.xlu0 %1425  ;;  %v1898_v62 = vsel %vm1832_vm12, %v1880_v40, %v1708_v26  ;;  %8245 = vmatprep.subr.bf16.mxu0 %v8244_v15 }
 0x316   :  { %v1827_v49 = vsel %vm1813_vm11, %v1244_v41, %v10382_v51  ;;  %v1323_v41 = vld [vmem:[#allocation3 + $0x2a] sm:$0x3] }
 0x318   :  { %v1776_v7 = vpop.permute.xlu1 %1775 }
 0x319   :  { %v1638_v33 = vpop.permute.xlu0 %1637  ;;  %v1914_v42 = vsel %vm1851_vm13, %v1896_v10, %v1776_v7  ;;  %v8250_v10 = vpack.c.bf16 %v2343_v52, %v2341_v25 }
 0x31a   :  { %v2024_v38 = vcombine.low %v1860_v50, %v1914_v42  ;;  %v1881_v63 = vsel %vm1813_vm11, %v1317_v45, %v1638_v33  ;;  %v1826_v45 = vsel %vm1813_vm11, %v1243_v43, %v10378_v30 }
 0x31c   :  { %v10384_v28 = vpop.permute.xlu1 %1427  ;;  %v2031_v14 = vrot.slane %v2024_v38, %v9671_v47 }
 0x31d   :  { %v1706_v31 = vpop.permute.xlu0 %1705 }
 0x31e   :  { %v1897_v44 = vsel %vm1832_vm12, %v1879_v19, %v1706_v31 }
 0x320   :  { %v1780_v2 = vpop.permute.xlu1 %1779 }
 0x321   :  { %v1778_v53 = vpop.permute.xlu0 %1777  ;;  %v1916_v35 = vsel %vm1851_vm13, %v1898_v62, %v1780_v2  ;;  %v2344_v2 = vld [vmem:[%s11468_s5 + $0x78] sm:$0xff] }
 0x322   :  { %v1915_v37 = vsel %vm1851_vm13, %v1897_v44, %v1778_v53  ;;  %v2040_v32 = vcombine.low %v1862_v39, %v1916_v35  ;;  %v2342_v44 = vld [vmem:[%s11468_s5 + $0x68] sm:$0xff]  ;;  %v8246_v53 = vpack.c.bf16 %v2339_v54, %v2337_v17 }
 0x323   :  { %v2032_v23 = vcombine.low %v1861_v34, %v1915_v37  ;;  %v8248_v16 = vpack.c.bf16 %v2344_v2, %v2342_v44  ;;  %v1245_v39 = vld [vmem:[#allocation3 + $0x1c] sm:$0x3] }
 0x324   :  { %v10404_v24 = vpop.permute.xlu1 %1639  ;;  %v2047_v48 = vrot.slane %v2040_v32, %v9671_v47  ;;  %8247 = vmatpush1.bf16.msra.mxu0 %v8246_v53  ;;  %v1828_v32 = vsel %vm1813_vm11, %v1245_v39, %v10384_v28 }
 0x325   :  { %v1710_v20 = vpop.permute.xlu0 %1709  ;;  %v2039_v12 = vrot.slane %v2032_v23, %v9671_v47  ;;  %8249 = vmatprep.subr.bf16.mxu0 %v8248_v16  ;;  %v1882_v38 = vsel %vm1813_vm11, %v1318_v29, %v10404_v24 }
 0x326   :  { %v1899_v22 = vsel %vm1832_vm12, %v1881_v63, %v1710_v20  ;;  %v1320_v63 = vld [vmem:[#allocation3 + $0x24] sm:$0x3] }
 0x327   :  { %v2179_v18 = vcombine.low %v2031_v14, %v2039_v12 }
 0x328   :  { %v1644_v36 = vpop.permute.xlu1 %1643  ;;  %8251 = vmatpush1.bf16.msra.mxu0 %v8250_v10 }
 0x329   :  { %v1782_v58 = vpop.permute.xlu0 %1781  ;;  %v2187_v33 = vrot.slane %v2179_v18, %v9671_v47 }
 0x32a   :  { %v1917_v1 = vsel %vm1851_vm13, %v1899_v22, %v1782_v58  ;;  %v1884_v22 = vsel %vm1813_vm11, %v1320_v63, %v1644_v36  ;;  %v1248_v63 = vld [vmem:[#allocation3 + $0x22] sm:$0x3] }
 0x32b   :  { %v2048_v21 = vcombine.low %v1863_v60, %v1917_v1 }
 0x32c   :  { %v1496_v27 = vpop.permute.xlu1 %1495 }
 0x32d   :  { %v2055_v6 = vrot.slane %v2048_v21, %v9671_v47  ;;  %v10425_v8 = vpop.permute.xlu0 %1429  ;;  %v1845_v60 = vsel %vm1832_vm12, %v1826_v45, %v1496_v27  ;;  %v1321_v27 = vld [vmem:[#allocation3 + $0x26] sm:$0x3] }
 0x32f   :  { %v2180_v46 = vcombine.low %v2047_v48, %v2055_v6  ;;  %v1246_v6 = vld [vmem:[#allocation3 + $0x1e] sm:$0x3] }
 0x330   :  { %v1500_v7 = vpop.permute.xlu1 %1499 }
 0x331   :  { %v1642_v26 = vpop.permute.xlu0 %1641  ;;  %v2194_v31 = vrot.slane %v2180_v46, %v9671_v47  ;;  %v1847_v13 = vsel %vm1832_vm12, %v1828_v32, %v1500_v7  ;;  %v1829_v46 = vsel %vm1813_vm11, %v1246_v6, %v10425_v8 }
 0x332   :  { %v1883_v58 = vsel %vm1813_vm11, %v1319_v57, %v1642_v26 }
 0x333   :  { %v2196_v3 = vcombine.high %v2187_v33, %v2194_v31  ;;  %v2195_v19 = vcombine.low %v2187_v33, %v2194_v31 }
 0x334   :  { %v1712_v37 = vpop.permute.xlu1 %1711 }
 0x335   :  { %2308 = vmatprep.mubr.f32.mxu1 %v2196_v3  ;;  %v1646_v11 = vpop.permute.xlu0 %1645  ;;  %v1900_v12 = vsel %vm1832_vm12, %v1882_v38, %v1712_v37 }
 0x336   :  { %2309 = vmatmul.mubr.f32.gmra.mrb[4].mxu1 %v2195_v19  ;;  %v1885_v26 = vsel %vm1813_vm11, %v1321_v27, %v1646_v11 }
 0x338   :  { %v1716_v5 = vpop.permute.xlu1 %1715 }
 0x339   :  { %v1498_v4 = vpop.permute.xlu0 %1497  ;;  %v1902_v30 = vsel %vm1832_vm12, %v1884_v22, %v1716_v5 }
 0x33a   :  { %v1846_v51 = vsel %vm1832_vm12, %v1827_v49, %v1498_v4 }
 0x33c   :  { %v1568_v34 = vpop.permute.xlu1 %1567 }
 0x33d   :  { %v1502_v40 = vpop.permute.xlu0 %1501  ;;  %v1864_v18 = vsel %vm1851_vm13, %v1845_v60, %v1568_v34 }
 0x33e   :  { %v1848_v31 = vsel %vm1832_vm12, %v1829_v46, %v1502_v40  ;;  %v2585_v46 = vld [vmem:[%s11469_s6 + $0x18] sm:$0xff] }
 0x340   :  { %v1572_v42 = vpop.permute.xlu1 %1571 }
 0x341   :  { %v1714_v59 = vpop.permute.xlu0 %1713  ;;  %v1866_v33 = vsel %vm1851_vm13, %v1847_v13, %v1572_v42 }
 0x342   :  { %v1901_v1 = vsel %vm1832_vm12, %v1883_v58, %v1714_v59 }
 0x344   :  { %v1784_v9 = vpop.permute.xlu1 %1783 }
 0x345   :  { %v1718_v62 = vpop.permute.xlu0 %1717  ;;  %v1918_v24 = vsel %vm1851_vm13, %v1900_v12, %v1784_v9 }
 0x346   :  { %v2056_v55 = vcombine.low %v1864_v18, %v1918_v24  ;;  %v1903_v3 = vsel %vm1832_vm12, %v1885_v26, %v1718_v62  ;;  %v2582_v26 = vld [vmem:[%s11469_s6] sm:$0xff] }
 0x348   :  { %v1788_v23 = vpop.permute.xlu1 %1787  ;;  %v2063_v2 = vrot.slane %v2056_v55, %v9671_v47 }
 0x349   :  { %v1570_v20 = vpop.permute.xlu0 %1569  ;;  %v1920_v28 = vsel %vm1851_vm13, %v1902_v30, %v1788_v23  ;;  %v1322_v23 = vld [vmem:[#allocation3 + $0x28] sm:$0x3] }
 0x34a   :  { %v1865_v36 = vsel %vm1851_vm13, %v1846_v51, %v1570_v20  ;;  %v2072_v19 = vcombine.low %v1866_v33, %v1920_v28 }
 0x34c   :  { %v10453_v50 = vpop.permute.xlu1 %1431  ;;  %v2079_v25 = vrot.slane %v2072_v19, %v9671_v47  ;;  %v2589_v19 = vld [vmem:[%s11469_s6 + $0x38] sm:$0xff] }
 0x34d   :  { %v1574_v35 = vpop.permute.xlu0 %1573 }
 0x34e   :  { %v1867_v7 = vsel %vm1851_vm13, %v1848_v31, %v1574_v35  ;;  %v1247_v35 = vld [vmem:[#allocation3 + $0x20] sm:$0x3] }
 0x34f   :  { %v1830_v45 = vsel %vm1813_vm11, %v1247_v35, %v10453_v50  ;;  %v2584_v31 = vld [vmem:[%s11469_s6 + $0x10] sm:$0xff]  ;;  %v2825_v35 = vld [vmem:[%s11470_s7 + $0x28] sm:$0xff] }
 0x350   :  { %v1648_v14 = vpop.permute.xlu1 %1647 }
 0x351   :  { %v1786_v21 = vpop.permute.xlu0 %1785  ;;  %v1886_v29 = vsel %vm1813_vm11, %v1322_v23, %v1648_v14  ;;  %v2822_v23 = vld [vmem:[%s11470_s7 + $0x10] sm:$0xff] }
 0x352   :  { %v1919_v48 = vsel %vm1851_vm13, %v1901_v1, %v1786_v21 }
 0x353   :  { %v2064_v15 = vcombine.low %v1865_v36, %v1919_v48  ;;  %v10510_v48 = vld [vmem:[%s11467_s4] ss:$0 sm:$0xff] }
 0x354   :  { %v1504_v54 = vpop.permute.xlu1 %1503 }
 0x355   :  { %v2071_v17 = vrot.slane %v2064_v15, %v9671_v47  ;;  %v1790_v44 = vpop.permute.xlu0 %1789  ;;  %v1849_v39 = vsel %vm1832_vm12, %v1830_v45, %v1504_v54  ;;  %v2583_v15 = vld [vmem:[%s11469_s6 + $0x8] sm:$0xff] }
 0x356   :  { %v1921_v53 = vsel %vm1851_vm13, %v1903_v3, %v1790_v44  ;;  %v8252_v33 = vpack.c.bf16 %v2585_v46, %v2583_v15  ;;  %v2587_v3 = vld [vmem:[%s11469_s6 + $0x28] sm:$0xff]  ;;  %v2586_v44 = vld [vmem:[%s11469_s6 + $0x20] sm:$0xff] }
 0x357   :  { %v2080_v8 = vcombine.low %v1867_v7, %v1921_v53  ;;  %v2197_v52 = vcombine.low %v2063_v2, %v2071_v17  ;;  %v8254_v17 = vpack.c.bf16 %v2584_v31, %v2582_v26  ;;  %v8256_v54 = vpack.c.bf16 %v2589_v19, %v2587_v3  ;;  %v2588_v7 = vld [vmem:[%s11469_s6 + $0x30] sm:$0xff]  ;;  %v2591_v2 = vld [vmem:[%s11469_s6 + $0x48] sm:$0xff] }
 0x358   :  { %v1720_v10 = vpop.permute.xlu1 %1719  ;;  %8253 = vmatprep.subr.bf16.mxu0 %v8252_v33  ;;  %v8258_v53 = vpack.c.bf16 %v2588_v7, %v2586_v44 }
 0x359   :  { %v2087_v37 = vrot.slane %v2080_v8, %v9671_v47  ;;  %v1434_v11 = vpop.permute.xlu0 %1433  ;;  %v2205_v4 = vrot.slane %v2197_v52, %v9671_v47  ;;  %v1904_v43 = vsel %vm1832_vm12, %v1886_v29, %v1720_v10  ;;  %v2593_v8 = vld [vmem:[%s11469_s6 + $0x58] sm:$0xff] }
 0x35a   :  { %v1831_v57 = vsel %vm1813_vm11, %v1248_v63, %v1434_v11  ;;  %v8260_v52 = vpack.c.bf16 %v2593_v8, %v2591_v2  ;;  %v2595_v11 = vld [vmem:[%s11469_s6 + $0x68] sm:$0xff] }
 0x35b   :  { %v2198_v16 = vcombine.low %v2079_v25, %v2087_v37  ;;  %v2590_v25 = vld [vmem:[%s11469_s6 + $0x40] sm:$0xff]  ;;  %v2592_v37 = vld [vmem:[%s11469_s6 + $0x50] sm:$0xff] }
 0x35c   :  { %v1576_v59 = vpop.permute.xlu1 %1575  ;;  %v8262_v10 = vpack.c.bf16 %v2592_v37, %v2590_v25 }
 0x35d   :  { %v1650_v5 = vpop.permute.xlu0 %1649  ;;  %v2212_v34 = vrot.slane %v2198_v16, %v9671_v47  ;;  %v1868_v12 = vsel %vm1851_vm13, %v1849_v39, %v1576_v59  ;;  %v2597_v16 = vld [vmem:[%s11469_s6 + $0x78] sm:$0xff] }
 0x35e   :  { %v1887_v32 = vsel %vm1813_vm11, %v1323_v41, %v1650_v5  ;;  %v8264_v5 = vpack.c.bf16 %v2597_v16, %v2595_v11  ;;  %v2823_v59 = vld [vmem:[%s11470_s7 + $0x18] sm:$0xff]  ;;  %v2824_v41 = vld [vmem:[%s11470_s7 + $0x20] sm:$0xff] }
 0x35f   :  { %v2214_v40 = vcombine.high %v2205_v4, %v2212_v34  ;;  %v2213_v42 = vcombine.low %v2205_v4, %v2212_v34  ;;  %v2594_v4 = vld [vmem:[%s11469_s6 + $0x60] sm:$0xff]  ;;  %v2596_v34 = vld [vmem:[%s11469_s6 + $0x70] sm:$0xff] }
 0x360   :  { %v1792_v20 = vpop.permute.xlu1 %1791 }
 0x361   :  { %2313 = vmatprep.mubr.f32.mxu1 %v2214_v40  ;;  %v1506_v9 = vpop.permute.xlu0 %1505  ;;  %v1922_v49 = vsel %vm1851_vm13, %v1904_v43, %v1792_v20  ;;  %v8266_v40 = vpack.c.bf16 %v2596_v34, %v2594_v4  ;;  %v2827_v43 = vld [vmem:[%s11470_s7 + $0x38] sm:$0xff] }
 0x362   :  { %2314 = vmatmul.mubr.f32.gmra.mrb[6].mxu1 %v2213_v42  ;;  %v2088_v22 = vcombine.low %v1868_v12, %v1922_v49  ;;  %v1850_v58 = vsel %vm1832_vm12, %v1831_v57, %v1506_v9  ;;  %v2821_v42 = vld [vmem:[%s11470_s7 + $0x8] sm:$0xff]  ;;  %v10596_v45 = vpack.c.bf16 %v2827_v43, %v2825_v35  ;;  %v2826_v49 = vld [vmem:[%s11470_s7 + $0x30] sm:$0xff] }
 0x363   :  { %v10574_v9 = vpack.c.bf16 %v2823_v59, %v2821_v42  ;;  %v10601_v63 = vpack.c.bf16 %v2826_v49, %v2824_v41  ;;  %v2829_v12 = vld [vmem:[%s11470_s7 + $0x48] sm:$0xff] }
 0x364   :  { %v2095_v1 = vrot.slane %v2088_v22, %v9671_v47  ;;  %v2828_v22 = vld [vmem:[%s11470_s7 + $0x40] sm:$0xff] }
 0x365   :  { %v1722_v62 = vpop.permute.xlu0 %1721  ;;  %8269 = vmatprep.subr.bf16.mxu1 %v10574_v9 }
 0x366   :  { %v1905_v24 = vsel %vm1832_vm12, %v1887_v32, %v1722_v62  ;;  %v2820_v62 = vld [vmem:[%s11470_s7] sm:$0xff]  ;;  %v2831_v32 = vld [vmem:[%s11470_s7 + $0x58] sm:$0xff] }
 0x367   :  { %v10584_v20 = vpack.c.bf16 %v2822_v23, %v2820_v62 }
 0x369   :  { %v1578_v38 = vpop.permute.xlu0 %1577  ;;  %8271 = vmatpush1.bf16.msra.mxu1 %v10584_v20 }
 0x36a   :  { %v1869_v30 = vsel %vm1851_vm13, %v1850_v58, %v1578_v38  ;;  %8273 = vmatprep.subr.bf16.mxu1 %v10596_v45  ;;  %v10615_v58 = vpack.c.bf16 %v2831_v32, %v2829_v12 }
 0x36d   :  { %v1794_v60 = vpop.permute.xlu0 %1793  ;;  %8275 = vmatpush1.bf16.msra.mxu1 %v10601_v63 }
 0x36e   :  { %v1923_v50 = vsel %vm1851_vm13, %v1905_v24, %v1794_v60  ;;  %v2830_v24 = vld [vmem:[%s11470_s7 + $0x50] sm:$0xff]  ;;  %v2833_v60 = vld [vmem:[%s11470_s7 + $0x68] sm:$0xff]  ;;  %8277 = vmatprep.subr.bf16.mxu1 %v10615_v58 }
 0x36f   :  { %v2096_v51 = vcombine.low %v1869_v30, %v1923_v50  ;;  %v2835_v30 = vld [vmem:[%s11470_s7 + $0x78] sm:$0xff] }
 0x371   :  { %v2103_v14 = vrot.slane %v2096_v51, %v9671_v47  ;;  %v10626_v51 = vpack.c.bf16 %v2830_v24, %v2828_v22 }
 0x373   :  { %v2215_v21 = vcombine.low %v2095_v1, %v2103_v14  ;;  %v10628_v1 = vpack.c.bf16 %v2835_v30, %v2833_v60  ;;  %v2832_v14 = vld [vmem:[%s11470_s7 + $0x60] sm:$0xff]  ;;  %8279 = vmatpush1.bf16.msra.mxu1 %v10626_v51 }
 0x375   :  { %v2222_v18 = vrot.slane %v2215_v21, %v9671_v47  ;;  %v2834_v21 = vld [vmem:[%s11470_s7 + $0x70] sm:$0xff]  ;;  %8281 = vmatprep.subr.bf16.mxu1 %v10628_v1 }
 0x377   :  { %v2223_v28 = vcombine.high %v2222_v18, %v2222_v18 }
 0x379   :  { %2318 = vmatprep.mubr.f32.mxu1 %v2223_v28 }
 0x37a   :  { %2319 = vmatmul.mubr.f32.gmra.mrb[8].mxu1 %v2222_v18  ;;  %v10639_v18 = vpack.c.bf16 %v2834_v21, %v2832_v14 }
 0x37b   :  { %2908 = vmatprep.mubr.f32.mxu1 %v9204_v0 }
 0x37c   :  { %8283 = vmatpush1.bf16.msra.mxu1 %v10639_v18 }
 0x37d   :  { %8285 = vmatprep.subr.bf16.mxu1 %v10574_v9 }
 0x37f   :  { %2909 = vmatmul.mubr.f32.vlgmr.msra.gmra.mrb[10].mxu1 %v9204_v0 }
 0x380   :  { %8287 = vmatpush1.bf16.msra.mxu1 %v10584_v20  ;;  %3045 = vmatprep.mubr.f32.mxu1 %v9204_v0 }
 0x381   :  { %8289 = vmatprep.subr.bf16.mxu1 %v10596_v45 }
 0x384   :  { %8291 = vmatpush1.bf16.msra.mxu1 %v10601_v63 }
 0x385   :  { %8293 = vmatprep.subr.bf16.mxu1 %v10615_v58 }
 0x388   :  { %8295 = vmatpush1.bf16.msra.mxu1 %v10626_v51 }
 0x389   :  { %8297 = vmatprep.subr.bf16.mxu1 %v10628_v1 }
 0x38c   :  { %8299 = vmatpush1.bf16.msra.mxu1 %v10639_v18 }
 0x38d   :  { %8301 = vmatprep.subr.bf16.mxu1 %v10574_v9 }
 0x3ad   :  { %v8087_v36 = vpop.f32.mrb[0].mxu1 }
 0x3ae   :  { %v8088_v6 = vpop.f32.mrb[1].mxu1 }
 0x3af   :  { %v8089_v13 = vadd.f32 %v8088_v6, %v8087_v36 }
 0x3b1   :  { %v10513_v27 = vadd.f32 %v8089_v13, %v10510_v48 }
 0x3b3   :  { %v2324_v55 = vmax.f32 %v10513_v27, 0.0 }
 0x3b5   :  { %7955 = vmatmul.mubr.msk.f32.vlgmr.msra.gmra.mrb[10].mxu0 %vm1832_vm12, %v2324_v55 }
 0x3b6   :  { %2430 = vmatprep.mubr.f32.mxu0 %v9204_v0  ;;  %8255 = vmatpush1.bf16.msra.mxu0 %v8254_v17 }
 0x3b7   :  { %8257 = vmatprep.subr.bf16.mxu0 %v8256_v54 }
 0x3ba   :  { %8259 = vmatpush1.bf16.msra.mxu0 %v8258_v53 }
 0x3bb   :  { %8261 = vmatprep.subr.bf16.mxu0 %v8260_v52 }
 0x3be   :  { %8263 = vmatpush1.bf16.msra.mxu0 %v8262_v10 }
 0x3bf   :  { %8265 = vmatprep.subr.bf16.mxu0 %v8264_v5 }
 0x3c2   :  { %8267 = vmatpush1.bf16.msra.mxu0 %v8266_v40 }
 0x3c3   :  { %8317 = vmatprep.subr.bf16.mxu0 %v10574_v9 }
 0x3e5   :  { %v8090_v29 = vpop.f32.mrb[2].mxu1 }
 0x3e6   :  { %v8091_v38 = vpop.f32.mrb[3].mxu1 }
 0x3e7   :  { %v8092_v39 = vadd.f32 %v8091_v38, %v8090_v29 }
 0x3e9   :  { %v2306_v57 = vadd.f32 %v8092_v39, %v10510_v48 }
 0x3eb   :  { %v2325_v50 = vmax.f32 %v2306_v57, 0.0 }
 0x3ed   :  { %7956 = vmatmul.mubr.msk.f32.gmra.mrb[12].mxu0 %vm1832_vm12, %v2325_v50 }
 0x3ee   :  { %2436 = vmatprep.mubr.f32.mxu0 %v9204_v0 }
 0x409   :  { %v8093_v28 = vpop.f32.mrb[4].mxu1 }
 0x40a   :  { %v8094_v36 = vpop.f32.mrb[5].mxu1 }
 0x40b   :  { %v8095_v6 = vadd.f32 %v8094_v36, %v8093_v28 }
 0x40d   :  { %v2311_v13 = vadd.f32 %v8095_v6, %v10510_v48 }
 0x40f   :  { %v2326_v15 = vmax.f32 %v2311_v13, 0.0 }
 0x411   :  { %7957 = vmatmul.mubr.msk.f32.gmra.mrb[14].mxu0 %vm1832_vm12, %v2326_v15 }
 0x412   :  { %2442 = vmatprep.mubr.f32.mxu0 %v9204_v0 }
 0x435   :  { %v8096_v46 = vpop.f32.mrb[6].mxu1 }
 0x436   :  { %v8097_v26 = vpop.f32.mrb[7].mxu1 }
 0x437   :  { %v8098_v33 = vadd.f32 %v8097_v26, %v8096_v46 }
 0x439   :  { %v2316_v31 = vadd.f32 %v8098_v33, %v10510_v48 }
 0x43b   :  { %v2327_v3 = vmax.f32 %v2316_v31, 0.0 }
 0x43d   :  { %7958 = vmatmul.mubr.msk.f32.gmra.mrb[16].mxu0 %vm1832_vm12, %v2327_v3 }
 0x43e   :  { %2448 = vmatprep.mubr.f32.mxu0 %v9204_v0 }
 0x44d   :  { %v8099_v19 = vpop.f32.mrb[8].mxu1 }
 0x44e   :  { %v8100_v17 = vpop.f32.mrb[9].mxu1 }
 0x44f   :  { %v8101_v54 = vadd.f32 %v8100_v17, %v8099_v19 }
 0x451   :  { %v2321_v44 = vadd.f32 %v8101_v54, %v10510_v48 }
 0x452   :  { %v10688_v42 = vpop.f32.mrb[10].mxu1 }
 0x453   :  { %v2328_v7 = vmax.f32 %v2321_v44, 0.0  ;;  %v10690_v59 = vpop.f32.mrb[11].mxu1 }
 0x454   :  { %v2917_v62 = vcombine.low %v10688_v42, %v10690_v59 }
 0x455   :  { %7959 = vmatmul.mubr.msk.f32.gmra.mrb[18].mxu0 %vm1832_vm12, %v2328_v7 }
 0x456   :  { %2662 = vmatprep.mubr.f32.mxu0 %v9204_v0 }
 0x459   :  { %7969 = vmatmul.mubr.msk.f32.vlgmr.msra.gmra.mrb[20].mxu0 %vm1832_vm12, %v2324_v55 }
 0x45a   :  { %2668 = vmatprep.mubr.f32.mxu0 %v9204_v0  ;;  %8319 = vmatpush1.bf16.msra.mxu0 %v10584_v20 }
 0x45b   :  { %8321 = vmatprep.subr.bf16.mxu0 %v10596_v45 }
 0x45d   :  { %7970 = vmatmul.mubr.msk.f32.gmra.mrb[22].mxu0 %vm1832_vm12, %v2325_v50 }
 0x45e   :  { %2674 = vmatprep.mubr.f32.mxu0 %v9204_v0  ;;  %8323 = vmatpush1.bf16.msra.mxu0 %v10601_v63 }
 0x45f   :  { %8325 = vmatprep.subr.bf16.mxu0 %v10615_v58 }
 0x461   :  { %7971 = vmatmul.mubr.msk.f32.gmra.mrb[24].mxu0 %vm1832_vm12, %v2326_v15 }
 0x462   :  { %2680 = vmatprep.mubr.f32.mxu0 %v9204_v0  ;;  %8327 = vmatpush1.bf16.msra.mxu0 %v10626_v51 }
 0x463   :  { %8329 = vmatprep.subr.bf16.mxu0 %v10628_v1 }
 0x465   :  { %7972 = vmatmul.mubr.msk.f32.gmra.mrb[26].mxu0 %vm1832_vm12, %v2327_v3 }
 0x466   :  { %2686 = vmatprep.mubr.f32.mxu0 %v9204_v0  ;;  %8331 = vmatpush1.bf16.msra.mxu0 %v10639_v18 }
 0x467   :  { %8349 = vmatprep.subr.bf16.mxu0 %v10574_v9 }
 0x469   :  { %7973 = vmatmul.mubr.msk.f32.gmra.mrb[28].mxu0 %vm1832_vm12, %v2328_v7 }
 0x46a   :  { %3283 = vmatprep.mubr.f32.mxu0 %v9204_v0 }
 0x488   :  { %v2426_v48 = vpop.f32.mrb[10].mxu0 }
 0x489   :  { %v2428_v27 = vpop.f32.mrb[11].mxu0 }
 0x48a   :  { %v2465_v55 = vcombine.low %v2426_v48, %v2428_v27  ;;  %v2466_v53 = vcombine.high %v2426_v48, %v2428_v27 }
 0x48c   :  { %v2473_v2 = vrot.slane %v2465_v55, %v9671_v47  ;;  %v2480_v8 = vrot.slane %v2466_v53, %v9671_v47  ;;  %7960 = vst.sshfl [vmem:[#allocation4] sm:$0x33 pattern:$0x76325410] %v2465_v55 }
 0x48d   :  { %7961 = vst.sshfl [vmem:[#allocation4 + $0x8] sm:$0x33 pattern:$0x76325410] %v2466_v53 }
 0x48e   :  { %v2481_v25 = vcombine.high %v2473_v2, %v2473_v2  ;;  %v2482_v52 = vcombine.high %v2480_v8, %v2480_v8 }
 0x490   :  { %2565 = vst [vmem:[#allocation4 + $0x4] sm:$0xf] %v2481_v25  ;;  %2567 = vst [vmem:[#allocation4 + $0xc] sm:$0xf] %v2482_v52 }
 0x4c0   :  { %v2432_v37 = vpop.f32.mrb[12].mxu0 }
 0x4c1   :  { %v2434_v11 = vpop.f32.mrb[13].mxu0 }
 0x4c2   :  { %v2483_v16 = vcombine.low %v2432_v37, %v2434_v11  ;;  %v2484_v10 = vcombine.high %v2432_v37, %v2434_v11 }
 0x4c4   :  { %v2491_v5 = vrot.slane %v2483_v16, %v9671_v47  ;;  %v2498_v4 = vrot.slane %v2484_v10, %v9671_v47  ;;  %7962 = vst.sshfl [vmem:[#allocation4 + $0x10] sm:$0x33 pattern:$0x76325410] %v2483_v16 }
 0x4c5   :  { %7963 = vst.sshfl [vmem:[#allocation4 + $0x18] sm:$0x33 pattern:$0x76325410] %v2484_v10 }
 0x4c6   :  { %v2499_v34 = vcombine.high %v2491_v5, %v2491_v5  ;;  %v2500_v40 = vcombine.high %v2498_v4, %v2498_v4 }
 0x4c8   :  { %2569 = vst [vmem:[#allocation4 + $0x14] sm:$0xf] %v2499_v34  ;;  %2571 = vst [vmem:[#allocation4 + $0x1c] sm:$0xf] %v2500_v40 }
 0x4e4   :  { %v2438_v23 = vpop.f32.mrb[14].mxu0 }
 0x4e5   :  { %v2440_v29 = vpop.f32.mrb[15].mxu0 }
 0x4e6   :  { %v2501_v35 = vcombine.low %v2438_v23, %v2440_v29  ;;  %v2502_v43 = vcombine.high %v2438_v23, %v2440_v29 }
 0x4e8   :  { %v2509_v41 = vrot.slane %v2501_v35, %v9671_v47  ;;  %v2516_v38 = vrot.slane %v2502_v43, %v9671_v47  ;;  %7964 = vst.sshfl [vmem:[#allocation4 + $0x20] sm:$0x33 pattern:$0x76325410] %v2501_v35 }
 0x4e9   :  { %7965 = vst.sshfl [vmem:[#allocation4 + $0x28] sm:$0x33 pattern:$0x76325410] %v2502_v43 }
 0x4ea   :  { %v2517_v49 = vcombine.high %v2509_v41, %v2509_v41  ;;  %v2518_v39 = vcombine.high %v2516_v38, %v2516_v38 }
 0x4ec   :  { %2573 = vst [vmem:[#allocation4 + $0x24] sm:$0xf] %v2517_v49  ;;  %2575 = vst [vmem:[#allocation4 + $0x2c] sm:$0xf] %v2518_v39 }
 0x510   :  { %v2444_v57 = vpop.f32.mrb[16].mxu0 }
 0x511   :  { %v2446_v12 = vpop.f32.mrb[17].mxu0 }
 0x512   :  { %v2519_v32 = vcombine.low %v2444_v57, %v2446_v12  ;;  %v2520_v22 = vcombine.high %v2444_v57, %v2446_v12  ;;  %v2930_v57 = vsub.s32 0, %v9634_v61  ;;  %v2934_v12 = vsub.s32 1, %v9634_v61 }
 0x514   :  { %v2527_v24 = vrot.slane %v2519_v32, %v9671_v47  ;;  %v2534_v60 = vrot.slane %v2520_v22, %v9671_v47  ;;  %7966 = vst.sshfl [vmem:[#allocation4 + $0x30] sm:$0x33 pattern:$0x76325410] %v2519_v32  ;;  %v2836_v32 = vld [vmem:[%s11471_s8] sm:$0x3] }
 0x515   :  { %7967 = vst.sshfl [vmem:[#allocation4 + $0x38] sm:$0x33 pattern:$0x76325410] %v2520_v22 }
 0x516   :  { %v2535_v30 = vcombine.high %v2527_v24, %v2527_v24  ;;  %v2536_v50 = vcombine.high %v2534_v60, %v2534_v60  ;;  %v2931_v24 = vrot.slane %v2836_v32, %v2930_v57  ;;  %v2935_v60 = vrot.slane %v2836_v32, %v2934_v12 }
 0x518   :  { %2577 = vst [vmem:[#allocation4 + $0x34] sm:$0xf] %v2535_v30  ;;  %2579 = vst [vmem:[#allocation4 + $0x3c] sm:$0xf] %v2536_v50  ;;  %v2936_v30 = vcombine.low %v2931_v24, %v2935_v60  ;;  %v2924_v50 = vrot.slane %v2917_v62, %v9671_v47 }
 0x528   :  { %v2450_v14 = vpop.f32.mrb[18].mxu0 }
 0x529   :  { %v2452_v21 = vpop.f32.mrb[19].mxu0 }
 0x52a   :  { %v2537_v28 = vcombine.low %v2450_v14, %v2452_v21  ;;  %v2837_v14 = vld [vmem:[#allocation4] sm:$0xf] }
 0x52c   :  { %v2544_v36 = vrot.slane %v2537_v28, %v9671_v47  ;;  %7968 = vst.sshfl [vmem:[#allocation4 + $0x40] sm:$0x33 pattern:$0x76325410] %v2537_v28  ;;  %v2664_v6 = vpop.f32.mrb[20].mxu0 }
 0x52d   :  { %v2666_v13 = vpop.f32.mrb[21].mxu0 }
 0x52e   :  { %v2545_v15 = vcombine.high %v2544_v36, %v2544_v36  ;;  %v2703_v46 = vcombine.low %v2664_v6, %v2666_v13  ;;  %v2704_v26 = vcombine.high %v2664_v6, %v2666_v13  ;;  %v10722_v36 = vrot.slane %v2936_v30, %v9671_v47 }
 0x530   :  { %2581 = vst [vmem:[#allocation4 + $0x44] sm:$0xf] %v2545_v15  ;;  %v2711_v33 = vrot.slane %v2703_v46, %v9671_v47  ;;  %v2718_v31 = vrot.slane %v2704_v26, %v9671_v47  ;;  %7974 = vst.sshfl [vmem:[#allocation5] sm:$0x33 pattern:$0x76325410] %v2703_v46 }
 0x531   :  { %7975 = vst.sshfl [vmem:[#allocation5 + $0x8] sm:$0x33 pattern:$0x76325410] %v2704_v26  ;;  %v2670_v3 = vpop.f32.mrb[22].mxu0 }
 0x532   :  { %v2672_v19 = vpop.f32.mrb[23].mxu0  ;;  %v2719_v17 = vcombine.high %v2711_v33, %v2711_v33  ;;  %v2720_v54 = vcombine.high %v2718_v31, %v2718_v31 }
 0x533   :  { %v2721_v44 = vcombine.low %v2670_v3, %v2672_v19  ;;  %v2722_v7 = vcombine.high %v2670_v3, %v2672_v19 }
 0x534   :  { %2803 = vst [vmem:[#allocation5 + $0x4] sm:$0xf] %v2719_v17  ;;  %2805 = vst [vmem:[#allocation5 + $0xc] sm:$0xf] %v2720_v54  ;;  %v2676_v55 = vpop.f32.mrb[24].mxu0 }
 0x535   :  { %v2729_v48 = vrot.slane %v2721_v44, %v9671_v47  ;;  %v2736_v27 = vrot.slane %v2722_v7, %v9671_v47  ;;  %7976 = vst.sshfl [vmem:[#allocation5 + $0x10] sm:$0x33 pattern:$0x76325410] %v2721_v44  ;;  %v2678_v53 = vpop.f32.mrb[25].mxu0 }
 0x536   :  { %7977 = vst.sshfl [vmem:[#allocation5 + $0x18] sm:$0x33 pattern:$0x76325410] %v2722_v7  ;;  %v2739_v25 = vcombine.low %v2676_v55, %v2678_v53  ;;  %v2740_v52 = vcombine.high %v2676_v55, %v2678_v53 }
 0x537   :  { %v2737_v2 = vcombine.high %v2729_v48, %v2729_v48  ;;  %v2738_v8 = vcombine.high %v2736_v27, %v2736_v27 }
 0x538   :  { %v2747_v37 = vrot.slane %v2739_v25, %v9671_v47  ;;  %v2754_v11 = vrot.slane %v2740_v52, %v9671_v47  ;;  %7978 = vst.sshfl [vmem:[#allocation5 + $0x20] sm:$0x33 pattern:$0x76325410] %v2739_v25  ;;  %v2682_v16 = vpop.f32.mrb[26].mxu0 }
 0x539   :  { %2807 = vst [vmem:[#allocation5 + $0x14] sm:$0xf] %v2737_v2  ;;  %2809 = vst [vmem:[#allocation5 + $0x1c] sm:$0xf] %v2738_v8  ;;  %v2684_v10 = vpop.f32.mrb[27].mxu0 }
 0x53a   :  { %7979 = vst.sshfl [vmem:[#allocation5 + $0x28] sm:$0x33 pattern:$0x76325410] %v2740_v52  ;;  %v2755_v5 = vcombine.high %v2747_v37, %v2747_v37  ;;  %v2756_v4 = vcombine.high %v2754_v11, %v2754_v11  ;;  %v2757_v34 = vcombine.low %v2682_v16, %v2684_v10  ;;  %v2758_v40 = vcombine.high %v2682_v16, %v2684_v10  ;;  %v2974_v8 = vld [vmem:[#allocation4 + $0x4] sm:$0xf] }
 0x53c   :  { %2811 = vst [vmem:[#allocation5 + $0x24] sm:$0xf] %v2755_v5  ;;  %2813 = vst [vmem:[#allocation5 + $0x2c] sm:$0xf] %v2756_v4  ;;  %v2765_v23 = vrot.slane %v2757_v34, %v9671_v47  ;;  %v2772_v29 = vrot.slane %v2758_v40, %v9671_v47  ;;  %v2688_v35 = vpop.f32.mrb[28].mxu0 }
 0x53d   :  { %7980 = vst.sshfl [vmem:[#allocation5 + $0x30] sm:$0x33 pattern:$0x76325410] %v2757_v34  ;;  %v2690_v43 = vpop.f32.mrb[29].mxu0 }
 0x53e   :  { %7981 = vst.sshfl [vmem:[#allocation5 + $0x38] sm:$0x33 pattern:$0x76325410] %v2758_v40  ;;  %v2773_v41 = vcombine.high %v2765_v23, %v2765_v23  ;;  %v2774_v38 = vcombine.high %v2772_v29, %v2772_v29  ;;  %v2775_v49 = vcombine.low %v2688_v35, %v2690_v43 }
 0x540   :  { %2815 = vst [vmem:[#allocation5 + $0x34] sm:$0xf] %v2773_v41  ;;  %2817 = vst [vmem:[#allocation5 + $0x3c] sm:$0xf] %v2774_v38  ;;  %v2782_v39 = vrot.slane %v2775_v49, %v9671_v47 }
 0x541   :  { %7982 = vst.sshfl [vmem:[#allocation5 + $0x40] sm:$0x33 pattern:$0x76325410] %v2775_v49 }
 0x542   :  { %v2783_v22 = vcombine.high %v2782_v39, %v2782_v39 }
 0x544   :  { %2819 = vst [vmem:[#allocation5 + $0x44] sm:$0xf] %v2783_v22 }
 0x547   :  { %v3095_v24 = vld [vmem:[#allocation5 + $0x3c] sm:$0xf] }
 0x548   :  { %v2976_v55 = vld [vmem:[#allocation5 + $0x40] sm:$0xf] }
 0x549   :  { %v2977_v25 = vadd.f32 %v2976_v55, %v2974_v8 }
 0x54b   :  { %v2839_v21 = vld [vmem:[#allocation5 + $0x44] sm:$0xf] }
 0x54c   :  { %v2840_v28 = vadd.f32 %v2839_v21, %v2837_v14 }
 0x54e   :  { %v2926_v6 = vadd.f32 %v2924_v50, %v2840_v28  ;;  %v3093_v50 = vld [vmem:[#allocation4 + $0x8] sm:$0xf] }
 0x54f   :  { %v3096_v14 = vadd.f32 %v3095_v24, %v3093_v50 }
 0x550   :  { %v2945_v13 = vadd.f32 %v10722_v36, %v2926_v6 }
 0x552   :  { %8934 = vtanh.f32 %v2945_v13 }
 0x55c   :  { %v8935_v15 = vpop.eup %8934 }
 0x55d   :  { %2950 = vrot.lane.b32.xlu0 %v8935_v15, %s9215_s25  ;;  %v2947_v46 = vmul.f32 0.5, %v8935_v15  ;;  %v2957_v33 = vrot.slane %v8935_v15, 2 }
 0x55f   :  { %v2948_v26 = vadd.f32 0.5, %v2947_v46 }
 0x561   :  { %v2959_v31 = vmul.f32 %v2957_v33, %v2948_v26  ;;  %v2956_v42 = vmul.f32 0.0, %v2948_v26 }
 0x563   :  { %2961 = vrot.lane.b32.xlu1 %v2959_v31, %s9215_s25 }
 0x5cf   :  { %v2951_v19 = vpop.permute.xlu0 %2950 }
 0x5d0   :  { %v2952_v17 = vrot.slane %v2951_v19, 2 }
 0x5d2   :  { %v2954_v54 = vmul.f32 0.5, %v2952_v17 }
 0x5d4   :  { %v2955_v44 = vadd.f32 0.5, %v2954_v54 }
 0x5d5   :  { %v2962_v59 = vpop.permute.xlu1 %2961 }
 0x5d6   :  { %v2964_v62 = vadd.f32 %v2962_v59, %v2956_v42 }
 0x5d8   :  { %8936 = vtanh.f32 %v2964_v62 }
 0x5e2   :  { %v8937_v3 = vpop.eup %8936 }
 0x5e3   :  { %2967 = vrot.lane.b32.xlu1 %v8937_v3, %s9215_s25 }
 0x655   :  { %v2968_v7 = vpop.permute.xlu1 %2967 }
 0x656   :  { %v2970_v48 = vmul.f32 %v2968_v7, %v2955_v44 }
 0x658   :  { %2972 = vst.msk [vmem:[#allocation8] sm:$0x3] %vm2971_vm14, %v2970_v48  ;;  %7983 = vmatmul.mubr.msk.f32.vlgmr.msra.gmra.mrb[12].mxu1 %vm1832_vm12, %v2970_v48 }
 0x659   :  { %8303 = vmatpush1.bf16.msra.mxu1 %v10584_v20  ;;  %3164 = vmatprep.mubr.f32.mxu1 %v9204_v0 }
 0x65a   :  { %8305 = vmatprep.subr.bf16.mxu1 %v10596_v45 }
 0x65d   :  { %8307 = vmatpush1.bf16.msra.mxu1 %v10601_v63 }
 0x65e   :  { %8309 = vmatprep.subr.bf16.mxu1 %v10615_v58 }
 0x661   :  { %8311 = vmatpush1.bf16.msra.mxu1 %v10626_v51 }
 0x662   :  { %8313 = vmatprep.subr.bf16.mxu1 %v10628_v1 }
 0x665   :  { %8315 = vmatpush1.bf16.msra.mxu1 %v10639_v18 }
 0x666   :  { %8333 = vmatprep.subr.bf16.mxu1 %v10574_v9 }
 0x72b   :  { %v3047_v27 = vpop.f32.mrb[12].mxu1 }
 0x72c   :  { %v3049_v53 = vpop.f32.mrb[13].mxu1 }
 0x72d   :  { %v3054_v2 = vcombine.low %v3047_v27, %v3049_v53  ;;  %v3214_v27 = vld [vmem:[#allocation5 + $0x38] sm:$0xf] }
 0x72f   :  { %v3061_v52 = vrot.slane %v3054_v2, %v9671_v47  ;;  %v3212_v2 = vld [vmem:[#allocation4 + $0xc] sm:$0xf] }
 0x730   :  { %v3215_v8 = vadd.f32 %v3214_v27, %v3212_v2 }
 0x731   :  { %v3063_v37 = vadd.f32 %v3061_v52, %v2977_v25 }
 0x733   :  { %v3064_v11 = vadd.f32 %v3063_v37, %v10722_v36 }
 0x735   :  { %8938 = vtanh.f32 %v3064_v11 }
 0x73f   :  { %v8939_v16 = vpop.eup %8938 }
 0x740   :  { %3069 = vrot.lane.b32.xlu1 %v8939_v16, %s9215_s25  ;;  %v3066_v10 = vmul.f32 0.5, %v8939_v16  ;;  %v3076_v4 = vrot.slane %v8939_v16, 2 }
 0x742   :  { %v3067_v5 = vadd.f32 0.5, %v3066_v10 }
 0x744   :  { %v3078_v34 = vmul.f32 %v3076_v4, %v3067_v5  ;;  %v3075_v40 = vmul.f32 %v3067_v5, %v2964_v62 }
 0x746   :  { %3080 = vrot.lane.b32.xlu0 %v3078_v34, %s9215_s25 }
 0x7b2   :  { %v3070_v43 = vpop.permute.xlu1 %3069 }
 0x7b3   :  { %v3071_v41 = vrot.slane %v3070_v43, 2 }
 0x7b5   :  { %v3073_v38 = vmul.f32 0.5, %v3071_v41 }
 0x7b7   :  { %v3074_v49 = vadd.f32 0.5, %v3073_v38 }
 0x7b8   :  { %v3081_v23 = vpop.permute.xlu0 %3080 }
 0x7b9   :  { %v3083_v29 = vadd.f32 %v3081_v23, %v3075_v40 }
 0x7bb   :  { %8940 = vtanh.f32 %v3083_v29 }
 0x7c5   :  { %v8941_v35 = vpop.eup %8940 }
 0x7c6   :  { %3086 = vrot.lane.b32.xlu0 %v8941_v35, %s9215_s25 }
 0x838   :  { %v3087_v39 = vpop.permute.xlu0 %3086 }
 0x839   :  { %v3089_v32 = vmul.f32 %v3087_v39, %v3074_v49 }
 0x83b   :  { %3091 = vst.msk [vmem:[#allocation8 + $0x2] sm:$0x3] %vm2971_vm14, %v3089_v32  ;;  %7984 = vmatmul.mubr.msk.f32.vlgmr.msra.gmra.mrb[14].mxu1 %vm1832_vm12, %v3089_v32 }
 0x83c   :  { %8335 = vmatpush1.bf16.msra.mxu1 %v10584_v20  ;;  %3402 = vmatprep.mubr.f32.mxu1 %v9204_v0 }
 0x83d   :  { %8337 = vmatprep.subr.bf16.mxu1 %v10596_v45 }
 0x840   :  { %8339 = vmatpush1.bf16.msra.mxu1 %v10601_v63 }
 0x841   :  { %8341 = vmatprep.subr.bf16.mxu1 %v10615_v58 }
 0x844   :  { %8343 = vmatpush1.bf16.msra.mxu1 %v10626_v51 }
 0x845   :  { %8345 = vmatprep.subr.bf16.mxu1 %v10628_v1 }
 0x848   :  { %8347 = vmatpush1.bf16.msra.mxu1 %v10639_v18 }
 0x849   :  { %8365 = vmatprep.subr.bf16.mxu1 %v10574_v9 }
 0x90e   :  { %v3166_v22 = vpop.f32.mrb[14].mxu1 }
 0x90f   :  { %v3168_v60 = vpop.f32.mrb[15].mxu1 }
 0x910   :  { %v3173_v30 = vcombine.low %v3166_v22, %v3168_v60  ;;  %v3333_v22 = vld [vmem:[#allocation5 + $0x34] sm:$0xf] }
 0x912   :  { %v3180_v21 = vrot.slane %v3173_v30, %v9671_v47  ;;  %v3331_v30 = vld [vmem:[#allocation4 + $0x10] sm:$0xf] }
 0x913   :  { %v3334_v50 = vadd.f32 %v3333_v22, %v3331_v30 }
 0x914   :  { %v3182_v28 = vadd.f32 %v3180_v21, %v3096_v14 }
 0x916   :  { %v3183_v6 = vadd.f32 %v3182_v28, %v10722_v36 }
 0x918   :  { %8942 = vtanh.f32 %v3183_v6 }
 0x922   :  { %v8943_v13 = vpop.eup %8942 }
 0x923   :  { %3188 = vrot.lane.b32.xlu0 %v8943_v13, %s9215_s25  ;;  %v3185_v15 = vmul.f32 0.5, %v8943_v13  ;;  %v3195_v26 = vrot.slane %v8943_v13, 2 }
 0x925   :  { %v3186_v46 = vadd.f32 0.5, %v3185_v15 }
 0x927   :  { %v3197_v33 = vmul.f32 %v3195_v26, %v3186_v46  ;;  %v3194_v31 = vmul.f32 %v3186_v46, %v3083_v29 }
 0x929   :  { %3199 = vrot.lane.b32.xlu1 %v3197_v33, %s9215_s25 }
 0x995   :  { %v3189_v3 = vpop.permute.xlu0 %3188 }
 0x996   :  { %v3190_v19 = vrot.slane %v3189_v3, 2 }
 0x998   :  { %v3192_v17 = vmul.f32 0.5, %v3190_v19 }
 0x99a   :  { %v3193_v54 = vadd.f32 0.5, %v3192_v17 }
 0x99b   :  { %v3200_v42 = vpop.permute.xlu1 %3199 }
 0x99c   :  { %v3202_v59 = vadd.f32 %v3200_v42, %v3194_v31 }
 0x99e   :  { %8944 = vtanh.f32 %v3202_v59 }
 0x9a8   :  { %v8945_v62 = vpop.eup %8944 }
 0x9a9   :  { %3205 = vrot.lane.b32.xlu1 %v8945_v62, %s9215_s25 }
 0xa1b   :  { %v3206_v44 = vpop.permute.xlu1 %3205 }
 0xa1c   :  { %v3208_v7 = vmul.f32 %v3206_v44, %v3193_v54 }
 0xa1e   :  { %3210 = vst.msk [vmem:[#allocation8 + $0x4] sm:$0x3] %vm2971_vm14, %v3208_v7  ;;  %7985 = vmatmul.mubr.msk.f32.vlgmr.msra.gmra.mrb[30].mxu0 %vm1832_vm12, %v3208_v7 }
 0xa1f   :  { %8351 = vmatpush1.bf16.msra.mxu0 %v10584_v20  ;;  %3521 = vmatprep.mubr.f32.mxu0 %v9204_v0 }
 0xa20   :  { %8353 = vmatprep.subr.bf16.mxu0 %v10596_v45 }
 0xa23   :  { %8355 = vmatpush1.bf16.msra.mxu0 %v10601_v63 }
 0xa24   :  { %8357 = vmatprep.subr.bf16.mxu0 %v10615_v58 }
 0xa27   :  { %8359 = vmatpush1.bf16.msra.mxu0 %v10626_v51 }
 0xa28   :  { %8361 = vmatprep.subr.bf16.mxu0 %v10628_v1 }
 0xa2b   :  { %8363 = vmatpush1.bf16.msra.mxu0 %v10639_v18 }
 0xa2c   :  { %8381 = vmatprep.subr.bf16.mxu0 %v10574_v9 }
 0xaf1   :  { %v3285_v48 = vpop.f32.mrb[30].mxu0 }
 0xaf2   :  { %v3287_v55 = vpop.f32.mrb[31].mxu0 }
 0xaf3   :  { %v3292_v53 = vcombine.low %v3285_v48, %v3287_v55  ;;  %v3452_v48 = vld [vmem:[#allocation5 + $0x30] sm:$0xf] }
 0xaf5   :  { %v3299_v25 = vrot.slane %v3292_v53, %v9671_v47  ;;  %v3450_v53 = vld [vmem:[#allocation4 + $0x14] sm:$0xf] }
 0xaf6   :  { %v3453_v2 = vadd.f32 %v3452_v48, %v3450_v53 }
 0xaf7   :  { %v3301_v52 = vadd.f32 %v3299_v25, %v3215_v8 }
 0xaf9   :  { %v3302_v37 = vadd.f32 %v3301_v52, %v10722_v36 }
 0xafb   :  { %8946 = vtanh.f32 %v3302_v37 }
 0xb05   :  { %v8947_v11 = vpop.eup %8946 }
 0xb06   :  { %3307 = vrot.lane.b32.xlu1 %v8947_v11, %s9215_s25  ;;  %v3304_v16 = vmul.f32 0.5, %v8947_v11  ;;  %v3314_v5 = vrot.slane %v8947_v11, 2 }
 0xb08   :  { %v3305_v10 = vadd.f32 0.5, %v3304_v16 }
 0xb0a   :  { %v3316_v4 = vmul.f32 %v3314_v5, %v3305_v10  ;;  %v3313_v34 = vmul.f32 %v3305_v10, %v3202_v59 }
 0xb0c   :  { %3318 = vrot.lane.b32.xlu0 %v3316_v4, %s9215_s25 }
 0xb78   :  { %v3308_v35 = vpop.permute.xlu1 %3307 }
 0xb79   :  { %v3309_v43 = vrot.slane %v3308_v35, 2 }
 0xb7b   :  { %v3311_v41 = vmul.f32 0.5, %v3309_v43 }
 0xb7d   :  { %v3312_v38 = vadd.f32 0.5, %v3311_v41 }
 0xb7e   :  { %v3319_v40 = vpop.permute.xlu0 %3318 }
 0xb7f   :  { %v3321_v23 = vadd.f32 %v3319_v40, %v3313_v34 }
 0xb81   :  { %8948 = vtanh.f32 %v3321_v23 }
 0xb8b   :  { %v8949_v29 = vpop.eup %8948 }
 0xb8c   :  { %3324 = vrot.lane.b32.xlu0 %v8949_v29, %s9215_s25 }
 0xbfe   :  { %v3325_v49 = vpop.permute.xlu0 %3324 }
 0xbff   :  { %v3327_v39 = vmul.f32 %v3325_v49, %v3312_v38 }
 0xc01   :  { %3329 = vst.msk [vmem:[#allocation8 + $0x6] sm:$0x3] %vm2971_vm14, %v3327_v39  ;;  %7986 = vmatmul.mubr.msk.f32.vlgmr.msra.gmra.mrb[16].mxu1 %vm1832_vm12, %v3327_v39 }
 0xc02   :  { %8367 = vmatpush1.bf16.msra.mxu1 %v10584_v20  ;;  %3640 = vmatprep.mubr.f32.mxu1 %v9204_v0 }
 0xc03   :  { %8369 = vmatprep.subr.bf16.mxu1 %v10596_v45 }
 0xc06   :  { %8371 = vmatpush1.bf16.msra.mxu1 %v10601_v63 }
 0xc07   :  { %8373 = vmatprep.subr.bf16.mxu1 %v10615_v58 }
 0xc0a   :  { %8375 = vmatpush1.bf16.msra.mxu1 %v10626_v51 }
 0xc0b   :  { %8377 = vmatprep.subr.bf16.mxu1 %v10628_v1 }
 0xc0e   :  { %8379 = vmatpush1.bf16.msra.mxu1 %v10639_v18 }
 0xc0f   :  { %8397 = vmatprep.subr.bf16.mxu1 %v10574_v9 }
 0xcd4   :  { %v3404_v32 = vpop.f32.mrb[16].mxu1 }
 0xcd5   :  { %v3406_v24 = vpop.f32.mrb[17].mxu1 }
 0xcd6   :  { %v3411_v60 = vcombine.low %v3404_v32, %v3406_v24  ;;  %v3571_v32 = vld [vmem:[#allocation5 + $0x2c] sm:$0xf] }
 0xcd8   :  { %v3418_v14 = vrot.slane %v3411_v60, %v9671_v47  ;;  %v3569_v60 = vld [vmem:[#allocation4 + $0x18] sm:$0xf] }
 0xcd9   :  { %v3572_v30 = vadd.f32 %v3571_v32, %v3569_v60 }
 0xcda   :  { %v3420_v21 = vadd.f32 %v3418_v14, %v3334_v50 }
 0xcdc   :  { %v3421_v28 = vadd.f32 %v3420_v21, %v10722_v36 }
 0xcde   :  { %8950 = vtanh.f32 %v3421_v28 }
 0xce8   :  { %v8951_v6 = vpop.eup %8950 }
 0xce9   :  { %3426 = vrot.lane.b32.xlu0 %v8951_v6, %s9215_s25  ;;  %v3423_v13 = vmul.f32 0.5, %v8951_v6  ;;  %v3433_v46 = vrot.slane %v8951_v6, 2 }
 0xceb   :  { %v3424_v15 = vadd.f32 0.5, %v3423_v13 }
 0xced   :  { %v3435_v26 = vmul.f32 %v3433_v46, %v3424_v15  ;;  %v3432_v33 = vmul.f32 %v3424_v15, %v3321_v23 }
 0xcef   :  { %3437 = vrot.lane.b32.xlu1 %v3435_v26, %s9215_s25 }
 0xd5b   :  { %v3427_v62 = vpop.permute.xlu0 %3426 }
 0xd5c   :  { %v3428_v3 = vrot.slane %v3427_v62, 2 }
 0xd5e   :  { %v3430_v19 = vmul.f32 0.5, %v3428_v3 }
 0xd60   :  { %v3431_v17 = vadd.f32 0.5, %v3430_v19 }
 0xd61   :  { %v3438_v31 = vpop.permute.xlu1 %3437 }
 0xd62   :  { %v3440_v42 = vadd.f32 %v3438_v31, %v3432_v33 }
 0xd64   :  { %8952 = vtanh.f32 %v3440_v42 }
 0xd6e   :  { %v8953_v59 = vpop.eup %8952 }
 0xd6f   :  { %3443 = vrot.lane.b32.xlu1 %v8953_v59, %s9215_s25 }
 0xde1   :  { %v3444_v54 = vpop.permute.xlu1 %3443 }
 0xde2   :  { %v3446_v44 = vmul.f32 %v3444_v54, %v3431_v17 }
 0xde4   :  { %3448 = vst.msk [vmem:[#allocation8 + $0x8] sm:$0x3] %vm2971_vm14, %v3446_v44  ;;  %7987 = vmatmul.mubr.msk.f32.vlgmr.msra.gmra.mrb[32].mxu0 %vm1832_vm12, %v3446_v44 }
 0xde5   :  { %8383 = vmatpush1.bf16.msra.mxu0 %v10584_v20  ;;  %3759 = vmatprep.mubr.f32.mxu0 %v9204_v0 }
 0xde6   :  { %8385 = vmatprep.subr.bf16.mxu0 %v10596_v45 }
 0xde9   :  { %8387 = vmatpush1.bf16.msra.mxu0 %v10601_v63 }
 0xdea   :  { %8389 = vmatprep.subr.bf16.mxu0 %v10615_v58 }
 0xded   :  { %8391 = vmatpush1.bf16.msra.mxu0 %v10626_v51 }
 0xdee   :  { %8393 = vmatprep.subr.bf16.mxu0 %v10628_v1 }
 0xdf1   :  { %8395 = vmatpush1.bf16.msra.mxu0 %v10639_v18 }
 0xdf2   :  { %8413 = vmatprep.subr.bf16.mxu0 %v10574_v9 }
 0xeb7   :  { %v3523_v7 = vpop.f32.mrb[32].mxu0 }
 0xeb8   :  { %v3525_v27 = vpop.f32.mrb[33].mxu0 }
 0xeb9   :  { %v3530_v55 = vcombine.low %v3523_v7, %v3525_v27  ;;  %v3690_v7 = vld [vmem:[#allocation5 + $0x28] sm:$0xf] }
 0xebb   :  { %v3537_v8 = vrot.slane %v3530_v55, %v9671_v47  ;;  %v3688_v55 = vld [vmem:[#allocation4 + $0x1c] sm:$0xf] }
 0xebc   :  { %v3691_v53 = vadd.f32 %v3690_v7, %v3688_v55 }
 0xebd   :  { %v3539_v25 = vadd.f32 %v3537_v8, %v3453_v2 }
 0xebf   :  { %v3540_v52 = vadd.f32 %v3539_v25, %v10722_v36 }
 0xec1   :  { %8954 = vtanh.f32 %v3540_v52 }
 0xecb   :  { %v8955_v37 = vpop.eup %8954 }
 0xecc   :  { %3545 = vrot.lane.b32.xlu1 %v8955_v37, %s9215_s25  ;;  %v3542_v11 = vmul.f32 0.5, %v8955_v37  ;;  %v3552_v10 = vrot.slane %v8955_v37, 2 }
 0xece   :  { %v3543_v16 = vadd.f32 0.5, %v3542_v11 }
 0xed0   :  { %v3554_v5 = vmul.f32 %v3552_v10, %v3543_v16  ;;  %v3551_v4 = vmul.f32 %v3543_v16, %v3440_v42 }
 0xed2   :  { %3556 = vrot.lane.b32.xlu0 %v3554_v5, %s9215_s25 }
 0xf3e   :  { %v3546_v29 = vpop.permute.xlu1 %3545 }
 0xf3f   :  { %v3547_v35 = vrot.slane %v3546_v29, 2 }
 0xf41   :  { %v3549_v43 = vmul.f32 0.5, %v3547_v35 }
 0xf43   :  { %v3550_v41 = vadd.f32 0.5, %v3549_v43 }
 0xf44   :  { %v3557_v34 = vpop.permute.xlu0 %3556 }
 0xf45   :  { %v3559_v40 = vadd.f32 %v3557_v34, %v3551_v4 }
 0xf47   :  { %8956 = vtanh.f32 %v3559_v40 }
 0xf51   :  { %v8957_v23 = vpop.eup %8956 }
 0xf52   :  { %3562 = vrot.lane.b32.xlu0 %v8957_v23, %s9215_s25 }
 0xfc4   :  { %v3563_v38 = vpop.permute.xlu0 %3562 }
 0xfc5   :  { %v3565_v49 = vmul.f32 %v3563_v38, %v3550_v41 }
 0xfc7   :  { %3567 = vst.msk [vmem:[#allocation8 + $0xa] sm:$0x3] %vm2971_vm14, %v3565_v49  ;;  %7988 = vmatmul.mubr.msk.f32.vlgmr.msra.gmra.mrb[18].mxu1 %vm1832_vm12, %v3565_v49 }
 0xfc8   :  { %8399 = vmatpush1.bf16.msra.mxu1 %v10584_v20  ;;  %3878 = vmatprep.mubr.f32.mxu1 %v9204_v0 }
 0xfc9   :  { %8401 = vmatprep.subr.bf16.mxu1 %v10596_v45 }
 0xfcc   :  { %8403 = vmatpush1.bf16.msra.mxu1 %v10601_v63 }
 0xfcd   :  { %8405 = vmatprep.subr.bf16.mxu1 %v10615_v58 }
 0xfd0   :  { %8407 = vmatpush1.bf16.msra.mxu1 %v10626_v51 }
 0xfd1   :  { %8409 = vmatprep.subr.bf16.mxu1 %v10628_v1 }
 0xfd4   :  { %8411 = vmatpush1.bf16.msra.mxu1 %v10639_v18 }
 0xfd5   :  { %8429 = vmatprep.subr.bf16.mxu1 %v10574_v9 }
0x109a   :  { %v3642_v39 = vpop.f32.mrb[18].mxu1 }
0x109b   :  { %v3644_v22 = vpop.f32.mrb[19].mxu1 }
0x109c   :  { %v3649_v24 = vcombine.low %v3642_v39, %v3644_v22  ;;  %v3809_v39 = vld [vmem:[#allocation5 + $0x24] sm:$0xf] }
0x109e   :  { %v3656_v50 = vrot.slane %v3649_v24, %v9671_v47  ;;  %v3807_v24 = vld [vmem:[#allocation4 + $0x20] sm:$0xf] }
0x109f   :  { %v3810_v60 = vadd.f32 %v3809_v39, %v3807_v24 }
0x10a0   :  { %v3658_v14 = vadd.f32 %v3656_v50, %v3572_v30 }
0x10a2   :  { %v3659_v21 = vadd.f32 %v3658_v14, %v10722_v36 }
0x10a4   :  { %8958 = vtanh.f32 %v3659_v21 }
0x10ae   :  { %v8959_v28 = vpop.eup %8958 }
0x10af   :  { %3664 = vrot.lane.b32.xlu0 %v8959_v28, %s9215_s25  ;;  %v3661_v6 = vmul.f32 0.5, %v8959_v28  ;;  %v3671_v15 = vrot.slane %v8959_v28, 2 }
0x10b1   :  { %v3662_v13 = vadd.f32 0.5, %v3661_v6 }
0x10b3   :  { %v3673_v46 = vmul.f32 %v3671_v15, %v3662_v13  ;;  %v3670_v26 = vmul.f32 %v3662_v13, %v3559_v40 }
0x10b5   :  { %3675 = vrot.lane.b32.xlu1 %v3673_v46, %s9215_s25 }
0x1121   :  { %v3665_v59 = vpop.permute.xlu0 %3664 }
0x1122   :  { %v3666_v62 = vrot.slane %v3665_v59, 2 }
0x1124   :  { %v3668_v3 = vmul.f32 0.5, %v3666_v62 }
0x1126   :  { %v3669_v19 = vadd.f32 0.5, %v3668_v3 }
0x1127   :  { %v3676_v33 = vpop.permute.xlu1 %3675 }
0x1128   :  { %v3678_v31 = vadd.f32 %v3676_v33, %v3670_v26 }
0x112a   :  { %8960 = vtanh.f32 %v3678_v31 }
0x1134   :  { %v8961_v42 = vpop.eup %8960 }
0x1135   :  { %3681 = vrot.lane.b32.xlu1 %v8961_v42, %s9215_s25 }
0x11a7   :  { %v3682_v17 = vpop.permute.xlu1 %3681 }
0x11a8   :  { %v3684_v54 = vmul.f32 %v3682_v17, %v3669_v19 }
0x11aa   :  { %3686 = vst.msk [vmem:[#allocation8 + $0xc] sm:$0x3] %vm2971_vm14, %v3684_v54  ;;  %7989 = vmatmul.mubr.msk.f32.vlgmr.msra.gmra.mrb[34].mxu0 %vm1832_vm12, %v3684_v54 }
0x11ab   :  { %8415 = vmatpush1.bf16.msra.mxu0 %v10584_v20  ;;  %3997 = vmatprep.mubr.f32.mxu0 %v9204_v0 }
0x11ac   :  { %8417 = vmatprep.subr.bf16.mxu0 %v10596_v45 }
0x11af   :  { %8419 = vmatpush1.bf16.msra.mxu0 %v10601_v63 }
0x11b0   :  { %8421 = vmatprep.subr.bf16.mxu0 %v10615_v58 }
0x11b3   :  { %8423 = vmatpush1.bf16.msra.mxu0 %v10626_v51 }
0x11b4   :  { %8425 = vmatprep.subr.bf16.mxu0 %v10628_v1 }
0x11b7   :  { %8427 = vmatpush1.bf16.msra.mxu0 %v10639_v18 }
0x11b8   :  { %8445 = vmatprep.subr.bf16.mxu0 %v10574_v9 }
0x127d   :  { %v3761_v44 = vpop.f32.mrb[34].mxu0 }
0x127e   :  { %v3763_v48 = vpop.f32.mrb[35].mxu0 }
0x127f   :  { %v3768_v27 = vcombine.low %v3761_v44, %v3763_v48  ;;  %v3928_v44 = vld [vmem:[#allocation5 + $0x20] sm:$0xf] }
0x1281   :  { %v3775_v2 = vrot.slane %v3768_v27, %v9671_v47  ;;  %v3926_v27 = vld [vmem:[#allocation4 + $0x24] sm:$0xf] }
0x1282   :  { %v3929_v55 = vadd.f32 %v3928_v44, %v3926_v27 }
0x1283   :  { %v3777_v8 = vadd.f32 %v3775_v2, %v3691_v53 }
0x1285   :  { %v3778_v25 = vadd.f32 %v3777_v8, %v10722_v36 }
0x1287   :  { %8962 = vtanh.f32 %v3778_v25 }
0x1291   :  { %v8963_v52 = vpop.eup %8962 }
0x1292   :  { %3783 = vrot.lane.b32.xlu1 %v8963_v52, %s9215_s25  ;;  %v3780_v37 = vmul.f32 0.5, %v8963_v52  ;;  %v3790_v16 = vrot.slane %v8963_v52, 2 }
0x1294   :  { %v3781_v11 = vadd.f32 0.5, %v3780_v37 }
0x1296   :  { %v3792_v10 = vmul.f32 %v3790_v16, %v3781_v11  ;;  %v3789_v5 = vmul.f32 %v3781_v11, %v3678_v31 }
0x1298   :  { %3794 = vrot.lane.b32.xlu0 %v3792_v10, %s9215_s25 }
0x1304   :  { %v3784_v23 = vpop.permute.xlu1 %3783 }
0x1305   :  { %v3785_v29 = vrot.slane %v3784_v23, 2 }
0x1307   :  { %v3787_v35 = vmul.f32 0.5, %v3785_v29 }
0x1309   :  { %v3788_v43 = vadd.f32 0.5, %v3787_v35 }
0x130a   :  { %v3795_v4 = vpop.permute.xlu0 %3794 }
0x130b   :  { %v3797_v34 = vadd.f32 %v3795_v4, %v3789_v5 }
0x130d   :  { %8964 = vtanh.f32 %v3797_v34 }
0x1317   :  { %v8965_v40 = vpop.eup %8964 }
0x1318   :  { %3800 = vrot.lane.b32.xlu0 %v8965_v40, %s9215_s25 }
0x138a   :  { %v3801_v41 = vpop.permute.xlu0 %3800 }
0x138b   :  { %v3803_v38 = vmul.f32 %v3801_v41, %v3788_v43 }
0x138d   :  { %3805 = vst.msk [vmem:[#allocation8 + $0xe] sm:$0x3] %vm2971_vm14, %v3803_v38  ;;  %7990 = vmatmul.mubr.msk.f32.vlgmr.msra.gmra.mrb[20].mxu1 %vm1832_vm12, %v3803_v38 }
0x138e   :  { %8431 = vmatpush1.bf16.msra.mxu1 %v10584_v20  ;;  %4116 = vmatprep.mubr.f32.mxu1 %v9204_v0 }
0x138f   :  { %8433 = vmatprep.subr.bf16.mxu1 %v10596_v45 }
0x1392   :  { %8435 = vmatpush1.bf16.msra.mxu1 %v10601_v63 }
0x1393   :  { %8437 = vmatprep.subr.bf16.mxu1 %v10615_v58 }
0x1396   :  { %8439 = vmatpush1.bf16.msra.mxu1 %v10626_v51 }
0x1397   :  { %8441 = vmatprep.subr.bf16.mxu1 %v10628_v1 }
0x139a   :  { %8443 = vmatpush1.bf16.msra.mxu1 %v10639_v18 }
0x139b   :  { %8461 = vmatprep.subr.bf16.mxu1 %v10574_v9 }
0x1460   :  { %v3880_v49 = vpop.f32.mrb[20].mxu1 }
0x1461   :  { %v3882_v32 = vpop.f32.mrb[21].mxu1 }
0x1462   :  { %v3887_v22 = vcombine.low %v3880_v49, %v3882_v32  ;;  %v4047_v49 = vld [vmem:[#allocation5 + $0x1c] sm:$0xf] }
0x1464   :  { %v3894_v30 = vrot.slane %v3887_v22, %v9671_v47  ;;  %v4045_v22 = vld [vmem:[#allocation4 + $0x28] sm:$0xf] }
0x1465   :  { %v4048_v24 = vadd.f32 %v4047_v49, %v4045_v22 }
0x1466   :  { %v3896_v50 = vadd.f32 %v3894_v30, %v3810_v60 }
0x1468   :  { %v3897_v14 = vadd.f32 %v3896_v50, %v10722_v36 }
0x146a   :  { %8966 = vtanh.f32 %v3897_v14 }
0x1474   :  { %v8967_v21 = vpop.eup %8966 }
0x1475   :  { %3902 = vrot.lane.b32.xlu0 %v8967_v21, %s9215_s25  ;;  %v3899_v28 = vmul.f32 0.5, %v8967_v21  ;;  %v3909_v13 = vrot.slane %v8967_v21, 2 }
0x1477   :  { %v3900_v6 = vadd.f32 0.5, %v3899_v28 }
0x1479   :  { %v3911_v15 = vmul.f32 %v3909_v13, %v3900_v6  ;;  %v3908_v46 = vmul.f32 %v3900_v6, %v3797_v34 }
0x147b   :  { %3913 = vrot.lane.b32.xlu1 %v3911_v15, %s9215_s25 }
0x14e7   :  { %v3903_v42 = vpop.permute.xlu0 %3902 }
0x14e8   :  { %v3904_v59 = vrot.slane %v3903_v42, 2 }
0x14ea   :  { %v3906_v62 = vmul.f32 0.5, %v3904_v59 }
0x14ec   :  { %v3907_v3 = vadd.f32 0.5, %v3906_v62 }
0x14ed   :  { %v3914_v26 = vpop.permute.xlu1 %3913 }
0x14ee   :  { %v3916_v33 = vadd.f32 %v3914_v26, %v3908_v46 }
0x14f0   :  { %8968 = vtanh.f32 %v3916_v33 }
0x14fa   :  { %v8969_v31 = vpop.eup %8968 }
0x14fb   :  { %3919 = vrot.lane.b32.xlu1 %v8969_v31, %s9215_s25 }
0x156d   :  { %v3920_v19 = vpop.permute.xlu1 %3919 }
0x156e   :  { %v3922_v17 = vmul.f32 %v3920_v19, %v3907_v3 }
0x1570   :  { %3924 = vst.msk [vmem:[#allocation8 + $0x10] sm:$0x3] %vm2971_vm14, %v3922_v17  ;;  %7991 = vmatmul.mubr.msk.f32.vlgmr.msra.gmra.mrb[36].mxu0 %vm1832_vm12, %v3922_v17 }
0x1571   :  { %8447 = vmatpush1.bf16.msra.mxu0 %v10584_v20  ;;  %4235 = vmatprep.mubr.f32.mxu0 %v9204_v0 }
0x1572   :  { %8449 = vmatprep.subr.bf16.mxu0 %v10596_v45 }
0x1575   :  { %8451 = vmatpush1.bf16.msra.mxu0 %v10601_v63 }
0x1576   :  { %8453 = vmatprep.subr.bf16.mxu0 %v10615_v58 }
0x1579   :  { %8455 = vmatpush1.bf16.msra.mxu0 %v10626_v51 }
0x157a   :  { %8457 = vmatprep.subr.bf16.mxu0 %v10628_v1 }
0x157d   :  { %8459 = vmatpush1.bf16.msra.mxu0 %v10639_v18 }
0x157e   :  { %8477 = vmatprep.subr.bf16.mxu0 %v10574_v9 }
0x1643   :  { %v3999_v54 = vpop.f32.mrb[36].mxu0 }
0x1644   :  { %v4001_v7 = vpop.f32.mrb[37].mxu0 }
0x1645   :  { %v4006_v48 = vcombine.low %v3999_v54, %v4001_v7  ;;  %v4166_v54 = vld [vmem:[#allocation5 + $0x18] sm:$0xf] }
0x1647   :  { %v4013_v53 = vrot.slane %v4006_v48, %v9671_v47  ;;  %v4164_v48 = vld [vmem:[#allocation4 + $0x2c] sm:$0xf] }
0x1648   :  { %v4167_v27 = vadd.f32 %v4166_v54, %v4164_v48 }
0x1649   :  { %v4015_v2 = vadd.f32 %v4013_v53, %v3929_v55 }
0x164b   :  { %v4016_v8 = vadd.f32 %v4015_v2, %v10722_v36 }
0x164d   :  { %8970 = vtanh.f32 %v4016_v8 }
0x1657   :  { %v8971_v25 = vpop.eup %8970 }
0x1658   :  { %4021 = vrot.lane.b32.xlu1 %v8971_v25, %s9215_s25  ;;  %v4018_v52 = vmul.f32 0.5, %v8971_v25  ;;  %v4028_v11 = vrot.slane %v8971_v25, 2 }
0x165a   :  { %v4019_v37 = vadd.f32 0.5, %v4018_v52 }
0x165c   :  { %v4030_v16 = vmul.f32 %v4028_v11, %v4019_v37  ;;  %v4027_v10 = vmul.f32 %v4019_v37, %v3916_v33 }
0x165e   :  { %4032 = vrot.lane.b32.xlu0 %v4030_v16, %s9215_s25 }
0x16ca   :  { %v4022_v40 = vpop.permute.xlu1 %4021 }
0x16cb   :  { %v4023_v23 = vrot.slane %v4022_v40, 2 }
0x16cd   :  { %v4025_v29 = vmul.f32 0.5, %v4023_v23 }
0x16cf   :  { %v4026_v35 = vadd.f32 0.5, %v4025_v29 }
0x16d0   :  { %v4033_v5 = vpop.permute.xlu0 %4032 }
0x16d1   :  { %v4035_v4 = vadd.f32 %v4033_v5, %v4027_v10 }
0x16d3   :  { %8972 = vtanh.f32 %v4035_v4 }
0x16dd   :  { %v8973_v34 = vpop.eup %8972 }
0x16de   :  { %4038 = vrot.lane.b32.xlu0 %v8973_v34, %s9215_s25 }
0x1750   :  { %v4039_v43 = vpop.permute.xlu0 %4038 }
0x1751   :  { %v4041_v41 = vmul.f32 %v4039_v43, %v4026_v35 }
0x1753   :  { %4043 = vst.msk [vmem:[#allocation8 + $0x12] sm:$0x3] %vm2971_vm14, %v4041_v41  ;;  %7992 = vmatmul.mubr.msk.f32.vlgmr.msra.gmra.mrb[22].mxu1 %vm1832_vm12, %v4041_v41 }
0x1754   :  { %8463 = vmatpush1.bf16.msra.mxu1 %v10584_v20  ;;  %4354 = vmatprep.mubr.f32.mxu1 %v9204_v0 }
0x1755   :  { %8465 = vmatprep.subr.bf16.mxu1 %v10596_v45 }
0x1758   :  { %8467 = vmatpush1.bf16.msra.mxu1 %v10601_v63 }
0x1759   :  { %8469 = vmatprep.subr.bf16.mxu1 %v10615_v58 }
0x175c   :  { %8471 = vmatpush1.bf16.msra.mxu1 %v10626_v51 }
0x175d   :  { %8473 = vmatprep.subr.bf16.mxu1 %v10628_v1 }
0x1760   :  { %8475 = vmatpush1.bf16.msra.mxu1 %v10639_v18 }
0x1761   :  { %8493 = vmatprep.subr.bf16.mxu1 %v10574_v9 }
0x1826   :  { %v4118_v38 = vpop.f32.mrb[22].mxu1 }
0x1827   :  { %v4120_v39 = vpop.f32.mrb[23].mxu1 }
0x1828   :  { %v4125_v32 = vcombine.low %v4118_v38, %v4120_v39  ;;  %v4285_v38 = vld [vmem:[#allocation5 + $0x14] sm:$0xf] }
0x182a   :  { %v4132_v60 = vrot.slane %v4125_v32, %v9671_v47  ;;  %v4283_v32 = vld [vmem:[#allocation4 + $0x30] sm:$0xf] }
0x182b   :  { %v4286_v22 = vadd.f32 %v4285_v38, %v4283_v32 }
0x182c   :  { %v4134_v30 = vadd.f32 %v4132_v60, %v4048_v24 }
0x182e   :  { %v4135_v50 = vadd.f32 %v4134_v30, %v10722_v36 }
0x1830   :  { %8974 = vtanh.f32 %v4135_v50 }
0x183a   :  { %v8975_v14 = vpop.eup %8974 }
0x183b   :  { %4140 = vrot.lane.b32.xlu0 %v8975_v14, %s9215_s25  ;;  %v4137_v21 = vmul.f32 0.5, %v8975_v14  ;;  %v4147_v6 = vrot.slane %v8975_v14, 2 }
0x183d   :  { %v4138_v28 = vadd.f32 0.5, %v4137_v21 }
0x183f   :  { %v4149_v13 = vmul.f32 %v4147_v6, %v4138_v28  ;;  %v4146_v15 = vmul.f32 %v4138_v28, %v4035_v4 }
0x1841   :  { %4151 = vrot.lane.b32.xlu1 %v4149_v13, %s9215_s25 }
0x18ad   :  { %v4141_v31 = vpop.permute.xlu0 %4140 }
0x18ae   :  { %v4142_v42 = vrot.slane %v4141_v31, 2 }
0x18b0   :  { %v4144_v59 = vmul.f32 0.5, %v4142_v42 }
0x18b2   :  { %v4145_v62 = vadd.f32 0.5, %v4144_v59 }
0x18b3   :  { %v4152_v46 = vpop.permute.xlu1 %4151 }
0x18b4   :  { %v4154_v26 = vadd.f32 %v4152_v46, %v4146_v15 }
0x18b6   :  { %8976 = vtanh.f32 %v4154_v26 }
0x18c0   :  { %v8977_v33 = vpop.eup %8976 }
0x18c1   :  { %4157 = vrot.lane.b32.xlu1 %v8977_v33, %s9215_s25 }
0x1933   :  { %v4158_v3 = vpop.permute.xlu1 %4157 }
0x1934   :  { %v4160_v19 = vmul.f32 %v4158_v3, %v4145_v62 }
0x1936   :  { %4162 = vst.msk [vmem:[#allocation8 + $0x14] sm:$0x3] %vm2971_vm14, %v4160_v19  ;;  %7993 = vmatmul.mubr.msk.f32.vlgmr.msra.gmra.mrb[38].mxu0 %vm1832_vm12, %v4160_v19 }
0x1937   :  { %8479 = vmatpush1.bf16.msra.mxu0 %v10584_v20  ;;  %4473 = vmatprep.mubr.f32.mxu0 %v9204_v0 }
0x1938   :  { %8481 = vmatprep.subr.bf16.mxu0 %v10596_v45 }
0x193b   :  { %8483 = vmatpush1.bf16.msra.mxu0 %v10601_v63 }
0x193c   :  { %8485 = vmatprep.subr.bf16.mxu0 %v10615_v58 }
0x193f   :  { %8487 = vmatpush1.bf16.msra.mxu0 %v10626_v51 }
0x1940   :  { %8489 = vmatprep.subr.bf16.mxu0 %v10628_v1 }
0x1943   :  { %8491 = vmatpush1.bf16.msra.mxu0 %v10639_v18 }
0x1944   :  { %8509 = vmatprep.subr.bf16.mxu0 %v10574_v9 }
0x1a09   :  { %v4237_v17 = vpop.f32.mrb[38].mxu0 }
0x1a0a   :  { %v4239_v44 = vpop.f32.mrb[39].mxu0 }
0x1a0b   :  { %v4244_v7 = vcombine.low %v4237_v17, %v4239_v44  ;;  %v4404_v17 = vld [vmem:[#allocation5 + $0x10] sm:$0xf] }
0x1a0d   :  { %v4251_v55 = vrot.slane %v4244_v7, %v9671_v47  ;;  %v4402_v7 = vld [vmem:[#allocation4 + $0x34] sm:$0xf] }
0x1a0e   :  { %v4405_v48 = vadd.f32 %v4404_v17, %v4402_v7 }
0x1a0f   :  { %v4253_v53 = vadd.f32 %v4251_v55, %v4167_v27 }
0x1a11   :  { %v4254_v2 = vadd.f32 %v4253_v53, %v10722_v36 }
0x1a13   :  { %8978 = vtanh.f32 %v4254_v2 }
0x1a1d   :  { %v8979_v8 = vpop.eup %8978 }
0x1a1e   :  { %4259 = vrot.lane.b32.xlu1 %v8979_v8, %s9215_s25  ;;  %v4256_v25 = vmul.f32 0.5, %v8979_v8  ;;  %v4266_v37 = vrot.slane %v8979_v8, 2 }
0x1a20   :  { %v4257_v52 = vadd.f32 0.5, %v4256_v25 }
0x1a22   :  { %v4268_v11 = vmul.f32 %v4266_v37, %v4257_v52  ;;  %v4265_v16 = vmul.f32 %v4257_v52, %v4154_v26 }
0x1a24   :  { %4270 = vrot.lane.b32.xlu0 %v4268_v11, %s9215_s25 }
0x1a90   :  { %v4260_v34 = vpop.permute.xlu1 %4259 }
0x1a91   :  { %v4261_v40 = vrot.slane %v4260_v34, 2 }
0x1a93   :  { %v4263_v23 = vmul.f32 0.5, %v4261_v40 }
0x1a95   :  { %v4264_v29 = vadd.f32 0.5, %v4263_v23 }
0x1a96   :  { %v4271_v10 = vpop.permute.xlu0 %4270 }
0x1a97   :  { %v4273_v5 = vadd.f32 %v4271_v10, %v4265_v16 }
0x1a99   :  { %8980 = vtanh.f32 %v4273_v5 }
0x1aa3   :  { %v8981_v4 = vpop.eup %8980 }
0x1aa4   :  { %4276 = vrot.lane.b32.xlu0 %v8981_v4, %s9215_s25 }
0x1b16   :  { %v4277_v35 = vpop.permute.xlu0 %4276 }
0x1b17   :  { %v4279_v43 = vmul.f32 %v4277_v35, %v4264_v29 }
0x1b19   :  { %4281 = vst.msk [vmem:[#allocation8 + $0x16] sm:$0x3] %vm2971_vm14, %v4279_v43  ;;  %7994 = vmatmul.mubr.msk.f32.vlgmr.msra.gmra.mrb[24].mxu1 %vm1832_vm12, %v4279_v43  ;;  %v4523_v43 = vld [vmem:[#allocation5 + $0xc] sm:$0xf] }
0x1b1a   :  { %8495 = vmatpush1.bf16.msra.mxu1 %v10584_v20  ;;  %4592 = vmatprep.mubr.f32.mxu1 %v9204_v0 }
0x1b1b   :  { %8497 = vmatprep.subr.bf16.mxu1 %v10596_v45 }
0x1b1e   :  { %8499 = vmatpush1.bf16.msra.mxu1 %v10601_v63 }
0x1b1f   :  { %8501 = vmatprep.subr.bf16.mxu1 %v10615_v58 }
0x1b22   :  { %8503 = vmatpush1.bf16.msra.mxu1 %v10626_v51 }
0x1b23   :  { %8505 = vmatprep.subr.bf16.mxu1 %v10628_v1 }
0x1b26   :  { %8507 = vmatpush1.bf16.msra.mxu1 %v10639_v18 }
0x1b27   :  { %8525 = vmatprep.subr.bf16.mxu1 %v10574_v9 }
0x1bec   :  { %v4356_v41 = vpop.f32.mrb[24].mxu1 }
0x1bed   :  { %v4358_v49 = vpop.f32.mrb[25].mxu1 }
0x1bee   :  { %v4363_v39 = vcombine.low %v4356_v41, %v4358_v49  ;;  %v4521_v49 = vld [vmem:[#allocation4 + $0x38] sm:$0xf] }
0x1bf0   :  { %v4370_v24 = vrot.slane %v4363_v39, %v9671_v47  ;;  %v4524_v39 = vadd.f32 %v4523_v43, %v4521_v49  ;;  %v5019_v43 = vld [vmem:[#allocation12 + $0x30] sm:$0xff] }
0x1bf2   :  { %v4372_v60 = vadd.f32 %v4370_v24, %v4286_v22 }
0x1bf4   :  { %v4373_v30 = vadd.f32 %v4372_v60, %v10722_v36 }
0x1bf6   :  { %8982 = vtanh.f32 %v4373_v30 }
0x1c00   :  { %v8983_v50 = vpop.eup %8982 }
0x1c01   :  { %4378 = vrot.lane.b32.xlu0 %v8983_v50, %s9215_s25  ;;  %v4375_v14 = vmul.f32 0.5, %v8983_v50  ;;  %v4385_v28 = vrot.slane %v8983_v50, 2 }
0x1c03   :  { %v4376_v21 = vadd.f32 0.5, %v4375_v14 }
0x1c05   :  { %v4387_v6 = vmul.f32 %v4385_v28, %v4376_v21  ;;  %v4384_v13 = vmul.f32 %v4376_v21, %v4273_v5 }
0x1c07   :  { %4389 = vrot.lane.b32.xlu1 %v4387_v6, %s9215_s25 }
0x1c73   :  { %v4379_v33 = vpop.permute.xlu0 %4378 }
0x1c74   :  { %v4380_v31 = vrot.slane %v4379_v33, 2 }
0x1c76   :  { %v4382_v42 = vmul.f32 0.5, %v4380_v31 }
0x1c78   :  { %v4383_v59 = vadd.f32 0.5, %v4382_v42 }
0x1c79   :  { %v4390_v15 = vpop.permute.xlu1 %4389 }
0x1c7a   :  { %v4392_v46 = vadd.f32 %v4390_v15, %v4384_v13 }
0x1c7c   :  { %8984 = vtanh.f32 %v4392_v46 }
0x1c86   :  { %v8985_v26 = vpop.eup %8984 }
0x1c87   :  { %4395 = vrot.lane.b32.xlu1 %v8985_v26, %s9215_s25 }
0x1cf9   :  { %v4396_v62 = vpop.permute.xlu1 %4395 }
0x1cfa   :  { %v4398_v3 = vmul.f32 %v4396_v62, %v4383_v59 }
0x1cfc   :  { %4400 = vst.msk [vmem:[#allocation8 + $0x18] sm:$0x3] %vm2971_vm14, %v4398_v3  ;;  %7995 = vmatmul.mubr.msk.f32.vlgmr.msra.gmra.mrb[40].mxu0 %vm1832_vm12, %v4398_v3  ;;  %v4642_v3 = vld [vmem:[#allocation5 + $0x8] sm:$0xf] }
0x1cfd   :  { %8511 = vmatpush1.bf16.msra.mxu0 %v10584_v20  ;;  %4711 = vmatprep.mubr.f32.mxu0 %v9204_v0 }
0x1cfe   :  { %8513 = vmatprep.subr.bf16.mxu0 %v10596_v45 }
0x1d01   :  { %8515 = vmatpush1.bf16.msra.mxu0 %v10601_v63 }
0x1d02   :  { %8517 = vmatprep.subr.bf16.mxu0 %v10615_v58 }
0x1d05   :  { %8519 = vmatpush1.bf16.msra.mxu0 %v10626_v51 }
0x1d06   :  { %8521 = vmatprep.subr.bf16.mxu0 %v10628_v1 }
0x1d09   :  { %8523 = vmatpush1.bf16.msra.mxu0 %v10639_v18 }
0x1d0a   :  { %8541 = vmatprep.subr.bf16.mxu0 %v10574_v9 }
0x1dcf   :  { %v4475_v19 = vpop.f32.mrb[40].mxu0 }
0x1dd0   :  { %v4477_v54 = vpop.f32.mrb[41].mxu0 }
0x1dd1   :  { %v4482_v44 = vcombine.low %v4475_v19, %v4477_v54  ;;  %v4640_v54 = vld [vmem:[#allocation4 + $0x3c] sm:$0xf] }
0x1dd3   :  { %v4489_v27 = vrot.slane %v4482_v44, %v9671_v47 }
0x1dd5   :  { %v4491_v55 = vadd.f32 %v4489_v27, %v4405_v48 }
0x1dd7   :  { %v4492_v53 = vadd.f32 %v4491_v55, %v10722_v36 }
0x1dd9   :  { %8986 = vtanh.f32 %v4492_v53  ;;  %v5014_v53 = vld [vmem:[#allocation12 + $0x8] sm:$0xff] }
0x1de3   :  { %v8987_v2 = vpop.eup %8986 }
0x1de4   :  { %4497 = vrot.lane.b32.xlu1 %v8987_v2, %s9215_s25  ;;  %v4494_v8 = vmul.f32 0.5, %v8987_v2  ;;  %v4504_v52 = vrot.slane %v8987_v2, 2  ;;  %v5016_v2 = vld [vmem:[#allocation12 + $0x18] sm:$0xff] }
0x1de6   :  { %v4495_v25 = vadd.f32 0.5, %v4494_v8  ;;  %v8556_v8 = vpack.c.bf16 %v5016_v2, %v5014_v53 }
0x1de8   :  { %v4506_v37 = vmul.f32 %v4504_v52, %v4495_v25  ;;  %v4503_v9 = vmul.f32 %v4495_v25, %v4392_v46 }
0x1dea   :  { %4508 = vrot.lane.b32.xlu0 %v4506_v37, %s9215_s25 }
0x1e56   :  { %v4498_v5 = vpop.permute.xlu1 %4497 }
0x1e57   :  { %v4499_v4 = vrot.slane %v4498_v5, 2  ;;  %v5020_v5 = vld [vmem:[#allocation12 + $0x38] sm:$0xff] }
0x1e59   :  { %v4501_v34 = vmul.f32 0.5, %v4499_v4 }
0x1e5b   :  { %v4502_v40 = vadd.f32 0.5, %v4501_v34 }
0x1e5c   :  { %v4509_v11 = vpop.permute.xlu0 %4508 }
0x1e5d   :  { %v4511_v16 = vadd.f32 %v4509_v11, %v4503_v9  ;;  %v5013_v11 = vld [vmem:[#allocation12] sm:$0xff] }
0x1e5f   :  { %8988 = vtanh.f32 %v4511_v16 }
0x1e69   :  { %v8989_v10 = vpop.eup %8988 }
0x1e6a   :  { %4514 = vrot.lane.b32.xlu0 %v8989_v10, %s9215_s25  ;;  %v5018_v10 = vld [vmem:[#allocation12 + $0x28] sm:$0xff] }
0x1edc   :  { %v4515_v23 = vpop.permute.xlu0 %4514 }
0x1edd   :  { %v4517_v29 = vmul.f32 %v4515_v23, %v4502_v40 }
0x1edf   :  { %4519 = vst.msk [vmem:[#allocation8 + $0x1a] sm:$0x3] %vm2971_vm14, %v4517_v29  ;;  %7996 = vmatmul.mubr.msk.f32.vlgmr.msra.gmra.mrb[26].mxu1 %vm1832_vm12, %v4517_v29  ;;  %v8560_v29 = vpack.c.bf16 %v5020_v5, %v5018_v10 }
0x1ee0   :  { %8527 = vmatpush1.bf16.msra.mxu1 %v10584_v20  ;;  %4830 = vmatprep.mubr.f32.mxu1 %v9204_v0 }
0x1ee1   :  { %8529 = vmatprep.subr.bf16.mxu1 %v10596_v45 }
0x1ee4   :  { %8531 = vmatpush1.bf16.msra.mxu1 %v10601_v63 }
0x1ee5   :  { %8533 = vmatprep.subr.bf16.mxu1 %v10615_v58 }
0x1ee8   :  { %8535 = vmatpush1.bf16.msra.mxu1 %v10626_v51 }
0x1ee9   :  { %8537 = vmatprep.subr.bf16.mxu1 %v10628_v1 }
0x1eec   :  { %8539 = vmatpush1.bf16.msra.mxu1 %v10639_v18 }
0x1eed   :  { %8557 = vmatprep.subr.bf16.mxu1 %v8556_v8 }
0x1fb2   :  { %v4594_v35 = vpop.f32.mrb[26].mxu1 }
0x1fb3   :  { %v4596_v41 = vpop.f32.mrb[27].mxu1 }
0x1fb4   :  { %v4601_v38 = vcombine.low %v4594_v35, %v4596_v41  ;;  %v5017_v35 = vld [vmem:[#allocation12 + $0x20] sm:$0xff]  ;;  %v5022_v41 = vld [vmem:[#allocation12 + $0x48] sm:$0xff] }
0x1fb5   :  { %v8562_v49 = vpack.c.bf16 %v5019_v43, %v5017_v35 }
0x1fb6   :  { %v4608_v32 = vrot.slane %v4601_v38, %v9671_v47  ;;  %v5024_v38 = vld [vmem:[#allocation12 + $0x58] sm:$0xff] }
0x1fb8   :  { %v4610_v22 = vadd.f32 %v4608_v32, %v4524_v39  ;;  %v8564_v39 = vpack.c.bf16 %v5024_v38, %v5022_v41  ;;  %v5021_v32 = vld [vmem:[#allocation12 + $0x40] sm:$0xff] }
0x1fba   :  { %v4611_v24 = vadd.f32 %v4610_v22, %v10722_v36  ;;  %v5023_v22 = vld [vmem:[#allocation12 + $0x50] sm:$0xff] }
0x1fbc   :  { %8990 = vtanh.f32 %v4611_v24  ;;  %v5026_v24 = vld [vmem:[#allocation12 + $0x68] sm:$0xff] }
0x1fc6   :  { %v8991_v60 = vpop.eup %8990 }
0x1fc7   :  { %4616 = vrot.lane.b32.xlu0 %v8991_v60, %s9215_s25  ;;  %v4613_v30 = vmul.f32 0.5, %v8991_v60  ;;  %v4623_v14 = vrot.slane %v8991_v60, 2  ;;  %v5028_v60 = vld [vmem:[#allocation12 + $0x78] sm:$0xff] }
0x1fc9   :  { %v4614_v50 = vadd.f32 0.5, %v4613_v30  ;;  %v4998_v30 = vld [vmem:[#allocation8 + $0x6] sm:$0x3] }
0x1fcb   :  { %v4625_v21 = vmul.f32 %v4623_v14, %v4614_v50  ;;  %v4622_v28 = vmul.f32 %v4614_v50, %v4511_v16  ;;  %v5015_v16 = vld [vmem:[#allocation12 + $0x10] sm:$0xff]  ;;  %v8566_v50 = vpack.c.bf16 %v5023_v22, %v5021_v32  ;;  %v4996_v14 = vld [vmem:[#allocation8 + $0x2] sm:$0x3] }
0x1fcc   :  { %v8558_v40 = vpack.c.bf16 %v5015_v16, %v5013_v11 }
0x1fcd   :  { %4627 = vrot.lane.b32.xlu1 %v4625_v21, %s9215_s25  ;;  %v4997_v21 = vld [vmem:[#allocation8 + $0x4] sm:$0x3] }
0x2039   :  { %v4617_v46 = vpop.permute.xlu0 %4616 }
0x203a   :  { %v4618_v26 = vrot.slane %v4617_v46, 2  ;;  %v4995_v46 = vld [vmem:[#allocation8] sm:$0x3] }
0x203c   :  { %v4620_v33 = vmul.f32 0.5, %v4618_v26  ;;  %v5002_v26 = vld [vmem:[#allocation8 + $0xe] sm:$0x3] }
0x203e   :  { %v4621_v31 = vadd.f32 0.5, %v4620_v33  ;;  %v5047_v33 = vcombine.low %v4995_v46, %v4996_v14 }
0x203f   :  { %v4628_v6 = vpop.permute.xlu1 %4627 }
0x2040   :  { %v4630_v13 = vadd.f32 %v4628_v6, %v4622_v28  ;;  %v8568_v28 = vpack.c.bf16 %v5028_v60, %v5026_v24  ;;  %v5025_v6 = vld [vmem:[#allocation12 + $0x60] sm:$0xff] }
0x2042   :  { %8992 = vtanh.f32 %v4630_v13 }
0x204c   :  { %v8993_v15 = vpop.eup %8992 }
0x204d   :  { %4633 = vrot.lane.b32.xlu1 %v8993_v15, %s9215_s25  ;;  %v5048_v15 = vcombine.low %v4997_v21, %v4998_v30 }
0x20bf   :  { %v4634_v42 = vpop.permute.xlu1 %4633 }
0x20c0   :  { %v4636_v59 = vmul.f32 %v4634_v42, %v4621_v31  ;;  %v5000_v42 = vld [vmem:[#allocation8 + $0xa] sm:$0x3] }
0x20c2   :  { %4638 = vst.msk [vmem:[#allocation8 + $0x1c] sm:$0x3] %vm2971_vm14, %v4636_v59  ;;  %7997 = vmatmul.mubr.msk.f32.vlgmr.msra.gmra.mrb[42].mxu0 %vm1832_vm12, %v4636_v59  ;;  %v5001_v59 = vld [vmem:[#allocation8 + $0xc] sm:$0x3] }
0x20c3   :  { %8543 = vmatpush1.bf16.msra.mxu0 %v10584_v20  ;;  %4948 = vmatprep.mubr.f32.mxu0 %v9204_v0  ;;  %v4643_v20 = vadd.f32 %v4642_v3, %v4640_v54  ;;  %v5065_v3 = vcombine.low %v5001_v59, %v5002_v26  ;;  %v5055_v54 = vrot.slane %v5047_v33, %v9671_v47 }
0x20c4   :  { %8545 = vmatprep.subr.bf16.mxu0 %v10596_v45 }
0x20c7   :  { %8547 = vmatpush1.bf16.msra.mxu0 %v10601_v63 }
0x20c8   :  { %8549 = vmatprep.subr.bf16.mxu0 %v10615_v58 }
0x20c9   :  { %v5009_v53 = vld [vmem:[#allocation8 + $0x1c] sm:$0x3] }
0x20cb   :  { %8551 = vmatpush1.bf16.msra.mxu0 %v10626_v51 }
0x20cc   :  { %8553 = vmatprep.subr.bf16.mxu0 %v10628_v1 }
0x20cf   :  { %8555 = vmatpush1.bf16.msra.mxu0 %v10639_v18 }
0x2195   :  { %v4713_v62 = vpop.f32.mrb[42].mxu0 }
0x2196   :  { %v4715_v19 = vpop.f32.mrb[43].mxu0 }
0x2197   :  { %v4720_v17 = vcombine.low %v4713_v62, %v4715_v19  ;;  %v5062_v62 = vrot.slane %v5048_v15, %v9671_v47  ;;  %v4999_v19 = vld [vmem:[#allocation8 + $0x8] sm:$0x3] }
0x2199   :  { %v4727_v44 = vrot.slane %v4720_v17, %v9671_v47  ;;  %v5006_v17 = vld [vmem:[#allocation8 + $0x16] sm:$0x3] }
0x219b   :  { %v4729_v7 = vadd.f32 %v4727_v44, %v4643_v20  ;;  %v5064_v20 = vcombine.low %v4999_v19, %v5000_v42  ;;  %v5004_v44 = vld [vmem:[#allocation8 + $0x12] sm:$0x3] }
0x219d   :  { %v4730_v45 = vadd.f32 %v4729_v7, %v10722_v36  ;;  %v5005_v7 = vld [vmem:[#allocation8 + $0x14] sm:$0x3] }
0x219f   :  { %8994 = vtanh.f32 %v4730_v45  ;;  %v10974_v45 = vcombine.low %v5055_v54, %v5062_v62 }
0x21a9   :  { %v8995_v63 = vpop.eup %8994 }
0x21aa   :  { %4735 = vrot.lane.b32.xlu1 %v8995_v63, %s9215_s25  ;;  %v4732_v58 = vmul.f32 0.5, %v8995_v63  ;;  %v4742_v1 = vrot.slane %v8995_v63, 2  ;;  %v5079_v63 = vrot.slane %v5065_v3, %v9671_v47 }
0x21ac   :  { %v4733_v51 = vadd.f32 0.5, %v4732_v58  ;;  %v5082_v58 = vcombine.low %v5005_v7, %v5006_v17 }
0x21ae   :  { %v4744_v48 = vmul.f32 %v4742_v1, %v4733_v51  ;;  %v4741_v18 = vmul.f32 %v4733_v51, %v4630_v13  ;;  %v5027_v13 = vld [vmem:[#allocation12 + $0x70] sm:$0xff]  ;;  %v5003_v51 = vld [vmem:[#allocation8 + $0x10] sm:$0x3]  ;;  %v5096_v8 = vrot.slane %v5082_v58, %v9671_v47 }
0x21af   :  { %v8570_v31 = vpack.c.bf16 %v5027_v13, %v5025_v6 }
0x21b0   :  { %4746 = vrot.lane.b32.xlu0 %v4744_v48, %s9215_s25  ;;  %v5072_v48 = vrot.slane %v5064_v20, %v9671_v47 }
0x21b2   :  { %v10981_v2 = vcombine.low %v5072_v48, %v5079_v63 }
0x221c   :  { %v4736_v52 = vpop.permute.xlu1 %4735 }
0x221d   :  { %v4737_v37 = vrot.slane %v4736_v52, 2  ;;  %v5007_v52 = vld [vmem:[#allocation8 + $0x18] sm:$0x3] }
0x221f   :  { %v4739_v9 = vmul.f32 0.5, %v4737_v37 }
0x2221   :  { %v4740_v4 = vadd.f32 0.5, %v4739_v9 }
0x2222   :  { %v4747_v27 = vpop.permute.xlu0 %4746 }
0x2223   :  { %v10965_v55 = vadd.f32 %v4747_v27, %v4741_v18  ;;  %v5081_v18 = vcombine.low %v5003_v51, %v5004_v44  ;;  %v5008_v27 = vld [vmem:[#allocation8 + $0x1a] sm:$0x3] }
0x2224   :  { %v5098_v9 = vcombine.low %v5007_v52, %v5008_v27 }
0x2225   :  { %8996 = vtanh.f32 %v10965_v55  ;;  %v5089_v37 = vrot.slane %v5081_v18, %v9671_v47 }
0x2226   :  { %v5106_v10 = vrot.slane %v5098_v9, %v9671_v47  ;;  %v5356_v9 = vld [vmem:[#allocation14 + $0x8] sm:$0xff] }
0x2227   :  { %v10988_v11 = vcombine.low %v5089_v37, %v5096_v8 }
0x222f   :  { %v8997_v25 = vpop.eup %8996 }
0x2230   :  { %4752 = vrot.lane.b32.xlu0 %v8997_v25, %s9215_s25 }
0x22a2   :  { %v4753_v34 = vpop.permute.xlu0 %4752 }
0x22a3   :  { %v4755_v23 = vmul.f32 %v4753_v34, %v4740_v4  ;;  %v4761_v34 = vld [vmem:[#allocation5 + $0x4] sm:$0xf] }
0x22a5   :  { %4757 = vst.msk [vmem:[#allocation8 + $0x1e] sm:$0x3] %vm2971_vm14, %v4755_v23  ;;  %7998 = vmatmul.mubr.msk.f32.vlgmr.msra.gmra.mrb[28].mxu1 %vm1832_vm12, %v4755_v23 }
0x22a6   :  { %8559 = vmatpush1.bf16.msra.mxu1 %v8558_v40  ;;  %5197 = vmatprep.mubr.f32.mxu1 %v9204_v0 }
0x22a7   :  { %8561 = vmatprep.subr.bf16.mxu1 %v8560_v29  ;;  %v4759_v29 = vld [vmem:[#allocation4 + $0x40] sm:$0xf] }
0x22a8   :  { %v4762_v35 = vadd.f32 %v4761_v34, %v4759_v29  ;;  %v5355_v29 = vld [vmem:[#allocation14] sm:$0xff] }
0x22aa   :  { %8563 = vmatpush1.bf16.msra.mxu1 %v8562_v49 }
0x22ab   :  { %8565 = vmatprep.subr.bf16.mxu1 %v8564_v39 }
0x22ac   :  { %v5010_v1 = vld [vmem:[#allocation8 + $0x1e] sm:$0x3] }
0x22ad   :  { %v5099_v25 = vcombine.low %v5009_v53, %v5010_v1 }
0x22ae   :  { %8567 = vmatpush1.bf16.msra.mxu1 %v8566_v50 }
0x22af   :  { %8569 = vmatprep.subr.bf16.mxu1 %v8568_v28  ;;  %v5113_v16 = vrot.slane %v5099_v25, %v9671_v47 }
0x22b1   :  { %v10995_v5 = vcombine.low %v5106_v10, %v5113_v16  ;;  %v5358_v16 = vld [vmem:[#allocation14 + $0x18] sm:$0xff] }
0x22b2   :  { %8571 = vmatpush1.bf16.msra.mxu1 %v8570_v31  ;;  %v8572_v10 = vpack.c.bf16 %v5358_v16, %v5356_v9 }
0x22b4   :  { %8573 = vmatprep.subr.bf16.mxu0 %v8572_v10 }
0x22b5   :  { %8000 = vmatmul.mubr.msk.f32.vlgmr.msra.gmra.mrb[30].mxu1 %vm1832_vm12, %v10974_v45 }
0x22b6   :  { %5203 = vmatprep.mubr.f32.mxu1 %v9204_v0 }
0x22b9   :  { %8001 = vmatmul.mubr.msk.f32.gmra.mrb[32].mxu1 %vm1832_vm12, %v10981_v2 }
0x22ba   :  { %5209 = vmatprep.mubr.f32.mxu1 %v9204_v0 }
0x22bd   :  { %8002 = vmatmul.mubr.msk.f32.gmra.mrb[34].mxu1 %vm1832_vm12, %v10988_v11 }
0x22be   :  { %5215 = vmatprep.mubr.f32.mxu1 %v9204_v0 }
0x22c1   :  { %8003 = vmatmul.mubr.msk.f32.gmra.mrb[36].mxu1 %vm1832_vm12, %v10995_v5 }
0x22c2   :  { %5221 = vmatprep.mubr.f32.mxu1 %v9204_v0 }
0x2378   :  { %v4832_v4 = vpop.f32.mrb[28].mxu1 }
0x2379   :  { %v4834_v40 = vpop.f32.mrb[29].mxu1 }
0x237a   :  { %v4839_v23 = vcombine.low %v4832_v4, %v4834_v40 }
0x237c   :  { %v4846_v43 = vrot.slane %v4839_v23, %v9671_v47 }
0x237e   :  { %v4848_v41 = vadd.f32 %v4846_v43, %v4762_v35  ;;  %v5357_v35 = vld [vmem:[#allocation14 + $0x10] sm:$0xff]  ;;  %v5360_v43 = vld [vmem:[#allocation14 + $0x28] sm:$0xff] }
0x2380   :  { %v4849_v38 = vadd.f32 %v4848_v41, %v10722_v36  ;;  %v5362_v41 = vld [vmem:[#allocation14 + $0x38] sm:$0xff] }
0x2382   :  { %8998 = vtanh.f32 %v4849_v38 }
0x2388   :  { %v5199_v49 = vpop.f32.mrb[30].mxu1 }
0x2389   :  { %v5201_v39 = vpop.f32.mrb[31].mxu1 }
0x238a   :  { %v5238_v32 = vcombine.low %v5199_v49, %v5201_v39  ;;  %v5239_v22 = vcombine.high %v5199_v49, %v5201_v39  ;;  %v8574_v49 = vpack.c.bf16 %v5357_v35, %v5355_v29 }
0x238c   :  { %v8999_v24 = vpop.eup %8998  ;;  %v5246_v60 = vrot.slane %v5238_v32, %v9671_v47  ;;  %v5253_v30 = vrot.slane %v5239_v22, %v9671_v47  ;;  %8005 = vst.sshfl [vmem:[#allocation6] sm:$0x33 pattern:$0x76325410] %v5238_v32  ;;  %v5205_v50 = vpop.f32.mrb[32].mxu1  ;;  %v8576_v32 = vpack.c.bf16 %v5362_v41, %v5360_v43 }
0x238d   :  { %8006 = vst.sshfl [vmem:[#allocation6 + $0x8] sm:$0x33 pattern:$0x76325410] %v5239_v22  ;;  %v5207_v14 = vpop.f32.mrb[33].mxu1  ;;  %4854 = vrot.lane.b32.xlu0 %v8999_v24, %s9215_s25  ;;  %v4851_v21 = vmul.f32 0.5, %v8999_v24 }
0x238e   :  { %v5254_v28 = vcombine.high %v5246_v60, %v5246_v60  ;;  %v5255_v6 = vcombine.high %v5253_v30, %v5253_v30  ;;  %v5256_v13 = vcombine.low %v5205_v50, %v5207_v14  ;;  %v5257_v15 = vcombine.high %v5205_v50, %v5207_v14  ;;  %v5359_v22 = vld [vmem:[#allocation14 + $0x20] sm:$0xff]  ;;  %v5364_v60 = vld [vmem:[#allocation14 + $0x48] sm:$0xff]  ;;  %v5366_v30 = vld [vmem:[#allocation14 + $0x58] sm:$0xff] }
0x238f   :  { %v4852_v46 = vadd.f32 0.5, %v4851_v21  ;;  %v4861_v26 = vrot.slane %v8999_v24, 2  ;;  %v5361_v24 = vld [vmem:[#allocation14 + $0x30] sm:$0xff]  ;;  %v8580_v14 = vpack.c.bf16 %v5366_v30, %v5364_v60  ;;  %v5363_v21 = vld [vmem:[#allocation14 + $0x40] sm:$0xff] }
0x2390   :  { %5338 = vst [vmem:[#allocation6 + $0x4] sm:$0xf] %v5254_v28  ;;  %5340 = vst [vmem:[#allocation6 + $0xc] sm:$0xf] %v5255_v6  ;;  %v5264_v33 = vrot.slane %v5256_v13, %v9671_v47  ;;  %v5271_v31 = vrot.slane %v5257_v15, %v9671_v47  ;;  %v5211_v42 = vpop.f32.mrb[34].mxu1  ;;  %v8578_v50 = vpack.c.bf16 %v5361_v24, %v5359_v22  ;;  %v5365_v28 = vld [vmem:[#allocation14 + $0x50] sm:$0xff] }
0x2391   :  { %8007 = vst.sshfl [vmem:[#allocation6 + $0x10] sm:$0x33 pattern:$0x76325410] %v5256_v13  ;;  %v5213_v59 = vpop.f32.mrb[35].mxu1  ;;  %v4863_v62 = vmul.f32 %v4861_v26, %v4852_v46  ;;  %v4860_v25 = vmul.f32 %v4852_v46, %v10965_v55  ;;  %v5368_v6 = vld [vmem:[#allocation14 + $0x68] sm:$0xff] }
0x2392   :  { %8008 = vst.sshfl [vmem:[#allocation6 + $0x18] sm:$0x33 pattern:$0x76325410] %v5257_v15  ;;  %v5272_v3 = vcombine.high %v5264_v33, %v5264_v33  ;;  %v5273_v19 = vcombine.high %v5271_v31, %v5271_v31  ;;  %v5274_v17 = vcombine.low %v5211_v42, %v5213_v59  ;;  %v5275_v54 = vcombine.high %v5211_v42, %v5213_v59  ;;  %v5370_v13 = vld [vmem:[#allocation14 + $0x78] sm:$0xff]  ;;  %v5367_v26 = vld [vmem:[#allocation14 + $0x60] sm:$0xff] }
0x2393   :  { %4865 = vrot.lane.b32.xlu1 %v4863_v62, %s9215_s25  ;;  %v8582_v15 = vpack.c.bf16 %v5365_v28, %v5363_v21  ;;  %v8584_v46 = vpack.c.bf16 %v5370_v13, %v5368_v6  ;;  %v5369_v33 = vld [vmem:[#allocation14 + $0x70] sm:$0xff]  ;;  %v5594_v28 = vld [vmem:[#allocation15 + $0x8] sm:$0xff]  ;;  %v5596_v6 = vld [vmem:[#allocation15 + $0x18] sm:$0xff] }
0x2394   :  { %5342 = vst [vmem:[#allocation6 + $0x14] sm:$0xf] %v5272_v3  ;;  %5344 = vst [vmem:[#allocation6 + $0x1c] sm:$0xf] %v5273_v19  ;;  %v5282_v20 = vrot.slane %v5274_v17, %v9671_v47  ;;  %v5289_v44 = vrot.slane %v5275_v54, %v9671_v47  ;;  %v5217_v7 = vpop.f32.mrb[36].mxu1  ;;  %v8586_v31 = vpack.c.bf16 %v5369_v33, %v5367_v26  ;;  %v5593_v13 = vld [vmem:[#allocation15] sm:$0xff] }
0x2395   :  { %8009 = vst.sshfl [vmem:[#allocation6 + $0x20] sm:$0x33 pattern:$0x76325410] %v5274_v17  ;;  %v5219_v63 = vpop.f32.mrb[37].mxu1  ;;  %v5598_v26 = vld [vmem:[#allocation15 + $0x28] sm:$0xff] }
0x2396   :  { %8010 = vst.sshfl [vmem:[#allocation6 + $0x28] sm:$0x33 pattern:$0x76325410] %v5275_v54  ;;  %v5290_v58 = vcombine.high %v5282_v20, %v5282_v20  ;;  %v5291_v51 = vcombine.high %v5289_v44, %v5289_v44  ;;  %v5292_v1 = vcombine.low %v5217_v7, %v5219_v63  ;;  %v5293_v48 = vcombine.high %v5217_v7, %v5219_v63  ;;  %v4878_v59 = vld [vmem:[#allocation4 + $0x44] sm:$0xf] }
0x2397   :  { %v5600_v33 = vld [vmem:[#allocation15 + $0x38] sm:$0xff] }
0x2398   :  { %5346 = vst [vmem:[#allocation6 + $0x24] sm:$0xf] %v5290_v58  ;;  %5348 = vst [vmem:[#allocation6 + $0x2c] sm:$0xf] %v5291_v51  ;;  %v5300_v18 = vrot.slane %v5292_v1, %v9671_v47  ;;  %v5307_v27 = vrot.slane %v5293_v48, %v9671_v47 }
0x2399   :  { %8011 = vst.sshfl [vmem:[#allocation6 + $0x30] sm:$0x33 pattern:$0x76325410] %v5292_v1 }
0x239a   :  { %8012 = vst.sshfl [vmem:[#allocation6 + $0x38] sm:$0x33 pattern:$0x76325410] %v5293_v48  ;;  %v5308_v53 = vcombine.high %v5300_v18, %v5300_v18  ;;  %v5309_v8 = vcombine.high %v5307_v27, %v5307_v27 }
0x239c   :  { %5350 = vst [vmem:[#allocation6 + $0x34] sm:$0xf] %v5308_v53  ;;  %5352 = vst [vmem:[#allocation6 + $0x3c] sm:$0xf] %v5309_v8 }
0x23ff   :  { %v4855_v34 = vpop.permute.xlu0 %4854 }
0x2400   :  { %v4856_v40 = vrot.slane %v4855_v34, 2 }
0x2402   :  { %v4858_v23 = vmul.f32 0.5, %v4856_v40 }
0x2404   :  { %v4859_v55 = vadd.f32 0.5, %v4858_v23 }
0x2405   :  { %v4866_v52 = vpop.permute.xlu1 %4865 }
0x2406   :  { %v11013_v37 = vadd.f32 %v4866_v52, %v4860_v25 }
0x2408   :  { %9000 = vtanh.f32 %v11013_v37 }
0x2412   :  { %v9001_v4 = vpop.eup %9000 }
0x2413   :  { %4871 = vrot.lane.b32.xlu1 %v9001_v4, %s9215_s25 }
0x2485   :  { %v4872_v38 = vpop.permute.xlu1 %4871 }
0x2486   :  { %v4874_v39 = vmul.f32 %v4872_v38, %v4859_v55 }
0x2488   :  { %4876 = vst.msk [vmem:[#allocation8 + $0x20] sm:$0x3] %vm2971_vm14, %v4874_v39  ;;  %7999 = vmatmul.mubr.msk.f32.vlgmr.msra.gmra.mrb[44].mxu0 %vm1832_vm12, %v4874_v39 }
0x2489   :  { %8575 = vmatpush1.bf16.msra.mxu0 %v8574_v49  ;;  %5435 = vmatprep.mubr.f32.mxu0 %v9204_v0 }
0x248a   :  { %8577 = vmatprep.subr.bf16.mxu0 %v8576_v32 }
0x248d   :  { %8579 = vmatpush1.bf16.msra.mxu0 %v8578_v50 }
0x248e   :  { %8581 = vmatprep.subr.bf16.mxu0 %v8580_v14 }
0x2491   :  { %8583 = vmatpush1.bf16.msra.mxu0 %v8582_v15  ;;  %v11045_v15 = vpack.c.bf16 %v5596_v6, %v5594_v28 }
0x2492   :  { %8585 = vmatprep.subr.bf16.mxu0 %v8584_v46  ;;  %v5595_v46 = vld [vmem:[#allocation15 + $0x10] sm:$0xff] }
0x2493   :  { %8589 = vmatprep.subr.bf16.mxu1 %v11045_v15 }
0x2495   :  { %8587 = vmatpush1.bf16.msra.mxu0 %v8586_v31  ;;  %v11047_v31 = vpack.c.bf16 %v5595_v46, %v5593_v13 }
0x2496   :  { %8605 = vmatprep.subr.bf16.mxu0 %v11045_v15 }
0x2497   :  { %8591 = vmatpush1.bf16.msra.mxu1 %v11047_v31 }
0x2498   :  { %8014 = vmatmul.mubr.msk.f32.vlgmr.msra.gmra.mrb[46].mxu0 %vm1832_vm12, %v10974_v45  ;;  %v4879_v45 = vld [vmem:[#allocation5] sm:$0xf] }
0x2499   :  { %5441 = vmatprep.mubr.f32.mxu0 %v9204_v0  ;;  %v4880_v19 = vadd.f32 %v4879_v45, %v4878_v59  ;;  %v5597_v59 = vld [vmem:[#allocation15 + $0x20] sm:$0xff]  ;;  %v5599_v45 = vld [vmem:[#allocation15 + $0x30] sm:$0xff]  ;;  %8607 = vmatpush1.bf16.msra.mxu0 %v11047_v31 }
0x249c   :  { %8015 = vmatmul.mubr.msk.f32.gmra.mrb[48].mxu0 %vm1832_vm12, %v10981_v2 }
0x249d   :  { %5447 = vmatprep.mubr.f32.mxu0 %v9204_v0 }
0x24a0   :  { %8016 = vmatmul.mubr.msk.f32.gmra.mrb[50].mxu0 %vm1832_vm12, %v10988_v11 }
0x24a1   :  { %5453 = vmatprep.mubr.f32.mxu0 %v9204_v0 }
0x24a4   :  { %8017 = vmatmul.mubr.msk.f32.gmra.mrb[52].mxu0 %vm1832_vm12, %v10995_v5 }
0x24a5   :  { %5459 = vmatprep.mubr.f32.mxu0 %v9204_v0 }
0x255b   :  { %v4950_v42 = vpop.f32.mrb[44].mxu0 }
0x255c   :  { %v4952_v62 = vpop.f32.mrb[45].mxu0 }
0x255d   :  { %v4957_v3 = vcombine.low %v4950_v42, %v4952_v62  ;;  %v11049_v42 = vpack.c.bf16 %v5600_v33, %v5598_v26 }
0x255f   :  { %v4964_v2 = vrot.slane %v4957_v3, %v9671_v47  ;;  %8593 = vmatprep.subr.bf16.mxu1 %v11049_v42  ;;  %8609 = vmatprep.subr.bf16.mxu0 %v11049_v42  ;;  %v5602_v3 = vld [vmem:[#allocation15 + $0x48] sm:$0xff] }
0x2561   :  { %v4966_v17 = vadd.f32 %v4964_v2, %v4880_v19  ;;  %v5604_v19 = vld [vmem:[#allocation15 + $0x58] sm:$0xff]  ;;  %v5601_v2 = vld [vmem:[#allocation15 + $0x40] sm:$0xff] }
0x2563   :  { %v4967_v54 = vadd.f32 %v4966_v17, %v10722_v36  ;;  %v11062_v17 = vpack.c.bf16 %v5604_v19, %v5602_v3 }
0x2565   :  { %9002 = vtanh.f32 %v4967_v54  ;;  %v5603_v54 = vld [vmem:[#allocation15 + $0x50] sm:$0xff] }
0x256b   :  { %v5437_v11 = vpop.f32.mrb[46].mxu0 }
0x256c   :  { %v5439_v20 = vpop.f32.mrb[47].mxu0 }
0x256d   :  { %v5476_v44 = vcombine.low %v5437_v11, %v5439_v20  ;;  %v5477_v7 = vcombine.high %v5437_v11, %v5439_v20  ;;  %v5606_v11 = vld [vmem:[#allocation15 + $0x68] sm:$0xff]  ;;  %v5608_v20 = vld [vmem:[#allocation15 + $0x78] sm:$0xff] }
0x256f   :  { %v9003_v63 = vpop.eup %9002  ;;  %v5484_v5 = vrot.slane %v5476_v44, %v9671_v47  ;;  %v5491_v58 = vrot.slane %v5477_v7, %v9671_v47  ;;  %8019 = vst.sshfl [vmem:[#allocation7] sm:$0x33 pattern:$0x76325410] %v5476_v44  ;;  %v5443_v51 = vpop.f32.mrb[48].mxu0  ;;  %v11064_v44 = vpack.c.bf16 %v5603_v54, %v5601_v2 }
0x2570   :  { %8020 = vst.sshfl [vmem:[#allocation7 + $0x8] sm:$0x33 pattern:$0x76325410] %v5477_v7  ;;  %v5445_v1 = vpop.f32.mrb[49].mxu0  ;;  %4972 = vrot.lane.b32.xlu1 %v9003_v63, %s9215_s25  ;;  %v4969_v48 = vmul.f32 0.5, %v9003_v63  ;;  %v11066_v7 = vpack.c.bf16 %v5608_v20, %v5606_v11 }
0x2571   :  { %v5492_v18 = vcombine.high %v5484_v5, %v5484_v5  ;;  %v5493_v27 = vcombine.high %v5491_v58, %v5491_v58  ;;  %v5494_v36 = vcombine.low %v5443_v51, %v5445_v1  ;;  %v5495_v53 = vcombine.high %v5443_v51, %v5445_v1  ;;  %v5607_v5 = vld [vmem:[#allocation15 + $0x70] sm:$0xff] }
0x2572   :  { %v4970_v8 = vadd.f32 0.5, %v4969_v48  ;;  %v4979_v25 = vrot.slane %v9003_v63, 2  ;;  %v5605_v63 = vld [vmem:[#allocation15 + $0x60] sm:$0xff] }
0x2573   :  { %5576 = vst [vmem:[#allocation7 + $0x4] sm:$0xf] %v5492_v18  ;;  %5578 = vst [vmem:[#allocation7 + $0xc] sm:$0xf] %v5493_v27  ;;  %v5502_v52 = vrot.slane %v5494_v36, %v9671_v47  ;;  %v5509_v9 = vrot.slane %v5495_v53, %v9671_v47  ;;  %v5449_v16 = vpop.f32.mrb[50].mxu0  ;;  %v11071_v58 = vpack.c.bf16 %v5607_v5, %v5605_v63 }
0x2574   :  { %8021 = vst.sshfl [vmem:[#allocation7 + $0x10] sm:$0x33 pattern:$0x76325410] %v5494_v36  ;;  %v5451_v10 = vpop.f32.mrb[51].mxu0  ;;  %v4981_v4 = vmul.f32 %v4979_v25, %v4970_v8  ;;  %v4978_v50 = vmul.f32 %v4970_v8, %v11013_v37  ;;  %v11054_v37 = vpack.c.bf16 %v5599_v45, %v5597_v59 }
0x2575   :  { %8022 = vst.sshfl [vmem:[#allocation7 + $0x18] sm:$0x33 pattern:$0x76325410] %v5495_v53  ;;  %v5510_v34 = vcombine.high %v5502_v52, %v5502_v52  ;;  %v5511_v40 = vcombine.high %v5509_v9, %v5509_v9  ;;  %v5512_v23 = vcombine.low %v5449_v16, %v5451_v10  ;;  %v5513_v29 = vcombine.high %v5449_v16, %v5451_v10  ;;  %v5011_v53 = vld [vmem:[#allocation8 + $0x20] sm:$0x3] }
0x2576   :  { %4983 = vrot.lane.b32.xlu0 %v4981_v4, %s9215_s25  ;;  %8595 = vmatpush1.bf16.msra.mxu1 %v11054_v37 }
0x2577   :  { %5580 = vst [vmem:[#allocation7 + $0x14] sm:$0xf] %v5510_v34  ;;  %5582 = vst [vmem:[#allocation7 + $0x1c] sm:$0xf] %v5511_v40  ;;  %v5520_v35 = vrot.slane %v5512_v23, %v9671_v47  ;;  %v5527_v43 = vrot.slane %v5513_v29, %v9671_v47  ;;  %v5455_v41 = vpop.f32.mrb[52].mxu0  ;;  %8611 = vmatpush1.bf16.msra.mxu0 %v11054_v37  ;;  %8597 = vmatprep.subr.bf16.mxu1 %v11062_v17 }
0x2578   :  { %8023 = vst.sshfl [vmem:[#allocation7 + $0x20] sm:$0x33 pattern:$0x76325410] %v5512_v23  ;;  %v5457_v55 = vpop.f32.mrb[53].mxu0  ;;  %8613 = vmatprep.subr.bf16.mxu0 %v11062_v17 }
0x2579   :  { %8024 = vst.sshfl [vmem:[#allocation7 + $0x28] sm:$0x33 pattern:$0x76325410] %v5513_v29  ;;  %v5528_v38 = vcombine.high %v5520_v35, %v5520_v35  ;;  %v5529_v49 = vcombine.high %v5527_v43, %v5527_v43  ;;  %v5530_v39 = vcombine.low %v5455_v41, %v5457_v55  ;;  %v5531_v32 = vcombine.high %v5455_v41, %v5457_v55  ;;  %v5609_v43 = vld [vmem:[%s11475_s12] sm:$0x3] }
0x257a   :  { %8599 = vmatpush1.bf16.msra.mxu1 %v11064_v44 }
0x257b   :  { %5584 = vst [vmem:[#allocation7 + $0x24] sm:$0xf] %v5528_v38  ;;  %5586 = vst [vmem:[#allocation7 + $0x2c] sm:$0xf] %v5529_v49  ;;  %v5538_v22 = vrot.slane %v5530_v39, %v9671_v47  ;;  %v5545_v24 = vrot.slane %v5531_v32, %v9671_v47  ;;  %8615 = vmatpush1.bf16.msra.mxu0 %v11064_v44  ;;  %8601 = vmatprep.subr.bf16.mxu1 %v11066_v7 }
0x257c   :  { %8025 = vst.sshfl [vmem:[#allocation7 + $0x30] sm:$0x33 pattern:$0x76325410] %v5530_v39  ;;  %8617 = vmatprep.subr.bf16.mxu0 %v11066_v7  ;;  %v5701_v39 = vrot.slane %v5609_v43, %v2930_v57 }
0x257d   :  { %8026 = vst.sshfl [vmem:[#allocation7 + $0x38] sm:$0x33 pattern:$0x76325410] %v5531_v32  ;;  %v5546_v60 = vcombine.high %v5538_v22, %v5538_v22  ;;  %v5547_v30 = vcombine.high %v5545_v24, %v5545_v24  ;;  %v5705_v32 = vrot.slane %v5609_v43, %v2934_v12 }
0x257e   :  { %8603 = vmatpush1.bf16.msra.mxu1 %v11071_v58 }
0x257f   :  { %5588 = vst [vmem:[#allocation7 + $0x34] sm:$0xf] %v5546_v60  ;;  %5590 = vst [vmem:[#allocation7 + $0x3c] sm:$0xf] %v5547_v30  ;;  %8619 = vmatpush1.bf16.msra.mxu0 %v11071_v58  ;;  %8621 = vmatprep.subr.bf16.mxu1 %v11045_v15  ;;  %v5706_v22 = vcombine.low %v5701_v39, %v5705_v32  ;;  %v5610_v60 = vld [vmem:[#allocation6] sm:$0xf] }
0x2580   :  { %8637 = vmatprep.subr.bf16.mxu0 %v11045_v15  ;;  %v5861_v39 = vld [vmem:[#allocation6 + $0x8] sm:$0xf] }
0x25e2   :  { %v4973_v51 = vpop.permute.xlu1 %4972 }
0x25e3   :  { %v4974_v1 = vrot.slane %v4973_v51, 2  ;;  %v5743_v51 = vld [vmem:[#allocation6 + $0x4] sm:$0xf] }
0x25e5   :  { %v4976_v48 = vmul.f32 0.5, %v4974_v1 }
0x25e7   :  { %v4977_v18 = vadd.f32 0.5, %v4976_v48 }
0x25e8   :  { %v4984_v14 = vpop.permute.xlu0 %4983 }
0x25e9   :  { %v4986_v21 = vadd.f32 %v4984_v14, %v4978_v50  ;;  %v11107_v14 = vrot.slane %v5706_v22, %v9671_v47 }
0x25eb   :  { %9004 = vtanh.f32 %v4986_v21 }
0x25f5   :  { %v9005_v62 = vpop.eup %9004 }
0x25f6   :  { %4989 = vrot.lane.b32.xlu0 %v9005_v62, %s9215_s25 }
0x2668   :  { %v4990_v27 = vpop.permute.xlu0 %4989 }
0x2669   :  { %v4992_v36 = vmul.f32 %v4990_v27, %v4977_v18 }
0x266b   :  { %4994 = vst.msk [vmem:[#allocation8 + $0x22] sm:$0x3] %vm2971_vm14, %v4992_v36 }
0x2672   :  { %v5012_v8 = vld [vmem:[#allocation8 + $0x22] sm:$0x3] }
0x2673   :  { %v5115_v25 = vcombine.low %v5011_v53, %v5012_v8 }
0x2675   :  { %v5122_v52 = vrot.slane %v5115_v25, %v9671_v47 }
0x2677   :  { %8004 = vmatmul.mubr.msk.f32.gmra.mrb[38].mxu1 %vm1832_vm12, %v5122_v52  ;;  %8018 = vmatmul.mubr.msk.f32.gmra.mrb[54].mxu0 %vm1832_vm12, %v5122_v52 }
0x2678   :  { %5678 = vmatprep.mubr.f32.mxu1 %v9204_v0  ;;  %5814 = vmatprep.mubr.f32.mxu0 %v9204_v0 }
0x267b   :  { %5679 = vmatmul.mubr.f32.vlgmr.msra.gmra.mrb[40].mxu1 %v9204_v0 }
0x267c   :  { %8623 = vmatpush1.bf16.msra.mxu1 %v11047_v31  ;;  %5932 = vmatprep.mubr.f32.mxu1 %v9204_v0 }
0x267d   :  { %8625 = vmatprep.subr.bf16.mxu1 %v11049_v42 }
0x2680   :  { %8627 = vmatpush1.bf16.msra.mxu1 %v11054_v37 }
0x2681   :  { %8629 = vmatprep.subr.bf16.mxu1 %v11062_v17 }
0x2684   :  { %8631 = vmatpush1.bf16.msra.mxu1 %v11064_v44 }
0x2685   :  { %8633 = vmatprep.subr.bf16.mxu1 %v11066_v7 }
0x2688   :  { %8635 = vmatpush1.bf16.msra.mxu1 %v11071_v58 }
0x2689   :  { %8653 = vmatprep.subr.bf16.mxu1 %v11045_v15 }
0x274a   :  { %v5223_v9 = vpop.f32.mrb[38].mxu1  ;;  %v5461_v16 = vpop.f32.mrb[54].mxu0 }
0x274b   :  { %v5225_v10 = vpop.f32.mrb[39].mxu1  ;;  %v5463_v4 = vpop.f32.mrb[55].mxu0 }
0x274c   :  { %v5310_v34 = vcombine.low %v5223_v9, %v5225_v10  ;;  %v5548_v40 = vcombine.low %v5461_v16, %v5463_v4 }
0x274e   :  { %v5317_v23 = vrot.slane %v5310_v34, %v9671_v47  ;;  %8013 = vst.sshfl [vmem:[#allocation6 + $0x40] sm:$0x33 pattern:$0x76325410] %v5310_v34  ;;  %v5555_v29 = vrot.slane %v5548_v40, %v9671_v47  ;;  %v5680_v35 = vpop.f32.mrb[40].mxu1 }
0x274f   :  { %8027 = vst.sshfl [vmem:[#allocation7 + $0x40] sm:$0x33 pattern:$0x76325410] %v5548_v40  ;;  %v5682_v41 = vpop.f32.mrb[41].mxu1 }
0x2750   :  { %v5318_v55 = vcombine.high %v5317_v23, %v5317_v23  ;;  %v5556_v38 = vcombine.high %v5555_v29, %v5555_v29  ;;  %v5687_v49 = vcombine.low %v5680_v35, %v5682_v41 }
0x2752   :  { %5354 = vst [vmem:[#allocation6 + $0x44] sm:$0xf] %v5318_v55  ;;  %5592 = vst [vmem:[#allocation7 + $0x44] sm:$0xf] %v5556_v38  ;;  %v5694_v24 = vrot.slane %v5687_v49, %v9671_v47  ;;  %v5863_v55 = vld [vmem:[#allocation7 + $0x3c] sm:$0xf] }
0x2753   :  { %v5864_v32 = vadd.f32 %v5863_v55, %v5861_v39 }
0x2756   :  { %v5745_v20 = vld [vmem:[#allocation7 + $0x40] sm:$0xf] }
0x2757   :  { %v5746_v1 = vadd.f32 %v5745_v20, %v5743_v51 }
0x2759   :  { %v5612_v30 = vld [vmem:[#allocation7 + $0x44] sm:$0xf] }
0x275a   :  { %v5613_v50 = vadd.f32 %v5612_v30, %v5610_v60 }
0x275c   :  { %v5696_v21 = vadd.f32 %v5694_v24, %v5613_v50 }
0x275e   :  { %v5715_v28 = vadd.f32 %v11107_v14, %v5696_v21 }
0x2760   :  { %9006 = vtanh.f32 %v5715_v28 }
0x276a   :  { %v9007_v6 = vpop.eup %9006 }
0x276b   :  { %5720 = vrot.lane.b32.xlu0 %v9007_v6, %s9215_s25  ;;  %v5717_v57 = vmul.f32 0.5, %v9007_v6  ;;  %v5727_v61 = vrot.slane %v9007_v6, 2 }
0x276d   :  { %v5718_v13 = vadd.f32 0.5, %v5717_v57 }
0x276f   :  { %v5729_v12 = vmul.f32 %v5727_v61, %v5718_v13  ;;  %v5726_v46 = vmul.f32 0.0, %v5718_v13 }
0x2771   :  { %5731 = vrot.lane.b32.xlu1 %v5729_v12, %s9215_s25 }
0x27dd   :  { %v5721_v45 = vpop.permute.xlu0 %5720 }
0x27de   :  { %v5722_v62 = vrot.slane %v5721_v45, 2 }
0x27e0   :  { %v5724_v3 = vmul.f32 0.5, %v5722_v62 }
0x27e2   :  { %v5725_v19 = vadd.f32 0.5, %v5724_v3 }
0x27e3   :  { %v5732_v26 = vpop.permute.xlu1 %5731 }
0x27e4   :  { %v5734_v33 = vadd.f32 %v5732_v26, %v5726_v46 }
0x27e6   :  { %9008 = vtanh.f32 %v5734_v33 }
0x27f0   :  { %v9009_v59 = vpop.eup %9008 }
0x27f1   :  { %5737 = vrot.lane.b32.xlu1 %v9009_v59, %s9215_s25 }
0x2863   :  { %v5738_v2 = vpop.permute.xlu1 %5737 }
0x2864   :  { %v11113_v54 = vmul.f32 %v5738_v2, %v5725_v19 }
0x2866   :  { %8028 = vmatmul.mubr.msk.f32.vlgmr.msra.gmra.mrb[56].mxu0 %vm1832_vm12, %v11113_v54 }
0x2867   :  { %8639 = vmatpush1.bf16.msra.mxu0 %v11047_v31  ;;  %6050 = vmatprep.mubr.f32.mxu0 %v9204_v0 }
0x2868   :  { %8641 = vmatprep.subr.bf16.mxu0 %v11049_v42 }
0x286b   :  { %8643 = vmatpush1.bf16.msra.mxu0 %v11054_v37 }
0x286c   :  { %8645 = vmatprep.subr.bf16.mxu0 %v11062_v17 }
0x286f   :  { %8647 = vmatpush1.bf16.msra.mxu0 %v11064_v44 }
0x2870   :  { %8649 = vmatprep.subr.bf16.mxu0 %v11066_v7 }
0x2873   :  { %8651 = vmatpush1.bf16.msra.mxu0 %v11071_v58 }
0x2874   :  { %8669 = vmatprep.subr.bf16.mxu0 %v11045_v15 }
0x2939   :  { %v5816_v11 = vpop.f32.mrb[56].mxu0 }
0x293a   :  { %v5818_v63 = vpop.f32.mrb[57].mxu0 }
0x293b   :  { %v5823_v5 = vcombine.low %v5816_v11, %v5818_v63  ;;  %v5979_v63 = vld [vmem:[#allocation6 + $0xc] sm:$0xf] }
0x293d   :  { %v5830_v48 = vrot.slane %v5823_v5, %v9671_v47 }
0x293f   :  { %v5832_v18 = vadd.f32 %v5830_v48, %v5746_v1 }
0x2941   :  { %v5833_v27 = vadd.f32 %v5832_v18, %v11107_v14 }
0x2943   :  { %9010 = vtanh.f32 %v5833_v27 }
0x294d   :  { %v9011_v36 = vpop.eup %9010 }
0x294e   :  { %5838 = vrot.lane.b32.xlu1 %v9011_v36, %s9215_s25  ;;  %v5835_v53 = vmul.f32 0.5, %v9011_v36  ;;  %v5845_v25 = vrot.slane %v9011_v36, 2 }
0x2950   :  { %v5836_v8 = vadd.f32 0.5, %v5835_v53 }
0x2952   :  { %v5847_v52 = vmul.f32 %v5845_v25, %v5836_v8  ;;  %v5844_v9 = vmul.f32 %v5836_v8, %v5734_v33 }
0x2954   :  { %5849 = vrot.lane.b32.xlu0 %v5847_v52, %s9215_s25 }
0x29c0   :  { %v5839_v34 = vpop.permute.xlu1 %5838 }
0x29c1   :  { %v5840_v40 = vrot.slane %v5839_v34, 2 }
0x29c3   :  { %v5842_v23 = vmul.f32 0.5, %v5840_v40 }
0x29c5   :  { %v5843_v29 = vadd.f32 0.5, %v5842_v23 }
0x29c6   :  { %v5850_v16 = vpop.permute.xlu0 %5849 }
0x29c7   :  { %v5852_v10 = vadd.f32 %v5850_v16, %v5844_v9 }
0x29c9   :  { %9012 = vtanh.f32 %v5852_v10 }
0x29d3   :  { %v9013_v4 = vpop.eup %9012 }
0x29d4   :  { %5855 = vrot.lane.b32.xlu0 %v9013_v4, %s9215_s25 }
0x2a46   :  { %v5856_v35 = vpop.permute.xlu0 %5855 }
0x2a47   :  { %v5858_v43 = vmul.f32 %v5856_v35, %v5843_v29 }
0x2a49   :  { %8029 = vmatmul.mubr.msk.f32.vlgmr.msra.gmra.mrb[42].mxu1 %vm1832_vm12, %v5858_v43  ;;  %v5859_v62 = vadd.f32 %v5858_v43, %v11113_v54  ;;  %v5981_v54 = vld [vmem:[#allocation7 + $0x38] sm:$0xf] }
0x2a4a   :  { %8655 = vmatpush1.bf16.msra.mxu1 %v11047_v31  ;;  %6168 = vmatprep.mubr.f32.mxu1 %v9204_v0  ;;  %v5982_v5 = vadd.f32 %v5981_v54, %v5979_v63 }
0x2a4b   :  { %8657 = vmatprep.subr.bf16.mxu1 %v11049_v42 }
0x2a4e   :  { %8659 = vmatpush1.bf16.msra.mxu1 %v11054_v37 }
0x2a4f   :  { %8661 = vmatprep.subr.bf16.mxu1 %v11062_v17 }
0x2a52   :  { %8663 = vmatpush1.bf16.msra.mxu1 %v11064_v44 }
0x2a53   :  { %8665 = vmatprep.subr.bf16.mxu1 %v11066_v7 }
0x2a56   :  { %8667 = vmatpush1.bf16.msra.mxu1 %v11071_v58 }
0x2a57   :  { %8685 = vmatprep.subr.bf16.mxu1 %v11045_v15 }
0x2b1c   :  { %v5934_v41 = vpop.f32.mrb[42].mxu1 }
0x2b1d   :  { %v5936_v38 = vpop.f32.mrb[43].mxu1 }
0x2b1e   :  { %v5941_v49 = vcombine.low %v5934_v41, %v5936_v38  ;;  %v6099_v41 = vld [vmem:[#allocation7 + $0x34] sm:$0xf] }
0x2b20   :  { %v5948_v22 = vrot.slane %v5941_v49, %v9671_v47  ;;  %v6097_v49 = vld [vmem:[#allocation6 + $0x10] sm:$0xf] }
0x2b21   :  { %v6100_v39 = vadd.f32 %v6099_v41, %v6097_v49 }
0x2b22   :  { %v5950_v24 = vadd.f32 %v5948_v22, %v5864_v32 }
0x2b24   :  { %v5951_v60 = vadd.f32 %v5950_v24, %v11107_v14 }
0x2b26   :  { %9014 = vtanh.f32 %v5951_v60 }
0x2b30   :  { %v9015_v30 = vpop.eup %9014 }
0x2b31   :  { %5956 = vrot.lane.b32.xlu0 %v9015_v30, %s9215_s25  ;;  %v5953_v50 = vmul.f32 0.5, %v9015_v30  ;;  %v5963_v28 = vrot.slane %v9015_v30, 2 }
0x2b33   :  { %v5954_v21 = vadd.f32 0.5, %v5953_v50 }
0x2b35   :  { %v5965_v6 = vmul.f32 %v5963_v28, %v5954_v21  ;;  %v5962_v57 = vmul.f32 %v5954_v21, %v5852_v10 }
0x2b37   :  { %5967 = vrot.lane.b32.xlu1 %v5965_v6, %s9215_s25 }
0x2ba3   :  { %v5957_v46 = vpop.permute.xlu0 %5956 }
0x2ba4   :  { %v5958_v26 = vrot.slane %v5957_v46, 2 }
0x2ba6   :  { %v5960_v33 = vmul.f32 0.5, %v5958_v26 }
0x2ba8   :  { %v5961_v59 = vadd.f32 0.5, %v5960_v33 }
0x2ba9   :  { %v5968_v13 = vpop.permute.xlu1 %5967 }
0x2baa   :  { %v5970_v61 = vadd.f32 %v5968_v13, %v5962_v57 }
0x2bac   :  { %9016 = vtanh.f32 %v5970_v61 }
0x2bb6   :  { %v9017_v12 = vpop.eup %9016 }
0x2bb7   :  { %5973 = vrot.lane.b32.xlu1 %v9017_v12, %s9215_s25 }
0x2c29   :  { %v5974_v45 = vpop.permute.xlu1 %5973 }
0x2c2a   :  { %v5976_v3 = vmul.f32 %v5974_v45, %v5961_v59 }
0x2c2c   :  { %v5977_v19 = vadd.f32 %v5976_v3, %v5859_v62  ;;  %8030 = vmatmul.mubr.msk.f32.vlgmr.msra.gmra.mrb[58].mxu0 %vm1832_vm12, %v5976_v3 }
0x2c2d   :  { %8671 = vmatpush1.bf16.msra.mxu0 %v11047_v31  ;;  %6286 = vmatprep.mubr.f32.mxu0 %v9204_v0 }
0x2c2e   :  { %8673 = vmatprep.subr.bf16.mxu0 %v11049_v42 }
0x2c31   :  { %8675 = vmatpush1.bf16.msra.mxu0 %v11054_v37 }
0x2c32   :  { %8677 = vmatprep.subr.bf16.mxu0 %v11062_v17 }
0x2c35   :  { %8679 = vmatpush1.bf16.msra.mxu0 %v11064_v44 }
0x2c36   :  { %8681 = vmatprep.subr.bf16.mxu0 %v11066_v7 }
0x2c39   :  { %8683 = vmatpush1.bf16.msra.mxu0 %v11071_v58 }
0x2c3a   :  { %8701 = vmatprep.subr.bf16.mxu0 %v11045_v15 }
0x2cff   :  { %v6052_v2 = vpop.f32.mrb[58].mxu0 }
0x2d00   :  { %v6054_v11 = vpop.f32.mrb[59].mxu0 }
0x2d01   :  { %v6059_v20 = vcombine.low %v6052_v2, %v6054_v11  ;;  %v6215_v11 = vld [vmem:[#allocation6 + $0x14] sm:$0xf] }
0x2d03   :  { %v6066_v51 = vrot.slane %v6059_v20, %v9671_v47 }
0x2d05   :  { %v6068_v1 = vadd.f32 %v6066_v51, %v5982_v5 }
0x2d07   :  { %v6069_v48 = vadd.f32 %v6068_v1, %v11107_v14 }
0x2d09   :  { %9018 = vtanh.f32 %v6069_v48 }
0x2d13   :  { %v9019_v18 = vpop.eup %9018 }
0x2d14   :  { %6074 = vrot.lane.b32.xlu1 %v9019_v18, %s9215_s25  ;;  %v6071_v27 = vmul.f32 0.5, %v9019_v18  ;;  %v6081_v53 = vrot.slane %v9019_v18, 2 }
0x2d16   :  { %v6072_v36 = vadd.f32 0.5, %v6071_v27 }
0x2d18   :  { %v6083_v8 = vmul.f32 %v6081_v53, %v6072_v36  ;;  %v6080_v25 = vmul.f32 %v6072_v36, %v5970_v61 }
0x2d1a   :  { %6085 = vrot.lane.b32.xlu0 %v6083_v8, %s9215_s25 }
0x2d86   :  { %v6075_v10 = vpop.permute.xlu1 %6074 }
0x2d87   :  { %v6076_v4 = vrot.slane %v6075_v10, 2 }
0x2d89   :  { %v6078_v34 = vmul.f32 0.5, %v6076_v4 }
0x2d8b   :  { %v6079_v40 = vadd.f32 0.5, %v6078_v34 }
0x2d8c   :  { %v6086_v52 = vpop.permute.xlu0 %6085 }
0x2d8d   :  { %v6088_v9 = vadd.f32 %v6086_v52, %v6080_v25 }
0x2d8f   :  { %9020 = vtanh.f32 %v6088_v9 }
0x2d99   :  { %v9021_v16 = vpop.eup %9020 }
0x2d9a   :  { %6091 = vrot.lane.b32.xlu0 %v9021_v16, %s9215_s25 }
0x2e0c   :  { %v6092_v23 = vpop.permute.xlu0 %6091 }
0x2e0d   :  { %v6094_v29 = vmul.f32 %v6092_v23, %v6079_v40 }
0x2e0f   :  { %v6095_v35 = vadd.f32 %v6094_v29, %v5977_v19  ;;  %8031 = vmatmul.mubr.msk.f32.vlgmr.msra.gmra.mrb[44].mxu1 %vm1832_vm12, %v6094_v29  ;;  %v6217_v19 = vld [vmem:[#allocation7 + $0x30] sm:$0xf] }
0x2e10   :  { %8687 = vmatpush1.bf16.msra.mxu1 %v11047_v31  ;;  %6404 = vmatprep.mubr.f32.mxu1 %v9204_v0  ;;  %v6218_v20 = vadd.f32 %v6217_v19, %v6215_v11 }
0x2e11   :  { %8689 = vmatprep.subr.bf16.mxu1 %v11049_v42 }
0x2e14   :  { %8691 = vmatpush1.bf16.msra.mxu1 %v11054_v37 }
0x2e15   :  { %8693 = vmatprep.subr.bf16.mxu1 %v11062_v17 }
0x2e18   :  { %8695 = vmatpush1.bf16.msra.mxu1 %v11064_v44 }
0x2e19   :  { %8697 = vmatprep.subr.bf16.mxu1 %v11066_v7 }
0x2e1c   :  { %8699 = vmatpush1.bf16.msra.mxu1 %v11071_v58 }
0x2e1d   :  { %8717 = vmatprep.subr.bf16.mxu1 %v11045_v15 }
0x2ee2   :  { %v6170_v43 = vpop.f32.mrb[44].mxu1 }
0x2ee3   :  { %v6172_v55 = vpop.f32.mrb[45].mxu1 }
0x2ee4   :  { %v6177_v38 = vcombine.low %v6170_v43, %v6172_v55  ;;  %v6333_v55 = vld [vmem:[#allocation6 + $0x18] sm:$0xf] }
0x2ee6   :  { %v6184_v32 = vrot.slane %v6177_v38, %v9671_v47 }
0x2ee8   :  { %v6186_v22 = vadd.f32 %v6184_v32, %v6100_v39 }
0x2eea   :  { %v6187_v24 = vadd.f32 %v6186_v22, %v11107_v14 }
0x2eec   :  { %9022 = vtanh.f32 %v6187_v24 }
0x2ef6   :  { %v9023_v60 = vpop.eup %9022 }
0x2ef7   :  { %6192 = vrot.lane.b32.xlu0 %v9023_v60, %s9215_s25  ;;  %v6189_v30 = vmul.f32 0.5, %v9023_v60  ;;  %v6199_v21 = vrot.slane %v9023_v60, 2 }
0x2ef9   :  { %v6190_v50 = vadd.f32 0.5, %v6189_v30 }
0x2efb   :  { %v6201_v28 = vmul.f32 %v6199_v21, %v6190_v50  ;;  %v6198_v6 = vmul.f32 %v6190_v50, %v6088_v9 }
0x2efd   :  { %6203 = vrot.lane.b32.xlu1 %v6201_v28, %s9215_s25 }
0x2f69   :  { %v6193_v12 = vpop.permute.xlu0 %6192 }
0x2f6a   :  { %v6194_v46 = vrot.slane %v6193_v12, 2 }
0x2f6c   :  { %v6196_v26 = vmul.f32 0.5, %v6194_v46 }
0x2f6e   :  { %v6197_v33 = vadd.f32 0.5, %v6196_v26 }
0x2f6f   :  { %v6204_v57 = vpop.permute.xlu1 %6203 }
0x2f70   :  { %v6206_v13 = vadd.f32 %v6204_v57, %v6198_v6 }
0x2f72   :  { %9024 = vtanh.f32 %v6206_v13 }
0x2f7c   :  { %v9025_v61 = vpop.eup %9024 }
0x2f7d   :  { %6209 = vrot.lane.b32.xlu1 %v9025_v61, %s9215_s25 }
0x2fef   :  { %v6210_v59 = vpop.permute.xlu1 %6209 }
0x2ff0   :  { %v6212_v45 = vmul.f32 %v6210_v59, %v6197_v33 }
0x2ff2   :  { %v6213_v62 = vadd.f32 %v6212_v45, %v6095_v35  ;;  %8032 = vmatmul.mubr.msk.f32.vlgmr.msra.gmra.mrb[60].mxu0 %vm1832_vm12, %v6212_v45  ;;  %v6335_v35 = vld [vmem:[#allocation7 + $0x2c] sm:$0xf] }
0x2ff3   :  { %8703 = vmatpush1.bf16.msra.mxu0 %v11047_v31  ;;  %6522 = vmatprep.mubr.f32.mxu0 %v9204_v0  ;;  %v6336_v38 = vadd.f32 %v6335_v35, %v6333_v55 }
0x2ff4   :  { %8705 = vmatprep.subr.bf16.mxu0 %v11049_v42 }
0x2ff7   :  { %8707 = vmatpush1.bf16.msra.mxu0 %v11054_v37 }
0x2ff8   :  { %8709 = vmatprep.subr.bf16.mxu0 %v11062_v17 }
0x2ffb   :  { %8711 = vmatpush1.bf16.msra.mxu0 %v11064_v44 }
0x2ffc   :  { %8713 = vmatprep.subr.bf16.mxu0 %v11066_v7 }
0x2fff   :  { %8715 = vmatpush1.bf16.msra.mxu0 %v11071_v58 }
0x3000   :  { %8733 = vmatprep.subr.bf16.mxu0 %v11045_v15 }
0x30c5   :  { %v6288_v3 = vpop.f32.mrb[60].mxu0 }
0x30c6   :  { %v6290_v2 = vpop.f32.mrb[61].mxu0 }
0x30c7   :  { %v6295_v54 = vcombine.low %v6288_v3, %v6290_v2  ;;  %v6451_v2 = vld [vmem:[#allocation6 + $0x1c] sm:$0xf] }
0x30c9   :  { %v6302_v63 = vrot.slane %v6295_v54, %v9671_v47 }
0x30cb   :  { %v6304_v5 = vadd.f32 %v6302_v63, %v6218_v20 }
0x30cd   :  { %v6305_v51 = vadd.f32 %v6304_v5, %v11107_v14 }
0x30cf   :  { %9026 = vtanh.f32 %v6305_v51 }
0x30d9   :  { %v9027_v1 = vpop.eup %9026 }
0x30da   :  { %6310 = vrot.lane.b32.xlu1 %v9027_v1, %s9215_s25  ;;  %v6307_v48 = vmul.f32 0.5, %v9027_v1  ;;  %v6317_v27 = vrot.slane %v9027_v1, 2 }
0x30dc   :  { %v6308_v18 = vadd.f32 0.5, %v6307_v48 }
0x30de   :  { %v6319_v36 = vmul.f32 %v6317_v27, %v6308_v18  ;;  %v6316_v53 = vmul.f32 %v6308_v18, %v6206_v13 }
0x30e0   :  { %6321 = vrot.lane.b32.xlu0 %v6319_v36, %s9215_s25 }
0x314c   :  { %v6311_v9 = vpop.permute.xlu1 %6310 }
0x314d   :  { %v6312_v16 = vrot.slane %v6311_v9, 2 }
0x314f   :  { %v6314_v10 = vmul.f32 0.5, %v6312_v16 }
0x3151   :  { %v6315_v4 = vadd.f32 0.5, %v6314_v10 }
0x3152   :  { %v6322_v8 = vpop.permute.xlu0 %6321 }
0x3153   :  { %v6324_v25 = vadd.f32 %v6322_v8, %v6316_v53 }
0x3155   :  { %9028 = vtanh.f32 %v6324_v25 }
0x315f   :  { %v9029_v52 = vpop.eup %9028 }
0x3160   :  { %6327 = vrot.lane.b32.xlu0 %v9029_v52, %s9215_s25 }
0x31d2   :  { %v6328_v34 = vpop.permute.xlu0 %6327 }
0x31d3   :  { %v6330_v40 = vmul.f32 %v6328_v34, %v6315_v4 }
0x31d5   :  { %v6331_v23 = vadd.f32 %v6330_v40, %v6213_v62  ;;  %8033 = vmatmul.mubr.msk.f32.vlgmr.msra.gmra.mrb[46].mxu1 %vm1832_vm12, %v6330_v40  ;;  %v6453_v62 = vld [vmem:[#allocation7 + $0x28] sm:$0xf] }
0x31d6   :  { %8719 = vmatpush1.bf16.msra.mxu1 %v11047_v31  ;;  %6640 = vmatprep.mubr.f32.mxu1 %v9204_v0  ;;  %v6454_v54 = vadd.f32 %v6453_v62, %v6451_v2 }
0x31d7   :  { %8721 = vmatprep.subr.bf16.mxu1 %v11049_v42 }
0x31da   :  { %8723 = vmatpush1.bf16.msra.mxu1 %v11054_v37 }
0x31db   :  { %8725 = vmatprep.subr.bf16.mxu1 %v11062_v17 }
0x31de   :  { %8727 = vmatpush1.bf16.msra.mxu1 %v11064_v44 }
0x31df   :  { %8729 = vmatprep.subr.bf16.mxu1 %v11066_v7 }
0x31e2   :  { %8731 = vmatpush1.bf16.msra.mxu1 %v11071_v58 }
0x31e3   :  { %8749 = vmatprep.subr.bf16.mxu1 %v11045_v15 }
0x32a8   :  { %v6406_v29 = vpop.f32.mrb[46].mxu1 }
0x32a9   :  { %v6408_v43 = vpop.f32.mrb[47].mxu1 }
0x32aa   :  { %v6413_v41 = vcombine.low %v6406_v29, %v6408_v43  ;;  %v6569_v43 = vld [vmem:[#allocation6 + $0x20] sm:$0xf] }
0x32ac   :  { %v6420_v49 = vrot.slane %v6413_v41, %v9671_v47 }
0x32ae   :  { %v6422_v39 = vadd.f32 %v6420_v49, %v6336_v38 }
0x32b0   :  { %v6423_v32 = vadd.f32 %v6422_v39, %v11107_v14 }
0x32b2   :  { %9030 = vtanh.f32 %v6423_v32 }
0x32bc   :  { %v9031_v22 = vpop.eup %9030 }
0x32bd   :  { %6428 = vrot.lane.b32.xlu0 %v9031_v22, %s9215_s25  ;;  %v6425_v24 = vmul.f32 0.5, %v9031_v22  ;;  %v6435_v30 = vrot.slane %v9031_v22, 2 }
0x32bf   :  { %v6426_v60 = vadd.f32 0.5, %v6425_v24 }
0x32c1   :  { %v6437_v50 = vmul.f32 %v6435_v30, %v6426_v60  ;;  %v6434_v21 = vmul.f32 %v6426_v60, %v6324_v25 }
0x32c3   :  { %6439 = vrot.lane.b32.xlu1 %v6437_v50, %s9215_s25 }
0x332f   :  { %v6429_v13 = vpop.permute.xlu0 %6428 }
0x3330   :  { %v6430_v61 = vrot.slane %v6429_v13, 2 }
0x3332   :  { %v6432_v12 = vmul.f32 0.5, %v6430_v61 }
0x3334   :  { %v6433_v46 = vadd.f32 0.5, %v6432_v12 }
0x3335   :  { %v6440_v28 = vpop.permute.xlu1 %6439 }
0x3336   :  { %v6442_v6 = vadd.f32 %v6440_v28, %v6434_v21 }
0x3338   :  { %9032 = vtanh.f32 %v6442_v6 }
0x3342   :  { %v9033_v57 = vpop.eup %9032 }
0x3343   :  { %6445 = vrot.lane.b32.xlu1 %v9033_v57, %s9215_s25 }
0x33b5   :  { %v6446_v26 = vpop.permute.xlu1 %6445 }
0x33b6   :  { %v6448_v33 = vmul.f32 %v6446_v26, %v6433_v46 }
0x33b8   :  { %v6449_v59 = vadd.f32 %v6448_v33, %v6331_v23  ;;  %8034 = vmatmul.mubr.msk.f32.vlgmr.msra.gmra.mrb[62].mxu0 %vm1832_vm12, %v6448_v33  ;;  %v6571_v23 = vld [vmem:[#allocation7 + $0x24] sm:$0xf] }
0x33b9   :  { %8735 = vmatpush1.bf16.msra.mxu0 %v11047_v31  ;;  %6758 = vmatprep.mubr.f32.mxu0 %v9204_v0  ;;  %v6572_v41 = vadd.f32 %v6571_v23, %v6569_v43 }
0x33ba   :  { %8737 = vmatprep.subr.bf16.mxu0 %v11049_v42 }
0x33bd   :  { %8739 = vmatpush1.bf16.msra.mxu0 %v11054_v37 }
0x33be   :  { %8741 = vmatprep.subr.bf16.mxu0 %v11062_v17 }
0x33c1   :  { %8743 = vmatpush1.bf16.msra.mxu0 %v11064_v44 }
0x33c2   :  { %8745 = vmatprep.subr.bf16.mxu0 %v11066_v7 }
0x33c5   :  { %8747 = vmatpush1.bf16.msra.mxu0 %v11071_v58 }
0x33c6   :  { %8765 = vmatprep.subr.bf16.mxu0 %v11045_v15 }
0x348b   :  { %v6524_v45 = vpop.f32.mrb[62].mxu0 }
0x348c   :  { %v6526_v3 = vpop.f32.mrb[63].mxu0 }
0x348d   :  { %v6531_v19 = vcombine.low %v6524_v45, %v6526_v3  ;;  %v6687_v3 = vld [vmem:[#allocation6 + $0x24] sm:$0xf] }
0x348f   :  { %v6538_v11 = vrot.slane %v6531_v19, %v9671_v47 }
0x3491   :  { %v6540_v20 = vadd.f32 %v6538_v11, %v6454_v54 }
0x3493   :  { %v6541_v63 = vadd.f32 %v6540_v20, %v11107_v14 }
0x3495   :  { %9034 = vtanh.f32 %v6541_v63 }
0x349f   :  { %v9035_v5 = vpop.eup %9034 }
0x34a0   :  { %6546 = vrot.lane.b32.xlu1 %v9035_v5, %s9215_s25  ;;  %v6543_v51 = vmul.f32 0.5, %v9035_v5  ;;  %v6553_v48 = vrot.slane %v9035_v5, 2 }
0x34a2   :  { %v6544_v1 = vadd.f32 0.5, %v6543_v51 }
0x34a4   :  { %v6555_v18 = vmul.f32 %v6553_v48, %v6544_v1  ;;  %v6552_v27 = vmul.f32 %v6544_v1, %v6442_v6 }
0x34a6   :  { %6557 = vrot.lane.b32.xlu0 %v6555_v18, %s9215_s25 }
0x3512   :  { %v6547_v25 = vpop.permute.xlu1 %6546 }
0x3513   :  { %v6548_v52 = vrot.slane %v6547_v25, 2 }
0x3515   :  { %v6550_v9 = vmul.f32 0.5, %v6548_v52 }
0x3517   :  { %v6551_v16 = vadd.f32 0.5, %v6550_v9 }
0x3518   :  { %v6558_v36 = vpop.permute.xlu0 %6557 }
0x3519   :  { %v6560_v53 = vadd.f32 %v6558_v36, %v6552_v27 }
0x351b   :  { %9036 = vtanh.f32 %v6560_v53 }
0x3525   :  { %v9037_v8 = vpop.eup %9036 }
0x3526   :  { %6563 = vrot.lane.b32.xlu0 %v9037_v8, %s9215_s25 }
0x3598   :  { %v6564_v10 = vpop.permute.xlu0 %6563 }
0x3599   :  { %v6566_v4 = vmul.f32 %v6564_v10, %v6551_v16 }
0x359b   :  { %v6567_v34 = vadd.f32 %v6566_v4, %v6449_v59  ;;  %8035 = vmatmul.mubr.msk.f32.vlgmr.msra.gmra.mrb[48].mxu1 %vm1832_vm12, %v6566_v4  ;;  %v6689_v59 = vld [vmem:[#allocation7 + $0x20] sm:$0xf] }
0x359c   :  { %8751 = vmatpush1.bf16.msra.mxu1 %v11047_v31  ;;  %6876 = vmatprep.mubr.f32.mxu1 %v9204_v0  ;;  %v6690_v19 = vadd.f32 %v6689_v59, %v6687_v3 }
0x359d   :  { %8753 = vmatprep.subr.bf16.mxu1 %v11049_v42 }
0x35a0   :  { %8755 = vmatpush1.bf16.msra.mxu1 %v11054_v37 }
0x35a1   :  { %8757 = vmatprep.subr.bf16.mxu1 %v11062_v17 }
0x35a4   :  { %8759 = vmatpush1.bf16.msra.mxu1 %v11064_v44 }
0x35a5   :  { %8761 = vmatprep.subr.bf16.mxu1 %v11066_v7 }
0x35a8   :  { %8763 = vmatpush1.bf16.msra.mxu1 %v11071_v58 }
0x35a9   :  { %8781 = vmatprep.subr.bf16.mxu1 %v11045_v15 }
0x366e   :  { %v6642_v40 = vpop.f32.mrb[48].mxu1 }
0x366f   :  { %v6644_v29 = vpop.f32.mrb[49].mxu1 }
0x3670   :  { %v6649_v35 = vcombine.low %v6642_v40, %v6644_v29  ;;  %v6805_v29 = vld [vmem:[#allocation6 + $0x28] sm:$0xf] }
0x3672   :  { %v6656_v55 = vrot.slane %v6649_v35, %v9671_v47 }
0x3674   :  { %v6658_v38 = vadd.f32 %v6656_v55, %v6572_v41 }
0x3676   :  { %v6659_v49 = vadd.f32 %v6658_v38, %v11107_v14 }
0x3678   :  { %9038 = vtanh.f32 %v6659_v49 }
0x3682   :  { %v9039_v39 = vpop.eup %9038 }
0x3683   :  { %6664 = vrot.lane.b32.xlu0 %v9039_v39, %s9215_s25  ;;  %v6661_v32 = vmul.f32 0.5, %v9039_v39  ;;  %v6671_v24 = vrot.slane %v9039_v39, 2 }
0x3685   :  { %v6662_v22 = vadd.f32 0.5, %v6661_v32 }
0x3687   :  { %v6673_v60 = vmul.f32 %v6671_v24, %v6662_v22  ;;  %v6670_v30 = vmul.f32 %v6662_v22, %v6560_v53 }
0x3689   :  { %6675 = vrot.lane.b32.xlu1 %v6673_v60, %s9215_s25 }
0x36f5   :  { %v6665_v6 = vpop.permute.xlu0 %6664 }
0x36f6   :  { %v6666_v57 = vrot.slane %v6665_v6, 2 }
0x36f8   :  { %v6668_v13 = vmul.f32 0.5, %v6666_v57 }
0x36fa   :  { %v6669_v61 = vadd.f32 0.5, %v6668_v13 }
0x36fb   :  { %v6676_v50 = vpop.permute.xlu1 %6675 }
0x36fc   :  { %v6678_v21 = vadd.f32 %v6676_v50, %v6670_v30 }
0x36fe   :  { %9040 = vtanh.f32 %v6678_v21 }
0x3708   :  { %v9041_v28 = vpop.eup %9040 }
0x3709   :  { %6681 = vrot.lane.b32.xlu1 %v9041_v28, %s9215_s25 }
0x377b   :  { %v6682_v12 = vpop.permute.xlu1 %6681 }
0x377c   :  { %v6684_v46 = vmul.f32 %v6682_v12, %v6669_v61 }
0x377e   :  { %v6685_v26 = vadd.f32 %v6684_v46, %v6567_v34  ;;  %8036 = vmatmul.mubr.msk.f32.vlgmr.msra.gmra.mrb[64].mxu0 %vm1832_vm12, %v6684_v46  ;;  %v6807_v34 = vld [vmem:[#allocation7 + $0x1c] sm:$0xf] }
0x377f   :  { %8767 = vmatpush1.bf16.msra.mxu0 %v11047_v31  ;;  %6994 = vmatprep.mubr.f32.mxu0 %v9204_v0  ;;  %v6808_v35 = vadd.f32 %v6807_v34, %v6805_v29 }
0x3780   :  { %8769 = vmatprep.subr.bf16.mxu0 %v11049_v42 }
0x3783   :  { %8771 = vmatpush1.bf16.msra.mxu0 %v11054_v37 }
0x3784   :  { %8773 = vmatprep.subr.bf16.mxu0 %v11062_v17 }
0x3787   :  { %8775 = vmatpush1.bf16.msra.mxu0 %v11064_v44 }
0x3788   :  { %8777 = vmatprep.subr.bf16.mxu0 %v11066_v7 }
0x378b   :  { %8779 = vmatpush1.bf16.msra.mxu0 %v11071_v58 }
0x378c   :  { %8797 = vmatprep.subr.bf16.mxu0 %v11045_v15 }
0x3851   :  { %v6760_v33 = vpop.f32.mrb[64].mxu0 }
0x3852   :  { %v6762_v45 = vpop.f32.mrb[65].mxu0 }
0x3853   :  { %v6767_v62 = vcombine.low %v6760_v33, %v6762_v45  ;;  %v6923_v45 = vld [vmem:[#allocation6 + $0x2c] sm:$0xf] }
0x3855   :  { %v6774_v2 = vrot.slane %v6767_v62, %v9671_v47 }
0x3857   :  { %v6776_v54 = vadd.f32 %v6774_v2, %v6690_v19 }
0x3859   :  { %v6777_v11 = vadd.f32 %v6776_v54, %v11107_v14 }
0x385b   :  { %9042 = vtanh.f32 %v6777_v11 }
0x3865   :  { %v9043_v20 = vpop.eup %9042 }
0x3866   :  { %6782 = vrot.lane.b32.xlu1 %v9043_v20, %s9215_s25  ;;  %v6779_v63 = vmul.f32 0.5, %v9043_v20  ;;  %v6789_v51 = vrot.slane %v9043_v20, 2 }
0x3868   :  { %v6780_v5 = vadd.f32 0.5, %v6779_v63 }
0x386a   :  { %v6791_v1 = vmul.f32 %v6789_v51, %v6780_v5  ;;  %v6788_v48 = vmul.f32 %v6780_v5, %v6678_v21 }
0x386c   :  { %6793 = vrot.lane.b32.xlu0 %v6791_v1, %s9215_s25 }
0x38d8   :  { %v6783_v53 = vpop.permute.xlu1 %6782 }
0x38d9   :  { %v6784_v8 = vrot.slane %v6783_v53, 2 }
0x38db   :  { %v6786_v25 = vmul.f32 0.5, %v6784_v8 }
0x38dd   :  { %v6787_v52 = vadd.f32 0.5, %v6786_v25 }
0x38de   :  { %v6794_v18 = vpop.permute.xlu0 %6793 }
0x38df   :  { %v6796_v27 = vadd.f32 %v6794_v18, %v6788_v48 }
0x38e1   :  { %9044 = vtanh.f32 %v6796_v27 }
0x38eb   :  { %v9045_v36 = vpop.eup %9044 }
0x38ec   :  { %6799 = vrot.lane.b32.xlu0 %v9045_v36, %s9215_s25 }
0x395e   :  { %v6800_v9 = vpop.permute.xlu0 %6799 }
0x395f   :  { %v6802_v16 = vmul.f32 %v6800_v9, %v6787_v52 }
0x3961   :  { %v6803_v10 = vadd.f32 %v6802_v16, %v6685_v26  ;;  %8037 = vmatmul.mubr.msk.f32.vlgmr.msra.gmra.mrb[50].mxu1 %vm1832_vm12, %v6802_v16  ;;  %v6925_v26 = vld [vmem:[#allocation7 + $0x18] sm:$0xf] }
0x3962   :  { %8783 = vmatpush1.bf16.msra.mxu1 %v11047_v31  ;;  %7112 = vmatprep.mubr.f32.mxu1 %v9204_v0  ;;  %v6926_v62 = vadd.f32 %v6925_v26, %v6923_v45 }
0x3963   :  { %8785 = vmatprep.subr.bf16.mxu1 %v11049_v42 }
0x3966   :  { %8787 = vmatpush1.bf16.msra.mxu1 %v11054_v37 }
0x3967   :  { %8789 = vmatprep.subr.bf16.mxu1 %v11062_v17 }
0x396a   :  { %8791 = vmatpush1.bf16.msra.mxu1 %v11064_v44 }
0x396b   :  { %8793 = vmatprep.subr.bf16.mxu1 %v11066_v7 }
0x396e   :  { %8795 = vmatpush1.bf16.msra.mxu1 %v11071_v58 }
0x396f   :  { %8813 = vmatprep.subr.bf16.mxu1 %v11045_v15 }
0x3a34   :  { %v6878_v4 = vpop.f32.mrb[50].mxu1 }
0x3a35   :  { %v6880_v40 = vpop.f32.mrb[51].mxu1 }
0x3a36   :  { %v6885_v23 = vcombine.low %v6878_v4, %v6880_v40  ;;  %v7041_v40 = vld [vmem:[#allocation6 + $0x30] sm:$0xf] }
0x3a38   :  { %v6892_v43 = vrot.slane %v6885_v23, %v9671_v47 }
0x3a3a   :  { %v6894_v41 = vadd.f32 %v6892_v43, %v6808_v35 }
0x3a3c   :  { %v6895_v55 = vadd.f32 %v6894_v41, %v11107_v14 }
0x3a3e   :  { %9046 = vtanh.f32 %v6895_v55 }
0x3a48   :  { %v9047_v38 = vpop.eup %9046 }
0x3a49   :  { %6900 = vrot.lane.b32.xlu0 %v9047_v38, %s9215_s25  ;;  %v6897_v49 = vmul.f32 0.5, %v9047_v38  ;;  %v6907_v32 = vrot.slane %v9047_v38, 2 }
0x3a4b   :  { %v6898_v39 = vadd.f32 0.5, %v6897_v49 }
0x3a4d   :  { %v6909_v22 = vmul.f32 %v6907_v32, %v6898_v39  ;;  %v6906_v24 = vmul.f32 %v6898_v39, %v6796_v27 }
0x3a4f   :  { %6911 = vrot.lane.b32.xlu1 %v6909_v22, %s9215_s25 }
0x3abb   :  { %v6901_v21 = vpop.permute.xlu0 %6900 }
0x3abc   :  { %v6902_v28 = vrot.slane %v6901_v21, 2 }
0x3abe   :  { %v6904_v6 = vmul.f32 0.5, %v6902_v28 }
0x3ac0   :  { %v6905_v57 = vadd.f32 0.5, %v6904_v6 }
0x3ac1   :  { %v6912_v60 = vpop.permute.xlu1 %6911 }
0x3ac2   :  { %v6914_v30 = vadd.f32 %v6912_v60, %v6906_v24 }
0x3ac4   :  { %9048 = vtanh.f32 %v6914_v30 }
0x3ace   :  { %v9049_v50 = vpop.eup %9048 }
0x3acf   :  { %6917 = vrot.lane.b32.xlu1 %v9049_v50, %s9215_s25 }
0x3b41   :  { %v6918_v13 = vpop.permute.xlu1 %6917 }
0x3b42   :  { %v6920_v61 = vmul.f32 %v6918_v13, %v6905_v57 }
0x3b44   :  { %v6921_v12 = vadd.f32 %v6920_v61, %v6803_v10  ;;  %8038 = vmatmul.mubr.msk.f32.vlgmr.msra.gmra.mrb[66].mxu0 %vm1832_vm12, %v6920_v61  ;;  %v7043_v10 = vld [vmem:[#allocation7 + $0x14] sm:$0xf] }
0x3b45   :  { %8799 = vmatpush1.bf16.msra.mxu0 %v11047_v31  ;;  %7230 = vmatprep.mubr.f32.mxu0 %v9204_v0  ;;  %v7044_v23 = vadd.f32 %v7043_v10, %v7041_v40  ;;  %v7277_v10 = vld [vmem:[#allocation6 + $0x38] sm:$0xf] }
0x3b46   :  { %8801 = vmatprep.subr.bf16.mxu0 %v11049_v42 }
0x3b49   :  { %8803 = vmatpush1.bf16.msra.mxu0 %v11054_v37 }
0x3b4a   :  { %8805 = vmatprep.subr.bf16.mxu0 %v11062_v17 }
0x3b4d   :  { %8807 = vmatpush1.bf16.msra.mxu0 %v11064_v44 }
0x3b4e   :  { %8809 = vmatprep.subr.bf16.mxu0 %v11066_v7 }
0x3b51   :  { %8811 = vmatpush1.bf16.msra.mxu0 %v11071_v58 }
0x3b52   :  { %8829 = vmatprep.subr.bf16.mxu0 %v11045_v15 }
0x3c17   :  { %v6996_v46 = vpop.f32.mrb[66].mxu0 }
0x3c18   :  { %v6998_v33 = vpop.f32.mrb[67].mxu0 }
0x3c19   :  { %v7003_v59 = vcombine.low %v6996_v46, %v6998_v33  ;;  %v7159_v33 = vld [vmem:[#allocation6 + $0x34] sm:$0xf] }
0x3c1b   :  { %v7010_v3 = vrot.slane %v7003_v59, %v9671_v47 }
0x3c1d   :  { %v7012_v19 = vadd.f32 %v7010_v3, %v6926_v62 }
0x3c1f   :  { %v7013_v2 = vadd.f32 %v7012_v19, %v11107_v14 }
0x3c21   :  { %9050 = vtanh.f32 %v7013_v2 }
0x3c2b   :  { %v9051_v54 = vpop.eup %9050 }
0x3c2c   :  { %7018 = vrot.lane.b32.xlu1 %v9051_v54, %s9215_s25  ;;  %v7015_v11 = vmul.f32 0.5, %v9051_v54  ;;  %v7025_v63 = vrot.slane %v9051_v54, 2 }
0x3c2e   :  { %v7016_v20 = vadd.f32 0.5, %v7015_v11 }
0x3c30   :  { %v7027_v5 = vmul.f32 %v7025_v63, %v7016_v20  ;;  %v7024_v51 = vmul.f32 %v7016_v20, %v6914_v30 }
0x3c32   :  { %7029 = vrot.lane.b32.xlu0 %v7027_v5, %s9215_s25 }
0x3c9e   :  { %v7019_v27 = vpop.permute.xlu1 %7018 }
0x3c9f   :  { %v7020_v36 = vrot.slane %v7019_v27, 2 }
0x3ca1   :  { %v7022_v53 = vmul.f32 0.5, %v7020_v36 }
0x3ca3   :  { %v7023_v8 = vadd.f32 0.5, %v7022_v53 }
0x3ca4   :  { %v7030_v1 = vpop.permute.xlu0 %7029 }
0x3ca5   :  { %v7032_v48 = vadd.f32 %v7030_v1, %v7024_v51 }
0x3ca7   :  { %9052 = vtanh.f32 %v7032_v48 }
0x3cb1   :  { %v9053_v18 = vpop.eup %9052 }
0x3cb2   :  { %7035 = vrot.lane.b32.xlu0 %v9053_v18, %s9215_s25 }
0x3d24   :  { %v7036_v25 = vpop.permute.xlu0 %7035 }
0x3d25   :  { %v7038_v52 = vmul.f32 %v7036_v25, %v7023_v8 }
0x3d27   :  { %v7039_v9 = vadd.f32 %v7038_v52, %v6921_v12  ;;  %8039 = vmatmul.mubr.msk.f32.vlgmr.msra.gmra.mrb[52].mxu1 %vm1832_vm12, %v7038_v52  ;;  %v7161_v12 = vld [vmem:[#allocation7 + $0x10] sm:$0xf]  ;;  %v7279_v52 = vld [vmem:[#allocation7 + $0xc] sm:$0xf] }
0x3d28   :  { %8815 = vmatpush1.bf16.msra.mxu1 %v11047_v31  ;;  %7348 = vmatprep.mubr.f32.mxu1 %v9204_v0  ;;  %v7162_v59 = vadd.f32 %v7161_v12, %v7159_v33 }
0x3d29   :  { %8817 = vmatprep.subr.bf16.mxu1 %v11049_v42 }
0x3d2c   :  { %8819 = vmatpush1.bf16.msra.mxu1 %v11054_v37 }
0x3d2d   :  { %8821 = vmatprep.subr.bf16.mxu1 %v11062_v17 }
0x3d30   :  { %8823 = vmatpush1.bf16.msra.mxu1 %v11064_v44 }
0x3d31   :  { %8825 = vmatprep.subr.bf16.mxu1 %v11066_v7 }
0x3d34   :  { %8827 = vmatpush1.bf16.msra.mxu1 %v11071_v58 }
0x3d35   :  { %8845 = vmatprep.subr.bf16.mxu1 %v11045_v15 }
0x3dfa   :  { %v7114_v16 = vpop.f32.mrb[52].mxu1 }
0x3dfb   :  { %v7116_v4 = vpop.f32.mrb[53].mxu1 }
0x3dfc   :  { %v7121_v34 = vcombine.low %v7114_v16, %v7116_v4  ;;  %v7280_v4 = vadd.f32 %v7279_v52, %v7277_v10 }
0x3dfe   :  { %v7128_v29 = vrot.slane %v7121_v34, %v9671_v47 }
0x3e00   :  { %v7130_v35 = vadd.f32 %v7128_v29, %v7044_v23 }
0x3e02   :  { %v7131_v43 = vadd.f32 %v7130_v35, %v11107_v14 }
0x3e04   :  { %9054 = vtanh.f32 %v7131_v43 }
0x3e0e   :  { %v9055_v41 = vpop.eup %9054 }
0x3e0f   :  { %7136 = vrot.lane.b32.xlu0 %v9055_v41, %s9215_s25  ;;  %v7133_v55 = vmul.f32 0.5, %v9055_v41  ;;  %v7143_v49 = vrot.slane %v9055_v41, 2 }
0x3e11   :  { %v7134_v38 = vadd.f32 0.5, %v7133_v55 }
0x3e13   :  { %v7145_v39 = vmul.f32 %v7143_v49, %v7134_v38  ;;  %v7142_v32 = vmul.f32 %v7134_v38, %v7032_v48 }
0x3e15   :  { %7147 = vrot.lane.b32.xlu1 %v7145_v39, %s9215_s25 }
0x3e81   :  { %v7137_v30 = vpop.permute.xlu0 %7136 }
0x3e82   :  { %v7138_v50 = vrot.slane %v7137_v30, 2 }
0x3e84   :  { %v7140_v21 = vmul.f32 0.5, %v7138_v50 }
0x3e86   :  { %v7141_v28 = vadd.f32 0.5, %v7140_v21 }
0x3e87   :  { %v7148_v22 = vpop.permute.xlu1 %7147 }
0x3e88   :  { %v7150_v24 = vadd.f32 %v7148_v22, %v7142_v32 }
0x3e8a   :  { %9056 = vtanh.f32 %v7150_v24 }
0x3e94   :  { %v9057_v60 = vpop.eup %9056 }
0x3e95   :  { %7153 = vrot.lane.b32.xlu1 %v9057_v60, %s9215_s25 }
0x3f07   :  { %v7154_v6 = vpop.permute.xlu1 %7153 }
0x3f08   :  { %v7156_v57 = vmul.f32 %v7154_v6, %v7141_v28 }
0x3f0a   :  { %v7157_v13 = vadd.f32 %v7156_v57, %v7039_v9  ;;  %8040 = vmatmul.mubr.msk.f32.vlgmr.msra.gmra.mrb[68].mxu0 %vm1832_vm12, %v7156_v57  ;;  %v7397_v57 = vld [vmem:[#allocation7 + $0x8] sm:$0xf] }
0x3f0b   :  { %8831 = vmatpush1.bf16.msra.mxu0 %v11047_v31  ;;  %7466 = vmatprep.mubr.f32.mxu0 %v9204_v0 }
0x3f0c   :  { %8833 = vmatprep.subr.bf16.mxu0 %v11049_v42 }
0x3f0f   :  { %8835 = vmatpush1.bf16.msra.mxu0 %v11054_v37 }
0x3f10   :  { %8837 = vmatprep.subr.bf16.mxu0 %v11062_v17 }
0x3f13   :  { %8839 = vmatpush1.bf16.msra.mxu0 %v11064_v44 }
0x3f14   :  { %8841 = vmatprep.subr.bf16.mxu0 %v11066_v7 }
0x3f17   :  { %8843 = vmatpush1.bf16.msra.mxu0 %v11071_v58 }
0x3f18   :  { %8861 = vmatprep.subr.bf16.mxu0 %v11045_v15 }
0x3fdd   :  { %v7232_v61 = vpop.f32.mrb[68].mxu0 }
0x3fde   :  { %v7234_v46 = vpop.f32.mrb[69].mxu0 }
0x3fdf   :  { %v7239_v26 = vcombine.low %v7232_v61, %v7234_v46  ;;  %v7395_v61 = vld [vmem:[#allocation6 + $0x3c] sm:$0xf] }
0x3fe0   :  { %v7398_v12 = vadd.f32 %v7397_v57, %v7395_v61 }
0x3fe1   :  { %v7246_v45 = vrot.slane %v7239_v26, %v9671_v47 }
0x3fe3   :  { %v7248_v62 = vadd.f32 %v7246_v45, %v7162_v59 }
0x3fe5   :  { %v7249_v3 = vadd.f32 %v7248_v62, %v11107_v14 }
0x3fe7   :  { %9058 = vtanh.f32 %v7249_v3 }
0x3ff1   :  { %v9059_v19 = vpop.eup %9058 }
0x3ff2   :  { %7254 = vrot.lane.b32.xlu1 %v9059_v19, %s9215_s25  ;;  %v7251_v2 = vmul.f32 0.5, %v9059_v19  ;;  %v7261_v11 = vrot.slane %v9059_v19, 2 }
0x3ff4   :  { %v7252_v54 = vadd.f32 0.5, %v7251_v2 }
0x3ff6   :  { %v7263_v20 = vmul.f32 %v7261_v11, %v7252_v54  ;;  %v7260_v15 = vmul.f32 %v7252_v54, %v7150_v24 }
0x3ff8   :  { %7265 = vrot.lane.b32.xlu0 %v7263_v20, %s9215_s25 }
0x4064   :  { %v7255_v1 = vpop.permute.xlu1 %7254 }
0x4065   :  { %v7256_v48 = vrot.slane %v7255_v1, 2 }
0x4067   :  { %v7258_v18 = vmul.f32 0.5, %v7256_v48  ;;  %v7515_v48 = vld [vmem:[#allocation7 + $0x4] sm:$0xf] }
0x4069   :  { %v7259_v27 = vadd.f32 0.5, %v7258_v18 }
0x406a   :  { %v7266_v63 = vpop.permute.xlu0 %7265 }
0x406b   :  { %v7268_v5 = vadd.f32 %v7266_v63, %v7260_v15 }
0x406d   :  { %9060 = vtanh.f32 %v7268_v5 }
0x4077   :  { %v9061_v51 = vpop.eup %9060 }
0x4078   :  { %7271 = vrot.lane.b32.xlu0 %v9061_v51, %s9215_s25 }
0x40ea   :  { %v7272_v36 = vpop.permute.xlu0 %7271 }
0x40eb   :  { %v7274_v53 = vmul.f32 %v7272_v36, %v7259_v27 }
0x40ed   :  { %v7275_v8 = vadd.f32 %v7274_v53, %v7157_v13  ;;  %8041 = vmatmul.mubr.msk.f32.vlgmr.msra.gmra.mrb[54].mxu1 %vm1832_vm12, %v7274_v53 }
0x40ee   :  { %8847 = vmatpush1.bf16.msra.mxu1 %v11047_v31  ;;  %7584 = vmatprep.mubr.f32.mxu1 %v9204_v0 }
0x40ef   :  { %8849 = vmatprep.subr.bf16.mxu1 %v11049_v42 }
0x40f2   :  { %8851 = vmatpush1.bf16.msra.mxu1 %v11054_v37 }
0x40f3   :  { %8853 = vmatprep.subr.bf16.mxu1 %v11062_v17 }
0x40f6   :  { %8855 = vmatpush1.bf16.msra.mxu1 %v11064_v44 }
0x40f7   :  { %8857 = vmatprep.subr.bf16.mxu1 %v11066_v7 }
0x40fa   :  { %8859 = vmatpush1.bf16.msra.mxu1 %v11071_v58 }
0x40fb   :  { %8876 = vmatprep.subr.bf16.mxu1 %v9210_v56 }
0x41c0   :  { %v7350_v25 = vpop.f32.mrb[54].mxu1 }
0x41c1   :  { %v7352_v9 = vpop.f32.mrb[55].mxu1 }
0x41c2   :  { %v7357_v16 = vcombine.low %v7350_v25, %v7352_v9 }
0x41c4   :  { %v7364_v34 = vrot.slane %v7357_v16, %v9671_v47 }
0x41c6   :  { %v7366_v40 = vadd.f32 %v7364_v34, %v7280_v4 }
0x41c8   :  { %v7367_v23 = vadd.f32 %v7366_v40, %v11107_v14 }
0x41ca   :  { %9062 = vtanh.f32 %v7367_v23 }
0x41d4   :  { %v9063_v29 = vpop.eup %9062 }
0x41d5   :  { %7372 = vrot.lane.b32.xlu0 %v9063_v29, %s9215_s25  ;;  %v7369_v35 = vmul.f32 0.5, %v9063_v29  ;;  %v7379_v41 = vrot.slane %v9063_v29, 2 }
0x41d7   :  { %v7370_v43 = vadd.f32 0.5, %v7369_v35 }
0x41d9   :  { %v7381_v55 = vmul.f32 %v7379_v41, %v7370_v43  ;;  %v7378_v38 = vmul.f32 %v7370_v43, %v7268_v5  ;;  %v7513_v5 = vld [vmem:[#allocation6 + $0x40] sm:$0xf] }
0x41da   :  { %v7516_v18 = vadd.f32 %v7515_v48, %v7513_v5  ;;  %v7843_v5 = vld [vmem:[%s11478_s15 + $0x30] sm:$0xff]  ;;  %v7845_v48 = vld [vmem:[%s11478_s15 + $0x40] sm:$0xff] }
0x41db   :  { %7383 = vrot.lane.b32.xlu1 %v7381_v55, %s9215_s25 }
0x4247   :  { %v7373_v22 = vpop.permute.xlu0 %7372 }
0x4248   :  { %v7374_v24 = vrot.slane %v7373_v22, 2 }
0x424a   :  { %v7376_v60 = vmul.f32 0.5, %v7374_v24  ;;  %v7632_v24 = vld [vmem:[#allocation7] sm:$0xf] }
0x424c   :  { %v7377_v30 = vadd.f32 0.5, %v7376_v60 }
0x424d   :  { %v7384_v49 = vpop.permute.xlu1 %7383 }
0x424e   :  { %v7386_v39 = vadd.f32 %v7384_v49, %v7378_v38 }
0x4250   :  { %9064 = vtanh.f32 %v7386_v39 }
0x425a   :  { %v9065_v32 = vpop.eup %9064 }
0x425b   :  { %7389 = vrot.lane.b32.xlu1 %v9065_v32, %s9215_s25 }
0x42cd   :  { %v7390_v50 = vpop.permute.xlu1 %7389 }
0x42ce   :  { %v7392_v21 = vmul.f32 %v7390_v50, %v7377_v30 }
0x42d0   :  { %v7393_v28 = vadd.f32 %v7392_v21, %v7275_v8  ;;  %8042 = vmatmul.mubr.msk.f32.vlgmr.msra.gmra.mrb[70].mxu0 %vm1832_vm12, %v7392_v21 }
0x42d1   :  { %8863 = vmatpush1.bf16.msra.mxu0 %v11047_v31  ;;  %7701 = vmatprep.mubr.f32.mxu0 %v9204_v0 }
0x42d2   :  { %8865 = vmatprep.subr.bf16.mxu0 %v11049_v42 }
0x42d5   :  { %8867 = vmatpush1.bf16.msra.mxu0 %v11054_v37 }
0x42d6   :  { %8869 = vmatprep.subr.bf16.mxu0 %v11062_v17 }
0x42d9   :  { %8871 = vmatpush1.bf16.msra.mxu0 %v11064_v44 }
0x42da   :  { %8873 = vmatprep.subr.bf16.mxu0 %v11066_v7 }
0x42dd   :  { %8875 = vmatpush1.bf16.msra.mxu0 %v11071_v58 }
0x42de   :  { %8888 = vmatprep.subr.bf16.mxu0 %v9210_v56 }
0x43a3   :  { %v7468_v6 = vpop.f32.mrb[70].mxu0 }
0x43a4   :  { %v7470_v13 = vpop.f32.mrb[71].mxu0 }
0x43a5   :  { %v7475_v31 = vcombine.low %v7468_v6, %v7470_v13 }
0x43a7   :  { %v7482_v42 = vrot.slane %v7475_v31, %v9671_v47 }
0x43a9   :  { %v7484_v46 = vadd.f32 %v7482_v42, %v7398_v12  ;;  %v7751_v12 = vld [vmem:[%s11476_s13 + $0x18] sm:$0xff] }
0x43ab   :  { %v7485_v37 = vadd.f32 %v7484_v46, %v11107_v14  ;;  %v7752_v46 = vld [vmem:[%s11476_s13 + $0x20] sm:$0xff] }
0x43ad   :  { %9066 = vtanh.f32 %v7485_v37  ;;  %v7753_v37 = vld [vmem:[%s11476_s13 + $0x28] sm:$0xff] }
0x43b7   :  { %v9067_v17 = vpop.eup %9066 }
0x43b8   :  { %7490 = vrot.lane.b32.xlu1 %v9067_v17, %s9215_s25  ;;  %v7487_v44 = vmul.f32 0.5, %v9067_v17  ;;  %v7497_v58 = vrot.slane %v9067_v17, 2  ;;  %v8883_v17 = vpack.c.bf16 %v7753_v37, %v7752_v46 }
0x43ba   :  { %v7488_v7 = vadd.f32 0.5, %v7487_v44 }
0x43bc   :  { %v7499_v26 = vmul.f32 %v7497_v58, %v7488_v7  ;;  %v7496_v33 = vmul.f32 %v7488_v7, %v7386_v39  ;;  %v7631_v39 = vld [vmem:[#allocation6 + $0x44] sm:$0xf] }
0x43bd   :  { %v7633_v60 = vadd.f32 %v7632_v24, %v7631_v39 }
0x43be   :  { %7501 = vrot.lane.b32.xlu0 %v7499_v26, %s9215_s25  ;;  %v7754_v26 = vld [vmem:[%s11476_s13 + $0x30] sm:$0xff] }
0x442a   :  { %v7491_v3 = vpop.permute.xlu1 %7490 }
0x442b   :  { %v7492_v19 = vrot.slane %v7491_v3, 2  ;;  %v7839_v3 = vld [vmem:[%s11478_s15 + $0x10] sm:$0xff] }
0x442d   :  { %v7494_v2 = vmul.f32 0.5, %v7492_v19 }
0x442f   :  { %v7495_v54 = vadd.f32 0.5, %v7494_v2  ;;  %v7840_v2 = vld [vmem:[%s11478_s15 + $0x18] sm:$0xff] }
0x4430   :  { %v7502_v59 = vpop.permute.xlu0 %7501 }
0x4431   :  { %v7504_v45 = vadd.f32 %v7502_v59, %v7496_v33  ;;  %v7755_v33 = vld [vmem:[%s11476_s13 + $0x38] sm:$0xff] }
0x4432   :  { %v8886_v59 = vpack.c.bf16 %v7755_v33, %v7754_v26 }
0x4433   :  { %9068 = vtanh.f32 %v7504_v45 }
0x443d   :  { %v9069_v62 = vpop.eup %9068 }
0x443e   :  { %7507 = vrot.lane.b32.xlu0 %v9069_v62, %s9215_s25  ;;  %v7838_v62 = vld [vmem:[%s11478_s15 + $0x8] sm:$0xff] }
0x44b0   :  { %v7508_v11 = vpop.permute.xlu0 %7507 }
0x44b1   :  { %v7510_v20 = vmul.f32 %v7508_v11, %v7495_v54  ;;  %v8892_v54 = vpack.c.bf16 %v7840_v2, %v7839_v3  ;;  %v7841_v11 = vld [vmem:[%s11478_s15 + $0x20] sm:$0xff] }
0x44b3   :  { %v7511_v15 = vadd.f32 %v7510_v20, %v7393_v28  ;;  %8043 = vmatmul.mubr.msk.f32.vlgmr.msra.gmra.mrb[56].mxu1 %vm1832_vm12, %v7510_v20  ;;  %v7842_v20 = vld [vmem:[%s11478_s15 + $0x28] sm:$0xff] }
0x44b4   :  { %8163 = vmatprep.mubr.msk.f32.mxu1 %vm9211_vm1, %v9204_v0 }
0x4586   :  { %v7586_v63 = vpop.f32.mrb[56].mxu1 }
0x4587   :  { %v7588_v51 = vpop.f32.mrb[57].mxu1 }
0x4588   :  { %v7593_v1 = vcombine.low %v7586_v63, %v7588_v51  ;;  %v8895_v63 = vpack.c.bf16 %v7842_v20, %v7841_v11  ;;  %v7844_v51 = vld [vmem:[%s11478_s15 + $0x38] sm:$0xff] }
0x458a   :  { %v7600_v27 = vrot.slane %v7593_v1, %v9671_v47  ;;  %v8898_v1 = vpack.c.bf16 %v7844_v51, %v7843_v5 }
0x458c   :  { %v7602_v36 = vadd.f32 %v7600_v27, %v7516_v18  ;;  %v7846_v18 = vld [vmem:[%s11478_s15 + $0x48] sm:$0xff] }
0x458d   :  { %v8901_v27 = vpack.c.bf16 %v7846_v18, %v7845_v48 }
0x458e   :  { %v7603_v53 = vadd.f32 %v7602_v36, %v11107_v14  ;;  %v7847_v36 = vld [vmem:[%s11478_s15 + $0x50] sm:$0xff] }
0x4590   :  { %9070 = vtanh.f32 %v7603_v53  ;;  %v7848_v53 = vld [vmem:[%s11478_s15 + $0x58] sm:$0xff] }
0x459a   :  { %v9071_v8 = vpop.eup %9070 }
0x459b   :  { %7608 = vrot.lane.b32.xlu0 %v9071_v8, %s9215_s25  ;;  %v7605_v25 = vmul.f32 0.5, %v9071_v8  ;;  %v7615_v9 = vrot.slane %v9071_v8, 2  ;;  %v8904_v8 = vpack.c.bf16 %v7848_v53, %v7847_v36 }
0x459d   :  { %v7606_v52 = vadd.f32 0.5, %v7605_v25  ;;  %v7849_v25 = vld [vmem:[%s11478_s15 + $0x60] sm:$0xff] }
0x459f   :  { %v7617_v16 = vmul.f32 %v7615_v9, %v7606_v52  ;;  %v7614_v10 = vmul.f32 %v7606_v52, %v7504_v45  ;;  %v7837_v45 = vld [vmem:[%s11478_s15] sm:$0xff]  ;;  %v7850_v52 = vld [vmem:[%s11478_s15 + $0x68] sm:$0xff] }
0x45a0   :  { %v8889_v19 = vpack.c.bf16 %v7838_v62, %v7837_v45  ;;  %v8907_v9 = vpack.c.bf16 %v7850_v52, %v7849_v25 }
0x45a1   :  { %7619 = vrot.lane.b32.xlu1 %v7617_v16, %s9215_s25 }
0x460d   :  { %v7609_v23 = vpop.permute.xlu0 %7608 }
0x460e   :  { %v7610_v29 = vrot.slane %v7609_v23, 2 }
0x4610   :  { %v7612_v35 = vmul.f32 0.5, %v7610_v29 }
0x4612   :  { %v7613_v43 = vadd.f32 0.5, %v7612_v35 }
0x4613   :  { %v7620_v4 = vpop.permute.xlu1 %7619 }
0x4614   :  { %v7622_v34 = vadd.f32 %v7620_v4, %v7614_v10 }
0x4616   :  { %9072 = vtanh.f32 %v7622_v34 }
0x4620   :  { %v9073_v40 = vpop.eup %9072 }
0x4621   :  { %7625 = vrot.lane.b32.xlu1 %v9073_v40, %s9215_s25 }
0x4693   :  { %v7626_v41 = vpop.permute.xlu1 %7625 }
0x4694   :  { %v7628_v55 = vmul.f32 %v7626_v41, %v7613_v43  ;;  %v7851_v43 = vld [vmem:[%s11478_s15 + $0x70] sm:$0xff]  ;;  %v7852_v41 = vld [vmem:[%s11478_s15 + $0x78] sm:$0xff] }
0x4696   :  { %v11350_v38 = vadd.f32 %v7628_v55, %v7511_v15  ;;  %8044 = vmatmul.mubr.msk.f32.vlgmr.msra.gmra.mrb[72].mxu0 %vm1832_vm12, %v7628_v55  ;;  %v8045_v55 = vld [vmem:[%s11477_s14] ss:$0 sm:$0xff] }
0x4697   :  { %8198 = vmatprep.mubr.msk.f32.mxu0 %vm9211_vm1, %v9204_v0  ;;  %v7748_v0 = vld [vmem:[%s11476_s13] sm:$0xff]  ;;  %8890 = vmatpush3.bf16.msra.mxu0 %v8889_v19 }
0x4698   :  { %8891 = vmatprep.subr.bf16.mxu0 %v9210_v56 }
0x469b   :  { %8893 = vmatpush3.bf16.msra.mxu0 %v8892_v54 }
0x469c   :  { %8894 = vmatprep.subr.bf16.mxu0 %v9210_v56 }
0x469f   :  { %8896 = vmatpush3.bf16.msra.mxu0 %v8895_v63 }
0x46a0   :  { %8897 = vmatprep.subr.bf16.mxu0 %v9210_v56 }
0x46a3   :  { %8899 = vmatpush3.bf16.msra.mxu0 %v8898_v1 }
0x46a4   :  { %8900 = vmatprep.subr.bf16.mxu0 %v9210_v56 }
0x46a7   :  { %8902 = vmatpush3.bf16.msra.mxu0 %v8901_v27 }
0x46a8   :  { %8903 = vmatprep.subr.bf16.mxu0 %v9210_v56 }
0x46ab   :  { %8905 = vmatpush3.bf16.msra.mxu0 %v8904_v8 }
0x46ac   :  { %8906 = vmatprep.subr.bf16.mxu0 %v9210_v56 }
0x46af   :  { %8908 = vmatpush3.bf16.msra.mxu0 %v8907_v9 }
0x46b0   :  { %8909 = vmatprep.subr.bf16.mxu0 %v9210_v56 }
0x4769   :  { %v7703_v49 = vpop.f32.mrb[72].mxu0 }
0x476a   :  { %v7705_v32 = vpop.f32.mrb[73].mxu0 }
0x476b   :  { %v7710_v22 = vcombine.low %v7703_v49, %v7705_v32 }
0x476d   :  { %v7717_v30 = vrot.slane %v7710_v22, %v9671_v47  ;;  %v7749_v47 = vld [vmem:[%s11476_s13 + $0x8] sm:$0xff]  ;;  %v8047_v22 = vld [vmem:[%s11479_s16] ss:$0 sm:$0xff] }
0x476e   :  { %v8877_v61 = vpack.c.bf16 %v7749_v47, %v7748_v0 }
0x476f   :  { %v7719_v50 = vadd.f32 %v7717_v30, %v7633_v60 }
0x4770   :  { %8878 = vmatpush3.bf16.msra.mxu1 %v8877_v61 }
0x4771   :  { %v7720_v21 = vadd.f32 %v7719_v50, %v11107_v14  ;;  %v7750_v14 = vld [vmem:[%s11476_s13 + $0x10] sm:$0xff]  ;;  %8879 = vmatprep.subr.bf16.mxu1 %v9210_v56  ;;  %s9217_s13 = smov [#allocation17]  }
0x4772   :  { %v8880_v42 = vpack.c.bf16 %v7751_v12, %v7750_v14  ;;  %s7937_s8 = sshll.u32 %s9217_s13, 4  ;;  %s7938_s8 = int_to_ptr.vmem [resolvable:$true] %s7937_s8 }
0x4773   :  { %9074 = vtanh.f32 %v7720_v21  ;;  %s9166_s15 = scalar_lea.vmem %s7938_s8, 32  ;;  %p9171_p5 = scmp.lt.s32.totalorder %s7938_s8, %s7938_s8 }
0x4774   :  { %8881 = vmatpush3.bf16.msra.mxu1 %v8880_v42  ;;  %p9167_p4 = scmp.ne.s32.totalorder %s7938_s8, %s9166_s15  ;;  %p9172_p6 = scmp.lt.s32.totalorder %s9166_s15, %s9166_s15 }
0x4775   :  { %8882 = vmatprep.subr.bf16.mxu1 %v9210_v56 }
0x4776   :  { %p9173_p7 = por %p9172_p6, %p9171_p5 }
0x4778   :  { %8884 = vmatpush3.bf16.msra.mxu1 %v8883_v17  ;;  %p9174_p8 = pnand %p9173_p7, %p9167_p4 }
0x4779   :  { %8885 = vmatprep.subr.bf16.mxu1 %v9210_v56  ;;  %v8910_v56 = vpack.c.bf16 %v7852_v41, %v7851_v43 }
0x477b   :  { %8911 = vmatpush3.bf16.msra.mxu0 %v8910_v56 }
0x477c   :  { %8887 = vmatpush3.bf16.msra.mxu1 %v8886_v59 }
0x477d   :  { %v9075_v28 = vpop.eup %9074 }
0x477e   :  { %7725 = vrot.lane.b32.xlu1 %v9075_v28, %s9215_s25  ;;  %v7722_v6 = vmul.f32 0.5, %v9075_v28  ;;  %v7732_v13 = vrot.slane %v9075_v28, 2 }
0x4780   :  { %v7723_v57 = vadd.f32 0.5, %v7722_v6 }
0x4782   :  { %v7734_v31 = vmul.f32 %v7732_v13, %v7723_v57  ;;  %v7731_v44 = vmul.f32 %v7723_v57, %v7622_v34 }
0x4784   :  { %7736 = vrot.lane.b32.xlu0 %v7734_v31, %s9215_s25 }
0x47f0   :  { %v7726_v16 = vpop.permute.xlu1 %7725 }
0x47f1   :  { %v7727_v10 = vrot.slane %v7726_v16, 2 }
0x47f3   :  { %v7729_v4 = vmul.f32 0.5, %v7727_v10 }
0x47f5   :  { %v7730_v34 = vadd.f32 0.5, %v7729_v4 }
0x47f6   :  { %v7737_v7 = vpop.permute.xlu0 %7736 }
0x47f7   :  { %v7739_v58 = vadd.f32 %v7737_v7, %v7731_v44 }
0x47f9   :  { %9076 = vtanh.f32 %v7739_v58 }
0x4803   :  { %v9077_v15 = vpop.eup %9076 }
0x4804   :  { %7742 = vrot.lane.b32.xlu0 %v9077_v15, %s9215_s25 }
0x4876   :  { %v7743_v40 = vpop.permute.xlu0 %7742 }
0x4877   :  { %v7745_v23 = vmul.f32 %v7743_v40, %v7730_v34 }
0x4879   :  { %v7746_v29 = vadd.f32 %v7745_v23, %v11350_v38 }
0x487b   :  { %v7747_v35 = vmul.f32 0.055555556, %v7746_v29 }
0x487d   :  { %8164 = vmatmul.mubr.msk.f32.vlgmr.msra.gmra.mrb[58].mxu1 %vm1832_vm12, %v7747_v35 }
0x4950   :  { %v7832_v49 = vpop.f32.mrb[58].mxu1 }
0x4951   :  { %v7833_v39 = vadd.f32 %v8045_v55, %v7832_v49  ;;  %v8165_v38 = vpop.f32.mrb[59].mxu1 }
0x4953   :  { %v7836_v32 = vmax.f32 %v7833_v39, 0.0 }
0x4955   :  { %8199 = vmatmul.mubr.f32.vlgmr.msra.gmra.mrb[74].mxu0 %v7836_v32 }
0x4a28   :  { %v7926_v24 = vpop.f32.mrb[74].mxu0 }
0x4a29   :  { %v7927_v60 = vadd.f32 %v8047_v22, %v7926_v24  ;;  %v8200_v30 = vpop.f32.mrb[75].mxu0 }
0x4a2b   :  { %7930 = vst.msk [vmem:[#allocation17] sm:$0x3] %vm112_vm0, %v7927_v60 }
0x4a2c   :  { %9177 = shalt.err (!%p9174_p8)
}
0x4a2d   :  { %s11495_s12 = sld [smem:[#allocation24_spill]] }
0x4a33   :  { %s9178_s5 = scalar_lea.hbm %s11495_s12, 32 }
0x4a34   :  { %p9179_p9 = scmp.ne.s32.totalorder %s11495_s12, %s9178_s5  ;;  %p9182_p10 = scmp.lt.u32.totalorder %s9178_s5, %s11495_s12 }
0x4a36   :  { %p9184_p11 = pnand %p9182_p10, %p9179_p9 }
0x4a38   :  { %9187 = shalt.err (!%p9184_p11)
}
0x4a39   :  { %7940 = dma.vmem_to_hbm [thread:$0]  %s7938_s8, 32, %s11495_s12, [#allocation11]  }
0x4a3a   :  { %9194 = dma.done.wait [#allocation11], 32  }
0x4a3b   :  { %9195 = vsyncadd [#allocation11], 4294967264 }
0x4a3c   :  { %7944 = vsyncpa [#allocation10], 1 }
0x4a3d   :  { %7945 = vsyncpa [#allocation13], 1 }
0x4a3e   :  { %7946 = vsyncpa [#allocation16], 1 }
0x4a3f   :  { %7947 = vsyncpa [#allocation11], 1 }

</bundles_post_ra>
